<compile_context>
chip_gen: v7x
topology: tpu7x:2x2x1
jax: 0.10.0
libtpu: 0.0.40
codegen_flags: <defaults>
</compile_context>

<pallas_src>
import math

import jax
import jax.numpy as jnp
from jax.experimental import pallas as pl
from jax.experimental.pallas import tpu as pltpu

IN_FEATURES = 300 * 300          # 90000
DIMS = [(IN_FEATURES, 1024), (1024, 512), (512, 256), (256, 1)]

L1_TK = 8192                     # layer-1 reduction tile (90112 = 11 * 8192)
L1_NB = 512                      # layer-1 output-feature tile (2 "parallel" blocks)


def _round_up(v, m):
    return (v + m - 1) // m * m


# ----------------------------------------------------------------------------
# Layer 1: x(Mp,Kp) @ int8-quantized W1(Kp,1024); per-output-channel dequant
# scale + bias + ReLU fused into the final K step.  Accumulation happens
# directly in the resident f32 output block (no extra scratch).
# ----------------------------------------------------------------------------
def _linear1_kernel(x_ref, w_ref, s_ref, b_ref, o_ref):
    k = pl.program_id(1)

    @pl.when(k == 0)
    def _():
        o_ref[...] = jnp.zeros_like(o_ref)

    # int8 -> bf16 is exact (|q| <= 127); the VPU dequant hides under the
    # dominant weight DMA.
    w_blk = w_ref[...].astype(jnp.bfloat16)
    o_ref[...] += jnp.dot(x_ref[...], w_blk, preferred_element_type=jnp.float32)

    @pl.when(k == pl.num_programs(1) - 1)
    def _():
        # (x @ q) * scale == x @ (q * scale); then bias + ReLU.
        o_ref[...] = jnp.maximum(o_ref[...] * s_ref[...] + b_ref[...], 0.0)


def _layer1(hp, w1q, s1, b1p):
    """hp:(Mp,Kp) bf16, w1q:(Kp,1024) int8, s1:(1,1024) f32, b1p:(1,1024) f32
    -> (Mp,1024) f32."""
    Mp, Kp = hp.shape
    _, N1 = w1q.shape
    grid = (N1 // L1_NB, Kp // L1_TK)          # reduction axis last

    cost = pl.CostEstimate(
        flops=2 * Mp * Kp * N1,
        transcendentals=0,
        bytes_accessed=Kp * N1 * 1 + Mp * Kp * 2 + Mp * N1 * 4 + N1 * 8,
    )

    return pl.pallas_call(
        _linear1_kernel,
        out_shape=jax.ShapeDtypeStruct((Mp, N1), jnp.float32),
        grid_spec=pltpu.PrefetchScalarGridSpec(
            num_scalar_prefetch=0,
            grid=grid,
            in_specs=[
                pl.BlockSpec((Mp, L1_TK), lambda j, k: (0, k)),     # x
                pl.BlockSpec((L1_TK, L1_NB), lambda j, k: (k, j)),  # int8 weight
                pl.BlockSpec((1, L1_NB), lambda j, k: (0, j)),      # dequant scale
                pl.BlockSpec((1, L1_NB), lambda j, k: (0, j)),      # bias
            ],
            out_specs=pl.BlockSpec((Mp, L1_NB), lambda j, k: (0, j)),
        ),
        compiler_params=pltpu.CompilerParams(
            dimension_semantics=("parallel", "arbitrary"),
            vmem_limit_bytes=40 * 1024 * 1024,
        ),
        cost_estimate=cost,
    )(hp, w1q, s1, b1p)


# ----------------------------------------------------------------------------
# Layers 2+3+4 fused: all weights (<1.5 MB bf16) fit in VMEM, single call.
# ----------------------------------------------------------------------------
def _tail_kernel(h_ref, w2_ref, b2_ref, w3_ref, b3_ref, w4_ref, b4_ref, o_ref):
    h1 = h_ref[...].astype(jnp.bfloat16)
    y2 = jnp.dot(h1, w2_ref[...], preferred_element_type=jnp.float32) + b2_ref[...]
    h2 = jnp.maximum(y2, 0.0).astype(jnp.bfloat16)
    y3 = jnp.dot(h2, w3_ref[...], preferred_element_type=jnp.float32) + b3_ref[...]
    h3 = jnp.maximum(y3, 0.0).astype(jnp.bfloat16)
    y4 = jnp.dot(h3, w4_ref[...], preferred_element_type=jnp.float32) + b4_ref[...]
    o_ref[...] = jax.nn.sigmoid(y4)


def _tail(h1, w2, b2, w3, b3, w4p, b4p):
    Mp = h1.shape[0]
    Np4 = w4p.shape[1]
    return pl.pallas_call(
        _tail_kernel,
        out_shape=jax.ShapeDtypeStruct((Mp, Np4), jnp.float32),
    )(h1, w2, b2, w3, b3, w4p, b4p)


# ----------------------------------------------------------------------------
# Parameters
# ----------------------------------------------------------------------------
def init_params(key):
    """f32 parameters matching nn.Linear's U(-1/sqrt(fan_in), 1/sqrt(fan_in)).
    Weights stored as (in, out) so forward computes h @ W + b."""
    params = []
    for fan_in, fan_out in DIMS:
        key, kw, kb = jax.random.split(key, 3)
        bound = 1.0 / math.sqrt(fan_in)
        w = jax.random.uniform(kw, (fan_in, fan_out), jnp.float32, -bound, bound)
        b = jax.random.uniform(kb, (fan_out,), jnp.float32, -bound, bound)
        params.append((w, b))
    return params


def prepare_kernel_params(params):
    """One-time quantize/pad/cast of the weights (NOT done per forward call)."""
    (w1, b1), (w2, b2), (w3, b3), (w4, b4) = params

    # Layer 1: symmetric int8 per-output-channel quantization + K padding.
    K1, N1 = w1.shape
    absmax = jnp.max(jnp.abs(w1), axis=0, keepdims=True)            # (1, N1)
    s1 = jnp.maximum(absmax, 1e-12) / 127.0                          # (1, N1) f32
    q1 = jnp.clip(jnp.round(w1 / s1), -127, 127).astype(jnp.int8)
    Kp1 = _round_up(K1, L1_TK)                                       # 90000 -> 90112
    w1q = jnp.zeros((Kp1, N1), jnp.int8).at[:K1, :].set(q1)
    b1p = b1.reshape(1, N1).astype(jnp.float32)

    # Layer 4: pad the single output feature to a full 128-lane tile.
    K4, N4 = w4.shape
    Np4 = _round_up(N4, 128)
    w4p = jnp.zeros((K4, Np4), jnp.bfloat16).at[:, :N4].set(w4.astype(jnp.bfloat16))
    b4p = jnp.zeros((1, Np4), jnp.float32).at[0, :N4].set(b4)

    return {
        "w1q": w1q, "s1": s1.astype(jnp.float32), "b1p": b1p,
        "w2": w2.astype(jnp.bfloat16), "b2": b2.reshape(1, -1).astype(jnp.float32),
        "w3": w3.astype(jnp.bfloat16), "b3": b3.reshape(1, -1).astype(jnp.float32),
        "w4p": w4p, "b4p": b4p,
    }


# ----------------------------------------------------------------------------
# Forward
# ----------------------------------------------------------------------------
def discriminator_forward(x, kparams):
    B = x.shape[0]
    h = x.reshape(B, IN_FEATURES).astype(jnp.bfloat16)   # x.view(x.size(0), 300*300)

    Kp1 = kparams["w1q"].shape[0]
    Mp = max(16, _round_up(B, 16))        # bf16 sublane packing: 16x128 per vreg
    # Only the small activation is padded per call (a few MB at most).
    hp = jnp.zeros((Mp, Kp1), jnp.bfloat16).at[:B, :IN_FEATURES].set(h)

    h1 = _layer1(hp, kparams["w1q"], kparams["s1"], kparams["b1p"])   # L1 + ReLU
    out = _tail(h1, kparams["w2"], kparams["b2"],
                kparams["w3"], kparams["b3"],
                kparams["w4p"], kparams["b4p"])            # L2/L3 ReLU + L4 Sigmoid
    return out[:B, :1]                                     # (B, 1)


def discriminator_forward_ref(x, params):
    """Pure-JAX f32 reference for correctness checking."""
    B = x.shape[0]
    h = x.reshape(B, IN_FEATURES)
    (w1, b1), (w2, b2), (w3, b3), (w4, b4) = params
    h = jnp.maximum(h @ w1 + b1, 0.0)
    h = jnp.maximum(h @ w2 + b2, 0.0)
    h = jnp.maximum(h @ w3 + b3, 0.0)
    return jax.nn.sigmoid(h @ w4 + b4)


if __name__ == "__main__":
    key = jax.random.PRNGKey(0)
    key, kx = jax.random.split(key)

    B = 2
    # NCHW image input, flattened inside forward (module requires 300x300 spatial).
    x = jax.random.normal(kx, (B, 1, 300, 300), dtype=jnp.float32)

    params = init_params(key)
    kparams = prepare_kernel_params(params)     # one-time quantize/pad, not per call

    fwd = jax.jit(discriminator_forward)
    out = fwd(x, kparams)
    out = jax.block_until_ready(out)

    ref = discriminator_forward_ref(x, params)
    assert out.shape == (B, 1)
    # int8 per-channel weights + bf16 activations vs f32 reference -> loose tolerance.
    assert jnp.allclose(out, ref, atol=1e-2, rtol=1e-2), (out, ref)

    print("KERNEL_OK")
</pallas_src>

<mosaic_0001>
module attributes {stable_mosaic.version = 11 : i64} {
  func.func @_linear1_kernel(%arg0: i32, %arg1: i32, %arg2: memref<16x8192xbf16, #tpu.memory_space<vmem>>, %arg3: memref<8192x512xi8, #tpu.memory_space<vmem>>, %arg4: memref<1x512xf32, #tpu.memory_space<vmem>>, %arg5: memref<1x512xf32, #tpu.memory_space<vmem>>, %arg6: memref<16x512xf32, #tpu.memory_space<vmem>>) attributes {dimension_semantics = [#tpu.dimension_semantics<parallel>, #tpu.dimension_semantics<arbitrary>], iteration_bounds = array<i64: 2, 11>, scalar_prefetch = 0 : i64, scratch_operands = 0 : i64, tpu.core_type = #tpu.core_type<tc>, window_params = [{transform_indices = @transform_0, window_bounds = array<i64: 16, 8192>}, {transform_indices = @transform_1, window_bounds = array<i64: 8192, 512>}, {transform_indices = @transform_2, window_bounds = array<i64: 1, 512>}, {transform_indices = @transform_3, window_bounds = array<i64: 1, 512>}, {transform_indices = @transform_4, window_bounds = array<i64: 16, 512>}]} {
    %c0_i32 = arith.constant 0 : i32
    %0 = arith.cmpi eq, %arg1, %c0_i32 : i32
    %1 = arith.extui %0 : i1 to i32
    %c0_i32_0 = arith.constant 0 : i32
    %2 = arith.cmpi ne, %1, %c0_i32_0 : i32
    scf.if %2 {
      %cst_9 = arith.constant 0.000000e+00 : f32
      %13 = vector.broadcast %cst_9 : f32 to vector<16x512xf32>
      %c0_10 = arith.constant 0 : index
      %c0_11 = arith.constant 0 : index
      %14 = vector.load %arg6[%c0_10, %c0_11] : memref<16x512xf32, #tpu.memory_space<vmem>>, vector<16x512xf32>
      tpu.vector_store %arg6[%c0_10, %c0_11], %13 {strides = array<i32>} : memref<16x512xf32, #tpu.memory_space<vmem>>, vector<16x512xf32>,
    } else {
    }
    %c0 = arith.constant 0 : index
    %c0_1 = arith.constant 0 : index
    %3 = vector.load %arg3[%c0, %c0_1] : memref<8192x512xi8, #tpu.memory_space<vmem>>, vector<8192x512xi8>
    %4 = arith.sitofp %3 : vector<8192x512xi8> to vector<8192x512xbf16>
    %c0_2 = arith.constant 0 : index
    %c0_3 = arith.constant 0 : index
    %5 = vector.load %arg6[%c0_2, %c0_3] : memref<16x512xf32, #tpu.memory_space<vmem>>, vector<16x512xf32>
    %c0_4 = arith.constant 0 : index
    %c0_5 = arith.constant 0 : index
    %6 = vector.load %arg2[%c0_4, %c0_5] : memref<16x8192xbf16, #tpu.memory_space<vmem>>, vector<16x8192xbf16>
    %cst = arith.constant dense<0.000000e+00> : vector<16x512xf32>
    %7 = tpu.matmul %6, %4, %cst {dimension_numbers = #tpu.dot_dimension_numbers<[1], [0], [0], [1], [0, 0, 1, 1], [], []>} : vector<16x8192xbf16>, vector<8192x512xbf16>, vector<16x512xf32> -> vector<16x512xf32>
    %8 = arith.addf %5, %7 : vector<16x512xf32>
    %c0_6 = arith.constant 0 : index
    %c0_7 = arith.constant 0 : index
    %9 = vector.load %arg6[%c0_6, %c0_7] : memref<16x512xf32, #tpu.memory_space<vmem>>, vector<16x512xf32>
    tpu.vector_store %arg6[%c0_6, %c0_7], %8 {strides = array<i32>} : memref<16x512xf32, #tpu.memory_space<vmem>>, vector<16x512xf32>,
    %c10_i32 = arith.constant 10 : i32
    %10 = arith.cmpi eq, %arg1, %c10_i32 : i32
    %11 = arith.extui %10 : i1 to i32
    %c0_i32_8 = arith.constant 0 : i32
    %12 = arith.cmpi ne, %11, %c0_i32_8 : i32
    scf.if %12 {
      %c0_9 = arith.constant 0 : index
      %c0_10 = arith.constant 0 : index
      %13 = vector.load %arg6[%c0_9, %c0_10] : memref<16x512xf32, #tpu.memory_space<vmem>>, vector<16x512xf32>
      %c0_11 = arith.constant 0 : index
      %c0_12 = arith.constant 0 : index
      %14 = vector.load %arg4[%c0_11, %c0_12] : memref<1x512xf32, #tpu.memory_space<vmem>>, vector<1x512xf32>
      %15 = vector.broadcast %14 : vector<1x512xf32> to vector<16x512xf32>
      %16 = arith.mulf %13, %15 : vector<16x512xf32>
      %c0_13 = arith.constant 0 : index
      %c0_14 = arith.constant 0 : index
      %17 = vector.load %arg5[%c0_13, %c0_14] : memref<1x512xf32, #tpu.memory_space<vmem>>, vector<1x512xf32>
      %18 = vector.broadcast %17 : vector<1x512xf32> to vector<16x512xf32>
      %19 = arith.addf %16, %18 : vector<16x512xf32>
      %cst_15 = arith.constant 0.000000e+00 : f32
      %20 = vector.broadcast %cst_15 : f32 to vector<16x512xf32>
      %21 = arith.maximumf %19, %20 : vector<16x512xf32>
      %c0_16 = arith.constant 0 : index
      %c0_17 = arith.constant 0 : index
      %22 = vector.load %arg6[%c0_16, %c0_17] : memref<16x512xf32, #tpu.memory_space<vmem>>, vector<16x512xf32>
      tpu.vector_store %arg6[%c0_16, %c0_17], %21 {strides = array<i32>} : memref<16x512xf32, #tpu.memory_space<vmem>>, vector<16x512xf32>,
    } else {
    }
    return
  }
  func.func @transform_0(%arg0: i32, %arg1: i32) -> (i32, i32) {
    %c0_i32 = arith.constant 0 : i32
    %c0_i32_0 = arith.constant 0 : i32
    return %c0_i32, %arg1 : i32, i32
  }
  func.func @transform_1(%arg0: i32, %arg1: i32) -> (i32, i32) {
    %c0_i32 = arith.constant 0 : i32
    return %arg1, %arg0 : i32, i32
  }
  func.func @transform_2(%arg0: i32, %arg1: i32) -> (i32, i32) {
    %c0_i32 = arith.constant 0 : i32
    %c0_i32_0 = arith.constant 0 : i32
    return %c0_i32, %arg0 : i32, i32
  }
  func.func @transform_3(%arg0: i32, %arg1: i32) -> (i32, i32) {
    %c0_i32 = arith.constant 0 : i32
    %c0_i32_0 = arith.constant 0 : i32
    return %c0_i32, %arg0 : i32, i32
  }
  func.func @transform_4(%arg0: i32, %arg1: i32) -> (i32, i32) {
    %c0_i32 = arith.constant 0 : i32
    %c0_i32_0 = arith.constant 0 : i32
    return %c0_i32, %arg0 : i32, i32
  }
}

module attributes {stable_mosaic.version = 11 : i64} {
  func.func @_tail_kernel(%arg0: memref<16x1024xf32, #tpu.memory_space<vmem>>, %arg1: memref<1024x512xbf16, #tpu.memory_space<vmem>>, %arg2: memref<1x512xf32, #tpu.memory_space<vmem>>, %arg3: memref<512x256xbf16, #tpu.memory_space<vmem>>, %arg4: memref<1x256xf32, #tpu.memory_space<vmem>>, %arg5: memref<256x128xbf16, #tpu.memory_space<vmem>>, %arg6: memref<1x128xf32, #tpu.memory_space<vmem>>, %arg7: memref<16x128xf32, #tpu.memory_space<vmem>>) attributes {dimension_semantics = [], scalar_prefetch = 0 : i64, scratch_operands = 0 : i64, tpu.core_type = #tpu.core_type<tc>} {
    %c0 = arith.constant 0 : index
    %c0_0 = arith.constant 0 : index
    %0 = vector.load %arg0[%c0, %c0_0] : memref<16x1024xf32, #tpu.memory_space<vmem>>, vector<16x1024xf32>
    %1 = arith.truncf %0 : vector<16x1024xf32> to vector<16x1024xbf16>
    %c0_1 = arith.constant 0 : index
    %c0_2 = arith.constant 0 : index
    %2 = vector.load %arg1[%c0_1, %c0_2] : memref<1024x512xbf16, #tpu.memory_space<vmem>>, vector<1024x512xbf16>
    %cst = arith.constant dense<0.000000e+00> : vector<16x512xf32>
    %3 = tpu.matmul %1, %2, %cst {dimension_numbers = #tpu.dot_dimension_numbers<[1], [0], [0], [1], [0, 0, 1, 1], [], []>} : vector<16x1024xbf16>, vector<1024x512xbf16>, vector<16x512xf32> -> vector<16x512xf32>
    %c0_3 = arith.constant 0 : index
    %c0_4 = arith.constant 0 : index
    %4 = vector.load %arg2[%c0_3, %c0_4] : memref<1x512xf32, #tpu.memory_space<vmem>>, vector<1x512xf32>
    %5 = vector.broadcast %4 : vector<1x512xf32> to vector<16x512xf32>
    %6 = arith.addf %3, %5 : vector<16x512xf32>
    %cst_5 = arith.constant 0.000000e+00 : f32
    %7 = vector.broadcast %cst_5 : f32 to vector<16x512xf32>
    %8 = arith.maximumf %6, %7 : vector<16x512xf32>
    %9 = arith.truncf %8 : vector<16x512xf32> to vector<16x512xbf16>
    %c0_6 = arith.constant 0 : index
    %c0_7 = arith.constant 0 : index
    %10 = vector.load %arg3[%c0_6, %c0_7] : memref<512x256xbf16, #tpu.memory_space<vmem>>, vector<512x256xbf16>
    %cst_8 = arith.constant dense<0.000000e+00> : vector<16x256xf32>
    %11 = tpu.matmul %9, %10, %cst_8 {dimension_numbers = #tpu.dot_dimension_numbers<[1], [0], [0], [1], [0, 0, 1, 1], [], []>} : vector<16x512xbf16>, vector<512x256xbf16>, vector<16x256xf32> -> vector<16x256xf32>
    %c0_9 = arith.constant 0 : index
    %c0_10 = arith.constant 0 : index
    %12 = vector.load %arg4[%c0_9, %c0_10] : memref<1x256xf32, #tpu.memory_space<vmem>>, vector<1x256xf32>
    %13 = vector.broadcast %12 : vector<1x256xf32> to vector<16x256xf32>
    %14 = arith.addf %11, %13 : vector<16x256xf32>
    %cst_11 = arith.constant 0.000000e+00 : f32
    %15 = vector.broadcast %cst_11 : f32 to vector<16x256xf32>
    %16 = arith.maximumf %14, %15 : vector<16x256xf32>
    %17 = arith.truncf %16 : vector<16x256xf32> to vector<16x256xbf16>
    %c0_12 = arith.constant 0 : index
    %c0_13 = arith.constant 0 : index
    %18 = vector.load %arg5[%c0_12, %c0_13] : memref<256x128xbf16, #tpu.memory_space<vmem>>, vector<256x128xbf16>
    %cst_14 = arith.constant dense<0.000000e+00> : vector<16x128xf32>
    %19 = tpu.matmul %17, %18, %cst_14 {dimension_numbers = #tpu.dot_dimension_numbers<[1], [0], [0], [1], [0, 0, 1, 1], [], []>} : vector<16x256xbf16>, vector<256x128xbf16>, vector<16x128xf32> -> vector<16x128xf32>
    %c0_15 = arith.constant 0 : index
    %c0_16 = arith.constant 0 : index
    %20 = vector.load %arg6[%c0_15, %c0_16] : memref<1x128xf32, #tpu.memory_space<vmem>>, vector<1x128xf32>
    %21 = vector.broadcast %20 : vector<1x128xf32> to vector<16x128xf32>
    %22 = arith.addf %19, %21 : vector<16x128xf32>
    %23 = arith.negf %22 : vector<16x128xf32>
    %24 = math.exp %23 : vector<16x128xf32>
    %cst_17 = arith.constant 1.000000e+00 : f32
    %25 = vector.broadcast %cst_17 : f32 to vector<16x128xf32>
    %26 = arith.addf %25, %24 : vector<16x128xf32>
    %27 = arith.divf %25, %26 : vector<16x128xf32>
    %c0_18 = arith.constant 0 : index
    %c0_19 = arith.constant 0 : index
    %28 = vector.load %arg7[%c0_18, %c0_19] : memref<16x128xf32, #tpu.memory_space<vmem>>, vector<16x128xf32>
    tpu.vector_store %arg7[%c0_18, %c0_19], %27 {strides = array<i32>} : memref<16x128xf32, #tpu.memory_space<vmem>>, vector<16x128xf32>,
    return
  }
}

</mosaic_0001>

<bundles_post_ra>
// kernel: discriminator_forward.2
= control target key start
LH: loop header
LB: loop body
LE: loop exit
PB: predicated region body
PF: predicated region fallthrough
CT: control target
= control target key end

     0   :  { %s9524_s0 = inlined_call_operand.vmem [shape: bf16[16,90112], index: 0, kind: input, shape index: {}]   ;;  %s9525_s1 = inlined_call_operand.hbm [shape: s8[90112,1024], index: 1, kind: input, shape index: {}]   ;;  %s9526_s2 = inlined_call_operand.hbm [shape: f32[1,1024], index: 2, kind: input, shape index: {}]   ;;  %s9527_s3 = inlined_call_operand.hbm [shape: f32[1,1024], index: 3, kind: input, shape index: {}]   ;;  %s9528_s4 = inlined_call_operand.vmem [shape: f32[16,1024], index: 4, kind: output, shape index: {}]  }
   0x1   :  { %9536 = sst [smem:[#allocation19_spill]] %s9524_s0 }
   0x2   :  { %9537 = sst [smem:[#allocation20_spill]] %s9526_s2 }
   0x3   :  { %9538 = sst [smem:[#allocation21_spill]] %s9528_s4 }
   0x4   :  { %9 = vsyncpa [#allocation4], 0 }
   0x5   :  { %11 = vsyncpa [#allocation4 + $0x1], 0 }
   0x6   :  { %12 = vsyncpa [#allocation6], 0 }
   0x7   :  { %14 = vsyncpa [#allocation6 + $0x1], 0  ;;  %s7674_s15 = smov 0   ;;  %s7676_s16 = smov 0  }
   0x8   :  { %s7678_s17 = smov 0   ;;  %s7680_s18 = smov 0  }
   0x9   :  { %s7682_s19 = smov 0   ;;  %s7684_s20 = smov 0  }
   0xa   :  { %s7686_s21 = smov 0   ;;  %s7688_s22 = smov 0  }
   0xb   :  { %s7690_s23 = smov 0   ;;  %s7692_s24 = smov 0  }
   0xc   :  { %s7694_s25 = smov 0   ;;  %s7696_s26 = smov 0  }
   0xd   :  { %s7698_s27 = smov 0  }
   0xe LB: > { %9539 = sst [smem:[#allocation11_spill]] %s7600_s17  ;;  %s7740_s28 = sadd.s32 4294967295, %s7640_s27   ;;  %s7640_s27 = sphi %s7698_s27, %s20_s27   ;;  %s7636_s26 = sphi %s7696_s26, %s9577_s26   ;;  %s7632_s25 = sphi %s7694_s25, %s9576_s25   ;;  %s7628_s24 = sphi %s7692_s24, %s9575_s24   ;;  %s7624_s23 = sphi %s7690_s23, %s9574_s23   ;;  %s7620_s22 = sphi %s7688_s22, %s9566_s22   ;;  %s7616_s21 = sphi %s7686_s21, %s9565_s21   ;;  %s7612_s20 = sphi %s7684_s20, %s9573_s20   ;;  %s7608_s19 = sphi %s7682_s19, %s9572_s19   ;;  %s7604_s18 = sphi %s7680_s18, %s9571_s18   ;;  %s7600_s17 = sphi %s7678_s17, %s9563_s17   ;;  %s7596_s16 = sphi %s7676_s16, %s9570_s16   ;;  %s7592_s15 = sphi %s7674_s15, %s9569_s15  }
   0xf   : > { %9540 = sst [smem:[#allocation12_spill]] %s7620_s22  ;;  %s29_s29 = sadd.s32 1, %s7632_s25 }
  0x10   : > { %9541 = sst [smem:[#allocation13_spill]] %s7628_s24  ;;  %p30_p0 = scmp.ge.s32.totalorder %s29_s29, 11 }
  0x11   : > { %s32_s30 = sadd.s32 1, %s7636_s26  ;;  %s39_s5 = sadd.s32 1, %s7620_s22 }
  0x12   : > { %p46_p1 = scmp.ne.s32.totalorder %s7620_s22, %s7616_s21  ;;  %s9579_s29 = smov (%p30_p0, %s29_s29), 0 }
  0x13   : > { %9542 = sst [smem:[#allocation14_spill]] %s9579_s29  ;;  %s9581_s30 = smov (!%p30_p0, %s32_s30), %s7636_s26 }
  0x14   : > { %s36_s6 = ssub.s32 %s7632_s25, %s9579_s29  ;;  %p47_p2 = scmp.eq.s32.totalorder %s7640_s27, 0 }
  0x15   : > { %p34_p3 = scmp.ge.s32.totalorder %s9581_s30, 2  ;;  %p37_p4 = scmp.eq.s32.totalorder %s36_s6, 0 }
  0x16   : > { %p7755_p5 = por %p47_p2, %p46_p1  ;;  %s67_s8 = sadd.s32 1, %s7612_s20 }
  0x17   : > { %s9583_s30 = smov (%p34_p3, %s9581_s30), 0  ;;  %p74_p6 = scmp.ne.s32.totalorder %s7612_s20, %s7608_s19 }
  0x18   : > { %9544 = sst [smem:[#allocation15_spill]] %s9583_s30  ;;  %s63_s10 = ssub.s32 %s7636_s26, %s9583_s30 }
  0x19   : > { %s7763_s9 = scalar_select %p37_p4, %s7620_s22, %s39_s5  }
  0x1a   : > { %s64_s11 = sor.u32 %s63_s10, %s36_s6  ;;  %p80_p7 = scmp.ne.s32.totalorder %s7608_s19, %s7604_s18 }
  0x1b   : > { %9545 = sst [smem:[#allocation16_spill]] %s7763_s9  ;;  %p65_p8 = scmp.eq.s32.totalorder %s64_s11, 0 }
  0x1c   : > { %p7773_p9 = por %p74_p6, %p47_p2  ;;  %p81_p10 = scmp.eq.s32.totalorder %s7740_s28, 0 }
  0x1d   : > { %p91_p11 = scmp.eq.s32.totalorder %s63_s10, 0  ;;  %s93_s5 = sadd.s32 1, %s7600_s17 }
  0x1e   : > { %s7779_s13 = scalar_select %p65_p8, %s7612_s20, %s67_s8  }
  0x1f   : > { %p7781_p12 = por %p81_p10, %p80_p7  ;;  %p100_p13 = scmp.ne.s32.totalorder %s7600_s17, %s7596_s16 }
  0x20   : > { %9547 = sst [smem:[#allocation17_spill]] %s7779_s13  ;;  %p106_p0 = scmp.ne.s32.totalorder %s7596_s16, %s7592_s15 }
  0x21   : > { %s9548_s14 = scalar_select %p7781_p12, 1, 0 }
  0x22   : > { %s7787_s29 = scalar_select %p91_p11, %s7600_s17, %s93_s5  }
  0x23   : > { %p156_p1 = scmp.eq.s32.totalorder %s7740_s28, 21  ;;  %p7796_p3 = por %p100_p13, %p47_p2 }
  0x24   : > { %9549 = sst [smem:[#allocation18_spill]] %s7787_s29  ;;  %p7800_p4 = por %p106_p0, %p81_p10 }
  0x25   : > { %p7804_p6 = por %p156_p1, %p100_p13  ;;  %p6987_p7 = scmp.ge.s32.totalorder %s7640_s27, 22 }
  0x26   : > { %s9551_s6 = scalar_select %p7800_p4, 1, 0 }
  0x27   : > { %s9552_s8 = scalar_select %p7804_p6, 1, 0 }
  0x28   : > { %178 = sbr.rel (%p6987_p7) target bundleno = 170 (0xaa), region = 16 }
  0x2f   : > { %181 = sbr.rel (!%p7755_p5) target bundleno = 89 (0x59), region = 20  ;;  %s183_s15 = sand.u32 (%p7755_p5), 1, %s7620_s22  }
  0x30   : > { %s7079_s10 = sshll.u32 (%p7755_p5), %s7632_s25, 8  ;;  %s6988_s11 = sshll.u32 (%p7755_p5), %s183_s15, 9 }
  0x31   : > { %s9553_s0 = sld [smem:[#allocation19_spill]] (%p7755_p5)  ;;  %s7821_s7 = scalar_lea.vmem (%p7755_p5), [#allocation2], %s6988_s11 }
  0x37   : > { %s7816_s9 = scalar_lea.vmem %s9553_s0, %s7079_s10 }
  0x38   : > { %v201_v0 = vld [vmem:[%s7816_s9] sm:$0xff]  ;;  %v203_v1 = vld [vmem:[%s7816_s9 + $0x8] sm:$0xff]  ;;  %v205_v2 = vld [vmem:[%s7816_s9 + $0x10] sm:$0xff] }
  0x39   : > { %202 = vst [vmem:[%s7821_s7] sm:$0xff] %v201_v0  ;;  %204 = vst [vmem:[%s7821_s7 + $0x8] sm:$0xff] %v203_v1  ;;  %v207_v3 = vld [vmem:[%s7816_s9 + $0x18] sm:$0xff]  ;;  %v209_v4 = vld [vmem:[%s7816_s9 + $0x20] sm:$0xff] }
  0x3a   : > { %206 = vst [vmem:[%s7821_s7 + $0x10] sm:$0xff] %v205_v2  ;;  %v211_v5 = vld [vmem:[%s7816_s9 + $0x28] sm:$0xff]  ;;  %208 = vst [vmem:[%s7821_s7 + $0x18] sm:$0xff] %v207_v3  ;;  %v213_v6 = vld [vmem:[%s7816_s9 + $0x30] sm:$0xff] }
  0x3b   : > { %210 = vst [vmem:[%s7821_s7 + $0x20] sm:$0xff] %v209_v4  ;;  %212 = vst [vmem:[%s7821_s7 + $0x28] sm:$0xff] %v211_v5  ;;  %v215_v7 = vld [vmem:[%s7816_s9 + $0x38] sm:$0xff]  ;;  %v217_v8 = vld [vmem:[%s7816_s9 + $0x40] sm:$0xff] }
  0x3c   : > { %214 = vst [vmem:[%s7821_s7 + $0x30] sm:$0xff] %v213_v6  ;;  %216 = vst [vmem:[%s7821_s7 + $0x38] sm:$0xff] %v215_v7  ;;  %v219_v9 = vld [vmem:[%s7816_s9 + $0x48] sm:$0xff]  ;;  %v221_v10 = vld [vmem:[%s7816_s9 + $0x50] sm:$0xff] }
  0x3d   : > { %218 = vst [vmem:[%s7821_s7 + $0x40] sm:$0xff] %v217_v8  ;;  %v223_v11 = vld [vmem:[%s7816_s9 + $0x58] sm:$0xff]  ;;  %220 = vst [vmem:[%s7821_s7 + $0x48] sm:$0xff] %v219_v9  ;;  %v225_v12 = vld [vmem:[%s7816_s9 + $0x60] sm:$0xff] }
  0x3e   : > { %222 = vst [vmem:[%s7821_s7 + $0x50] sm:$0xff] %v221_v10  ;;  %224 = vst [vmem:[%s7821_s7 + $0x58] sm:$0xff] %v223_v11  ;;  %v227_v13 = vld [vmem:[%s7816_s9 + $0x68] sm:$0xff]  ;;  %v229_v14 = vld [vmem:[%s7816_s9 + $0x70] sm:$0xff] }
  0x3f   : > { %226 = vst [vmem:[%s7821_s7 + $0x60] sm:$0xff] %v225_v12  ;;  %228 = vst [vmem:[%s7821_s7 + $0x68] sm:$0xff] %v227_v13  ;;  %v231_v15 = vld [vmem:[%s7816_s9 + $0x78] sm:$0xff]  ;;  %v233_v16 = vld [vmem:[%s7816_s9 + $0x80] sm:$0xff] }
  0x40   : > { %230 = vst [vmem:[%s7821_s7 + $0x70] sm:$0xff] %v229_v14  ;;  %v235_v17 = vld [vmem:[%s7816_s9 + $0x88] sm:$0xff]  ;;  %232 = vst [vmem:[%s7821_s7 + $0x78] sm:$0xff] %v231_v15  ;;  %v237_v18 = vld [vmem:[%s7816_s9 + $0x90] sm:$0xff] }
  0x41   : > { %234 = vst [vmem:[%s7821_s7 + $0x80] sm:$0xff] %v233_v16  ;;  %236 = vst [vmem:[%s7821_s7 + $0x88] sm:$0xff] %v235_v17  ;;  %v239_v19 = vld [vmem:[%s7816_s9 + $0x98] sm:$0xff]  ;;  %v241_v20 = vld [vmem:[%s7816_s9 + $0xa0] sm:$0xff] }
  0x42   : > { %238 = vst [vmem:[%s7821_s7 + $0x90] sm:$0xff] %v237_v18  ;;  %240 = vst [vmem:[%s7821_s7 + $0x98] sm:$0xff] %v239_v19  ;;  %v243_v21 = vld [vmem:[%s7816_s9 + $0xa8] sm:$0xff]  ;;  %v245_v22 = vld [vmem:[%s7816_s9 + $0xb0] sm:$0xff] }
  0x43   : > { %242 = vst [vmem:[%s7821_s7 + $0xa0] sm:$0xff] %v241_v20  ;;  %v247_v23 = vld [vmem:[%s7816_s9 + $0xb8] sm:$0xff]  ;;  %244 = vst [vmem:[%s7821_s7 + $0xa8] sm:$0xff] %v243_v21  ;;  %v249_v24 = vld [vmem:[%s7816_s9 + $0xc0] sm:$0xff] }
  0x44   : > { %246 = vst [vmem:[%s7821_s7 + $0xb0] sm:$0xff] %v245_v22  ;;  %248 = vst [vmem:[%s7821_s7 + $0xb8] sm:$0xff] %v247_v23  ;;  %v251_v25 = vld [vmem:[%s7816_s9 + $0xc8] sm:$0xff]  ;;  %v253_v26 = vld [vmem:[%s7816_s9 + $0xd0] sm:$0xff] }
  0x45   : > { %250 = vst [vmem:[%s7821_s7 + $0xc0] sm:$0xff] %v249_v24  ;;  %252 = vst [vmem:[%s7821_s7 + $0xc8] sm:$0xff] %v251_v25  ;;  %v255_v27 = vld [vmem:[%s7816_s9 + $0xd8] sm:$0xff]  ;;  %v257_v28 = vld [vmem:[%s7816_s9 + $0xe0] sm:$0xff] }
  0x46   : > { %254 = vst [vmem:[%s7821_s7 + $0xd0] sm:$0xff] %v253_v26  ;;  %v259_v29 = vld [vmem:[%s7816_s9 + $0xe8] sm:$0xff]  ;;  %256 = vst [vmem:[%s7821_s7 + $0xd8] sm:$0xff] %v255_v27  ;;  %v261_v30 = vld [vmem:[%s7816_s9 + $0xf0] sm:$0xff] }
  0x47   : > { %258 = vst [vmem:[%s7821_s7 + $0xe0] sm:$0xff] %v257_v28  ;;  %260 = vst [vmem:[%s7821_s7 + $0xe8] sm:$0xff] %v259_v29  ;;  %v263_v31 = vld [vmem:[%s7816_s9 + $0xf8] sm:$0xff]  ;;  %v265_v32 = vld [vmem:[%s7816_s9 + $0xb00] sm:$0xff] }
  0x48   : > { %262 = vst [vmem:[%s7821_s7 + $0xf0] sm:$0xff] %v261_v30  ;;  %264 = vst [vmem:[%s7821_s7 + $0xf8] sm:$0xff] %v263_v31  ;;  %v267_v33 = vld [vmem:[%s7816_s9 + $0xb08] sm:$0xff]  ;;  %v269_v34 = vld [vmem:[%s7816_s9 + $0xb10] sm:$0xff] }
  0x49   : > { %266 = vst [vmem:[%s7821_s7 + $0x100] sm:$0xff] %v265_v32  ;;  %v271_v35 = vld [vmem:[%s7816_s9 + $0xb18] sm:$0xff]  ;;  %268 = vst [vmem:[%s7821_s7 + $0x108] sm:$0xff] %v267_v33  ;;  %v273_v36 = vld [vmem:[%s7816_s9 + $0xb20] sm:$0xff] }
  0x4a   : > { %270 = vst [vmem:[%s7821_s7 + $0x110] sm:$0xff] %v269_v34  ;;  %272 = vst [vmem:[%s7821_s7 + $0x118] sm:$0xff] %v271_v35  ;;  %v275_v37 = vld [vmem:[%s7816_s9 + $0xb28] sm:$0xff]  ;;  %v277_v38 = vld [vmem:[%s7816_s9 + $0xb30] sm:$0xff] }
  0x4b   : > { %274 = vst [vmem:[%s7821_s7 + $0x120] sm:$0xff] %v273_v36  ;;  %276 = vst [vmem:[%s7821_s7 + $0x128] sm:$0xff] %v275_v37  ;;  %v279_v39 = vld [vmem:[%s7816_s9 + $0xb38] sm:$0xff]  ;;  %v281_v40 = vld [vmem:[%s7816_s9 + $0xb40] sm:$0xff] }
  0x4c   : > { %278 = vst [vmem:[%s7821_s7 + $0x130] sm:$0xff] %v277_v38  ;;  %v283_v41 = vld [vmem:[%s7816_s9 + $0xb48] sm:$0xff]  ;;  %280 = vst [vmem:[%s7821_s7 + $0x138] sm:$0xff] %v279_v39  ;;  %v285_v42 = vld [vmem:[%s7816_s9 + $0xb50] sm:$0xff] }
  0x4d   : > { %282 = vst [vmem:[%s7821_s7 + $0x140] sm:$0xff] %v281_v40  ;;  %284 = vst [vmem:[%s7821_s7 + $0x148] sm:$0xff] %v283_v41  ;;  %v287_v43 = vld [vmem:[%s7816_s9 + $0xb58] sm:$0xff]  ;;  %v289_v44 = vld [vmem:[%s7816_s9 + $0xb60] sm:$0xff] }
  0x4e   : > { %286 = vst [vmem:[%s7821_s7 + $0x150] sm:$0xff] %v285_v42  ;;  %288 = vst [vmem:[%s7821_s7 + $0x158] sm:$0xff] %v287_v43  ;;  %v291_v45 = vld [vmem:[%s7816_s9 + $0xb68] sm:$0xff]  ;;  %v293_v46 = vld [vmem:[%s7816_s9 + $0xb70] sm:$0xff] }
  0x4f   : > { %290 = vst [vmem:[%s7821_s7 + $0x160] sm:$0xff] %v289_v44  ;;  %v295_v47 = vld [vmem:[%s7816_s9 + $0xb78] sm:$0xff]  ;;  %292 = vst [vmem:[%s7821_s7 + $0x168] sm:$0xff] %v291_v45  ;;  %v297_v48 = vld [vmem:[%s7816_s9 + $0xb80] sm:$0xff] }
  0x50   : > { %294 = vst [vmem:[%s7821_s7 + $0x170] sm:$0xff] %v293_v46  ;;  %296 = vst [vmem:[%s7821_s7 + $0x178] sm:$0xff] %v295_v47  ;;  %v299_v49 = vld [vmem:[%s7816_s9 + $0xb88] sm:$0xff]  ;;  %v301_v50 = vld [vmem:[%s7816_s9 + $0xb90] sm:$0xff] }
  0x51   : > { %298 = vst [vmem:[%s7821_s7 + $0x180] sm:$0xff] %v297_v48  ;;  %300 = vst [vmem:[%s7821_s7 + $0x188] sm:$0xff] %v299_v49  ;;  %v303_v51 = vld [vmem:[%s7816_s9 + $0xb98] sm:$0xff]  ;;  %v305_v52 = vld [vmem:[%s7816_s9 + $0xba0] sm:$0xff] }
  0x52   : > { %302 = vst [vmem:[%s7821_s7 + $0x190] sm:$0xff] %v301_v50  ;;  %v307_v53 = vld [vmem:[%s7816_s9 + $0xba8] sm:$0xff]  ;;  %304 = vst [vmem:[%s7821_s7 + $0x198] sm:$0xff] %v303_v51  ;;  %v309_v54 = vld [vmem:[%s7816_s9 + $0xbb0] sm:$0xff] }
  0x53   : > { %306 = vst [vmem:[%s7821_s7 + $0x1a0] sm:$0xff] %v305_v52  ;;  %308 = vst [vmem:[%s7821_s7 + $0x1a8] sm:$0xff] %v307_v53  ;;  %v311_v55 = vld [vmem:[%s7816_s9 + $0xbb8] sm:$0xff]  ;;  %v313_v56 = vld [vmem:[%s7816_s9 + $0xbc0] sm:$0xff] }
  0x54   : > { %310 = vst [vmem:[%s7821_s7 + $0x1b0] sm:$0xff] %v309_v54  ;;  %312 = vst [vmem:[%s7821_s7 + $0x1b8] sm:$0xff] %v311_v55  ;;  %v315_v57 = vld [vmem:[%s7816_s9 + $0xbc8] sm:$0xff]  ;;  %v317_v58 = vld [vmem:[%s7816_s9 + $0xbd0] sm:$0xff] }
  0x55   : > { %314 = vst [vmem:[%s7821_s7 + $0x1c0] sm:$0xff] %v313_v56  ;;  %v319_v59 = vld [vmem:[%s7816_s9 + $0xbd8] sm:$0xff]  ;;  %316 = vst [vmem:[%s7821_s7 + $0x1c8] sm:$0xff] %v315_v57  ;;  %v321_v60 = vld [vmem:[%s7816_s9 + $0xbe0] sm:$0xff] }
  0x56   : > { %318 = vst [vmem:[%s7821_s7 + $0x1d0] sm:$0xff] %v317_v58  ;;  %320 = vst [vmem:[%s7821_s7 + $0x1d8] sm:$0xff] %v319_v59  ;;  %v323_v61 = vld [vmem:[%s7816_s9 + $0xbe8] sm:$0xff]  ;;  %v325_v62 = vld [vmem:[%s7816_s9 + $0xbf0] sm:$0xff] }
  0x57   : > { %322 = vst [vmem:[%s7821_s7 + $0x1e0] sm:$0xff] %v321_v60  ;;  %324 = vst [vmem:[%s7821_s7 + $0x1e8] sm:$0xff] %v323_v61  ;;  %v327_v63 = vld [vmem:[%s7816_s9 + $0xbf8] sm:$0xff] }
  0x58   : > { %326 = vst [vmem:[%s7821_s7 + $0x1f0] sm:$0xff] %v325_v62  ;;  %328 = vst [vmem:[%s7821_s7 + $0x1f8] sm:$0xff] %v327_v63 }
  0x59 PF: > { %s359_s30 = sand.u32 1, %s7640_s27   ;;  %s361_s15 = sand.u32 1, %s7600_s17  }
  0x5a   : > { %s7950_s10 = sshll.u32 %s361_s15, 2  ;;  %s9533_s11 = sshll.u32 %s7636_s26, 6 }
  0x5b   : > { %s9554_s2 = sld [smem:[#allocation20_spill]]  ;;  %s363_s9 = scalar_lea.vmem [#allocation5], %s7950_s10 }
  0x5c   : > { %s371_s7 = sshll.u32 %s363_s9, 4  ;;  %s335_s13 = sand.u32 1, %s7612_s20   ;;  %s7961_s7 = int_to_ptr.vmem [resolvable:$true] %s371_s7 }
  0x5d   : > { %s7964_s29 = scalar_lea.sflag [#allocation6], %s359_s30 }
  0x61   : > { %s7958_s22 = scalar_lea.hbm %s9554_s2, %s9533_s11  ;;  %s7450_s5 = scalar_lea.hbm %s9554_s2, 128 }
  0x62   : > { %s7446_s15 = scalar_lea.hbm %s7958_s22, 64  ;;  %p7451_p10 = scmp.lt.u32.totalorder %s7958_s22, %s9554_s2 }
  0x63   : > { %p7447_p2 = scmp.ne.s32.totalorder %s7958_s22, %s7446_s15  ;;  %p7452_p11 = scmp.lt.u32.totalorder %s7450_s5, %s7446_s15 }
  0x64   : > { %p7454_p0 = scmp.lt.u32.totalorder %s7446_s15, %s7958_s22 }
  0x65   : > { %p7448_p5 = pnand %p7447_p2, %p7796_p3  ;;  %p7453_p13 = por %p7452_p11, %p7451_p10 }
  0x67   : > { %p7449_p8 = pneg %p7448_p5  ;;  %p7455_p1 = por %p7454_p0, %p7453_p13 }
  0x69   : > { %p7456_p7 = pnand %p7455_p1, %p7449_p8 }
  0x6b   : > { %7459 = shalt.err (!%p7456_p7)
}
  0x6c   : > { %s7460_s30 = scalar_lea.vmem %s7961_s7, 64  ;;  %s7642_s17 = smov [#allocation5]  }
  0x6d   : > { %p7461_p2 = scmp.ne.s32.totalorder %s7961_s7, %s7460_s30  ;;  %s7464_s9 = sshll.u32 %s7642_s17, 4  ;;  %s7465_s9 = int_to_ptr.vmem [resolvable:$false] %s7464_s9 }
  0x6e   : > { %s7466_s4 = scalar_lea.vmem %s7465_s9, 128  ;;  %p7467_p4 = scmp.lt.s32.totalorder %s7961_s7, %s7465_s9 }
  0x6f   : > { %p7462_p5 = pnand %p7461_p2, %p7796_p3  ;;  %p7468_p12 = scmp.lt.s32.totalorder %s7466_s4, %s7460_s30 }
  0x71   : > { %p7463_p6 = pneg %p7462_p5  ;;  %p7469_p10 = por %p7468_p12, %p7467_p4 }
  0x73   : > { %p7470_p11 = pnand %p7469_p10, %p7463_p6 }
  0x75   : > { %7473 = shalt.err (!%p7470_p11)
}
  0x76   : > { %7333 = dma.hbm_to_vmem [thread:$0]  (%p7796_p3), %s7958_s22, 64, %s7961_s7, %s7964_s29  }
  0x77   : > { %s6991_s11 = sshll.u32 %s335_s13, 13  ;;  %s6993_s15 = sshll.u32 %s7636_s26, 2 }
  0x78   : > { %s7080_s0 = sshll.u32 %s7632_s25, 11  ;;  %s339_s5 = scalar_lea.vmem [#allocation3], %s6991_s11 }
  0x79   : > { %s349_s30 = sshll.u32 %s339_s5, 4  ;;  %s346_s17 = sadd.s32 %s7080_s0, %s6993_s15  ;;  %s7992_s30 = int_to_ptr.vmem [resolvable:$true] %s349_s30 }
  0x7a   : > { %s6995_s9 = sshll.u32 %s346_s17, 7  ;;  %s8001_s22 = scalar_lea.sflag [#allocation4], %s335_s13 }
  0x7b   : > { %s7997_s24 = scalar_lea.hbm %s9525_s1, %s6995_s9  ;;  %s7478_s0 = scalar_lea.hbm %s9525_s1, 2883584 }
  0x7c   : > { %s7474_s7 = scalar_lea.hbm %s7997_s24, 131072  ;;  %p7479_p8 = scmp.lt.u32.totalorder %s7997_s24, %s9525_s1 }
  0x7d   : > { %p7475_p12 = scmp.ne.s32.totalorder %s7997_s24, %s7474_s7  ;;  %p7480_p13 = scmp.lt.u32.totalorder %s7478_s0, %s7474_s7 }
  0x7e   : > { %p7482_p1 = scmp.lt.u32.totalorder %s7474_s7, %s7997_s24 }
  0x7f   : > { %p7476_p4 = pnand %p7475_p12, %p7773_p9  ;;  %p7481_p0 = por %p7480_p13, %p7479_p8 }
  0x81   : > { %p7477_p6 = pneg %p7476_p4  ;;  %p7483_p7 = por %p7482_p1, %p7481_p0 }
  0x83   : > { %p7484_p2 = pnand %p7483_p7, %p7477_p6 }
  0x85   : > { %7487 = shalt.err (!%p7484_p2)
}
  0x86   : > { %s7488_s13 = scalar_lea.vmem %s7992_s30, 131072  ;;  %s7643_s17 = smov [#allocation3]  }
  0x87   : > { %p7489_p5 = scmp.ne.s32.totalorder %s7992_s30, %s7488_s13  ;;  %s7492_s9 = sshll.u32 %s7643_s17, 4  ;;  %s7493_s9 = int_to_ptr.vmem [resolvable:$false] %s7492_s9 }
  0x88   : > { %s7494_s4 = scalar_lea.vmem %s7493_s9, 262144  ;;  %p7495_p12 = scmp.lt.s32.totalorder %s7992_s30, %s7493_s9 }
  0x89   : > { %p7490_p10 = pnand %p7489_p5, %p7773_p9  ;;  %p7496_p4 = scmp.lt.s32.totalorder %s7494_s4, %s7488_s13 }
  0x8b   : > { %p7491_p11 = pneg %p7490_p10  ;;  %p7497_p8 = por %p7496_p4, %p7495_p12 }
  0x8d   : > { %p7498_p13 = pnand %p7497_p8, %p7491_p11 }
  0x8f   : > { %7501 = shalt.err (!%p7498_p13)
}
  0x90   : > { %s7644_s7 = smov 1024   ;;  %s7645_s11 = smov 512  }
  0x91   : > { %s7646_s15 = smov 32   ;;  %s9555_s0 = sshll.u32 %s7636_s26, 6 }
  0x92   : > { %7332 = dma.hbm_to_vmem [thread:$0]  (%p7773_p9), %s7997_s24, 131072, %s7992_s30, %s8001_s22, %s7644_s7, %s7645_s11, %s7646_s15  }
  0x93   : > { %s8030_s13 = scalar_lea.hbm %s9527_s3, %s9555_s0  ;;  %s382_s17 = scalar_lea.vmem [#allocation7], %s7950_s10 }
  0x94   : > { %s390_s9 = sshll.u32 %s382_s17, 4  ;;  %s7502_s4 = scalar_lea.hbm %s8030_s13, 64  ;;  %s391_s9 = int_to_ptr.vmem [resolvable:$true] %s390_s9 }
  0x95   : > { %p7503_p6 = scmp.ne.s32.totalorder %s8030_s13, %s7502_s4  ;;  %s7506_s30 = scalar_lea.hbm %s9527_s3, 128 }
  0x96   : > { %p7507_p9 = scmp.lt.u32.totalorder %s8030_s13, %s9527_s3  ;;  %p7508_p7 = scmp.lt.u32.totalorder %s7506_s30, %s7502_s4 }
  0x97   : > { %p7504_p0 = pnand %p7503_p6, %p7796_p3  ;;  %p7510_p5 = scmp.lt.u32.totalorder %s7502_s4, %s8030_s13 }
  0x98   : > { %p7509_p2 = por %p7508_p7, %p7507_p9 }
  0x99   : > { %p7505_p1 = pneg %p7504_p0 }
  0x9a   : > { %p7511_p10 = por %p7510_p5, %p7509_p2 }
  0x9c   : > { %p7512_p11 = pnand %p7511_p10, %p7505_p1 }
  0x9e   : > { %7515 = shalt.err (!%p7512_p11)
}
  0x9f   : > { %s7516_s10 = scalar_lea.vmem %s391_s9, 64  ;;  %s7647_s11 = smov [#allocation7]  }
  0xa0   : > { %p7517_p12 = scmp.ne.s32.totalorder %s391_s9, %s7516_s10  ;;  %s7520_s15 = sshll.u32 %s7647_s11, 4  ;;  %s7521_s15 = int_to_ptr.vmem [resolvable:$false] %s7520_s15 }
  0xa1   : > { %s7522_s0 = scalar_lea.vmem %s7521_s15, 128  ;;  %p7523_p13 = scmp.lt.s32.totalorder %s391_s9, %s7521_s15 }
  0xa2   : > { %p7518_p4 = pnand %p7517_p12, %p7796_p3  ;;  %p7524_p6 = scmp.lt.s32.totalorder %s7522_s0, %s7516_s10 }
  0xa4   : > { %p7519_p8 = pneg %p7518_p4  ;;  %p7525_p0 = por %p7524_p6, %p7523_p13 }
  0xa6   : > { %p7526_p7 = pnand %p7525_p0, %p7519_p8 }
  0xa8   : > { %7529 = shalt.err (!%p7526_p7)
}
  0xa9   : > { %7334 = dma.hbm_to_vmem [thread:$0]  (%p7796_p3), %s8030_s13, 64, %s391_s9, %s7964_s29  }
  0xaa PF: > { %p7002_p1 = scmp.ge.s32.totalorder %s7640_s27, 1  ;;  %p395_p9 = scmp.lt.s32.totalorder %s7640_s27, 23 }
  0xac   : > { %p396_p2 = pnand %p7002_p1, %p395_p9 }
  0xad   : > { %s402_s5 = sand.u32 (!%p396_p2), 1, %s7616_s21   ;;  %s408_s2 = sand.u32 (!%p396_p2), 1, %s7608_s19  }
  0xae   : > { %399 = sbr.rel (%p396_p2) target bundleno = 2493 (0x9bd), region = 55  ;;  %s7003_s17 = sshll.u32 (!%p396_p2), %s402_s5, 9 }
  0xaf   : > { %s7004_s4 = sshll.u32 (!%p396_p2), %s408_s2, 13  ;;  %s8055_s12 = scalar_lea.vmem (!%p396_p2), [#allocation2], %s7003_s17 }
  0xb0   : > { %s409_s18 = scalar_lea.sflag (!%p396_p2), [#allocation4], %s408_s2  ;;  %s8057_s24 = scalar_lea.vmem (!%p396_p2), [#allocation3], %s7004_s4 }
  0xb1   : > { %p9556_p3 = scmp.ne.s32.totalorder (!%p396_p2), %s9548_s14, 0 }
  0xb5   : > { %7583 = dma.done.wait (%p9556_p3), %s409_s18, 131072  }
  0xb6   : > { %7585 = vsyncadd (%p9556_p3), %s409_s18, 4294836224  ;;  %s417_s29 = sand.u32 1, %s7740_s28   ;;  %s419_s13 = sand.u32 1, %s7596_s16  }
  0xb7   : > { %s8065_s9 = sshll.u32 %s419_s13, 2  ;;  %s418_s21 = scalar_lea.sflag [#allocation6], %s417_s29 }
  0xb8   : > { %s421_s30 = scalar_lea.vmem [#allocation5], %s8065_s9  ;;  %p9557_p5 = scmp.ne.s32.totalorder %s9551_s6, 0 }
  0xba   : > { %7587 = dma.done.wait (%p9557_p5), %s418_s21, 128  }
  0xbb   : > { %7589 = vsyncadd (%p9557_p5), %s418_s21, 4294967168  ;;  %s7007_s22 = sshll.u32 %s419_s13, 6  ;;  %s430_s7 = scalar_lea.vmem [#allocation7], %s8065_s9 }
  0xbc   : > { %s8073_s14 = scalar_lea.vmem [#allocation8], %s7007_s22  ;;  %p7008_p10 = scmp.ne.s32.totalorder %s7624_s23, 0 }
  0xbd   : > { %v7648_v0 = vmov (!%p7008_p10), 0.0  }
  0xbe   : > { %477 = sbr.rel (%p7008_p10) target bundleno = 197 (0xc5), region = 75  ;;  %478 = vst [vmem:[%s8073_s14] sm:$0xff] (!%p7008_p10), %v7648_v0  ;;  %479 = vst [vmem:[%s8073_s14 + $0x8] sm:$0xff] (!%p7008_p10), %v7648_v0 }
  0xbf   : > { %480 = vst [vmem:[%s8073_s14 + $0x10] sm:$0xff] (!%p7008_p10), %v7648_v0  ;;  %481 = vst [vmem:[%s8073_s14 + $0x18] sm:$0xff] (!%p7008_p10), %v7648_v0 }
  0xc0   : > { %482 = vst [vmem:[%s8073_s14 + $0x20] sm:$0xff] (!%p7008_p10), %v7648_v0  ;;  %483 = vst [vmem:[%s8073_s14 + $0x28] sm:$0xff] (!%p7008_p10), %v7648_v0 }
  0xc1   : > { %484 = vst [vmem:[%s8073_s14 + $0x30] sm:$0xff] (!%p7008_p10), %v7648_v0  ;;  %485 = vst [vmem:[%s8073_s14 + $0x38] sm:$0xff] (!%p7008_p10), %v7648_v0 }
  0xc5 PF: > { %v487_v1 = vld [vmem:[%s8057_s24 + $0x8] sm:$0xff]  ;;  %v489_v2 = vld [vmem:[%s8057_s24 + $0x18] sm:$0xff]  ;;  %v486_v3 = vld [vmem:[%s8057_s24] sm:$0xff]  ;;  %p7073_p11 = scmp.ne.s32.totalorder %s7624_s23, 10 }
  0xc6   : > { %v1511_v4 = vunpack.c.l.s8.bf16 %v487_v1  ;;  %v1515_v5 = vunpack.c.h.s8.bf16 %v487_v1  ;;  %v1513_v6 = vunpack.c.l.s8.bf16 %v489_v2  ;;  %v1517_v7 = vunpack.c.h.s8.bf16 %v489_v2  ;;  %v488_v8 = vld [vmem:[%s8057_s24 + $0x10] sm:$0xff]  ;;  %v491_v11 = vld [vmem:[%s8057_s24 + $0x28] sm:$0xff]  ;;  %v493_v12 = vld [vmem:[%s8057_s24 + $0x38] sm:$0xff] }
  0xc7   : > { %v1510_v9 = vunpack.c.l.s8.bf16 %v486_v3  ;;  %v1512_v10 = vunpack.c.l.s8.bf16 %v488_v8  ;;  %v1514_v13 = vunpack.c.h.s8.bf16 %v486_v3  ;;  %v1516_v14 = vunpack.c.h.s8.bf16 %v488_v8  ;;  %v490_v17 = vld [vmem:[%s8057_s24 + $0x20] sm:$0xff]  ;;  %v492_v18 = vld [vmem:[%s8057_s24 + $0x30] sm:$0xff]  ;;  %v495_v23 = vld [vmem:[%s8057_s24 + $0x48] sm:$0xff] }
  0xc8   : > { %3950 = vmatprep.subr.bf16.mxu0 %v1511_v4  ;;  %5326 = vmatprep.subr.bf16.mxu1 %v1513_v6  ;;  %v1519_v15 = vunpack.c.l.s8.bf16 %v491_v11  ;;  %v1521_v16 = vunpack.c.l.s8.bf16 %v493_v12  ;;  %v1518_v19 = vunpack.c.l.s8.bf16 %v490_v17  ;;  %v1520_v20 = vunpack.c.l.s8.bf16 %v492_v18  ;;  %v497_v24 = vld [vmem:[%s8057_s24 + $0x58] sm:$0xff]  ;;  %v494_v29 = vld [vmem:[%s8057_s24 + $0x40] sm:$0xff]  ;;  %v496_v30 = vld [vmem:[%s8057_s24 + $0x50] sm:$0xff] }
  0xc9   : > { %3951 = vmatpush1.bf16.msra.mxu0 %v1510_v9  ;;  %5327 = vmatpush1.bf16.msra.mxu1 %v1512_v10  ;;  %v1523_v21 = vunpack.c.h.s8.bf16 %v491_v11  ;;  %v1525_v22 = vunpack.c.h.s8.bf16 %v493_v12  ;;  %v1522_v25 = vunpack.c.h.s8.bf16 %v490_v17  ;;  %v1524_v26 = vunpack.c.h.s8.bf16 %v492_v18  ;;  %v8097_v31 = vld [vmem:[%s8055_s12] sm:$0xff]  ;;  %v499_v38 = vld [vmem:[%s8057_s24 + $0x68] sm:$0xff]  ;;  %v501_v39 = vld [vmem:[%s8057_s24 + $0x78] sm:$0xff] }
  0xca   : > { %3952 = vmatprep.subr.bf16.mxu0 %v1515_v5  ;;  %5328 = vmatprep.subr.bf16.mxu1 %v1517_v7  ;;  %v1527_v27 = vunpack.c.l.s8.bf16 %v495_v23  ;;  %v1529_v28 = vunpack.c.l.s8.bf16 %v497_v24  ;;  %v8100_v32 = vld [vmem:[%s8055_s12 + $0x100] sm:$0xff]  ;;  %v1526_v33 = vunpack.c.l.s8.bf16 %v494_v29  ;;  %v1528_v34 = vunpack.c.l.s8.bf16 %v496_v30  ;;  %v500_v45 = vld [vmem:[%s8057_s24 + $0x70] sm:$0xff]  ;;  %v503_v50 = vld [vmem:[%s8057_s24 + $0x88] sm:$0xff] }
  0xcb   : > { %v1531_v35 = vunpack.c.h.s8.bf16 %v495_v23  ;;  %v1533_v36 = vunpack.c.h.s8.bf16 %v497_v24  ;;  %v7010_v37 = vcombine.high %v8097_v31, %v8100_v32  ;;  %v1530_v40 = vunpack.c.h.s8.bf16 %v494_v29  ;;  %v498_v44 = vld [vmem:[%s8057_s24 + $0x60] sm:$0xff]  ;;  %v505_v51 = vld [vmem:[%s8057_s24 + $0x98] sm:$0xff]  ;;  %v504_v57 = vld [vmem:[%s8057_s24 + $0x90] sm:$0xff] }
  0xcc   : > { %v1532_v41 = vunpack.c.h.s8.bf16 %v496_v30  ;;  %v1535_v42 = vunpack.c.l.s8.bf16 %v499_v38  ;;  %v1537_v43 = vunpack.c.l.s8.bf16 %v501_v39  ;;  %v1534_v46 = vunpack.c.l.s8.bf16 %v498_v44  ;;  %v502_v56 = vld [vmem:[%s8057_s24 + $0x80] sm:$0xff]  ;;  %v507_v62 = vld [vmem:[%s8057_s24 + $0xa8] sm:$0xff]  ;;  %v509_v63 = vld [vmem:[%s8057_s24 + $0xb8] sm:$0xff] }
  0xcd   : > { %3953 = vmatpush1.bf16.msra.mxu0 %v1514_v13  ;;  %5329 = vmatpush1.bf16.msra.mxu1 %v1516_v14  ;;  %v1536_v47 = vunpack.c.l.s8.bf16 %v500_v45  ;;  %v1539_v48 = vunpack.c.h.s8.bf16 %v499_v38  ;;  %v1541_v49 = vunpack.c.h.s8.bf16 %v501_v39  ;;  %v1538_v52 = vunpack.c.h.s8.bf16 %v498_v44  ;;  %v506_v4 = vld [vmem:[%s8057_s24 + $0xa0] sm:$0xff]  ;;  %v508_v5 = vld [vmem:[%s8057_s24 + $0xb0] sm:$0xff]  ;;  %v511_v10 = vld [vmem:[%s8057_s24 + $0xc8] sm:$0xff] }
  0xce   : > { %3954 = vmatprep.subr.bf16.mxu0 %v1519_v15  ;;  %5330 = vmatprep.subr.bf16.mxu1 %v1521_v16  ;;  %v1540_v53 = vunpack.c.h.s8.bf16 %v500_v45  ;;  %v1543_v54 = vunpack.c.l.s8.bf16 %v503_v50  ;;  %v1545_v55 = vunpack.c.l.s8.bf16 %v505_v51  ;;  %v1542_v58 = vunpack.c.l.s8.bf16 %v502_v56  ;;  %v513_v11 = vld [vmem:[%s8057_s24 + $0xd8] sm:$0xff]  ;;  %v510_v16 = vld [vmem:[%s8057_s24 + $0xc0] sm:$0xff]  ;;  %v512_v17 = vld [vmem:[%s8057_s24 + $0xd0] sm:$0xff] }
  0xcf   : > { %3982 = vmatprep.mubr.bf16.mxu0 %v7010_v37  ;;  %5358 = vmatprep.mubr.bf16.mxu1 %v7010_v37  ;;  %v1544_v59 = vunpack.c.l.s8.bf16 %v504_v57  ;;  %v1547_v60 = vunpack.c.h.s8.bf16 %v503_v50  ;;  %v1549_v61 = vunpack.c.h.s8.bf16 %v505_v51  ;;  %v1546_v0 = vunpack.c.h.s8.bf16 %v502_v56  ;;  %v517_v23 = vld [vmem:[%s8057_s24 + $0xf8] sm:$0xff]  ;;  %v516_v29 = vld [vmem:[%s8057_s24 + $0xf0] sm:$0xff]  ;;  %v8131_v45 = vld [vmem:[%s8055_s12 + $0x8] sm:$0xff] }
  0xd0   : > { %v1548_v1 = vunpack.c.h.s8.bf16 %v504_v57  ;;  %v1551_v2 = vunpack.c.l.s8.bf16 %v507_v62  ;;  %v1553_v3 = vunpack.c.l.s8.bf16 %v509_v63  ;;  %v1550_v6 = vunpack.c.l.s8.bf16 %v506_v4  ;;  %v521_v37 = vld [vmem:[%s8057_s24 + $0x118] sm:$0xff]  ;;  %v523_v51 = vld [vmem:[%s8057_s24 + $0x128] sm:$0xff]  ;;  %v522_v56 = vld [vmem:[%s8057_s24 + $0x120] sm:$0xff] }
  0xd1   : > { %3955 = vmatpush1.bf16.msra.mxu0 %v1518_v19  ;;  %5331 = vmatpush1.bf16.msra.mxu1 %v1520_v20  ;;  %v1552_v7 = vunpack.c.l.s8.bf16 %v508_v5  ;;  %v1555_v8 = vunpack.c.h.s8.bf16 %v507_v62  ;;  %v1557_v9 = vunpack.c.h.s8.bf16 %v509_v63  ;;  %v1554_v12 = vunpack.c.h.s8.bf16 %v506_v4  ;;  %v524_v57 = vld [vmem:[%s8057_s24 + $0x130] sm:$0xff]  ;;  %v527_v62 = vld [vmem:[%s8057_s24 + $0x148] sm:$0xff]  ;;  %v529_v63 = vld [vmem:[%s8057_s24 + $0x158] sm:$0xff] }
  0xd2   : > { %3956 = vmatprep.subr.bf16.mxu0 %v1523_v21  ;;  %5332 = vmatprep.subr.bf16.mxu1 %v1525_v22  ;;  %v1556_v13 = vunpack.c.h.s8.bf16 %v508_v5  ;;  %v1559_v14 = vunpack.c.l.s8.bf16 %v511_v10  ;;  %v1561_v15 = vunpack.c.l.s8.bf16 %v513_v11  ;;  %v1558_v18 = vunpack.c.l.s8.bf16 %v510_v16  ;;  %v515_v22 = vld [vmem:[%s8057_s24 + $0xe8] sm:$0xff]  ;;  %v526_v4 = vld [vmem:[%s8057_s24 + $0x140] sm:$0xff]  ;;  %v528_v5 = vld [vmem:[%s8057_s24 + $0x150] sm:$0xff] }
  0xd3   : > { %v1560_v19 = vunpack.c.l.s8.bf16 %v512_v17  ;;  %v1563_v20 = vunpack.c.h.s8.bf16 %v511_v10  ;;  %v1565_v21 = vunpack.c.h.s8.bf16 %v513_v11  ;;  %v1562_v24 = vunpack.c.h.s8.bf16 %v510_v16  ;;  %v531_v10 = vld [vmem:[%s8057_s24 + $0x168] sm:$0xff]  ;;  %v533_v11 = vld [vmem:[%s8057_s24 + $0x178] sm:$0xff]  ;;  %v530_v16 = vld [vmem:[%s8057_s24 + $0x160] sm:$0xff] }
  0xd4   : > { %v1572_v39 = vunpack.c.h.s8.bf16 %v516_v29  ;;  %v7009_v44 = vcombine.low %v8097_v31, %v8100_v32  ;;  %v1581_v50 = vunpack.c.h.s8.bf16 %v521_v37 }
  0xd5   : > { %3957 = vmatpush1.bf16.msra.mxu0 %v1522_v25  ;;  %5333 = vmatpush1.bf16.msra.mxu1 %v1524_v26  ;;  %v1564_v25 = vunpack.c.h.s8.bf16 %v512_v17  ;;  %v1567_v26 = vunpack.c.l.s8.bf16 %v515_v22  ;;  %v532_v17 = vld [vmem:[%s8057_s24 + $0x170] sm:$0xff] }
  0xd6   : > { %3958 = vmatprep.subr.bf16.mxu0 %v1527_v27  ;;  %5334 = vmatprep.subr.bf16.mxu1 %v1529_v28  ;;  %v1569_v27 = vunpack.c.l.s8.bf16 %v517_v23  ;;  %v514_v28 = vld [vmem:[%s8057_s24 + $0xe0] sm:$0xff] }
  0xd7   : > { %v1566_v30 = vunpack.c.l.s8.bf16 %v514_v28  ;;  %v1570_v38 = vunpack.c.h.s8.bf16 %v514_v28  ;;  %v534_v28 = vld [vmem:[%s8057_s24 + $0x180] sm:$0xff] }
  0xd9   : > { %3959 = vmatpush1.bf16.msra.mxu0 %v1526_v33  ;;  %5335 = vmatpush1.bf16.msra.mxu1 %v1528_v34  ;;  %v1568_v33 = vunpack.c.l.s8.bf16 %v516_v29  ;;  %v1571_v34 = vunpack.c.h.s8.bf16 %v515_v22  ;;  %v535_v22 = vld [vmem:[%s8057_s24 + $0x188] sm:$0xff]  ;;  %v536_v29 = vld [vmem:[%s8057_s24 + $0x190] sm:$0xff] }
  0xda   : > { %3960 = vmatprep.subr.bf16.mxu0 %v1531_v35  ;;  %5336 = vmatprep.subr.bf16.mxu1 %v1533_v36  ;;  %v1573_v35 = vunpack.c.h.s8.bf16 %v517_v23  ;;  %v519_v36 = vld [vmem:[%s8057_s24 + $0x108] sm:$0xff]  ;;  %v537_v23 = vld [vmem:[%s8057_s24 + $0x198] sm:$0xff] }
  0xdd   : > { %3961 = vmatpush1.bf16.msra.mxu0 %v1530_v40  ;;  %5337 = vmatpush1.bf16.msra.mxu1 %v1532_v41  ;;  %v1575_v40 = vunpack.c.l.s8.bf16 %v519_v36  ;;  %v1577_v41 = vunpack.c.l.s8.bf16 %v521_v37  ;;  %v541_v37 = vld [vmem:[%s8057_s24 + $0x1b8] sm:$0xff] }
  0xde   : > { %3962 = vmatprep.subr.bf16.mxu0 %v1535_v42  ;;  %5338 = vmatprep.subr.bf16.mxu1 %v1537_v43  ;;  %v518_v42 = vld [vmem:[%s8057_s24 + $0x100] sm:$0xff]  ;;  %v520_v43 = vld [vmem:[%s8057_s24 + $0x110] sm:$0xff] }
  0xdf   : > { %v1578_v31 = vunpack.c.h.s8.bf16 %v518_v42  ;;  %v1580_v32 = vunpack.c.h.s8.bf16 %v520_v43 }
  0xe1   : > { %3963 = vmatpush1.bf16.msra.mxu0 %v1534_v46  ;;  %5339 = vmatpush1.bf16.msra.mxu1 %v1536_v47  ;;  %v8134_v46 = vld [vmem:[%s8055_s12 + $0x108] sm:$0xff]  ;;  %v1574_v47 = vunpack.c.l.s8.bf16 %v518_v42  ;;  %v538_v42 = vld [vmem:[%s8057_s24 + $0x1a0] sm:$0xff] }
  0xe2   : > { %3964 = vmatprep.subr.bf16.mxu0 %v1539_v48  ;;  %5340 = vmatprep.subr.bf16.mxu1 %v1541_v49  ;;  %v1576_v48 = vunpack.c.l.s8.bf16 %v520_v43  ;;  %v1579_v49 = vunpack.c.h.s8.bf16 %v519_v36  ;;  %v539_v36 = vld [vmem:[%s8057_s24 + $0x1a8] sm:$0xff]  ;;  %v540_v43 = vld [vmem:[%s8057_s24 + $0x1b0] sm:$0xff] }
  0xe5   : > { %3965 = vmatpush1.bf16.msra.mxu0 %v1538_v52  ;;  %5341 = vmatpush1.bf16.msra.mxu1 %v1540_v53  ;;  %v525_v52 = vld [vmem:[%s8057_s24 + $0x138] sm:$0xff]  ;;  %v7012_v53 = vcombine.high %v8131_v45, %v8134_v46 }
  0xe6   : > { %3966 = vmatprep.subr.bf16.mxu0 %v1543_v54  ;;  %5342 = vmatprep.subr.bf16.mxu1 %v1545_v55  ;;  %v1583_v54 = vunpack.c.l.s8.bf16 %v523_v51  ;;  %v1585_v55 = vunpack.c.l.s8.bf16 %v525_v52 }
  0xe9   : > { %3967 = vmatpush1.bf16.msra.mxu0 %v1542_v58  ;;  %5343 = vmatpush1.bf16.msra.mxu1 %v1544_v59  ;;  %v1582_v58 = vunpack.c.l.s8.bf16 %v522_v56  ;;  %v1584_v59 = vunpack.c.l.s8.bf16 %v524_v57 }
  0xea   : > { %3968 = vmatprep.subr.bf16.mxu0 %v1547_v60  ;;  %5344 = vmatprep.subr.bf16.mxu1 %v1549_v61  ;;  %v1587_v60 = vunpack.c.h.s8.bf16 %v523_v51  ;;  %v1589_v61 = vunpack.c.h.s8.bf16 %v525_v52  ;;  %v545_v51 = vld [vmem:[%s8057_s24 + $0x1d8] sm:$0xff]  ;;  %v1618_v52 = vunpack.c.h.s8.bf16 %v538_v42 }
  0xed   : > { %3969 = vmatpush1.bf16.msra.mxu0 %v1546_v0  ;;  %5345 = vmatpush1.bf16.msra.mxu1 %v1548_v1  ;;  %v1586_v0 = vunpack.c.h.s8.bf16 %v522_v56  ;;  %v1588_v1 = vunpack.c.h.s8.bf16 %v524_v57 }
  0xee   : > { %3970 = vmatprep.subr.bf16.mxu0 %v1551_v2  ;;  %5346 = vmatprep.subr.bf16.mxu1 %v1553_v3  ;;  %v1591_v2 = vunpack.c.l.s8.bf16 %v527_v62  ;;  %v1593_v3 = vunpack.c.l.s8.bf16 %v529_v63 }
  0xf1   : > { %3971 = vmatpush1.bf16.msra.mxu0 %v1550_v6  ;;  %5347 = vmatpush1.bf16.msra.mxu1 %v1552_v7  ;;  %v1590_v6 = vunpack.c.l.s8.bf16 %v526_v4  ;;  %v1592_v7 = vunpack.c.l.s8.bf16 %v528_v5 }
  0xf2   : > { %3972 = vmatprep.subr.bf16.mxu0 %v1555_v8  ;;  %5348 = vmatprep.subr.bf16.mxu1 %v1557_v9  ;;  %v1595_v8 = vunpack.c.h.s8.bf16 %v527_v62  ;;  %v1597_v9 = vunpack.c.h.s8.bf16 %v529_v63 }
  0xf5   : > { %3973 = vmatpush1.bf16.msra.mxu0 %v1554_v12  ;;  %5349 = vmatpush1.bf16.msra.mxu1 %v1556_v13  ;;  %v1594_v12 = vunpack.c.h.s8.bf16 %v526_v4  ;;  %v1596_v13 = vunpack.c.h.s8.bf16 %v528_v5 }
  0xf6   : > { %3974 = vmatprep.subr.bf16.mxu0 %v1559_v14  ;;  %5350 = vmatprep.subr.bf16.mxu1 %v1561_v15  ;;  %v1599_v14 = vunpack.c.l.s8.bf16 %v531_v10  ;;  %v1601_v15 = vunpack.c.l.s8.bf16 %v533_v11 }
  0xf9   : > { %3975 = vmatpush1.bf16.msra.mxu0 %v1558_v18  ;;  %5351 = vmatpush1.bf16.msra.mxu1 %v1560_v19  ;;  %v1598_v18 = vunpack.c.l.s8.bf16 %v530_v16  ;;  %v1600_v19 = vunpack.c.l.s8.bf16 %v532_v17 }
  0xfa   : > { %3976 = vmatprep.subr.bf16.mxu0 %v1563_v20  ;;  %5352 = vmatprep.subr.bf16.mxu1 %v1565_v21  ;;  %v1603_v20 = vunpack.c.h.s8.bf16 %v531_v10  ;;  %v1605_v21 = vunpack.c.h.s8.bf16 %v533_v11 }
  0xfd   : > { %3977 = vmatpush1.bf16.msra.mxu0 %v1562_v24  ;;  %5353 = vmatpush1.bf16.msra.mxu1 %v1564_v25  ;;  %v1602_v24 = vunpack.c.h.s8.bf16 %v530_v16  ;;  %v1604_v25 = vunpack.c.h.s8.bf16 %v532_v17  ;;  %v7011_v16 = vcombine.low %v8131_v45, %v8134_v46  ;;  %v8173_v17 = vld [vmem:[%s8055_s12 + $0x10] sm:$0xff] }
  0xfe   : > { %3978 = vmatprep.subr.bf16.mxu0 %v1567_v26  ;;  %5354 = vmatprep.subr.bf16.mxu1 %v1569_v27  ;;  %v1607_v26 = vunpack.c.l.s8.bf16 %v535_v22  ;;  %v1609_v27 = vunpack.c.l.s8.bf16 %v537_v23 }
 0x101   : > { %3979 = vmatpush1.bf16.msra.mxu0 %v1566_v30  ;;  %5355 = vmatpush1.bf16.msra.mxu1 %v1568_v33  ;;  %v1606_v30 = vunpack.c.l.s8.bf16 %v534_v28  ;;  %v1608_v33 = vunpack.c.l.s8.bf16 %v536_v29 }
 0x102   : > { %3980 = vmatprep.subr.bf16.mxu0 %v1571_v34  ;;  %5356 = vmatprep.subr.bf16.mxu1 %v1573_v35  ;;  %v1611_v34 = vunpack.c.h.s8.bf16 %v535_v22  ;;  %v1613_v35 = vunpack.c.h.s8.bf16 %v537_v23  ;;  %v555_v23 = vld [vmem:[%s8057_s24 + $0x228] sm:$0xff] }
 0x105   : > { %3981 = vmatpush1.bf16.msra.mxu0 %v1570_v38  ;;  %5357 = vmatpush1.bf16.msra.mxu1 %v1572_v39  ;;  %v1610_v38 = vunpack.c.h.s8.bf16 %v534_v28  ;;  %v1612_v39 = vunpack.c.h.s8.bf16 %v536_v29  ;;  %v554_v28 = vld [vmem:[%s8057_s24 + $0x220] sm:$0xff]  ;;  %v556_v29 = vld [vmem:[%s8057_s24 + $0x230] sm:$0xff] }
 0x106   : > { %3993 = vmatprep.subr.bf16.mxu0 %v1575_v40  ;;  %5369 = vmatprep.subr.bf16.mxu1 %v1577_v41  ;;  %v1615_v40 = vunpack.c.l.s8.bf16 %v539_v36  ;;  %v1617_v41 = vunpack.c.l.s8.bf16 %v541_v37 }
 0x108   : > { %3983 = vmatmul.mubr.bf16.vlgmr.msra.gmra.mrb[0].mxu0 %v7009_v44  ;;  %5359 = vmatmul.mubr.bf16.vlgmr.msra.gmra.mrb[0].mxu1 %v7009_v44  ;;  %v1614_v44 = vunpack.c.l.s8.bf16 %v538_v42  ;;  %v558_v42 = vld [vmem:[%s8057_s24 + $0x240] sm:$0xff] }
 0x109   : > { %3994 = vmatpush1.bf16.msra.mxu0 %v1574_v47  ;;  %5370 = vmatpush1.bf16.msra.mxu1 %v1576_v48  ;;  %v1616_v47 = vunpack.c.l.s8.bf16 %v540_v43  ;;  %v1619_v48 = vunpack.c.h.s8.bf16 %v539_v36  ;;  %v559_v36 = vld [vmem:[%s8057_s24 + $0x248] sm:$0xff] }
 0x10a   : > { %3995 = vmatprep.subr.bf16.mxu0 %v1579_v49  ;;  %5371 = vmatprep.subr.bf16.mxu1 %v1581_v50  ;;  %v1621_v49 = vunpack.c.h.s8.bf16 %v541_v37  ;;  %v543_v50 = vld [vmem:[%s8057_s24 + $0x1c8] sm:$0xff]  ;;  %v561_v37 = vld [vmem:[%s8057_s24 + $0x258] sm:$0xff] }
 0x10b   : > { %4025 = vmatprep.mubr.bf16.mxu0 %v7012_v53  ;;  %5401 = vmatprep.mubr.bf16.mxu1 %v7012_v53  ;;  %v1620_v53 = vunpack.c.h.s8.bf16 %v540_v43  ;;  %v560_v43 = vld [vmem:[%s8057_s24 + $0x250] sm:$0xff] }
 0x10d   : > { %3996 = vmatpush1.bf16.msra.mxu0 %v1578_v31  ;;  %5372 = vmatpush1.bf16.msra.mxu1 %v1580_v32  ;;  %v1623_v31 = vunpack.c.l.s8.bf16 %v543_v50  ;;  %v1625_v32 = vunpack.c.l.s8.bf16 %v545_v51 }
 0x10e   : > { %3997 = vmatprep.subr.bf16.mxu0 %v1583_v54  ;;  %5373 = vmatprep.subr.bf16.mxu1 %v1585_v55  ;;  %v542_v54 = vld [vmem:[%s8057_s24 + $0x1c0] sm:$0xff]  ;;  %v544_v55 = vld [vmem:[%s8057_s24 + $0x1d0] sm:$0xff] }
 0x10f   : > { %v1622_v56 = vunpack.c.l.s8.bf16 %v542_v54  ;;  %v1624_v57 = vunpack.c.l.s8.bf16 %v544_v55  ;;  %v1626_v62 = vunpack.c.h.s8.bf16 %v542_v54  ;;  %v1628_v63 = vunpack.c.h.s8.bf16 %v544_v55  ;;  %v562_v54 = vld [vmem:[%s8057_s24 + $0x260] sm:$0xff]  ;;  %v564_v55 = vld [vmem:[%s8057_s24 + $0x270] sm:$0xff] }
 0x111   : > { %3998 = vmatpush1.bf16.msra.mxu0 %v1582_v58  ;;  %5374 = vmatpush1.bf16.msra.mxu1 %v1584_v59  ;;  %v1627_v58 = vunpack.c.h.s8.bf16 %v543_v50  ;;  %v1629_v59 = vunpack.c.h.s8.bf16 %v545_v51  ;;  %v563_v50 = vld [vmem:[%s8057_s24 + $0x268] sm:$0xff]  ;;  %v565_v51 = vld [vmem:[%s8057_s24 + $0x278] sm:$0xff] }
 0x112   : > { %3999 = vmatprep.subr.bf16.mxu0 %v1587_v60  ;;  %5375 = vmatprep.subr.bf16.mxu1 %v1589_v61  ;;  %v547_v60 = vld [vmem:[%s8057_s24 + $0x1e8] sm:$0xff]  ;;  %v549_v61 = vld [vmem:[%s8057_s24 + $0x1f8] sm:$0xff] }
 0x115   : > { %4000 = vmatpush1.bf16.msra.mxu0 %v1586_v0  ;;  %5376 = vmatpush1.bf16.msra.mxu1 %v1588_v1  ;;  %v1631_v0 = vunpack.c.l.s8.bf16 %v547_v60  ;;  %v1633_v1 = vunpack.c.l.s8.bf16 %v549_v61 }
 0x116   : > { %4001 = vmatprep.subr.bf16.mxu0 %v1591_v2  ;;  %5377 = vmatprep.subr.bf16.mxu1 %v1593_v3  ;;  %v546_v2 = vld [vmem:[%s8057_s24 + $0x1e0] sm:$0xff]  ;;  %v548_v3 = vld [vmem:[%s8057_s24 + $0x1f0] sm:$0xff] }
 0x117   : > { %v1630_v4 = vunpack.c.l.s8.bf16 %v546_v2  ;;  %v1632_v5 = vunpack.c.l.s8.bf16 %v548_v3  ;;  %v1634_v10 = vunpack.c.h.s8.bf16 %v546_v2  ;;  %v1636_v11 = vunpack.c.h.s8.bf16 %v548_v3  ;;  %v566_v2 = vld [vmem:[%s8057_s24 + $0x280] sm:$0xff]  ;;  %v568_v3 = vld [vmem:[%s8057_s24 + $0x290] sm:$0xff] }
 0x119   : > { %4002 = vmatpush1.bf16.msra.mxu0 %v1590_v6  ;;  %5378 = vmatpush1.bf16.msra.mxu1 %v1592_v7  ;;  %v1635_v6 = vunpack.c.h.s8.bf16 %v547_v60  ;;  %v1637_v7 = vunpack.c.h.s8.bf16 %v549_v61  ;;  %v567_v60 = vld [vmem:[%s8057_s24 + $0x288] sm:$0xff]  ;;  %v569_v61 = vld [vmem:[%s8057_s24 + $0x298] sm:$0xff] }
 0x11a   : > { %4003 = vmatprep.subr.bf16.mxu0 %v1595_v8  ;;  %5379 = vmatprep.subr.bf16.mxu1 %v1597_v9  ;;  %v551_v8 = vld [vmem:[%s8057_s24 + $0x208] sm:$0xff]  ;;  %v553_v9 = vld [vmem:[%s8057_s24 + $0x218] sm:$0xff] }
 0x11b   : > { %v1645_v22 = vunpack.c.h.s8.bf16 %v553_v9 }
 0x11d   : > { %4004 = vmatpush1.bf16.msra.mxu0 %v1594_v12  ;;  %5380 = vmatpush1.bf16.msra.mxu1 %v1596_v13  ;;  %v1639_v12 = vunpack.c.l.s8.bf16 %v551_v8  ;;  %v1641_v13 = vunpack.c.l.s8.bf16 %v553_v9  ;;  %v573_v9 = vld [vmem:[%s8057_s24 + $0x2b8] sm:$0xff] }
 0x11e   : > { %4005 = vmatprep.subr.bf16.mxu0 %v1599_v14  ;;  %5381 = vmatprep.subr.bf16.mxu1 %v1601_v15  ;;  %v550_v14 = vld [vmem:[%s8057_s24 + $0x200] sm:$0xff]  ;;  %v552_v15 = vld [vmem:[%s8057_s24 + $0x210] sm:$0xff] }
 0x11f   : > { %v1642_v45 = vunpack.c.h.s8.bf16 %v550_v14  ;;  %v1644_v46 = vunpack.c.h.s8.bf16 %v552_v15 }
 0x121   : > { %4006 = vmatpush1.bf16.msra.mxu0 %v1598_v18  ;;  %5382 = vmatpush1.bf16.msra.mxu1 %v1600_v19  ;;  %v8176_v18 = vld [vmem:[%s8055_s12 + $0x110] sm:$0xff]  ;;  %v1638_v19 = vunpack.c.l.s8.bf16 %v550_v14  ;;  %v570_v14 = vld [vmem:[%s8057_s24 + $0x2a0] sm:$0xff] }
 0x122   : > { %4007 = vmatprep.subr.bf16.mxu0 %v1603_v20  ;;  %5383 = vmatprep.subr.bf16.mxu1 %v1605_v21  ;;  %v1640_v20 = vunpack.c.l.s8.bf16 %v552_v15  ;;  %v1643_v21 = vunpack.c.h.s8.bf16 %v551_v8  ;;  %v571_v8 = vld [vmem:[%s8057_s24 + $0x2a8] sm:$0xff]  ;;  %v572_v15 = vld [vmem:[%s8057_s24 + $0x2b0] sm:$0xff] }
 0x125   : > { %4008 = vmatpush1.bf16.msra.mxu0 %v1602_v24  ;;  %5384 = vmatpush1.bf16.msra.mxu1 %v1604_v25  ;;  %v557_v24 = vld [vmem:[%s8057_s24 + $0x238] sm:$0xff]  ;;  %v7014_v25 = vcombine.high %v8173_v17, %v8176_v18 }
 0x126   : > { %4009 = vmatprep.subr.bf16.mxu0 %v1607_v26  ;;  %5385 = vmatprep.subr.bf16.mxu1 %v1609_v27  ;;  %v1647_v26 = vunpack.c.l.s8.bf16 %v555_v23  ;;  %v1649_v27 = vunpack.c.l.s8.bf16 %v557_v24 }
 0x129   : > { %4010 = vmatpush1.bf16.msra.mxu0 %v1606_v30  ;;  %5386 = vmatpush1.bf16.msra.mxu1 %v1608_v33  ;;  %v1646_v30 = vunpack.c.l.s8.bf16 %v554_v28  ;;  %v1648_v33 = vunpack.c.l.s8.bf16 %v556_v29 }
 0x12a   : > { %4011 = vmatprep.subr.bf16.mxu0 %v1611_v34  ;;  %5387 = vmatprep.subr.bf16.mxu1 %v1613_v35  ;;  %v1651_v34 = vunpack.c.h.s8.bf16 %v555_v23  ;;  %v1653_v35 = vunpack.c.h.s8.bf16 %v557_v24  ;;  %v577_v23 = vld [vmem:[%s8057_s24 + $0x2d8] sm:$0xff]  ;;  %v1682_v24 = vunpack.c.h.s8.bf16 %v570_v14 }
 0x12d   : > { %4012 = vmatpush1.bf16.msra.mxu0 %v1610_v38  ;;  %5388 = vmatpush1.bf16.msra.mxu1 %v1612_v39  ;;  %v1650_v38 = vunpack.c.h.s8.bf16 %v554_v28  ;;  %v1652_v39 = vunpack.c.h.s8.bf16 %v556_v29 }
 0x12e   : > { %4013 = vmatprep.subr.bf16.mxu0 %v1615_v40  ;;  %5389 = vmatprep.subr.bf16.mxu1 %v1617_v41  ;;  %v1655_v40 = vunpack.c.l.s8.bf16 %v559_v36  ;;  %v1657_v41 = vunpack.c.l.s8.bf16 %v561_v37 }
 0x131   : > { %4014 = vmatpush1.bf16.msra.mxu0 %v1614_v44  ;;  %5390 = vmatpush1.bf16.msra.mxu1 %v1616_v47  ;;  %v1654_v44 = vunpack.c.l.s8.bf16 %v558_v42  ;;  %v1656_v47 = vunpack.c.l.s8.bf16 %v560_v43 }
 0x132   : > { %4015 = vmatprep.subr.bf16.mxu0 %v1619_v48  ;;  %5391 = vmatprep.subr.bf16.mxu1 %v1621_v49  ;;  %v1659_v48 = vunpack.c.h.s8.bf16 %v559_v36  ;;  %v1661_v49 = vunpack.c.h.s8.bf16 %v561_v37 }
 0x135   : > { %4016 = vmatpush1.bf16.msra.mxu0 %v1618_v52  ;;  %5392 = vmatpush1.bf16.msra.mxu1 %v1620_v53  ;;  %v1658_v52 = vunpack.c.h.s8.bf16 %v558_v42  ;;  %v1660_v53 = vunpack.c.h.s8.bf16 %v560_v43 }
 0x136   : > { %4017 = vmatprep.subr.bf16.mxu0 %v1623_v31  ;;  %5393 = vmatprep.subr.bf16.mxu1 %v1625_v32  ;;  %v1663_v31 = vunpack.c.l.s8.bf16 %v563_v50  ;;  %v1665_v32 = vunpack.c.l.s8.bf16 %v565_v51 }
 0x139   : > { %4018 = vmatpush1.bf16.msra.mxu0 %v1622_v56  ;;  %5394 = vmatpush1.bf16.msra.mxu1 %v1624_v57  ;;  %v1662_v56 = vunpack.c.l.s8.bf16 %v562_v54  ;;  %v1664_v57 = vunpack.c.l.s8.bf16 %v564_v55 }
 0x13a   : > { %4019 = vmatprep.subr.bf16.mxu0 %v1627_v58  ;;  %5395 = vmatprep.subr.bf16.mxu1 %v1629_v59  ;;  %v1667_v58 = vunpack.c.h.s8.bf16 %v563_v50  ;;  %v1669_v59 = vunpack.c.h.s8.bf16 %v565_v51 }
 0x13d   : > { %4020 = vmatpush1.bf16.msra.mxu0 %v1626_v62  ;;  %5396 = vmatpush1.bf16.msra.mxu1 %v1628_v63  ;;  %v1666_v62 = vunpack.c.h.s8.bf16 %v562_v54  ;;  %v1668_v63 = vunpack.c.h.s8.bf16 %v564_v55  ;;  %v7013_v54 = vcombine.low %v8173_v17, %v8176_v18  ;;  %v8215_v55 = vld [vmem:[%s8055_s12 + $0x18] sm:$0xff] }
 0x13e   : > { %4021 = vmatprep.subr.bf16.mxu0 %v1631_v0  ;;  %5397 = vmatprep.subr.bf16.mxu1 %v1633_v1  ;;  %v1671_v0 = vunpack.c.l.s8.bf16 %v567_v60  ;;  %v1673_v1 = vunpack.c.l.s8.bf16 %v569_v61 }
 0x141   : > { %4022 = vmatpush1.bf16.msra.mxu0 %v1630_v4  ;;  %5398 = vmatpush1.bf16.msra.mxu1 %v1632_v5  ;;  %v1670_v4 = vunpack.c.l.s8.bf16 %v566_v2  ;;  %v1672_v5 = vunpack.c.l.s8.bf16 %v568_v3 }
 0x142   : > { %4023 = vmatprep.subr.bf16.mxu0 %v1635_v6  ;;  %5399 = vmatprep.subr.bf16.mxu1 %v1637_v7  ;;  %v1675_v6 = vunpack.c.h.s8.bf16 %v567_v60  ;;  %v1677_v7 = vunpack.c.h.s8.bf16 %v569_v61  ;;  %v587_v61 = vld [vmem:[%s8057_s24 + $0x328] sm:$0xff] }
 0x145   : > { %4024 = vmatpush1.bf16.msra.mxu0 %v1634_v10  ;;  %5400 = vmatpush1.bf16.msra.mxu1 %v1636_v11  ;;  %v1674_v10 = vunpack.c.h.s8.bf16 %v566_v2  ;;  %v1676_v11 = vunpack.c.h.s8.bf16 %v568_v3  ;;  %v586_v2 = vld [vmem:[%s8057_s24 + $0x320] sm:$0xff]  ;;  %v588_v3 = vld [vmem:[%s8057_s24 + $0x330] sm:$0xff] }
 0x146   : > { %4036 = vmatprep.subr.bf16.mxu0 %v1639_v12  ;;  %5412 = vmatprep.subr.bf16.mxu1 %v1641_v13  ;;  %v1679_v12 = vunpack.c.l.s8.bf16 %v571_v8  ;;  %v1681_v13 = vunpack.c.l.s8.bf16 %v573_v9 }
 0x148   : > { %4026 = vmatmul.mubr.bf16.vlgmr.msra.gmra.mrb[0].mxu0 %v7011_v16  ;;  %5402 = vmatmul.mubr.bf16.vlgmr.msra.gmra.mrb[0].mxu1 %v7011_v16  ;;  %v1678_v16 = vunpack.c.l.s8.bf16 %v570_v14  ;;  %v590_v14 = vld [vmem:[%s8057_s24 + $0x340] sm:$0xff] }
 0x149   : > { %4037 = vmatpush1.bf16.msra.mxu0 %v1638_v19  ;;  %5413 = vmatpush1.bf16.msra.mxu1 %v1640_v20  ;;  %v1680_v19 = vunpack.c.l.s8.bf16 %v572_v15  ;;  %v1683_v20 = vunpack.c.h.s8.bf16 %v571_v8  ;;  %v591_v8 = vld [vmem:[%s8057_s24 + $0x348] sm:$0xff] }
 0x14a   : > { %4038 = vmatprep.subr.bf16.mxu0 %v1643_v21  ;;  %5414 = vmatprep.subr.bf16.mxu1 %v1645_v22  ;;  %v1685_v21 = vunpack.c.h.s8.bf16 %v573_v9  ;;  %v575_v22 = vld [vmem:[%s8057_s24 + $0x2c8] sm:$0xff]  ;;  %v593_v9 = vld [vmem:[%s8057_s24 + $0x358] sm:$0xff] }
 0x14b   : > { %4068 = vmatprep.mubr.bf16.mxu0 %v7014_v25  ;;  %5444 = vmatprep.mubr.bf16.mxu1 %v7014_v25  ;;  %v1684_v25 = vunpack.c.h.s8.bf16 %v572_v15  ;;  %v592_v15 = vld [vmem:[%s8057_s24 + $0x350] sm:$0xff] }
 0x14d   : > { %4039 = vmatpush1.bf16.msra.mxu0 %v1642_v45  ;;  %5415 = vmatpush1.bf16.msra.mxu1 %v1644_v46  ;;  %v1687_v45 = vunpack.c.l.s8.bf16 %v575_v22  ;;  %v1689_v46 = vunpack.c.l.s8.bf16 %v577_v23 }
 0x14e   : > { %4040 = vmatprep.subr.bf16.mxu0 %v1647_v26  ;;  %5416 = vmatprep.subr.bf16.mxu1 %v1649_v27  ;;  %v574_v26 = vld [vmem:[%s8057_s24 + $0x2c0] sm:$0xff]  ;;  %v576_v27 = vld [vmem:[%s8057_s24 + $0x2d0] sm:$0xff] }
 0x14f   : > { %v1686_v28 = vunpack.c.l.s8.bf16 %v574_v26  ;;  %v1688_v29 = vunpack.c.l.s8.bf16 %v576_v27  ;;  %v1690_v36 = vunpack.c.h.s8.bf16 %v574_v26  ;;  %v1692_v37 = vunpack.c.h.s8.bf16 %v576_v27  ;;  %v594_v26 = vld [vmem:[%s8057_s24 + $0x360] sm:$0xff]  ;;  %v596_v27 = vld [vmem:[%s8057_s24 + $0x370] sm:$0xff] }
 0x151   : > { %4041 = vmatpush1.bf16.msra.mxu0 %v1646_v30  ;;  %5417 = vmatpush1.bf16.msra.mxu1 %v1648_v33  ;;  %v1691_v30 = vunpack.c.h.s8.bf16 %v575_v22  ;;  %v1693_v33 = vunpack.c.h.s8.bf16 %v577_v23  ;;  %v595_v22 = vld [vmem:[%s8057_s24 + $0x368] sm:$0xff]  ;;  %v597_v23 = vld [vmem:[%s8057_s24 + $0x378] sm:$0xff] }
 0x152   : > { %4042 = vmatprep.subr.bf16.mxu0 %v1651_v34  ;;  %5418 = vmatprep.subr.bf16.mxu1 %v1653_v35  ;;  %v579_v34 = vld [vmem:[%s8057_s24 + $0x2e8] sm:$0xff]  ;;  %v581_v35 = vld [vmem:[%s8057_s24 + $0x2f8] sm:$0xff] }
 0x155   : > { %4043 = vmatpush1.bf16.msra.mxu0 %v1650_v38  ;;  %5419 = vmatpush1.bf16.msra.mxu1 %v1652_v39  ;;  %v1695_v38 = vunpack.c.l.s8.bf16 %v579_v34  ;;  %v1697_v39 = vunpack.c.l.s8.bf16 %v581_v35 }
 0x156   : > { %4044 = vmatprep.subr.bf16.mxu0 %v1655_v40  ;;  %5420 = vmatprep.subr.bf16.mxu1 %v1657_v41  ;;  %v578_v40 = vld [vmem:[%s8057_s24 + $0x2e0] sm:$0xff]  ;;  %v580_v41 = vld [vmem:[%s8057_s24 + $0x2f0] sm:$0xff] }
 0x157   : > { %v1694_v42 = vunpack.c.l.s8.bf16 %v578_v40  ;;  %v1696_v43 = vunpack.c.l.s8.bf16 %v580_v41  ;;  %v1698_v50 = vunpack.c.h.s8.bf16 %v578_v40  ;;  %v1700_v51 = vunpack.c.h.s8.bf16 %v580_v41  ;;  %v598_v40 = vld [vmem:[%s8057_s24 + $0x380] sm:$0xff]  ;;  %v600_v41 = vld [vmem:[%s8057_s24 + $0x390] sm:$0xff] }
 0x159   : > { %4045 = vmatpush1.bf16.msra.mxu0 %v1654_v44  ;;  %5421 = vmatpush1.bf16.msra.mxu1 %v1656_v47  ;;  %v1699_v44 = vunpack.c.h.s8.bf16 %v579_v34  ;;  %v1701_v47 = vunpack.c.h.s8.bf16 %v581_v35  ;;  %v599_v34 = vld [vmem:[%s8057_s24 + $0x388] sm:$0xff]  ;;  %v601_v35 = vld [vmem:[%s8057_s24 + $0x398] sm:$0xff] }
 0x15a   : > { %4046 = vmatprep.subr.bf16.mxu0 %v1659_v48  ;;  %5422 = vmatprep.subr.bf16.mxu1 %v1661_v49  ;;  %v583_v48 = vld [vmem:[%s8057_s24 + $0x308] sm:$0xff]  ;;  %v585_v49 = vld [vmem:[%s8057_s24 + $0x318] sm:$0xff] }
 0x15b   : > { %v1709_v60 = vunpack.c.h.s8.bf16 %v585_v49 }
 0x15d   : > { %4047 = vmatpush1.bf16.msra.mxu0 %v1658_v52  ;;  %5423 = vmatpush1.bf16.msra.mxu1 %v1660_v53  ;;  %v1703_v52 = vunpack.c.l.s8.bf16 %v583_v48  ;;  %v1705_v53 = vunpack.c.l.s8.bf16 %v585_v49  ;;  %v605_v49 = vld [vmem:[%s8057_s24 + $0x3b8] sm:$0xff] }
 0x15e   : > { %4048 = vmatprep.subr.bf16.mxu0 %v1663_v31  ;;  %5424 = vmatprep.subr.bf16.mxu1 %v1665_v32  ;;  %v582_v31 = vld [vmem:[%s8057_s24 + $0x300] sm:$0xff]  ;;  %v584_v32 = vld [vmem:[%s8057_s24 + $0x310] sm:$0xff] }
 0x15f   : > { %v1706_v17 = vunpack.c.h.s8.bf16 %v582_v31  ;;  %v1708_v18 = vunpack.c.h.s8.bf16 %v584_v32 }
 0x161   : > { %4049 = vmatpush1.bf16.msra.mxu0 %v1662_v56  ;;  %5425 = vmatpush1.bf16.msra.mxu1 %v1664_v57  ;;  %v8218_v56 = vld [vmem:[%s8055_s12 + $0x118] sm:$0xff]  ;;  %v1702_v57 = vunpack.c.l.s8.bf16 %v582_v31  ;;  %v602_v31 = vld [vmem:[%s8057_s24 + $0x3a0] sm:$0xff] }
 0x162   : > { %4050 = vmatprep.subr.bf16.mxu0 %v1667_v58  ;;  %5426 = vmatprep.subr.bf16.mxu1 %v1669_v59  ;;  %v1704_v58 = vunpack.c.l.s8.bf16 %v584_v32  ;;  %v1707_v59 = vunpack.c.h.s8.bf16 %v583_v48  ;;  %v603_v48 = vld [vmem:[%s8057_s24 + $0x3a8] sm:$0xff]  ;;  %v604_v32 = vld [vmem:[%s8057_s24 + $0x3b0] sm:$0xff] }
 0x165   : > { %4051 = vmatpush1.bf16.msra.mxu0 %v1666_v62  ;;  %5427 = vmatpush1.bf16.msra.mxu1 %v1668_v63  ;;  %v589_v62 = vld [vmem:[%s8057_s24 + $0x338] sm:$0xff]  ;;  %v7016_v63 = vcombine.high %v8215_v55, %v8218_v56 }
 0x166   : > { %4052 = vmatprep.subr.bf16.mxu0 %v1671_v0  ;;  %5428 = vmatprep.subr.bf16.mxu1 %v1673_v1  ;;  %v1711_v0 = vunpack.c.l.s8.bf16 %v587_v61  ;;  %v1713_v1 = vunpack.c.l.s8.bf16 %v589_v62 }
 0x169   : > { %4053 = vmatpush1.bf16.msra.mxu0 %v1670_v4  ;;  %5429 = vmatpush1.bf16.msra.mxu1 %v1672_v5  ;;  %v1710_v4 = vunpack.c.l.s8.bf16 %v586_v2  ;;  %v1712_v5 = vunpack.c.l.s8.bf16 %v588_v3 }
 0x16a   : > { %4054 = vmatprep.subr.bf16.mxu0 %v1675_v6  ;;  %5430 = vmatprep.subr.bf16.mxu1 %v1677_v7  ;;  %v1715_v6 = vunpack.c.h.s8.bf16 %v587_v61  ;;  %v1717_v7 = vunpack.c.h.s8.bf16 %v589_v62  ;;  %v609_v61 = vld [vmem:[%s8057_s24 + $0x3d8] sm:$0xff]  ;;  %v1746_v62 = vunpack.c.h.s8.bf16 %v602_v31 }
 0x16d   : > { %4055 = vmatpush1.bf16.msra.mxu0 %v1674_v10  ;;  %5431 = vmatpush1.bf16.msra.mxu1 %v1676_v11  ;;  %v1714_v10 = vunpack.c.h.s8.bf16 %v586_v2  ;;  %v1716_v11 = vunpack.c.h.s8.bf16 %v588_v3 }
 0x16e   : > { %4056 = vmatprep.subr.bf16.mxu0 %v1679_v12  ;;  %5432 = vmatprep.subr.bf16.mxu1 %v1681_v13  ;;  %v1719_v12 = vunpack.c.l.s8.bf16 %v591_v8  ;;  %v1721_v13 = vunpack.c.l.s8.bf16 %v593_v9 }
 0x171   : > { %4057 = vmatpush1.bf16.msra.mxu0 %v1678_v16  ;;  %5433 = vmatpush1.bf16.msra.mxu1 %v1680_v19  ;;  %v1718_v16 = vunpack.c.l.s8.bf16 %v590_v14  ;;  %v1720_v19 = vunpack.c.l.s8.bf16 %v592_v15 }
 0x172   : > { %4058 = vmatprep.subr.bf16.mxu0 %v1683_v20  ;;  %5434 = vmatprep.subr.bf16.mxu1 %v1685_v21  ;;  %v1723_v20 = vunpack.c.h.s8.bf16 %v591_v8  ;;  %v1725_v21 = vunpack.c.h.s8.bf16 %v593_v9 }
 0x175   : > { %4059 = vmatpush1.bf16.msra.mxu0 %v1682_v24  ;;  %5435 = vmatpush1.bf16.msra.mxu1 %v1684_v25  ;;  %v1722_v24 = vunpack.c.h.s8.bf16 %v590_v14  ;;  %v1724_v25 = vunpack.c.h.s8.bf16 %v592_v15 }
 0x176   : > { %4060 = vmatprep.subr.bf16.mxu0 %v1687_v45  ;;  %5436 = vmatprep.subr.bf16.mxu1 %v1689_v46  ;;  %v1727_v45 = vunpack.c.l.s8.bf16 %v595_v22  ;;  %v1729_v46 = vunpack.c.l.s8.bf16 %v597_v23 }
 0x179   : > { %4061 = vmatpush1.bf16.msra.mxu0 %v1686_v28  ;;  %5437 = vmatpush1.bf16.msra.mxu1 %v1688_v29  ;;  %v1726_v28 = vunpack.c.l.s8.bf16 %v594_v26  ;;  %v1728_v29 = vunpack.c.l.s8.bf16 %v596_v27 }
 0x17a   : > { %4062 = vmatprep.subr.bf16.mxu0 %v1691_v30  ;;  %5438 = vmatprep.subr.bf16.mxu1 %v1693_v33  ;;  %v1731_v30 = vunpack.c.h.s8.bf16 %v595_v22  ;;  %v1733_v33 = vunpack.c.h.s8.bf16 %v597_v23 }
 0x17d   : > { %4063 = vmatpush1.bf16.msra.mxu0 %v1690_v36  ;;  %5439 = vmatpush1.bf16.msra.mxu1 %v1692_v37  ;;  %v1730_v36 = vunpack.c.h.s8.bf16 %v594_v26  ;;  %v1732_v37 = vunpack.c.h.s8.bf16 %v596_v27  ;;  %v7015_v26 = vcombine.low %v8215_v55, %v8218_v56  ;;  %v8257_v27 = vld [vmem:[%s8055_s12 + $0x20] sm:$0xff] }
 0x17e   : > { %4064 = vmatprep.subr.bf16.mxu0 %v1695_v38  ;;  %5440 = vmatprep.subr.bf16.mxu1 %v1697_v39  ;;  %v1735_v38 = vunpack.c.l.s8.bf16 %v599_v34  ;;  %v1737_v39 = vunpack.c.l.s8.bf16 %v601_v35 }
 0x181   : > { %4065 = vmatpush1.bf16.msra.mxu0 %v1694_v42  ;;  %5441 = vmatpush1.bf16.msra.mxu1 %v1696_v43  ;;  %v1734_v42 = vunpack.c.l.s8.bf16 %v598_v40  ;;  %v1736_v43 = vunpack.c.l.s8.bf16 %v600_v41 }
 0x182   : > { %4066 = vmatprep.subr.bf16.mxu0 %v1699_v44  ;;  %5442 = vmatprep.subr.bf16.mxu1 %v1701_v47  ;;  %v1739_v44 = vunpack.c.h.s8.bf16 %v599_v34  ;;  %v1741_v47 = vunpack.c.h.s8.bf16 %v601_v35  ;;  %v619_v35 = vld [vmem:[%s8057_s24 + $0x428] sm:$0xff] }
 0x185   : > { %4067 = vmatpush1.bf16.msra.mxu0 %v1698_v50  ;;  %5443 = vmatpush1.bf16.msra.mxu1 %v1700_v51  ;;  %v1738_v50 = vunpack.c.h.s8.bf16 %v598_v40  ;;  %v1740_v51 = vunpack.c.h.s8.bf16 %v600_v41  ;;  %v618_v40 = vld [vmem:[%s8057_s24 + $0x420] sm:$0xff]  ;;  %v620_v41 = vld [vmem:[%s8057_s24 + $0x430] sm:$0xff] }
 0x186   : > { %4079 = vmatprep.subr.bf16.mxu0 %v1703_v52  ;;  %5455 = vmatprep.subr.bf16.mxu1 %v1705_v53  ;;  %v1743_v52 = vunpack.c.l.s8.bf16 %v603_v48  ;;  %v1745_v53 = vunpack.c.l.s8.bf16 %v605_v49 }
 0x188   : > { %4069 = vmatmul.mubr.bf16.vlgmr.msra.gmra.mrb[0].mxu0 %v7013_v54  ;;  %5445 = vmatmul.mubr.bf16.vlgmr.msra.gmra.mrb[0].mxu1 %v7013_v54  ;;  %v1742_v54 = vunpack.c.l.s8.bf16 %v602_v31  ;;  %v622_v31 = vld [vmem:[%s8057_s24 + $0x440] sm:$0xff] }
 0x189   : > { %4080 = vmatpush1.bf16.msra.mxu0 %v1702_v57  ;;  %5456 = vmatpush1.bf16.msra.mxu1 %v1704_v58  ;;  %v1744_v57 = vunpack.c.l.s8.bf16 %v604_v32  ;;  %v1747_v58 = vunpack.c.h.s8.bf16 %v603_v48  ;;  %v623_v48 = vld [vmem:[%s8057_s24 + $0x448] sm:$0xff] }
 0x18a   : > { %4081 = vmatprep.subr.bf16.mxu0 %v1707_v59  ;;  %5457 = vmatprep.subr.bf16.mxu1 %v1709_v60  ;;  %v1749_v59 = vunpack.c.h.s8.bf16 %v605_v49  ;;  %v607_v60 = vld [vmem:[%s8057_s24 + $0x3c8] sm:$0xff]  ;;  %v625_v49 = vld [vmem:[%s8057_s24 + $0x458] sm:$0xff] }
 0x18b   : > { %4111 = vmatprep.mubr.bf16.mxu0 %v7016_v63  ;;  %5487 = vmatprep.mubr.bf16.mxu1 %v7016_v63  ;;  %v1748_v63 = vunpack.c.h.s8.bf16 %v604_v32  ;;  %v624_v32 = vld [vmem:[%s8057_s24 + $0x450] sm:$0xff] }
 0x18d   : > { %4082 = vmatpush1.bf16.msra.mxu0 %v1706_v17  ;;  %5458 = vmatpush1.bf16.msra.mxu1 %v1708_v18  ;;  %v1751_v17 = vunpack.c.l.s8.bf16 %v607_v60  ;;  %v1753_v18 = vunpack.c.l.s8.bf16 %v609_v61 }
 0x18e   : > { %4083 = vmatprep.subr.bf16.mxu0 %v1711_v0  ;;  %5459 = vmatprep.subr.bf16.mxu1 %v1713_v1  ;;  %v606_v0 = vld [vmem:[%s8057_s24 + $0x3c0] sm:$0xff]  ;;  %v608_v1 = vld [vmem:[%s8057_s24 + $0x3d0] sm:$0xff] }
 0x18f   : > { %v1750_v2 = vunpack.c.l.s8.bf16 %v606_v0  ;;  %v1752_v3 = vunpack.c.l.s8.bf16 %v608_v1  ;;  %v1754_v8 = vunpack.c.h.s8.bf16 %v606_v0  ;;  %v1756_v9 = vunpack.c.h.s8.bf16 %v608_v1  ;;  %v626_v0 = vld [vmem:[%s8057_s24 + $0x460] sm:$0xff]  ;;  %v628_v1 = vld [vmem:[%s8057_s24 + $0x470] sm:$0xff] }
 0x191   : > { %4084 = vmatpush1.bf16.msra.mxu0 %v1710_v4  ;;  %5460 = vmatpush1.bf16.msra.mxu1 %v1712_v5  ;;  %v1755_v4 = vunpack.c.h.s8.bf16 %v607_v60  ;;  %v1757_v5 = vunpack.c.h.s8.bf16 %v609_v61  ;;  %v627_v60 = vld [vmem:[%s8057_s24 + $0x468] sm:$0xff]  ;;  %v629_v61 = vld [vmem:[%s8057_s24 + $0x478] sm:$0xff] }
 0x192   : > { %4085 = vmatprep.subr.bf16.mxu0 %v1715_v6  ;;  %5461 = vmatprep.subr.bf16.mxu1 %v1717_v7  ;;  %v611_v6 = vld [vmem:[%s8057_s24 + $0x3e8] sm:$0xff]  ;;  %v613_v7 = vld [vmem:[%s8057_s24 + $0x3f8] sm:$0xff] }
 0x195   : > { %4086 = vmatpush1.bf16.msra.mxu0 %v1714_v10  ;;  %5462 = vmatpush1.bf16.msra.mxu1 %v1716_v11  ;;  %v1759_v10 = vunpack.c.l.s8.bf16 %v611_v6  ;;  %v1761_v11 = vunpack.c.l.s8.bf16 %v613_v7 }
 0x196   : > { %4087 = vmatprep.subr.bf16.mxu0 %v1719_v12  ;;  %5463 = vmatprep.subr.bf16.mxu1 %v1721_v13  ;;  %v610_v12 = vld [vmem:[%s8057_s24 + $0x3e0] sm:$0xff]  ;;  %v612_v13 = vld [vmem:[%s8057_s24 + $0x3f0] sm:$0xff] }
 0x197   : > { %v1758_v14 = vunpack.c.l.s8.bf16 %v610_v12  ;;  %v1760_v15 = vunpack.c.l.s8.bf16 %v612_v13  ;;  %v1762_v22 = vunpack.c.h.s8.bf16 %v610_v12  ;;  %v1764_v23 = vunpack.c.h.s8.bf16 %v612_v13  ;;  %v630_v12 = vld [vmem:[%s8057_s24 + $0x480] sm:$0xff]  ;;  %v632_v13 = vld [vmem:[%s8057_s24 + $0x490] sm:$0xff] }
 0x199   : > { %4088 = vmatpush1.bf16.msra.mxu0 %v1718_v16  ;;  %5464 = vmatpush1.bf16.msra.mxu1 %v1720_v19  ;;  %v1763_v16 = vunpack.c.h.s8.bf16 %v611_v6  ;;  %v1765_v19 = vunpack.c.h.s8.bf16 %v613_v7  ;;  %v631_v6 = vld [vmem:[%s8057_s24 + $0x488] sm:$0xff]  ;;  %v633_v7 = vld [vmem:[%s8057_s24 + $0x498] sm:$0xff] }
 0x19a   : > { %4089 = vmatprep.subr.bf16.mxu0 %v1723_v20  ;;  %5465 = vmatprep.subr.bf16.mxu1 %v1725_v21  ;;  %v615_v20 = vld [vmem:[%s8057_s24 + $0x408] sm:$0xff]  ;;  %v617_v21 = vld [vmem:[%s8057_s24 + $0x418] sm:$0xff] }
 0x19b   : > { %v1773_v34 = vunpack.c.h.s8.bf16 %v617_v21 }
 0x19d   : > { %4090 = vmatpush1.bf16.msra.mxu0 %v1722_v24  ;;  %5466 = vmatpush1.bf16.msra.mxu1 %v1724_v25  ;;  %v1767_v24 = vunpack.c.l.s8.bf16 %v615_v20  ;;  %v1769_v25 = vunpack.c.l.s8.bf16 %v617_v21  ;;  %v637_v21 = vld [vmem:[%s8057_s24 + $0x4b8] sm:$0xff] }
 0x19e   : > { %4091 = vmatprep.subr.bf16.mxu0 %v1727_v45  ;;  %5467 = vmatprep.subr.bf16.mxu1 %v1729_v46  ;;  %v614_v45 = vld [vmem:[%s8057_s24 + $0x400] sm:$0xff]  ;;  %v616_v46 = vld [vmem:[%s8057_s24 + $0x410] sm:$0xff] }
 0x19f   : > { %v1770_v55 = vunpack.c.h.s8.bf16 %v614_v45  ;;  %v1772_v56 = vunpack.c.h.s8.bf16 %v616_v46 }
 0x1a1   : > { %4092 = vmatpush1.bf16.msra.mxu0 %v1726_v28  ;;  %5468 = vmatpush1.bf16.msra.mxu1 %v1728_v29  ;;  %v8260_v28 = vld [vmem:[%s8055_s12 + $0x120] sm:$0xff]  ;;  %v1766_v29 = vunpack.c.l.s8.bf16 %v614_v45 }
 0x1a2   : > { %4093 = vmatprep.subr.bf16.mxu0 %v1731_v30  ;;  %5469 = vmatprep.subr.bf16.mxu1 %v1733_v33  ;;  %v1768_v30 = vunpack.c.l.s8.bf16 %v616_v46  ;;  %v1771_v33 = vunpack.c.h.s8.bf16 %v615_v20  ;;  %v635_v20 = vld [vmem:[%s8057_s24 + $0x4a8] sm:$0xff]  ;;  %v634_v45 = vld [vmem:[%s8057_s24 + $0x4a0] sm:$0xff]  ;;  %v636_v46 = vld [vmem:[%s8057_s24 + $0x4b0] sm:$0xff] }
 0x1a5   : > { %4094 = vmatpush1.bf16.msra.mxu0 %v1730_v36  ;;  %5470 = vmatpush1.bf16.msra.mxu1 %v1732_v37  ;;  %v621_v36 = vld [vmem:[%s8057_s24 + $0x438] sm:$0xff]  ;;  %v7018_v37 = vcombine.high %v8257_v27, %v8260_v28 }
 0x1a6   : > { %4095 = vmatprep.subr.bf16.mxu0 %v1735_v38  ;;  %5471 = vmatprep.subr.bf16.mxu1 %v1737_v39  ;;  %v1775_v38 = vunpack.c.l.s8.bf16 %v619_v35  ;;  %v1777_v39 = vunpack.c.l.s8.bf16 %v621_v36 }
 0x1a9   : > { %4096 = vmatpush1.bf16.msra.mxu0 %v1734_v42  ;;  %5472 = vmatpush1.bf16.msra.mxu1 %v1736_v43  ;;  %v1774_v42 = vunpack.c.l.s8.bf16 %v618_v40  ;;  %v1776_v43 = vunpack.c.l.s8.bf16 %v620_v41 }
 0x1aa   : > { %4097 = vmatprep.subr.bf16.mxu0 %v1739_v44  ;;  %5473 = vmatprep.subr.bf16.mxu1 %v1741_v47  ;;  %v1779_v44 = vunpack.c.h.s8.bf16 %v619_v35  ;;  %v1781_v47 = vunpack.c.h.s8.bf16 %v621_v36  ;;  %v641_v35 = vld [vmem:[%s8057_s24 + $0x4d8] sm:$0xff]  ;;  %v1810_v36 = vunpack.c.h.s8.bf16 %v634_v45 }
 0x1ad   : > { %4098 = vmatpush1.bf16.msra.mxu0 %v1738_v50  ;;  %5474 = vmatpush1.bf16.msra.mxu1 %v1740_v51  ;;  %v1778_v50 = vunpack.c.h.s8.bf16 %v618_v40  ;;  %v1780_v51 = vunpack.c.h.s8.bf16 %v620_v41 }
 0x1ae   : > { %4099 = vmatprep.subr.bf16.mxu0 %v1743_v52  ;;  %5475 = vmatprep.subr.bf16.mxu1 %v1745_v53  ;;  %v1783_v52 = vunpack.c.l.s8.bf16 %v623_v48  ;;  %v1785_v53 = vunpack.c.l.s8.bf16 %v625_v49 }
 0x1b1   : > { %4100 = vmatpush1.bf16.msra.mxu0 %v1742_v54  ;;  %5476 = vmatpush1.bf16.msra.mxu1 %v1744_v57  ;;  %v1782_v54 = vunpack.c.l.s8.bf16 %v622_v31  ;;  %v1784_v57 = vunpack.c.l.s8.bf16 %v624_v32 }
 0x1b2   : > { %4101 = vmatprep.subr.bf16.mxu0 %v1747_v58  ;;  %5477 = vmatprep.subr.bf16.mxu1 %v1749_v59  ;;  %v1787_v58 = vunpack.c.h.s8.bf16 %v623_v48  ;;  %v1789_v59 = vunpack.c.h.s8.bf16 %v625_v49 }
 0x1b5   : > { %4102 = vmatpush1.bf16.msra.mxu0 %v1746_v62  ;;  %5478 = vmatpush1.bf16.msra.mxu1 %v1748_v63  ;;  %v1786_v62 = vunpack.c.h.s8.bf16 %v622_v31  ;;  %v1788_v63 = vunpack.c.h.s8.bf16 %v624_v32 }
 0x1b6   : > { %4103 = vmatprep.subr.bf16.mxu0 %v1751_v17  ;;  %5479 = vmatprep.subr.bf16.mxu1 %v1753_v18  ;;  %v1791_v17 = vunpack.c.l.s8.bf16 %v627_v60  ;;  %v1793_v18 = vunpack.c.l.s8.bf16 %v629_v61 }
 0x1b9   : > { %4104 = vmatpush1.bf16.msra.mxu0 %v1750_v2  ;;  %5480 = vmatpush1.bf16.msra.mxu1 %v1752_v3  ;;  %v1790_v2 = vunpack.c.l.s8.bf16 %v626_v0  ;;  %v1792_v3 = vunpack.c.l.s8.bf16 %v628_v1 }
 0x1ba   : > { %4105 = vmatprep.subr.bf16.mxu0 %v1755_v4  ;;  %5481 = vmatprep.subr.bf16.mxu1 %v1757_v5  ;;  %v1795_v4 = vunpack.c.h.s8.bf16 %v627_v60  ;;  %v1797_v5 = vunpack.c.h.s8.bf16 %v629_v61 }
 0x1bd   : > { %4106 = vmatpush1.bf16.msra.mxu0 %v1754_v8  ;;  %5482 = vmatpush1.bf16.msra.mxu1 %v1756_v9  ;;  %v1794_v8 = vunpack.c.h.s8.bf16 %v626_v0  ;;  %v1796_v9 = vunpack.c.h.s8.bf16 %v628_v1  ;;  %v7017_v0 = vcombine.low %v8257_v27, %v8260_v28  ;;  %v8299_v1 = vld [vmem:[%s8055_s12 + $0x28] sm:$0xff] }
 0x1be   : > { %4107 = vmatprep.subr.bf16.mxu0 %v1759_v10  ;;  %5483 = vmatprep.subr.bf16.mxu1 %v1761_v11  ;;  %v1799_v10 = vunpack.c.l.s8.bf16 %v631_v6  ;;  %v1801_v11 = vunpack.c.l.s8.bf16 %v633_v7 }
 0x1c1   : > { %4108 = vmatpush1.bf16.msra.mxu0 %v1758_v14  ;;  %5484 = vmatpush1.bf16.msra.mxu1 %v1760_v15  ;;  %v1798_v14 = vunpack.c.l.s8.bf16 %v630_v12  ;;  %v1800_v15 = vunpack.c.l.s8.bf16 %v632_v13 }
 0x1c2   : > { %4109 = vmatprep.subr.bf16.mxu0 %v1763_v16  ;;  %5485 = vmatprep.subr.bf16.mxu1 %v1765_v19  ;;  %v1803_v16 = vunpack.c.h.s8.bf16 %v631_v6  ;;  %v1805_v19 = vunpack.c.h.s8.bf16 %v633_v7  ;;  %v651_v7 = vld [vmem:[%s8057_s24 + $0x528] sm:$0xff] }
 0x1c5   : > { %4110 = vmatpush1.bf16.msra.mxu0 %v1762_v22  ;;  %5486 = vmatpush1.bf16.msra.mxu1 %v1764_v23  ;;  %v1802_v22 = vunpack.c.h.s8.bf16 %v630_v12  ;;  %v1804_v23 = vunpack.c.h.s8.bf16 %v632_v13  ;;  %v650_v12 = vld [vmem:[%s8057_s24 + $0x520] sm:$0xff]  ;;  %v652_v13 = vld [vmem:[%s8057_s24 + $0x530] sm:$0xff] }
 0x1c6   : > { %4122 = vmatprep.subr.bf16.mxu0 %v1767_v24  ;;  %5498 = vmatprep.subr.bf16.mxu1 %v1769_v25  ;;  %v1807_v24 = vunpack.c.l.s8.bf16 %v635_v20  ;;  %v1809_v25 = vunpack.c.l.s8.bf16 %v637_v21 }
 0x1c8   : > { %4112 = vmatmul.mubr.bf16.vlgmr.msra.gmra.mrb[0].mxu0 %v7015_v26  ;;  %5488 = vmatmul.mubr.bf16.vlgmr.msra.gmra.mrb[0].mxu1 %v7015_v26  ;;  %v1806_v26 = vunpack.c.l.s8.bf16 %v634_v45  ;;  %v654_v45 = vld [vmem:[%s8057_s24 + $0x540] sm:$0xff] }
 0x1c9   : > { %4123 = vmatpush1.bf16.msra.mxu0 %v1766_v29  ;;  %5499 = vmatpush1.bf16.msra.mxu1 %v1768_v30  ;;  %v1808_v29 = vunpack.c.l.s8.bf16 %v636_v46  ;;  %v1811_v30 = vunpack.c.h.s8.bf16 %v635_v20  ;;  %v655_v20 = vld [vmem:[%s8057_s24 + $0x548] sm:$0xff] }
 0x1ca   : > { %4124 = vmatprep.subr.bf16.mxu0 %v1771_v33  ;;  %5500 = vmatprep.subr.bf16.mxu1 %v1773_v34  ;;  %v1813_v33 = vunpack.c.h.s8.bf16 %v637_v21  ;;  %v639_v34 = vld [vmem:[%s8057_s24 + $0x4c8] sm:$0xff]  ;;  %v657_v21 = vld [vmem:[%s8057_s24 + $0x558] sm:$0xff] }
 0x1cb   : > { %4154 = vmatprep.mubr.bf16.mxu0 %v7018_v37  ;;  %5530 = vmatprep.mubr.bf16.mxu1 %v7018_v37  ;;  %v1812_v37 = vunpack.c.h.s8.bf16 %v636_v46  ;;  %v656_v46 = vld [vmem:[%s8057_s24 + $0x550] sm:$0xff] }
 0x1cd   : > { %4125 = vmatpush1.bf16.msra.mxu0 %v1770_v55  ;;  %5501 = vmatpush1.bf16.msra.mxu1 %v1772_v56  ;;  %v1815_v55 = vunpack.c.l.s8.bf16 %v639_v34  ;;  %v1817_v56 = vunpack.c.l.s8.bf16 %v641_v35 }
 0x1ce   : > { %4126 = vmatprep.subr.bf16.mxu0 %v1775_v38  ;;  %5502 = vmatprep.subr.bf16.mxu1 %v1777_v39  ;;  %v638_v38 = vld [vmem:[%s8057_s24 + $0x4c0] sm:$0xff]  ;;  %v640_v39 = vld [vmem:[%s8057_s24 + $0x4d0] sm:$0xff] }
 0x1cf   : > { %v1814_v40 = vunpack.c.l.s8.bf16 %v638_v38  ;;  %v1816_v41 = vunpack.c.l.s8.bf16 %v640_v39  ;;  %v1818_v48 = vunpack.c.h.s8.bf16 %v638_v38  ;;  %v1820_v49 = vunpack.c.h.s8.bf16 %v640_v39  ;;  %v658_v38 = vld [vmem:[%s8057_s24 + $0x560] sm:$0xff]  ;;  %v660_v39 = vld [vmem:[%s8057_s24 + $0x570] sm:$0xff] }
 0x1d1   : > { %4127 = vmatpush1.bf16.msra.mxu0 %v1774_v42  ;;  %5503 = vmatpush1.bf16.msra.mxu1 %v1776_v43  ;;  %v1819_v42 = vunpack.c.h.s8.bf16 %v639_v34  ;;  %v1821_v43 = vunpack.c.h.s8.bf16 %v641_v35  ;;  %v659_v34 = vld [vmem:[%s8057_s24 + $0x568] sm:$0xff]  ;;  %v661_v35 = vld [vmem:[%s8057_s24 + $0x578] sm:$0xff] }
 0x1d2   : > { %4128 = vmatprep.subr.bf16.mxu0 %v1779_v44  ;;  %5504 = vmatprep.subr.bf16.mxu1 %v1781_v47  ;;  %v643_v44 = vld [vmem:[%s8057_s24 + $0x4e8] sm:$0xff]  ;;  %v645_v47 = vld [vmem:[%s8057_s24 + $0x4f8] sm:$0xff] }
 0x1d5   : > { %4129 = vmatpush1.bf16.msra.mxu0 %v1778_v50  ;;  %5505 = vmatpush1.bf16.msra.mxu1 %v1780_v51  ;;  %v1823_v50 = vunpack.c.l.s8.bf16 %v643_v44  ;;  %v1825_v51 = vunpack.c.l.s8.bf16 %v645_v47 }
 0x1d6   : > { %4130 = vmatprep.subr.bf16.mxu0 %v1783_v52  ;;  %5506 = vmatprep.subr.bf16.mxu1 %v1785_v53  ;;  %v642_v52 = vld [vmem:[%s8057_s24 + $0x4e0] sm:$0xff]  ;;  %v644_v53 = vld [vmem:[%s8057_s24 + $0x4f0] sm:$0xff] }
 0x1d7   : > { %v1822_v31 = vunpack.c.l.s8.bf16 %v642_v52  ;;  %v1824_v32 = vunpack.c.l.s8.bf16 %v644_v53  ;;  %v1826_v60 = vunpack.c.h.s8.bf16 %v642_v52  ;;  %v1828_v61 = vunpack.c.h.s8.bf16 %v644_v53  ;;  %v662_v52 = vld [vmem:[%s8057_s24 + $0x580] sm:$0xff]  ;;  %v664_v53 = vld [vmem:[%s8057_s24 + $0x590] sm:$0xff] }
 0x1d9   : > { %4131 = vmatpush1.bf16.msra.mxu0 %v1782_v54  ;;  %5507 = vmatpush1.bf16.msra.mxu1 %v1784_v57  ;;  %v1827_v54 = vunpack.c.h.s8.bf16 %v643_v44  ;;  %v1829_v57 = vunpack.c.h.s8.bf16 %v645_v47  ;;  %v663_v44 = vld [vmem:[%s8057_s24 + $0x588] sm:$0xff]  ;;  %v665_v47 = vld [vmem:[%s8057_s24 + $0x598] sm:$0xff] }
 0x1da   : > { %4132 = vmatprep.subr.bf16.mxu0 %v1787_v58  ;;  %5508 = vmatprep.subr.bf16.mxu1 %v1789_v59  ;;  %v647_v58 = vld [vmem:[%s8057_s24 + $0x508] sm:$0xff]  ;;  %v649_v59 = vld [vmem:[%s8057_s24 + $0x518] sm:$0xff] }
 0x1db   : > { %v1837_v6 = vunpack.c.h.s8.bf16 %v649_v59 }
 0x1dd   : > { %4133 = vmatpush1.bf16.msra.mxu0 %v1786_v62  ;;  %5509 = vmatpush1.bf16.msra.mxu1 %v1788_v63  ;;  %v1831_v62 = vunpack.c.l.s8.bf16 %v647_v58  ;;  %v1833_v63 = vunpack.c.l.s8.bf16 %v649_v59  ;;  %v669_v59 = vld [vmem:[%s8057_s24 + $0x5b8] sm:$0xff] }
 0x1de   : > { %4134 = vmatprep.subr.bf16.mxu0 %v1791_v17  ;;  %5510 = vmatprep.subr.bf16.mxu1 %v1793_v18  ;;  %v646_v17 = vld [vmem:[%s8057_s24 + $0x500] sm:$0xff]  ;;  %v648_v18 = vld [vmem:[%s8057_s24 + $0x510] sm:$0xff] }
 0x1df   : > { %v1834_v27 = vunpack.c.h.s8.bf16 %v646_v17  ;;  %v1836_v28 = vunpack.c.h.s8.bf16 %v648_v18 }
 0x1e1   : > { %4135 = vmatpush1.bf16.msra.mxu0 %v1790_v2  ;;  %5511 = vmatpush1.bf16.msra.mxu1 %v1792_v3  ;;  %v8302_v2 = vld [vmem:[%s8055_s12 + $0x128] sm:$0xff]  ;;  %v1830_v3 = vunpack.c.l.s8.bf16 %v646_v17  ;;  %v666_v17 = vld [vmem:[%s8057_s24 + $0x5a0] sm:$0xff] }
 0x1e2   : > { %4136 = vmatprep.subr.bf16.mxu0 %v1795_v4  ;;  %5512 = vmatprep.subr.bf16.mxu1 %v1797_v5  ;;  %v1832_v4 = vunpack.c.l.s8.bf16 %v648_v18  ;;  %v1835_v5 = vunpack.c.h.s8.bf16 %v647_v58  ;;  %v667_v58 = vld [vmem:[%s8057_s24 + $0x5a8] sm:$0xff]  ;;  %v668_v18 = vld [vmem:[%s8057_s24 + $0x5b0] sm:$0xff] }
 0x1e5   : > { %4137 = vmatpush1.bf16.msra.mxu0 %v1794_v8  ;;  %5513 = vmatpush1.bf16.msra.mxu1 %v1796_v9  ;;  %v653_v8 = vld [vmem:[%s8057_s24 + $0x538] sm:$0xff]  ;;  %v7020_v9 = vcombine.high %v8299_v1, %v8302_v2 }
 0x1e6   : > { %4138 = vmatprep.subr.bf16.mxu0 %v1799_v10  ;;  %5514 = vmatprep.subr.bf16.mxu1 %v1801_v11  ;;  %v1839_v10 = vunpack.c.l.s8.bf16 %v651_v7  ;;  %v1841_v11 = vunpack.c.l.s8.bf16 %v653_v8 }
 0x1e9   : > { %4139 = vmatpush1.bf16.msra.mxu0 %v1798_v14  ;;  %5515 = vmatpush1.bf16.msra.mxu1 %v1800_v15  ;;  %v1838_v14 = vunpack.c.l.s8.bf16 %v650_v12  ;;  %v1840_v15 = vunpack.c.l.s8.bf16 %v652_v13 }
 0x1ea   : > { %4140 = vmatprep.subr.bf16.mxu0 %v1803_v16  ;;  %5516 = vmatprep.subr.bf16.mxu1 %v1805_v19  ;;  %v1843_v16 = vunpack.c.h.s8.bf16 %v651_v7  ;;  %v1845_v19 = vunpack.c.h.s8.bf16 %v653_v8  ;;  %v673_v7 = vld [vmem:[%s8057_s24 + $0x5d8] sm:$0xff]  ;;  %v1874_v8 = vunpack.c.h.s8.bf16 %v666_v17 }
 0x1ed   : > { %4141 = vmatpush1.bf16.msra.mxu0 %v1802_v22  ;;  %5517 = vmatpush1.bf16.msra.mxu1 %v1804_v23  ;;  %v1842_v22 = vunpack.c.h.s8.bf16 %v650_v12  ;;  %v1844_v23 = vunpack.c.h.s8.bf16 %v652_v13 }
 0x1ee   : > { %4142 = vmatprep.subr.bf16.mxu0 %v1807_v24  ;;  %5518 = vmatprep.subr.bf16.mxu1 %v1809_v25  ;;  %v1847_v24 = vunpack.c.l.s8.bf16 %v655_v20  ;;  %v1849_v25 = vunpack.c.l.s8.bf16 %v657_v21 }
 0x1f1   : > { %4143 = vmatpush1.bf16.msra.mxu0 %v1806_v26  ;;  %5519 = vmatpush1.bf16.msra.mxu1 %v1808_v29  ;;  %v1846_v26 = vunpack.c.l.s8.bf16 %v654_v45  ;;  %v1848_v29 = vunpack.c.l.s8.bf16 %v656_v46 }
 0x1f2   : > { %4144 = vmatprep.subr.bf16.mxu0 %v1811_v30  ;;  %5520 = vmatprep.subr.bf16.mxu1 %v1813_v33  ;;  %v1851_v30 = vunpack.c.h.s8.bf16 %v655_v20  ;;  %v1853_v33 = vunpack.c.h.s8.bf16 %v657_v21 }
 0x1f5   : > { %4145 = vmatpush1.bf16.msra.mxu0 %v1810_v36  ;;  %5521 = vmatpush1.bf16.msra.mxu1 %v1812_v37  ;;  %v1850_v36 = vunpack.c.h.s8.bf16 %v654_v45  ;;  %v1852_v37 = vunpack.c.h.s8.bf16 %v656_v46 }
 0x1f6   : > { %4146 = vmatprep.subr.bf16.mxu0 %v1815_v55  ;;  %5522 = vmatprep.subr.bf16.mxu1 %v1817_v56  ;;  %v1855_v55 = vunpack.c.l.s8.bf16 %v659_v34  ;;  %v1857_v56 = vunpack.c.l.s8.bf16 %v661_v35 }
 0x1f9   : > { %4147 = vmatpush1.bf16.msra.mxu0 %v1814_v40  ;;  %5523 = vmatpush1.bf16.msra.mxu1 %v1816_v41  ;;  %v1854_v40 = vunpack.c.l.s8.bf16 %v658_v38  ;;  %v1856_v41 = vunpack.c.l.s8.bf16 %v660_v39 }
 0x1fa   : > { %4148 = vmatprep.subr.bf16.mxu0 %v1819_v42  ;;  %5524 = vmatprep.subr.bf16.mxu1 %v1821_v43  ;;  %v1859_v42 = vunpack.c.h.s8.bf16 %v659_v34  ;;  %v1861_v43 = vunpack.c.h.s8.bf16 %v661_v35 }
 0x1fd   : > { %4149 = vmatpush1.bf16.msra.mxu0 %v1818_v48  ;;  %5525 = vmatpush1.bf16.msra.mxu1 %v1820_v49  ;;  %v1858_v48 = vunpack.c.h.s8.bf16 %v658_v38  ;;  %v1860_v49 = vunpack.c.h.s8.bf16 %v660_v39  ;;  %v7019_v38 = vcombine.low %v8299_v1, %v8302_v2  ;;  %v8341_v39 = vld [vmem:[%s8055_s12 + $0x30] sm:$0xff] }
 0x1fe   : > { %4150 = vmatprep.subr.bf16.mxu0 %v1823_v50  ;;  %5526 = vmatprep.subr.bf16.mxu1 %v1825_v51  ;;  %v1863_v50 = vunpack.c.l.s8.bf16 %v663_v44  ;;  %v1865_v51 = vunpack.c.l.s8.bf16 %v665_v47 }
 0x201   : > { %4151 = vmatpush1.bf16.msra.mxu0 %v1822_v31  ;;  %5527 = vmatpush1.bf16.msra.mxu1 %v1824_v32  ;;  %v1862_v31 = vunpack.c.l.s8.bf16 %v662_v52  ;;  %v1864_v32 = vunpack.c.l.s8.bf16 %v664_v53 }
 0x202   : > { %4152 = vmatprep.subr.bf16.mxu0 %v1827_v54  ;;  %5528 = vmatprep.subr.bf16.mxu1 %v1829_v57  ;;  %v1867_v54 = vunpack.c.h.s8.bf16 %v663_v44  ;;  %v1869_v57 = vunpack.c.h.s8.bf16 %v665_v47  ;;  %v683_v47 = vld [vmem:[%s8057_s24 + $0x628] sm:$0xff] }
 0x205   : > { %4153 = vmatpush1.bf16.msra.mxu0 %v1826_v60  ;;  %5529 = vmatpush1.bf16.msra.mxu1 %v1828_v61  ;;  %v1866_v60 = vunpack.c.h.s8.bf16 %v662_v52  ;;  %v1868_v61 = vunpack.c.h.s8.bf16 %v664_v53  ;;  %v682_v52 = vld [vmem:[%s8057_s24 + $0x620] sm:$0xff]  ;;  %v684_v53 = vld [vmem:[%s8057_s24 + $0x630] sm:$0xff] }
 0x206   : > { %4165 = vmatprep.subr.bf16.mxu0 %v1831_v62  ;;  %5541 = vmatprep.subr.bf16.mxu1 %v1833_v63  ;;  %v1871_v62 = vunpack.c.l.s8.bf16 %v667_v58  ;;  %v1873_v63 = vunpack.c.l.s8.bf16 %v669_v59 }
 0x208   : > { %4155 = vmatmul.mubr.bf16.vlgmr.msra.gmra.mrb[0].mxu0 %v7017_v0  ;;  %5531 = vmatmul.mubr.bf16.vlgmr.msra.gmra.mrb[0].mxu1 %v7017_v0  ;;  %v1870_v0 = vunpack.c.l.s8.bf16 %v666_v17  ;;  %v686_v17 = vld [vmem:[%s8057_s24 + $0x640] sm:$0xff] }
 0x209   : > { %4166 = vmatpush1.bf16.msra.mxu0 %v1830_v3  ;;  %5542 = vmatpush1.bf16.msra.mxu1 %v1832_v4  ;;  %v1872_v3 = vunpack.c.l.s8.bf16 %v668_v18  ;;  %v1875_v4 = vunpack.c.h.s8.bf16 %v667_v58  ;;  %v687_v58 = vld [vmem:[%s8057_s24 + $0x648] sm:$0xff] }
 0x20a   : > { %4167 = vmatprep.subr.bf16.mxu0 %v1835_v5  ;;  %5543 = vmatprep.subr.bf16.mxu1 %v1837_v6  ;;  %v1877_v5 = vunpack.c.h.s8.bf16 %v669_v59  ;;  %v671_v6 = vld [vmem:[%s8057_s24 + $0x5c8] sm:$0xff]  ;;  %v689_v59 = vld [vmem:[%s8057_s24 + $0x658] sm:$0xff] }
 0x20b   : > { %4197 = vmatprep.mubr.bf16.mxu0 %v7020_v9  ;;  %5573 = vmatprep.mubr.bf16.mxu1 %v7020_v9  ;;  %v1876_v9 = vunpack.c.h.s8.bf16 %v668_v18  ;;  %v688_v18 = vld [vmem:[%s8057_s24 + $0x650] sm:$0xff] }
 0x20d   : > { %4168 = vmatpush1.bf16.msra.mxu0 %v1834_v27  ;;  %5544 = vmatpush1.bf16.msra.mxu1 %v1836_v28  ;;  %v1879_v27 = vunpack.c.l.s8.bf16 %v671_v6  ;;  %v1881_v28 = vunpack.c.l.s8.bf16 %v673_v7 }
 0x20e   : > { %4169 = vmatprep.subr.bf16.mxu0 %v1839_v10  ;;  %5545 = vmatprep.subr.bf16.mxu1 %v1841_v11  ;;  %v670_v10 = vld [vmem:[%s8057_s24 + $0x5c0] sm:$0xff]  ;;  %v672_v11 = vld [vmem:[%s8057_s24 + $0x5d0] sm:$0xff] }
 0x20f   : > { %v1878_v12 = vunpack.c.l.s8.bf16 %v670_v10  ;;  %v1880_v13 = vunpack.c.l.s8.bf16 %v672_v11  ;;  %v1882_v20 = vunpack.c.h.s8.bf16 %v670_v10  ;;  %v1884_v21 = vunpack.c.h.s8.bf16 %v672_v11  ;;  %v690_v10 = vld [vmem:[%s8057_s24 + $0x660] sm:$0xff]  ;;  %v692_v11 = vld [vmem:[%s8057_s24 + $0x670] sm:$0xff] }
 0x211   : > { %4170 = vmatpush1.bf16.msra.mxu0 %v1838_v14  ;;  %5546 = vmatpush1.bf16.msra.mxu1 %v1840_v15  ;;  %v1883_v14 = vunpack.c.h.s8.bf16 %v671_v6  ;;  %v1885_v15 = vunpack.c.h.s8.bf16 %v673_v7  ;;  %v691_v6 = vld [vmem:[%s8057_s24 + $0x668] sm:$0xff]  ;;  %v693_v7 = vld [vmem:[%s8057_s24 + $0x678] sm:$0xff] }
 0x212   : > { %4171 = vmatprep.subr.bf16.mxu0 %v1843_v16  ;;  %5547 = vmatprep.subr.bf16.mxu1 %v1845_v19  ;;  %v675_v16 = vld [vmem:[%s8057_s24 + $0x5e8] sm:$0xff]  ;;  %v677_v19 = vld [vmem:[%s8057_s24 + $0x5f8] sm:$0xff] }
 0x215   : > { %4172 = vmatpush1.bf16.msra.mxu0 %v1842_v22  ;;  %5548 = vmatpush1.bf16.msra.mxu1 %v1844_v23  ;;  %v1887_v22 = vunpack.c.l.s8.bf16 %v675_v16  ;;  %v1889_v23 = vunpack.c.l.s8.bf16 %v677_v19 }
 0x216   : > { %4173 = vmatprep.subr.bf16.mxu0 %v1847_v24  ;;  %5549 = vmatprep.subr.bf16.mxu1 %v1849_v25  ;;  %v674_v24 = vld [vmem:[%s8057_s24 + $0x5e0] sm:$0xff]  ;;  %v676_v25 = vld [vmem:[%s8057_s24 + $0x5f0] sm:$0xff] }
 0x217   : > { %v1886_v45 = vunpack.c.l.s8.bf16 %v674_v24  ;;  %v1888_v46 = vunpack.c.l.s8.bf16 %v676_v25  ;;  %v1890_v34 = vunpack.c.h.s8.bf16 %v674_v24  ;;  %v1892_v35 = vunpack.c.h.s8.bf16 %v676_v25  ;;  %v694_v24 = vld [vmem:[%s8057_s24 + $0x680] sm:$0xff]  ;;  %v696_v25 = vld [vmem:[%s8057_s24 + $0x690] sm:$0xff] }
 0x219   : > { %4174 = vmatpush1.bf16.msra.mxu0 %v1846_v26  ;;  %5550 = vmatpush1.bf16.msra.mxu1 %v1848_v29  ;;  %v1891_v26 = vunpack.c.h.s8.bf16 %v675_v16  ;;  %v1893_v29 = vunpack.c.h.s8.bf16 %v677_v19  ;;  %v695_v16 = vld [vmem:[%s8057_s24 + $0x688] sm:$0xff]  ;;  %v697_v19 = vld [vmem:[%s8057_s24 + $0x698] sm:$0xff] }
 0x21a   : > { %4175 = vmatprep.subr.bf16.mxu0 %v1851_v30  ;;  %5551 = vmatprep.subr.bf16.mxu1 %v1853_v33  ;;  %v679_v30 = vld [vmem:[%s8057_s24 + $0x608] sm:$0xff]  ;;  %v681_v33 = vld [vmem:[%s8057_s24 + $0x618] sm:$0xff] }
 0x21b   : > { %v1901_v44 = vunpack.c.h.s8.bf16 %v681_v33 }
 0x21d   : > { %4176 = vmatpush1.bf16.msra.mxu0 %v1850_v36  ;;  %5552 = vmatpush1.bf16.msra.mxu1 %v1852_v37  ;;  %v1895_v36 = vunpack.c.l.s8.bf16 %v679_v30  ;;  %v1897_v37 = vunpack.c.l.s8.bf16 %v681_v33  ;;  %v701_v33 = vld [vmem:[%s8057_s24 + $0x6b8] sm:$0xff] }
 0x21e   : > { %4177 = vmatprep.subr.bf16.mxu0 %v1855_v55  ;;  %5553 = vmatprep.subr.bf16.mxu1 %v1857_v56  ;;  %v678_v55 = vld [vmem:[%s8057_s24 + $0x600] sm:$0xff]  ;;  %v680_v56 = vld [vmem:[%s8057_s24 + $0x610] sm:$0xff] }
 0x21f   : > { %v1898_v1 = vunpack.c.h.s8.bf16 %v678_v55  ;;  %v1900_v2 = vunpack.c.h.s8.bf16 %v680_v56 }
 0x221   : > { %4178 = vmatpush1.bf16.msra.mxu0 %v1854_v40  ;;  %5554 = vmatpush1.bf16.msra.mxu1 %v1856_v41  ;;  %v8344_v40 = vld [vmem:[%s8055_s12 + $0x130] sm:$0xff]  ;;  %v1894_v41 = vunpack.c.l.s8.bf16 %v678_v55  ;;  %v698_v55 = vld [vmem:[%s8057_s24 + $0x6a0] sm:$0xff] }
 0x222   : > { %4179 = vmatprep.subr.bf16.mxu0 %v1859_v42  ;;  %5555 = vmatprep.subr.bf16.mxu1 %v1861_v43  ;;  %v1896_v42 = vunpack.c.l.s8.bf16 %v680_v56  ;;  %v1899_v43 = vunpack.c.h.s8.bf16 %v679_v30  ;;  %v699_v30 = vld [vmem:[%s8057_s24 + $0x6a8] sm:$0xff]  ;;  %v700_v56 = vld [vmem:[%s8057_s24 + $0x6b0] sm:$0xff] }
 0x225   : > { %4180 = vmatpush1.bf16.msra.mxu0 %v1858_v48  ;;  %5556 = vmatpush1.bf16.msra.mxu1 %v1860_v49  ;;  %v685_v48 = vld [vmem:[%s8057_s24 + $0x638] sm:$0xff]  ;;  %v7022_v49 = vcombine.high %v8341_v39, %v8344_v40 }
 0x226   : > { %4181 = vmatprep.subr.bf16.mxu0 %v1863_v50  ;;  %5557 = vmatprep.subr.bf16.mxu1 %v1865_v51  ;;  %v1903_v50 = vunpack.c.l.s8.bf16 %v683_v47  ;;  %v1905_v51 = vunpack.c.l.s8.bf16 %v685_v48 }
 0x229   : > { %4182 = vmatpush1.bf16.msra.mxu0 %v1862_v31  ;;  %5558 = vmatpush1.bf16.msra.mxu1 %v1864_v32  ;;  %v1902_v31 = vunpack.c.l.s8.bf16 %v682_v52  ;;  %v1904_v32 = vunpack.c.l.s8.bf16 %v684_v53 }
 0x22a   : > { %4183 = vmatprep.subr.bf16.mxu0 %v1867_v54  ;;  %5559 = vmatprep.subr.bf16.mxu1 %v1869_v57  ;;  %v1907_v54 = vunpack.c.h.s8.bf16 %v683_v47  ;;  %v1909_v57 = vunpack.c.h.s8.bf16 %v685_v48  ;;  %v705_v47 = vld [vmem:[%s8057_s24 + $0x6d8] sm:$0xff]  ;;  %v1938_v48 = vunpack.c.h.s8.bf16 %v698_v55 }
 0x22d   : > { %4184 = vmatpush1.bf16.msra.mxu0 %v1866_v60  ;;  %5560 = vmatpush1.bf16.msra.mxu1 %v1868_v61  ;;  %v1906_v60 = vunpack.c.h.s8.bf16 %v682_v52  ;;  %v1908_v61 = vunpack.c.h.s8.bf16 %v684_v53 }
 0x22e   : > { %4185 = vmatprep.subr.bf16.mxu0 %v1871_v62  ;;  %5561 = vmatprep.subr.bf16.mxu1 %v1873_v63  ;;  %v1911_v62 = vunpack.c.l.s8.bf16 %v687_v58  ;;  %v1913_v63 = vunpack.c.l.s8.bf16 %v689_v59 }
 0x231   : > { %4186 = vmatpush1.bf16.msra.mxu0 %v1870_v0  ;;  %5562 = vmatpush1.bf16.msra.mxu1 %v1872_v3  ;;  %v1910_v0 = vunpack.c.l.s8.bf16 %v686_v17  ;;  %v1912_v3 = vunpack.c.l.s8.bf16 %v688_v18 }
 0x232   : > { %4187 = vmatprep.subr.bf16.mxu0 %v1875_v4  ;;  %5563 = vmatprep.subr.bf16.mxu1 %v1877_v5  ;;  %v1915_v4 = vunpack.c.h.s8.bf16 %v687_v58  ;;  %v1917_v5 = vunpack.c.h.s8.bf16 %v689_v59 }
 0x235   : > { %4188 = vmatpush1.bf16.msra.mxu0 %v1874_v8  ;;  %5564 = vmatpush1.bf16.msra.mxu1 %v1876_v9  ;;  %v1914_v8 = vunpack.c.h.s8.bf16 %v686_v17  ;;  %v1916_v9 = vunpack.c.h.s8.bf16 %v688_v18 }
 0x236   : > { %4189 = vmatprep.subr.bf16.mxu0 %v1879_v27  ;;  %5565 = vmatprep.subr.bf16.mxu1 %v1881_v28  ;;  %v1919_v27 = vunpack.c.l.s8.bf16 %v691_v6  ;;  %v1921_v28 = vunpack.c.l.s8.bf16 %v693_v7 }
 0x239   : > { %4190 = vmatpush1.bf16.msra.mxu0 %v1878_v12  ;;  %5566 = vmatpush1.bf16.msra.mxu1 %v1880_v13  ;;  %v1918_v12 = vunpack.c.l.s8.bf16 %v690_v10  ;;  %v1920_v13 = vunpack.c.l.s8.bf16 %v692_v11 }
 0x23a   : > { %4191 = vmatprep.subr.bf16.mxu0 %v1883_v14  ;;  %5567 = vmatprep.subr.bf16.mxu1 %v1885_v15  ;;  %v1923_v14 = vunpack.c.h.s8.bf16 %v691_v6  ;;  %v1925_v15 = vunpack.c.h.s8.bf16 %v693_v7 }
 0x23d   : > { %4192 = vmatpush1.bf16.msra.mxu0 %v1882_v20  ;;  %5568 = vmatpush1.bf16.msra.mxu1 %v1884_v21  ;;  %v1922_v20 = vunpack.c.h.s8.bf16 %v690_v10  ;;  %v1924_v21 = vunpack.c.h.s8.bf16 %v692_v11  ;;  %v7021_v10 = vcombine.low %v8341_v39, %v8344_v40  ;;  %v8383_v11 = vld [vmem:[%s8055_s12 + $0x38] sm:$0xff] }
 0x23e   : > { %4193 = vmatprep.subr.bf16.mxu0 %v1887_v22  ;;  %5569 = vmatprep.subr.bf16.mxu1 %v1889_v23  ;;  %v1927_v22 = vunpack.c.l.s8.bf16 %v695_v16  ;;  %v1929_v23 = vunpack.c.l.s8.bf16 %v697_v19 }
 0x241   : > { %4194 = vmatpush1.bf16.msra.mxu0 %v1886_v45  ;;  %5570 = vmatpush1.bf16.msra.mxu1 %v1888_v46  ;;  %v1926_v45 = vunpack.c.l.s8.bf16 %v694_v24  ;;  %v1928_v46 = vunpack.c.l.s8.bf16 %v696_v25 }
 0x242   : > { %4195 = vmatprep.subr.bf16.mxu0 %v1891_v26  ;;  %5571 = vmatprep.subr.bf16.mxu1 %v1893_v29  ;;  %v1931_v26 = vunpack.c.h.s8.bf16 %v695_v16  ;;  %v1933_v29 = vunpack.c.h.s8.bf16 %v697_v19  ;;  %v715_v19 = vld [vmem:[%s8057_s24 + $0x728] sm:$0xff] }
 0x245   : > { %4196 = vmatpush1.bf16.msra.mxu0 %v1890_v34  ;;  %5572 = vmatpush1.bf16.msra.mxu1 %v1892_v35  ;;  %v1930_v34 = vunpack.c.h.s8.bf16 %v694_v24  ;;  %v1932_v35 = vunpack.c.h.s8.bf16 %v696_v25  ;;  %v714_v24 = vld [vmem:[%s8057_s24 + $0x720] sm:$0xff]  ;;  %v716_v25 = vld [vmem:[%s8057_s24 + $0x730] sm:$0xff] }
 0x246   : > { %4208 = vmatprep.subr.bf16.mxu0 %v1895_v36  ;;  %5584 = vmatprep.subr.bf16.mxu1 %v1897_v37  ;;  %v1935_v36 = vunpack.c.l.s8.bf16 %v699_v30  ;;  %v1937_v37 = vunpack.c.l.s8.bf16 %v701_v33 }
 0x248   : > { %4198 = vmatmul.mubr.bf16.vlgmr.msra.gmra.mrb[0].mxu0 %v7019_v38  ;;  %5574 = vmatmul.mubr.bf16.vlgmr.msra.gmra.mrb[0].mxu1 %v7019_v38  ;;  %v1934_v38 = vunpack.c.l.s8.bf16 %v698_v55  ;;  %v718_v55 = vld [vmem:[%s8057_s24 + $0x740] sm:$0xff] }
 0x249   : > { %4209 = vmatpush1.bf16.msra.mxu0 %v1894_v41  ;;  %5585 = vmatpush1.bf16.msra.mxu1 %v1896_v42  ;;  %v1936_v41 = vunpack.c.l.s8.bf16 %v700_v56  ;;  %v1939_v42 = vunpack.c.h.s8.bf16 %v699_v30  ;;  %v719_v30 = vld [vmem:[%s8057_s24 + $0x748] sm:$0xff] }
 0x24a   : > { %4210 = vmatprep.subr.bf16.mxu0 %v1899_v43  ;;  %5586 = vmatprep.subr.bf16.mxu1 %v1901_v44  ;;  %v1941_v43 = vunpack.c.h.s8.bf16 %v701_v33  ;;  %v703_v44 = vld [vmem:[%s8057_s24 + $0x6c8] sm:$0xff]  ;;  %v721_v33 = vld [vmem:[%s8057_s24 + $0x758] sm:$0xff] }
 0x24b   : > { %4240 = vmatprep.mubr.bf16.mxu0 %v7022_v49  ;;  %5616 = vmatprep.mubr.bf16.mxu1 %v7022_v49  ;;  %v1940_v49 = vunpack.c.h.s8.bf16 %v700_v56  ;;  %v720_v56 = vld [vmem:[%s8057_s24 + $0x750] sm:$0xff] }
 0x24d   : > { %4211 = vmatpush1.bf16.msra.mxu0 %v1898_v1  ;;  %5587 = vmatpush1.bf16.msra.mxu1 %v1900_v2  ;;  %v1943_v1 = vunpack.c.l.s8.bf16 %v703_v44  ;;  %v1945_v2 = vunpack.c.l.s8.bf16 %v705_v47 }
 0x24e   : > { %4212 = vmatprep.subr.bf16.mxu0 %v1903_v50  ;;  %5588 = vmatprep.subr.bf16.mxu1 %v1905_v51  ;;  %v702_v50 = vld [vmem:[%s8057_s24 + $0x6c0] sm:$0xff]  ;;  %v704_v51 = vld [vmem:[%s8057_s24 + $0x6d0] sm:$0xff] }
 0x24f   : > { %v1942_v52 = vunpack.c.l.s8.bf16 %v702_v50  ;;  %v1944_v53 = vunpack.c.l.s8.bf16 %v704_v51  ;;  %v1946_v58 = vunpack.c.h.s8.bf16 %v702_v50  ;;  %v1948_v59 = vunpack.c.h.s8.bf16 %v704_v51  ;;  %v722_v50 = vld [vmem:[%s8057_s24 + $0x760] sm:$0xff]  ;;  %v724_v51 = vld [vmem:[%s8057_s24 + $0x770] sm:$0xff] }
 0x251   : > { %4213 = vmatpush1.bf16.msra.mxu0 %v1902_v31  ;;  %5589 = vmatpush1.bf16.msra.mxu1 %v1904_v32  ;;  %v1947_v31 = vunpack.c.h.s8.bf16 %v703_v44  ;;  %v1949_v32 = vunpack.c.h.s8.bf16 %v705_v47  ;;  %v723_v44 = vld [vmem:[%s8057_s24 + $0x768] sm:$0xff]  ;;  %v725_v47 = vld [vmem:[%s8057_s24 + $0x778] sm:$0xff] }
 0x252   : > { %4214 = vmatprep.subr.bf16.mxu0 %v1907_v54  ;;  %5590 = vmatprep.subr.bf16.mxu1 %v1909_v57  ;;  %v707_v54 = vld [vmem:[%s8057_s24 + $0x6e8] sm:$0xff]  ;;  %v709_v57 = vld [vmem:[%s8057_s24 + $0x6f8] sm:$0xff] }
 0x255   : > { %4215 = vmatpush1.bf16.msra.mxu0 %v1906_v60  ;;  %5591 = vmatpush1.bf16.msra.mxu1 %v1908_v61  ;;  %v1951_v60 = vunpack.c.l.s8.bf16 %v707_v54  ;;  %v1953_v61 = vunpack.c.l.s8.bf16 %v709_v57 }
 0x256   : > { %4216 = vmatprep.subr.bf16.mxu0 %v1911_v62  ;;  %5592 = vmatprep.subr.bf16.mxu1 %v1913_v63  ;;  %v706_v62 = vld [vmem:[%s8057_s24 + $0x6e0] sm:$0xff]  ;;  %v708_v63 = vld [vmem:[%s8057_s24 + $0x6f0] sm:$0xff] }
 0x257   : > { %v1950_v17 = vunpack.c.l.s8.bf16 %v706_v62  ;;  %v1952_v18 = vunpack.c.l.s8.bf16 %v708_v63  ;;  %v1954_v6 = vunpack.c.h.s8.bf16 %v706_v62  ;;  %v1956_v7 = vunpack.c.h.s8.bf16 %v708_v63  ;;  %v726_v62 = vld [vmem:[%s8057_s24 + $0x780] sm:$0xff]  ;;  %v728_v63 = vld [vmem:[%s8057_s24 + $0x790] sm:$0xff] }
 0x259   : > { %4217 = vmatpush1.bf16.msra.mxu0 %v1910_v0  ;;  %5593 = vmatpush1.bf16.msra.mxu1 %v1912_v3  ;;  %v1955_v0 = vunpack.c.h.s8.bf16 %v707_v54  ;;  %v1957_v3 = vunpack.c.h.s8.bf16 %v709_v57  ;;  %v727_v54 = vld [vmem:[%s8057_s24 + $0x788] sm:$0xff]  ;;  %v729_v57 = vld [vmem:[%s8057_s24 + $0x798] sm:$0xff] }
 0x25a   : > { %4218 = vmatprep.subr.bf16.mxu0 %v1915_v4  ;;  %5594 = vmatprep.subr.bf16.mxu1 %v1917_v5  ;;  %v711_v4 = vld [vmem:[%s8057_s24 + $0x708] sm:$0xff]  ;;  %v713_v5 = vld [vmem:[%s8057_s24 + $0x718] sm:$0xff] }
 0x25b   : > { %v1965_v16 = vunpack.c.h.s8.bf16 %v713_v5 }
 0x25d   : > { %4219 = vmatpush1.bf16.msra.mxu0 %v1914_v8  ;;  %5595 = vmatpush1.bf16.msra.mxu1 %v1916_v9  ;;  %v1959_v8 = vunpack.c.l.s8.bf16 %v711_v4  ;;  %v1961_v9 = vunpack.c.l.s8.bf16 %v713_v5  ;;  %v733_v5 = vld [vmem:[%s8057_s24 + $0x7b8] sm:$0xff] }
 0x25e   : > { %4220 = vmatprep.subr.bf16.mxu0 %v1919_v27  ;;  %5596 = vmatprep.subr.bf16.mxu1 %v1921_v28  ;;  %v710_v27 = vld [vmem:[%s8057_s24 + $0x700] sm:$0xff]  ;;  %v712_v28 = vld [vmem:[%s8057_s24 + $0x710] sm:$0xff] }
 0x25f   : > { %v1962_v39 = vunpack.c.h.s8.bf16 %v710_v27  ;;  %v1964_v40 = vunpack.c.h.s8.bf16 %v712_v28 }
 0x261   : > { %4221 = vmatpush1.bf16.msra.mxu0 %v1918_v12  ;;  %5597 = vmatpush1.bf16.msra.mxu1 %v1920_v13  ;;  %v8386_v12 = vld [vmem:[%s8055_s12 + $0x138] sm:$0xff]  ;;  %v1958_v13 = vunpack.c.l.s8.bf16 %v710_v27  ;;  %v730_v27 = vld [vmem:[%s8057_s24 + $0x7a0] sm:$0xff] }
 0x262   : > { %4222 = vmatprep.subr.bf16.mxu0 %v1923_v14  ;;  %5598 = vmatprep.subr.bf16.mxu1 %v1925_v15  ;;  %v1960_v14 = vunpack.c.l.s8.bf16 %v712_v28  ;;  %v1963_v15 = vunpack.c.h.s8.bf16 %v711_v4  ;;  %v731_v4 = vld [vmem:[%s8057_s24 + $0x7a8] sm:$0xff]  ;;  %v732_v28 = vld [vmem:[%s8057_s24 + $0x7b0] sm:$0xff] }
 0x265   : > { %4223 = vmatpush1.bf16.msra.mxu0 %v1922_v20  ;;  %5599 = vmatpush1.bf16.msra.mxu1 %v1924_v21  ;;  %v717_v20 = vld [vmem:[%s8057_s24 + $0x738] sm:$0xff]  ;;  %v7024_v21 = vcombine.high %v8383_v11, %v8386_v12 }
 0x266   : > { %4224 = vmatprep.subr.bf16.mxu0 %v1927_v22  ;;  %5600 = vmatprep.subr.bf16.mxu1 %v1929_v23  ;;  %v1967_v22 = vunpack.c.l.s8.bf16 %v715_v19  ;;  %v1969_v23 = vunpack.c.l.s8.bf16 %v717_v20 }
 0x269   : > { %4225 = vmatpush1.bf16.msra.mxu0 %v1926_v45  ;;  %5601 = vmatpush1.bf16.msra.mxu1 %v1928_v46  ;;  %v1966_v45 = vunpack.c.l.s8.bf16 %v714_v24  ;;  %v1968_v46 = vunpack.c.l.s8.bf16 %v716_v25 }
 0x26a   : > { %4226 = vmatprep.subr.bf16.mxu0 %v1931_v26  ;;  %5602 = vmatprep.subr.bf16.mxu1 %v1933_v29  ;;  %v1971_v26 = vunpack.c.h.s8.bf16 %v715_v19  ;;  %v1973_v29 = vunpack.c.h.s8.bf16 %v717_v20  ;;  %v737_v19 = vld [vmem:[%s8057_s24 + $0x7d8] sm:$0xff]  ;;  %v2002_v20 = vunpack.c.h.s8.bf16 %v730_v27 }
 0x26d   : > { %4227 = vmatpush1.bf16.msra.mxu0 %v1930_v34  ;;  %5603 = vmatpush1.bf16.msra.mxu1 %v1932_v35  ;;  %v1970_v34 = vunpack.c.h.s8.bf16 %v714_v24  ;;  %v1972_v35 = vunpack.c.h.s8.bf16 %v716_v25 }
 0x26e   : > { %4228 = vmatprep.subr.bf16.mxu0 %v1935_v36  ;;  %5604 = vmatprep.subr.bf16.mxu1 %v1937_v37  ;;  %v1975_v36 = vunpack.c.l.s8.bf16 %v719_v30  ;;  %v1977_v37 = vunpack.c.l.s8.bf16 %v721_v33 }
 0x271   : > { %4229 = vmatpush1.bf16.msra.mxu0 %v1934_v38  ;;  %5605 = vmatpush1.bf16.msra.mxu1 %v1936_v41  ;;  %v1974_v38 = vunpack.c.l.s8.bf16 %v718_v55  ;;  %v1976_v41 = vunpack.c.l.s8.bf16 %v720_v56 }
 0x272   : > { %4230 = vmatprep.subr.bf16.mxu0 %v1939_v42  ;;  %5606 = vmatprep.subr.bf16.mxu1 %v1941_v43  ;;  %v1979_v42 = vunpack.c.h.s8.bf16 %v719_v30  ;;  %v1981_v43 = vunpack.c.h.s8.bf16 %v721_v33 }
 0x275   : > { %4231 = vmatpush1.bf16.msra.mxu0 %v1938_v48  ;;  %5607 = vmatpush1.bf16.msra.mxu1 %v1940_v49  ;;  %v1978_v48 = vunpack.c.h.s8.bf16 %v718_v55  ;;  %v1980_v49 = vunpack.c.h.s8.bf16 %v720_v56 }
 0x276   : > { %4232 = vmatprep.subr.bf16.mxu0 %v1943_v1  ;;  %5608 = vmatprep.subr.bf16.mxu1 %v1945_v2  ;;  %v1983_v1 = vunpack.c.l.s8.bf16 %v723_v44  ;;  %v1985_v2 = vunpack.c.l.s8.bf16 %v725_v47 }
 0x279   : > { %4233 = vmatpush1.bf16.msra.mxu0 %v1942_v52  ;;  %5609 = vmatpush1.bf16.msra.mxu1 %v1944_v53  ;;  %v1982_v52 = vunpack.c.l.s8.bf16 %v722_v50  ;;  %v1984_v53 = vunpack.c.l.s8.bf16 %v724_v51 }
 0x27a   : > { %4234 = vmatprep.subr.bf16.mxu0 %v1947_v31  ;;  %5610 = vmatprep.subr.bf16.mxu1 %v1949_v32  ;;  %v1987_v31 = vunpack.c.h.s8.bf16 %v723_v44  ;;  %v1989_v32 = vunpack.c.h.s8.bf16 %v725_v47 }
 0x27d   : > { %4235 = vmatpush1.bf16.msra.mxu0 %v1946_v58  ;;  %5611 = vmatpush1.bf16.msra.mxu1 %v1948_v59  ;;  %v1986_v58 = vunpack.c.h.s8.bf16 %v722_v50  ;;  %v1988_v59 = vunpack.c.h.s8.bf16 %v724_v51  ;;  %v7023_v50 = vcombine.low %v8383_v11, %v8386_v12  ;;  %v8425_v51 = vld [vmem:[%s8055_s12 + $0x40] sm:$0xff] }
 0x27e   : > { %4236 = vmatprep.subr.bf16.mxu0 %v1951_v60  ;;  %5612 = vmatprep.subr.bf16.mxu1 %v1953_v61  ;;  %v1991_v60 = vunpack.c.l.s8.bf16 %v727_v54  ;;  %v1993_v61 = vunpack.c.l.s8.bf16 %v729_v57 }
 0x281   : > { %4237 = vmatpush1.bf16.msra.mxu0 %v1950_v17  ;;  %5613 = vmatpush1.bf16.msra.mxu1 %v1952_v18  ;;  %v1990_v17 = vunpack.c.l.s8.bf16 %v726_v62  ;;  %v1992_v18 = vunpack.c.l.s8.bf16 %v728_v63 }
 0x282   : > { %4238 = vmatprep.subr.bf16.mxu0 %v1955_v0  ;;  %5614 = vmatprep.subr.bf16.mxu1 %v1957_v3  ;;  %v1995_v0 = vunpack.c.h.s8.bf16 %v727_v54  ;;  %v1997_v3 = vunpack.c.h.s8.bf16 %v729_v57  ;;  %v747_v57 = vld [vmem:[%s8057_s24 + $0x828] sm:$0xff] }
 0x285   : > { %4239 = vmatpush1.bf16.msra.mxu0 %v1954_v6  ;;  %5615 = vmatpush1.bf16.msra.mxu1 %v1956_v7  ;;  %v1994_v6 = vunpack.c.h.s8.bf16 %v726_v62  ;;  %v1996_v7 = vunpack.c.h.s8.bf16 %v728_v63  ;;  %v746_v62 = vld [vmem:[%s8057_s24 + $0x820] sm:$0xff]  ;;  %v748_v63 = vld [vmem:[%s8057_s24 + $0x830] sm:$0xff] }
 0x286   : > { %4251 = vmatprep.subr.bf16.mxu0 %v1959_v8  ;;  %5627 = vmatprep.subr.bf16.mxu1 %v1961_v9  ;;  %v1999_v8 = vunpack.c.l.s8.bf16 %v731_v4  ;;  %v2001_v9 = vunpack.c.l.s8.bf16 %v733_v5 }
 0x288   : > { %4241 = vmatmul.mubr.bf16.vlgmr.msra.gmra.mrb[0].mxu0 %v7021_v10  ;;  %5617 = vmatmul.mubr.bf16.vlgmr.msra.gmra.mrb[0].mxu1 %v7021_v10  ;;  %v1998_v10 = vunpack.c.l.s8.bf16 %v730_v27  ;;  %v750_v27 = vld [vmem:[%s8057_s24 + $0x840] sm:$0xff] }
 0x289   : > { %4252 = vmatpush1.bf16.msra.mxu0 %v1958_v13  ;;  %5628 = vmatpush1.bf16.msra.mxu1 %v1960_v14  ;;  %v2000_v13 = vunpack.c.l.s8.bf16 %v732_v28  ;;  %v2003_v14 = vunpack.c.h.s8.bf16 %v731_v4  ;;  %v751_v4 = vld [vmem:[%s8057_s24 + $0x848] sm:$0xff] }
 0x28a   : > { %4253 = vmatprep.subr.bf16.mxu0 %v1963_v15  ;;  %5629 = vmatprep.subr.bf16.mxu1 %v1965_v16  ;;  %v2005_v15 = vunpack.c.h.s8.bf16 %v733_v5  ;;  %v735_v16 = vld [vmem:[%s8057_s24 + $0x7c8] sm:$0xff]  ;;  %v753_v5 = vld [vmem:[%s8057_s24 + $0x858] sm:$0xff] }
 0x28b   : > { %4283 = vmatprep.mubr.bf16.mxu0 %v7024_v21  ;;  %5659 = vmatprep.mubr.bf16.mxu1 %v7024_v21  ;;  %v2004_v21 = vunpack.c.h.s8.bf16 %v732_v28  ;;  %v752_v28 = vld [vmem:[%s8057_s24 + $0x850] sm:$0xff] }
 0x28d   : > { %4254 = vmatpush1.bf16.msra.mxu0 %v1962_v39  ;;  %5630 = vmatpush1.bf16.msra.mxu1 %v1964_v40  ;;  %v2007_v39 = vunpack.c.l.s8.bf16 %v735_v16  ;;  %v2009_v40 = vunpack.c.l.s8.bf16 %v737_v19 }
 0x28e   : > { %4255 = vmatprep.subr.bf16.mxu0 %v1967_v22  ;;  %5631 = vmatprep.subr.bf16.mxu1 %v1969_v23  ;;  %v734_v22 = vld [vmem:[%s8057_s24 + $0x7c0] sm:$0xff]  ;;  %v736_v23 = vld [vmem:[%s8057_s24 + $0x7d0] sm:$0xff] }
 0x28f   : > { %v2006_v24 = vunpack.c.l.s8.bf16 %v734_v22  ;;  %v2008_v25 = vunpack.c.l.s8.bf16 %v736_v23  ;;  %v2010_v30 = vunpack.c.h.s8.bf16 %v734_v22  ;;  %v2012_v33 = vunpack.c.h.s8.bf16 %v736_v23  ;;  %v754_v22 = vld [vmem:[%s8057_s24 + $0x860] sm:$0xff]  ;;  %v756_v23 = vld [vmem:[%s8057_s24 + $0x870] sm:$0xff] }
 0x291   : > { %4256 = vmatpush1.bf16.msra.mxu0 %v1966_v45  ;;  %5632 = vmatpush1.bf16.msra.mxu1 %v1968_v46  ;;  %v2011_v45 = vunpack.c.h.s8.bf16 %v735_v16  ;;  %v2013_v46 = vunpack.c.h.s8.bf16 %v737_v19  ;;  %v755_v16 = vld [vmem:[%s8057_s24 + $0x868] sm:$0xff]  ;;  %v757_v19 = vld [vmem:[%s8057_s24 + $0x878] sm:$0xff] }
 0x292   : > { %4257 = vmatprep.subr.bf16.mxu0 %v1971_v26  ;;  %5633 = vmatprep.subr.bf16.mxu1 %v1973_v29  ;;  %v739_v26 = vld [vmem:[%s8057_s24 + $0x7e8] sm:$0xff]  ;;  %v741_v29 = vld [vmem:[%s8057_s24 + $0x7f8] sm:$0xff] }
 0x295   : > { %4258 = vmatpush1.bf16.msra.mxu0 %v1970_v34  ;;  %5634 = vmatpush1.bf16.msra.mxu1 %v1972_v35  ;;  %v2015_v34 = vunpack.c.l.s8.bf16 %v739_v26  ;;  %v2017_v35 = vunpack.c.l.s8.bf16 %v741_v29 }
 0x296   : > { %4259 = vmatprep.subr.bf16.mxu0 %v1975_v36  ;;  %5635 = vmatprep.subr.bf16.mxu1 %v1977_v37  ;;  %v738_v36 = vld [vmem:[%s8057_s24 + $0x7e0] sm:$0xff]  ;;  %v740_v37 = vld [vmem:[%s8057_s24 + $0x7f0] sm:$0xff] }
 0x297   : > { %v2014_v55 = vunpack.c.l.s8.bf16 %v738_v36  ;;  %v2016_v56 = vunpack.c.l.s8.bf16 %v740_v37  ;;  %v2018_v44 = vunpack.c.h.s8.bf16 %v738_v36  ;;  %v2020_v47 = vunpack.c.h.s8.bf16 %v740_v37  ;;  %v758_v36 = vld [vmem:[%s8057_s24 + $0x880] sm:$0xff]  ;;  %v760_v37 = vld [vmem:[%s8057_s24 + $0x890] sm:$0xff] }
 0x299   : > { %4260 = vmatpush1.bf16.msra.mxu0 %v1974_v38  ;;  %5636 = vmatpush1.bf16.msra.mxu1 %v1976_v41  ;;  %v2019_v38 = vunpack.c.h.s8.bf16 %v739_v26  ;;  %v2021_v41 = vunpack.c.h.s8.bf16 %v741_v29  ;;  %v759_v26 = vld [vmem:[%s8057_s24 + $0x888] sm:$0xff]  ;;  %v761_v29 = vld [vmem:[%s8057_s24 + $0x898] sm:$0xff] }
 0x29a   : > { %4261 = vmatprep.subr.bf16.mxu0 %v1979_v42  ;;  %5637 = vmatprep.subr.bf16.mxu1 %v1981_v43  ;;  %v743_v42 = vld [vmem:[%s8057_s24 + $0x808] sm:$0xff]  ;;  %v745_v43 = vld [vmem:[%s8057_s24 + $0x818] sm:$0xff] }
 0x29b   : > { %v2029_v54 = vunpack.c.h.s8.bf16 %v745_v43 }
 0x29d   : > { %4262 = vmatpush1.bf16.msra.mxu0 %v1978_v48  ;;  %5638 = vmatpush1.bf16.msra.mxu1 %v1980_v49  ;;  %v2023_v48 = vunpack.c.l.s8.bf16 %v743_v42  ;;  %v2025_v49 = vunpack.c.l.s8.bf16 %v745_v43  ;;  %v765_v43 = vld [vmem:[%s8057_s24 + $0x8b8] sm:$0xff] }
 0x29e   : > { %4263 = vmatprep.subr.bf16.mxu0 %v1983_v1  ;;  %5639 = vmatprep.subr.bf16.mxu1 %v1985_v2  ;;  %v742_v1 = vld [vmem:[%s8057_s24 + $0x800] sm:$0xff]  ;;  %v744_v2 = vld [vmem:[%s8057_s24 + $0x810] sm:$0xff] }
 0x29f   : > { %v2026_v11 = vunpack.c.h.s8.bf16 %v742_v1  ;;  %v2028_v12 = vunpack.c.h.s8.bf16 %v744_v2 }
 0x2a1   : > { %4264 = vmatpush1.bf16.msra.mxu0 %v1982_v52  ;;  %5640 = vmatpush1.bf16.msra.mxu1 %v1984_v53  ;;  %v8428_v52 = vld [vmem:[%s8055_s12 + $0x140] sm:$0xff]  ;;  %v2022_v53 = vunpack.c.l.s8.bf16 %v742_v1 }
 0x2a2   : > { %4265 = vmatprep.subr.bf16.mxu0 %v1987_v31  ;;  %5641 = vmatprep.subr.bf16.mxu1 %v1989_v32  ;;  %v2024_v31 = vunpack.c.l.s8.bf16 %v744_v2  ;;  %v2027_v32 = vunpack.c.h.s8.bf16 %v743_v42  ;;  %v763_v42 = vld [vmem:[%s8057_s24 + $0x8a8] sm:$0xff]  ;;  %v762_v1 = vld [vmem:[%s8057_s24 + $0x8a0] sm:$0xff]  ;;  %v764_v2 = vld [vmem:[%s8057_s24 + $0x8b0] sm:$0xff] }
 0x2a5   : > { %4266 = vmatpush1.bf16.msra.mxu0 %v1986_v58  ;;  %5642 = vmatpush1.bf16.msra.mxu1 %v1988_v59  ;;  %v749_v58 = vld [vmem:[%s8057_s24 + $0x838] sm:$0xff]  ;;  %v7026_v59 = vcombine.high %v8425_v51, %v8428_v52 }
 0x2a6   : > { %4267 = vmatprep.subr.bf16.mxu0 %v1991_v60  ;;  %5643 = vmatprep.subr.bf16.mxu1 %v1993_v61  ;;  %v2031_v60 = vunpack.c.l.s8.bf16 %v747_v57  ;;  %v2033_v61 = vunpack.c.l.s8.bf16 %v749_v58 }
 0x2a9   : > { %4268 = vmatpush1.bf16.msra.mxu0 %v1990_v17  ;;  %5644 = vmatpush1.bf16.msra.mxu1 %v1992_v18  ;;  %v2030_v17 = vunpack.c.l.s8.bf16 %v746_v62  ;;  %v2032_v18 = vunpack.c.l.s8.bf16 %v748_v63 }
 0x2aa   : > { %4269 = vmatprep.subr.bf16.mxu0 %v1995_v0  ;;  %5645 = vmatprep.subr.bf16.mxu1 %v1997_v3  ;;  %v2035_v0 = vunpack.c.h.s8.bf16 %v747_v57  ;;  %v2037_v3 = vunpack.c.h.s8.bf16 %v749_v58  ;;  %v769_v57 = vld [vmem:[%s8057_s24 + $0x8d8] sm:$0xff]  ;;  %v2066_v58 = vunpack.c.h.s8.bf16 %v762_v1 }
 0x2ad   : > { %4270 = vmatpush1.bf16.msra.mxu0 %v1994_v6  ;;  %5646 = vmatpush1.bf16.msra.mxu1 %v1996_v7  ;;  %v2034_v6 = vunpack.c.h.s8.bf16 %v746_v62  ;;  %v2036_v7 = vunpack.c.h.s8.bf16 %v748_v63 }
 0x2ae   : > { %4271 = vmatprep.subr.bf16.mxu0 %v1999_v8  ;;  %5647 = vmatprep.subr.bf16.mxu1 %v2001_v9  ;;  %v2039_v8 = vunpack.c.l.s8.bf16 %v751_v4  ;;  %v2041_v9 = vunpack.c.l.s8.bf16 %v753_v5 }
 0x2b1   : > { %4272 = vmatpush1.bf16.msra.mxu0 %v1998_v10  ;;  %5648 = vmatpush1.bf16.msra.mxu1 %v2000_v13  ;;  %v2038_v10 = vunpack.c.l.s8.bf16 %v750_v27  ;;  %v2040_v13 = vunpack.c.l.s8.bf16 %v752_v28 }
 0x2b2   : > { %4273 = vmatprep.subr.bf16.mxu0 %v2003_v14  ;;  %5649 = vmatprep.subr.bf16.mxu1 %v2005_v15  ;;  %v2043_v14 = vunpack.c.h.s8.bf16 %v751_v4  ;;  %v2045_v15 = vunpack.c.h.s8.bf16 %v753_v5 }
 0x2b5   : > { %4274 = vmatpush1.bf16.msra.mxu0 %v2002_v20  ;;  %5650 = vmatpush1.bf16.msra.mxu1 %v2004_v21  ;;  %v2042_v20 = vunpack.c.h.s8.bf16 %v750_v27  ;;  %v2044_v21 = vunpack.c.h.s8.bf16 %v752_v28 }
 0x2b6   : > { %4275 = vmatprep.subr.bf16.mxu0 %v2007_v39  ;;  %5651 = vmatprep.subr.bf16.mxu1 %v2009_v40  ;;  %v2047_v39 = vunpack.c.l.s8.bf16 %v755_v16  ;;  %v2049_v40 = vunpack.c.l.s8.bf16 %v757_v19 }
 0x2b9   : > { %4276 = vmatpush1.bf16.msra.mxu0 %v2006_v24  ;;  %5652 = vmatpush1.bf16.msra.mxu1 %v2008_v25  ;;  %v2046_v24 = vunpack.c.l.s8.bf16 %v754_v22  ;;  %v2048_v25 = vunpack.c.l.s8.bf16 %v756_v23 }
 0x2ba   : > { %4277 = vmatprep.subr.bf16.mxu0 %v2011_v45  ;;  %5653 = vmatprep.subr.bf16.mxu1 %v2013_v46  ;;  %v2051_v45 = vunpack.c.h.s8.bf16 %v755_v16  ;;  %v2053_v46 = vunpack.c.h.s8.bf16 %v757_v19 }
 0x2bd   : > { %4278 = vmatpush1.bf16.msra.mxu0 %v2010_v30  ;;  %5654 = vmatpush1.bf16.msra.mxu1 %v2012_v33  ;;  %v2050_v30 = vunpack.c.h.s8.bf16 %v754_v22  ;;  %v2052_v33 = vunpack.c.h.s8.bf16 %v756_v23  ;;  %v7025_v22 = vcombine.low %v8425_v51, %v8428_v52  ;;  %v8467_v23 = vld [vmem:[%s8055_s12 + $0x48] sm:$0xff] }
 0x2be   : > { %4279 = vmatprep.subr.bf16.mxu0 %v2015_v34  ;;  %5655 = vmatprep.subr.bf16.mxu1 %v2017_v35  ;;  %v2055_v34 = vunpack.c.l.s8.bf16 %v759_v26  ;;  %v2057_v35 = vunpack.c.l.s8.bf16 %v761_v29 }
 0x2c1   : > { %4280 = vmatpush1.bf16.msra.mxu0 %v2014_v55  ;;  %5656 = vmatpush1.bf16.msra.mxu1 %v2016_v56  ;;  %v2054_v55 = vunpack.c.l.s8.bf16 %v758_v36  ;;  %v2056_v56 = vunpack.c.l.s8.bf16 %v760_v37 }
 0x2c2   : > { %4281 = vmatprep.subr.bf16.mxu0 %v2019_v38  ;;  %5657 = vmatprep.subr.bf16.mxu1 %v2021_v41  ;;  %v2059_v38 = vunpack.c.h.s8.bf16 %v759_v26  ;;  %v2061_v41 = vunpack.c.h.s8.bf16 %v761_v29  ;;  %v779_v29 = vld [vmem:[%s8057_s24 + $0x928] sm:$0xff] }
 0x2c5   : > { %4282 = vmatpush1.bf16.msra.mxu0 %v2018_v44  ;;  %5658 = vmatpush1.bf16.msra.mxu1 %v2020_v47  ;;  %v2058_v44 = vunpack.c.h.s8.bf16 %v758_v36  ;;  %v2060_v47 = vunpack.c.h.s8.bf16 %v760_v37  ;;  %v778_v36 = vld [vmem:[%s8057_s24 + $0x920] sm:$0xff]  ;;  %v780_v37 = vld [vmem:[%s8057_s24 + $0x930] sm:$0xff] }
 0x2c6   : > { %4294 = vmatprep.subr.bf16.mxu0 %v2023_v48  ;;  %5670 = vmatprep.subr.bf16.mxu1 %v2025_v49  ;;  %v2063_v48 = vunpack.c.l.s8.bf16 %v763_v42  ;;  %v2065_v49 = vunpack.c.l.s8.bf16 %v765_v43 }
 0x2c8   : > { %4284 = vmatmul.mubr.bf16.vlgmr.msra.gmra.mrb[0].mxu0 %v7023_v50  ;;  %5660 = vmatmul.mubr.bf16.vlgmr.msra.gmra.mrb[0].mxu1 %v7023_v50  ;;  %v2062_v50 = vunpack.c.l.s8.bf16 %v762_v1  ;;  %v782_v1 = vld [vmem:[%s8057_s24 + $0x940] sm:$0xff] }
 0x2c9   : > { %4295 = vmatpush1.bf16.msra.mxu0 %v2022_v53  ;;  %5671 = vmatpush1.bf16.msra.mxu1 %v2024_v31  ;;  %v2064_v53 = vunpack.c.l.s8.bf16 %v764_v2  ;;  %v2067_v31 = vunpack.c.h.s8.bf16 %v763_v42  ;;  %v783_v42 = vld [vmem:[%s8057_s24 + $0x948] sm:$0xff] }
 0x2ca   : > { %4296 = vmatprep.subr.bf16.mxu0 %v2027_v32  ;;  %5672 = vmatprep.subr.bf16.mxu1 %v2029_v54  ;;  %v2069_v32 = vunpack.c.h.s8.bf16 %v765_v43  ;;  %v767_v54 = vld [vmem:[%s8057_s24 + $0x8c8] sm:$0xff]  ;;  %v785_v43 = vld [vmem:[%s8057_s24 + $0x958] sm:$0xff] }
 0x2cb   : > { %4326 = vmatprep.mubr.bf16.mxu0 %v7026_v59  ;;  %5702 = vmatprep.mubr.bf16.mxu1 %v7026_v59  ;;  %v2068_v59 = vunpack.c.h.s8.bf16 %v764_v2  ;;  %v784_v2 = vld [vmem:[%s8057_s24 + $0x950] sm:$0xff] }
 0x2cd   : > { %4297 = vmatpush1.bf16.msra.mxu0 %v2026_v11  ;;  %5673 = vmatpush1.bf16.msra.mxu1 %v2028_v12  ;;  %v2071_v11 = vunpack.c.l.s8.bf16 %v767_v54  ;;  %v2073_v12 = vunpack.c.l.s8.bf16 %v769_v57 }
 0x2ce   : > { %4298 = vmatprep.subr.bf16.mxu0 %v2031_v60  ;;  %5674 = vmatprep.subr.bf16.mxu1 %v2033_v61  ;;  %v766_v60 = vld [vmem:[%s8057_s24 + $0x8c0] sm:$0xff]  ;;  %v768_v61 = vld [vmem:[%s8057_s24 + $0x8d0] sm:$0xff] }
 0x2cf   : > { %v2070_v62 = vunpack.c.l.s8.bf16 %v766_v60  ;;  %v2072_v63 = vunpack.c.l.s8.bf16 %v768_v61  ;;  %v2074_v4 = vunpack.c.h.s8.bf16 %v766_v60  ;;  %v2076_v5 = vunpack.c.h.s8.bf16 %v768_v61  ;;  %v786_v60 = vld [vmem:[%s8057_s24 + $0x960] sm:$0xff]  ;;  %v788_v61 = vld [vmem:[%s8057_s24 + $0x970] sm:$0xff] }
 0x2d1   : > { %4299 = vmatpush1.bf16.msra.mxu0 %v2030_v17  ;;  %5675 = vmatpush1.bf16.msra.mxu1 %v2032_v18  ;;  %v2075_v17 = vunpack.c.h.s8.bf16 %v767_v54  ;;  %v2077_v18 = vunpack.c.h.s8.bf16 %v769_v57  ;;  %v787_v54 = vld [vmem:[%s8057_s24 + $0x968] sm:$0xff]  ;;  %v789_v57 = vld [vmem:[%s8057_s24 + $0x978] sm:$0xff] }
 0x2d2   : > { %4300 = vmatprep.subr.bf16.mxu0 %v2035_v0  ;;  %5676 = vmatprep.subr.bf16.mxu1 %v2037_v3  ;;  %v771_v0 = vld [vmem:[%s8057_s24 + $0x8e8] sm:$0xff]  ;;  %v773_v3 = vld [vmem:[%s8057_s24 + $0x8f8] sm:$0xff] }
 0x2d5   : > { %4301 = vmatpush1.bf16.msra.mxu0 %v2034_v6  ;;  %5677 = vmatpush1.bf16.msra.mxu1 %v2036_v7  ;;  %v2079_v6 = vunpack.c.l.s8.bf16 %v771_v0  ;;  %v2081_v7 = vunpack.c.l.s8.bf16 %v773_v3 }
 0x2d6   : > { %4302 = vmatprep.subr.bf16.mxu0 %v2039_v8  ;;  %5678 = vmatprep.subr.bf16.mxu1 %v2041_v9  ;;  %v770_v8 = vld [vmem:[%s8057_s24 + $0x8e0] sm:$0xff]  ;;  %v772_v9 = vld [vmem:[%s8057_s24 + $0x8f0] sm:$0xff] }
 0x2d7   : > { %v2078_v27 = vunpack.c.l.s8.bf16 %v770_v8  ;;  %v2080_v28 = vunpack.c.l.s8.bf16 %v772_v9  ;;  %v2082_v16 = vunpack.c.h.s8.bf16 %v770_v8  ;;  %v2084_v19 = vunpack.c.h.s8.bf16 %v772_v9  ;;  %v790_v8 = vld [vmem:[%s8057_s24 + $0x980] sm:$0xff]  ;;  %v792_v9 = vld [vmem:[%s8057_s24 + $0x990] sm:$0xff] }
 0x2d9   : > { %4303 = vmatpush1.bf16.msra.mxu0 %v2038_v10  ;;  %5679 = vmatpush1.bf16.msra.mxu1 %v2040_v13  ;;  %v2083_v10 = vunpack.c.h.s8.bf16 %v771_v0  ;;  %v2085_v13 = vunpack.c.h.s8.bf16 %v773_v3  ;;  %v791_v0 = vld [vmem:[%s8057_s24 + $0x988] sm:$0xff]  ;;  %v793_v3 = vld [vmem:[%s8057_s24 + $0x998] sm:$0xff] }
 0x2da   : > { %4304 = vmatprep.subr.bf16.mxu0 %v2043_v14  ;;  %5680 = vmatprep.subr.bf16.mxu1 %v2045_v15  ;;  %v775_v14 = vld [vmem:[%s8057_s24 + $0x908] sm:$0xff]  ;;  %v777_v15 = vld [vmem:[%s8057_s24 + $0x918] sm:$0xff] }
 0x2db   : > { %v2093_v26 = vunpack.c.h.s8.bf16 %v777_v15 }
 0x2dd   : > { %4305 = vmatpush1.bf16.msra.mxu0 %v2042_v20  ;;  %5681 = vmatpush1.bf16.msra.mxu1 %v2044_v21  ;;  %v2087_v20 = vunpack.c.l.s8.bf16 %v775_v14  ;;  %v2089_v21 = vunpack.c.l.s8.bf16 %v777_v15  ;;  %v797_v15 = vld [vmem:[%s8057_s24 + $0x9b8] sm:$0xff] }
 0x2de   : > { %4306 = vmatprep.subr.bf16.mxu0 %v2047_v39  ;;  %5682 = vmatprep.subr.bf16.mxu1 %v2049_v40  ;;  %v774_v39 = vld [vmem:[%s8057_s24 + $0x900] sm:$0xff]  ;;  %v776_v40 = vld [vmem:[%s8057_s24 + $0x910] sm:$0xff] }
 0x2df   : > { %v2090_v51 = vunpack.c.h.s8.bf16 %v774_v39  ;;  %v2092_v52 = vunpack.c.h.s8.bf16 %v776_v40 }
 0x2e1   : > { %4307 = vmatpush1.bf16.msra.mxu0 %v2046_v24  ;;  %5683 = vmatpush1.bf16.msra.mxu1 %v2048_v25  ;;  %v8470_v24 = vld [vmem:[%s8055_s12 + $0x148] sm:$0xff]  ;;  %v2086_v25 = vunpack.c.l.s8.bf16 %v774_v39  ;;  %v794_v39 = vld [vmem:[%s8057_s24 + $0x9a0] sm:$0xff] }
 0x2e2   : > { %4308 = vmatprep.subr.bf16.mxu0 %v2051_v45  ;;  %5684 = vmatprep.subr.bf16.mxu1 %v2053_v46  ;;  %v2088_v45 = vunpack.c.l.s8.bf16 %v776_v40  ;;  %v2091_v46 = vunpack.c.h.s8.bf16 %v775_v14  ;;  %v795_v14 = vld [vmem:[%s8057_s24 + $0x9a8] sm:$0xff]  ;;  %v796_v40 = vld [vmem:[%s8057_s24 + $0x9b0] sm:$0xff] }
 0x2e5   : > { %4309 = vmatpush1.bf16.msra.mxu0 %v2050_v30  ;;  %5685 = vmatpush1.bf16.msra.mxu1 %v2052_v33  ;;  %v781_v30 = vld [vmem:[%s8057_s24 + $0x938] sm:$0xff]  ;;  %v7028_v33 = vcombine.high %v8467_v23, %v8470_v24 }
 0x2e6   : > { %4310 = vmatprep.subr.bf16.mxu0 %v2055_v34  ;;  %5686 = vmatprep.subr.bf16.mxu1 %v2057_v35  ;;  %v2095_v34 = vunpack.c.l.s8.bf16 %v779_v29  ;;  %v2097_v35 = vunpack.c.l.s8.bf16 %v781_v30 }
 0x2e9   : > { %4311 = vmatpush1.bf16.msra.mxu0 %v2054_v55  ;;  %5687 = vmatpush1.bf16.msra.mxu1 %v2056_v56  ;;  %v2094_v55 = vunpack.c.l.s8.bf16 %v778_v36  ;;  %v2096_v56 = vunpack.c.l.s8.bf16 %v780_v37 }
 0x2ea   : > { %4312 = vmatprep.subr.bf16.mxu0 %v2059_v38  ;;  %5688 = vmatprep.subr.bf16.mxu1 %v2061_v41  ;;  %v2099_v38 = vunpack.c.h.s8.bf16 %v779_v29  ;;  %v2101_v41 = vunpack.c.h.s8.bf16 %v781_v30  ;;  %v801_v29 = vld [vmem:[%s8057_s24 + $0x9d8] sm:$0xff]  ;;  %v2130_v30 = vunpack.c.h.s8.bf16 %v794_v39 }
 0x2ed   : > { %4313 = vmatpush1.bf16.msra.mxu0 %v2058_v44  ;;  %5689 = vmatpush1.bf16.msra.mxu1 %v2060_v47  ;;  %v2098_v44 = vunpack.c.h.s8.bf16 %v778_v36  ;;  %v2100_v47 = vunpack.c.h.s8.bf16 %v780_v37 }
 0x2ee   : > { %4314 = vmatprep.subr.bf16.mxu0 %v2063_v48  ;;  %5690 = vmatprep.subr.bf16.mxu1 %v2065_v49  ;;  %v2103_v48 = vunpack.c.l.s8.bf16 %v783_v42  ;;  %v2105_v49 = vunpack.c.l.s8.bf16 %v785_v43 }
 0x2f1   : > { %4315 = vmatpush1.bf16.msra.mxu0 %v2062_v50  ;;  %5691 = vmatpush1.bf16.msra.mxu1 %v2064_v53  ;;  %v2102_v50 = vunpack.c.l.s8.bf16 %v782_v1  ;;  %v2104_v53 = vunpack.c.l.s8.bf16 %v784_v2 }
 0x2f2   : > { %4316 = vmatprep.subr.bf16.mxu0 %v2067_v31  ;;  %5692 = vmatprep.subr.bf16.mxu1 %v2069_v32  ;;  %v2107_v31 = vunpack.c.h.s8.bf16 %v783_v42  ;;  %v2109_v32 = vunpack.c.h.s8.bf16 %v785_v43 }
 0x2f5   : > { %4317 = vmatpush1.bf16.msra.mxu0 %v2066_v58  ;;  %5693 = vmatpush1.bf16.msra.mxu1 %v2068_v59  ;;  %v2106_v58 = vunpack.c.h.s8.bf16 %v782_v1  ;;  %v2108_v59 = vunpack.c.h.s8.bf16 %v784_v2 }
 0x2f6   : > { %4318 = vmatprep.subr.bf16.mxu0 %v2071_v11  ;;  %5694 = vmatprep.subr.bf16.mxu1 %v2073_v12  ;;  %v2111_v11 = vunpack.c.l.s8.bf16 %v787_v54  ;;  %v2113_v12 = vunpack.c.l.s8.bf16 %v789_v57 }
 0x2f9   : > { %4319 = vmatpush1.bf16.msra.mxu0 %v2070_v62  ;;  %5695 = vmatpush1.bf16.msra.mxu1 %v2072_v63  ;;  %v2110_v62 = vunpack.c.l.s8.bf16 %v786_v60  ;;  %v2112_v63 = vunpack.c.l.s8.bf16 %v788_v61 }
 0x2fa   : > { %4320 = vmatprep.subr.bf16.mxu0 %v2075_v17  ;;  %5696 = vmatprep.subr.bf16.mxu1 %v2077_v18  ;;  %v2115_v17 = vunpack.c.h.s8.bf16 %v787_v54  ;;  %v2117_v18 = vunpack.c.h.s8.bf16 %v789_v57 }
 0x2fd   : > { %4321 = vmatpush1.bf16.msra.mxu0 %v2074_v4  ;;  %5697 = vmatpush1.bf16.msra.mxu1 %v2076_v5  ;;  %v2114_v4 = vunpack.c.h.s8.bf16 %v786_v60  ;;  %v2116_v5 = vunpack.c.h.s8.bf16 %v788_v61  ;;  %v7027_v60 = vcombine.low %v8467_v23, %v8470_v24  ;;  %v8509_v61 = vld [vmem:[%s8055_s12 + $0x50] sm:$0xff] }
 0x2fe   : > { %4322 = vmatprep.subr.bf16.mxu0 %v2079_v6  ;;  %5698 = vmatprep.subr.bf16.mxu1 %v2081_v7  ;;  %v2119_v6 = vunpack.c.l.s8.bf16 %v791_v0  ;;  %v2121_v7 = vunpack.c.l.s8.bf16 %v793_v3 }
 0x301   : > { %4323 = vmatpush1.bf16.msra.mxu0 %v2078_v27  ;;  %5699 = vmatpush1.bf16.msra.mxu1 %v2080_v28  ;;  %v2118_v27 = vunpack.c.l.s8.bf16 %v790_v8  ;;  %v2120_v28 = vunpack.c.l.s8.bf16 %v792_v9 }
 0x302   : > { %4324 = vmatprep.subr.bf16.mxu0 %v2083_v10  ;;  %5700 = vmatprep.subr.bf16.mxu1 %v2085_v13  ;;  %v2123_v10 = vunpack.c.h.s8.bf16 %v791_v0  ;;  %v2125_v13 = vunpack.c.h.s8.bf16 %v793_v3  ;;  %v811_v3 = vld [vmem:[%s8057_s24 + $0xa28] sm:$0xff] }
 0x305   : > { %4325 = vmatpush1.bf16.msra.mxu0 %v2082_v16  ;;  %5701 = vmatpush1.bf16.msra.mxu1 %v2084_v19  ;;  %v2122_v16 = vunpack.c.h.s8.bf16 %v790_v8  ;;  %v2124_v19 = vunpack.c.h.s8.bf16 %v792_v9  ;;  %v810_v8 = vld [vmem:[%s8057_s24 + $0xa20] sm:$0xff]  ;;  %v812_v9 = vld [vmem:[%s8057_s24 + $0xa30] sm:$0xff] }
 0x306   : > { %4337 = vmatprep.subr.bf16.mxu0 %v2087_v20  ;;  %5713 = vmatprep.subr.bf16.mxu1 %v2089_v21  ;;  %v2127_v20 = vunpack.c.l.s8.bf16 %v795_v14  ;;  %v2129_v21 = vunpack.c.l.s8.bf16 %v797_v15 }
 0x308   : > { %4327 = vmatmul.mubr.bf16.vlgmr.msra.gmra.mrb[0].mxu0 %v7025_v22  ;;  %5703 = vmatmul.mubr.bf16.vlgmr.msra.gmra.mrb[0].mxu1 %v7025_v22  ;;  %v2126_v22 = vunpack.c.l.s8.bf16 %v794_v39  ;;  %v814_v39 = vld [vmem:[%s8057_s24 + $0xa40] sm:$0xff] }
 0x309   : > { %4338 = vmatpush1.bf16.msra.mxu0 %v2086_v25  ;;  %5714 = vmatpush1.bf16.msra.mxu1 %v2088_v45  ;;  %v2128_v25 = vunpack.c.l.s8.bf16 %v796_v40  ;;  %v2131_v45 = vunpack.c.h.s8.bf16 %v795_v14  ;;  %v815_v14 = vld [vmem:[%s8057_s24 + $0xa48] sm:$0xff] }
 0x30a   : > { %4339 = vmatprep.subr.bf16.mxu0 %v2091_v46  ;;  %5715 = vmatprep.subr.bf16.mxu1 %v2093_v26  ;;  %v2133_v46 = vunpack.c.h.s8.bf16 %v797_v15  ;;  %v799_v26 = vld [vmem:[%s8057_s24 + $0x9c8] sm:$0xff]  ;;  %v817_v15 = vld [vmem:[%s8057_s24 + $0xa58] sm:$0xff] }
 0x30b   : > { %4369 = vmatprep.mubr.bf16.mxu0 %v7028_v33  ;;  %5745 = vmatprep.mubr.bf16.mxu1 %v7028_v33  ;;  %v2132_v33 = vunpack.c.h.s8.bf16 %v796_v40  ;;  %v816_v40 = vld [vmem:[%s8057_s24 + $0xa50] sm:$0xff] }
 0x30d   : > { %4340 = vmatpush1.bf16.msra.mxu0 %v2090_v51  ;;  %5716 = vmatpush1.bf16.msra.mxu1 %v2092_v52  ;;  %v2135_v51 = vunpack.c.l.s8.bf16 %v799_v26  ;;  %v2137_v52 = vunpack.c.l.s8.bf16 %v801_v29 }
 0x30e   : > { %4341 = vmatprep.subr.bf16.mxu0 %v2095_v34  ;;  %5717 = vmatprep.subr.bf16.mxu1 %v2097_v35  ;;  %v798_v34 = vld [vmem:[%s8057_s24 + $0x9c0] sm:$0xff]  ;;  %v800_v35 = vld [vmem:[%s8057_s24 + $0x9d0] sm:$0xff] }
 0x30f   : > { %v2134_v36 = vunpack.c.l.s8.bf16 %v798_v34  ;;  %v2136_v37 = vunpack.c.l.s8.bf16 %v800_v35  ;;  %v2138_v42 = vunpack.c.h.s8.bf16 %v798_v34  ;;  %v2140_v43 = vunpack.c.h.s8.bf16 %v800_v35  ;;  %v818_v34 = vld [vmem:[%s8057_s24 + $0xa60] sm:$0xff]  ;;  %v820_v35 = vld [vmem:[%s8057_s24 + $0xa70] sm:$0xff] }
 0x311   : > { %4342 = vmatpush1.bf16.msra.mxu0 %v2094_v55  ;;  %5718 = vmatpush1.bf16.msra.mxu1 %v2096_v56  ;;  %v2139_v55 = vunpack.c.h.s8.bf16 %v799_v26  ;;  %v2141_v56 = vunpack.c.h.s8.bf16 %v801_v29  ;;  %v819_v26 = vld [vmem:[%s8057_s24 + $0xa68] sm:$0xff]  ;;  %v821_v29 = vld [vmem:[%s8057_s24 + $0xa78] sm:$0xff] }
 0x312   : > { %4343 = vmatprep.subr.bf16.mxu0 %v2099_v38  ;;  %5719 = vmatprep.subr.bf16.mxu1 %v2101_v41  ;;  %v803_v38 = vld [vmem:[%s8057_s24 + $0x9e8] sm:$0xff]  ;;  %v805_v41 = vld [vmem:[%s8057_s24 + $0x9f8] sm:$0xff] }
 0x315   : > { %4344 = vmatpush1.bf16.msra.mxu0 %v2098_v44  ;;  %5720 = vmatpush1.bf16.msra.mxu1 %v2100_v47  ;;  %v2143_v44 = vunpack.c.l.s8.bf16 %v803_v38  ;;  %v2145_v47 = vunpack.c.l.s8.bf16 %v805_v41 }
 0x316   : > { %4345 = vmatprep.subr.bf16.mxu0 %v2103_v48  ;;  %5721 = vmatprep.subr.bf16.mxu1 %v2105_v49  ;;  %v802_v48 = vld [vmem:[%s8057_s24 + $0x9e0] sm:$0xff]  ;;  %v804_v49 = vld [vmem:[%s8057_s24 + $0x9f0] sm:$0xff] }
 0x317   : > { %v2142_v1 = vunpack.c.l.s8.bf16 %v802_v48  ;;  %v2144_v2 = vunpack.c.l.s8.bf16 %v804_v49  ;;  %v2146_v54 = vunpack.c.h.s8.bf16 %v802_v48  ;;  %v2148_v57 = vunpack.c.h.s8.bf16 %v804_v49  ;;  %v822_v48 = vld [vmem:[%s8057_s24 + $0xa80] sm:$0xff]  ;;  %v824_v49 = vld [vmem:[%s8057_s24 + $0xa90] sm:$0xff] }
 0x319   : > { %4346 = vmatpush1.bf16.msra.mxu0 %v2102_v50  ;;  %5722 = vmatpush1.bf16.msra.mxu1 %v2104_v53  ;;  %v2147_v50 = vunpack.c.h.s8.bf16 %v803_v38  ;;  %v2149_v53 = vunpack.c.h.s8.bf16 %v805_v41  ;;  %v823_v38 = vld [vmem:[%s8057_s24 + $0xa88] sm:$0xff]  ;;  %v825_v41 = vld [vmem:[%s8057_s24 + $0xa98] sm:$0xff] }
 0x31a   : > { %4347 = vmatprep.subr.bf16.mxu0 %v2107_v31  ;;  %5723 = vmatprep.subr.bf16.mxu1 %v2109_v32  ;;  %v807_v31 = vld [vmem:[%s8057_s24 + $0xa08] sm:$0xff]  ;;  %v809_v32 = vld [vmem:[%s8057_s24 + $0xa18] sm:$0xff] }
 0x31b   : > { %v2157_v0 = vunpack.c.h.s8.bf16 %v809_v32 }
 0x31d   : > { %4348 = vmatpush1.bf16.msra.mxu0 %v2106_v58  ;;  %5724 = vmatpush1.bf16.msra.mxu1 %v2108_v59  ;;  %v2151_v58 = vunpack.c.l.s8.bf16 %v807_v31  ;;  %v2153_v59 = vunpack.c.l.s8.bf16 %v809_v32  ;;  %v829_v32 = vld [vmem:[%s8057_s24 + $0xab8] sm:$0xff] }
 0x31e   : > { %4349 = vmatprep.subr.bf16.mxu0 %v2111_v11  ;;  %5725 = vmatprep.subr.bf16.mxu1 %v2113_v12  ;;  %v806_v11 = vld [vmem:[%s8057_s24 + $0xa00] sm:$0xff]  ;;  %v808_v12 = vld [vmem:[%s8057_s24 + $0xa10] sm:$0xff] }
 0x31f   : > { %v2154_v23 = vunpack.c.h.s8.bf16 %v806_v11  ;;  %v2156_v24 = vunpack.c.h.s8.bf16 %v808_v12 }
 0x321   : > { %4350 = vmatpush1.bf16.msra.mxu0 %v2110_v62  ;;  %5726 = vmatpush1.bf16.msra.mxu1 %v2112_v63  ;;  %v8512_v62 = vld [vmem:[%s8055_s12 + $0x150] sm:$0xff]  ;;  %v2150_v63 = vunpack.c.l.s8.bf16 %v806_v11  ;;  %v826_v11 = vld [vmem:[%s8057_s24 + $0xaa0] sm:$0xff] }
 0x322   : > { %4351 = vmatprep.subr.bf16.mxu0 %v2115_v17  ;;  %5727 = vmatprep.subr.bf16.mxu1 %v2117_v18  ;;  %v2152_v17 = vunpack.c.l.s8.bf16 %v808_v12  ;;  %v2155_v18 = vunpack.c.h.s8.bf16 %v807_v31  ;;  %v827_v31 = vld [vmem:[%s8057_s24 + $0xaa8] sm:$0xff]  ;;  %v828_v12 = vld [vmem:[%s8057_s24 + $0xab0] sm:$0xff] }
 0x325   : > { %4352 = vmatpush1.bf16.msra.mxu0 %v2114_v4  ;;  %5728 = vmatpush1.bf16.msra.mxu1 %v2116_v5  ;;  %v813_v4 = vld [vmem:[%s8057_s24 + $0xa38] sm:$0xff]  ;;  %v7030_v5 = vcombine.high %v8509_v61, %v8512_v62 }
 0x326   : > { %4353 = vmatprep.subr.bf16.mxu0 %v2119_v6  ;;  %5729 = vmatprep.subr.bf16.mxu1 %v2121_v7  ;;  %v2159_v6 = vunpack.c.l.s8.bf16 %v811_v3  ;;  %v2161_v7 = vunpack.c.l.s8.bf16 %v813_v4 }
 0x329   : > { %4354 = vmatpush1.bf16.msra.mxu0 %v2118_v27  ;;  %5730 = vmatpush1.bf16.msra.mxu1 %v2120_v28  ;;  %v2158_v27 = vunpack.c.l.s8.bf16 %v810_v8  ;;  %v2160_v28 = vunpack.c.l.s8.bf16 %v812_v9 }
 0x32a   : > { %4355 = vmatprep.subr.bf16.mxu0 %v2123_v10  ;;  %5731 = vmatprep.subr.bf16.mxu1 %v2125_v13  ;;  %v2163_v10 = vunpack.c.h.s8.bf16 %v811_v3  ;;  %v2165_v13 = vunpack.c.h.s8.bf16 %v813_v4  ;;  %v833_v3 = vld [vmem:[%s8057_s24 + $0xad8] sm:$0xff]  ;;  %v2194_v4 = vunpack.c.h.s8.bf16 %v826_v11 }
 0x32d   : > { %4356 = vmatpush1.bf16.msra.mxu0 %v2122_v16  ;;  %5732 = vmatpush1.bf16.msra.mxu1 %v2124_v19  ;;  %v2162_v16 = vunpack.c.h.s8.bf16 %v810_v8  ;;  %v2164_v19 = vunpack.c.h.s8.bf16 %v812_v9 }
 0x32e   : > { %4357 = vmatprep.subr.bf16.mxu0 %v2127_v20  ;;  %5733 = vmatprep.subr.bf16.mxu1 %v2129_v21  ;;  %v2167_v20 = vunpack.c.l.s8.bf16 %v815_v14  ;;  %v2169_v21 = vunpack.c.l.s8.bf16 %v817_v15 }
 0x331   : > { %4358 = vmatpush1.bf16.msra.mxu0 %v2126_v22  ;;  %5734 = vmatpush1.bf16.msra.mxu1 %v2128_v25  ;;  %v2166_v22 = vunpack.c.l.s8.bf16 %v814_v39  ;;  %v2168_v25 = vunpack.c.l.s8.bf16 %v816_v40 }
 0x332   : > { %4359 = vmatprep.subr.bf16.mxu0 %v2131_v45  ;;  %5735 = vmatprep.subr.bf16.mxu1 %v2133_v46  ;;  %v2171_v45 = vunpack.c.h.s8.bf16 %v815_v14  ;;  %v2173_v46 = vunpack.c.h.s8.bf16 %v817_v15 }
 0x335   : > { %4360 = vmatpush1.bf16.msra.mxu0 %v2130_v30  ;;  %5736 = vmatpush1.bf16.msra.mxu1 %v2132_v33  ;;  %v2170_v30 = vunpack.c.h.s8.bf16 %v814_v39  ;;  %v2172_v33 = vunpack.c.h.s8.bf16 %v816_v40 }
 0x336   : > { %4361 = vmatprep.subr.bf16.mxu0 %v2135_v51  ;;  %5737 = vmatprep.subr.bf16.mxu1 %v2137_v52  ;;  %v2175_v51 = vunpack.c.l.s8.bf16 %v819_v26  ;;  %v2177_v52 = vunpack.c.l.s8.bf16 %v821_v29 }
 0x339   : > { %4362 = vmatpush1.bf16.msra.mxu0 %v2134_v36  ;;  %5738 = vmatpush1.bf16.msra.mxu1 %v2136_v37  ;;  %v2174_v36 = vunpack.c.l.s8.bf16 %v818_v34  ;;  %v2176_v37 = vunpack.c.l.s8.bf16 %v820_v35 }
 0x33a   : > { %4363 = vmatprep.subr.bf16.mxu0 %v2139_v55  ;;  %5739 = vmatprep.subr.bf16.mxu1 %v2141_v56  ;;  %v2179_v55 = vunpack.c.h.s8.bf16 %v819_v26  ;;  %v2181_v56 = vunpack.c.h.s8.bf16 %v821_v29 }
 0x33d   : > { %4364 = vmatpush1.bf16.msra.mxu0 %v2138_v42  ;;  %5740 = vmatpush1.bf16.msra.mxu1 %v2140_v43  ;;  %v2178_v42 = vunpack.c.h.s8.bf16 %v818_v34  ;;  %v2180_v43 = vunpack.c.h.s8.bf16 %v820_v35  ;;  %v7029_v34 = vcombine.low %v8509_v61, %v8512_v62  ;;  %v8551_v35 = vld [vmem:[%s8055_s12 + $0x58] sm:$0xff] }
 0x33e   : > { %4365 = vmatprep.subr.bf16.mxu0 %v2143_v44  ;;  %5741 = vmatprep.subr.bf16.mxu1 %v2145_v47  ;;  %v2183_v44 = vunpack.c.l.s8.bf16 %v823_v38  ;;  %v2185_v47 = vunpack.c.l.s8.bf16 %v825_v41 }
 0x341   : > { %4366 = vmatpush1.bf16.msra.mxu0 %v2142_v1  ;;  %5742 = vmatpush1.bf16.msra.mxu1 %v2144_v2  ;;  %v2182_v1 = vunpack.c.l.s8.bf16 %v822_v48  ;;  %v2184_v2 = vunpack.c.l.s8.bf16 %v824_v49 }
 0x342   : > { %4367 = vmatprep.subr.bf16.mxu0 %v2147_v50  ;;  %5743 = vmatprep.subr.bf16.mxu1 %v2149_v53  ;;  %v2187_v50 = vunpack.c.h.s8.bf16 %v823_v38  ;;  %v2189_v53 = vunpack.c.h.s8.bf16 %v825_v41  ;;  %v843_v41 = vld [vmem:[%s8057_s24 + $0xb28] sm:$0xff] }
 0x345   : > { %4368 = vmatpush1.bf16.msra.mxu0 %v2146_v54  ;;  %5744 = vmatpush1.bf16.msra.mxu1 %v2148_v57  ;;  %v2186_v54 = vunpack.c.h.s8.bf16 %v822_v48  ;;  %v2188_v57 = vunpack.c.h.s8.bf16 %v824_v49  ;;  %v842_v48 = vld [vmem:[%s8057_s24 + $0xb20] sm:$0xff]  ;;  %v844_v49 = vld [vmem:[%s8057_s24 + $0xb30] sm:$0xff] }
 0x346   : > { %4380 = vmatprep.subr.bf16.mxu0 %v2151_v58  ;;  %5756 = vmatprep.subr.bf16.mxu1 %v2153_v59  ;;  %v2191_v58 = vunpack.c.l.s8.bf16 %v827_v31  ;;  %v2193_v59 = vunpack.c.l.s8.bf16 %v829_v32 }
 0x348   : > { %4370 = vmatmul.mubr.bf16.vlgmr.msra.gmra.mrb[0].mxu0 %v7027_v60  ;;  %5746 = vmatmul.mubr.bf16.vlgmr.msra.gmra.mrb[0].mxu1 %v7027_v60  ;;  %v2190_v60 = vunpack.c.l.s8.bf16 %v826_v11  ;;  %v846_v11 = vld [vmem:[%s8057_s24 + $0xb40] sm:$0xff] }
 0x349   : > { %4381 = vmatpush1.bf16.msra.mxu0 %v2150_v63  ;;  %5757 = vmatpush1.bf16.msra.mxu1 %v2152_v17  ;;  %v2192_v63 = vunpack.c.l.s8.bf16 %v828_v12  ;;  %v2195_v17 = vunpack.c.h.s8.bf16 %v827_v31  ;;  %v847_v31 = vld [vmem:[%s8057_s24 + $0xb48] sm:$0xff] }
 0x34a   : > { %4382 = vmatprep.subr.bf16.mxu0 %v2155_v18  ;;  %5758 = vmatprep.subr.bf16.mxu1 %v2157_v0  ;;  %v2197_v18 = vunpack.c.h.s8.bf16 %v829_v32  ;;  %v831_v0 = vld [vmem:[%s8057_s24 + $0xac8] sm:$0xff]  ;;  %v849_v32 = vld [vmem:[%s8057_s24 + $0xb58] sm:$0xff] }
 0x34b   : > { %4412 = vmatprep.mubr.bf16.mxu0 %v7030_v5  ;;  %5788 = vmatprep.mubr.bf16.mxu1 %v7030_v5  ;;  %v2196_v5 = vunpack.c.h.s8.bf16 %v828_v12  ;;  %v848_v12 = vld [vmem:[%s8057_s24 + $0xb50] sm:$0xff] }
 0x34d   : > { %4383 = vmatpush1.bf16.msra.mxu0 %v2154_v23  ;;  %5759 = vmatpush1.bf16.msra.mxu1 %v2156_v24  ;;  %v2199_v23 = vunpack.c.l.s8.bf16 %v831_v0  ;;  %v2201_v24 = vunpack.c.l.s8.bf16 %v833_v3 }
 0x34e   : > { %4384 = vmatprep.subr.bf16.mxu0 %v2159_v6  ;;  %5760 = vmatprep.subr.bf16.mxu1 %v2161_v7  ;;  %v830_v6 = vld [vmem:[%s8057_s24 + $0xac0] sm:$0xff]  ;;  %v832_v7 = vld [vmem:[%s8057_s24 + $0xad0] sm:$0xff] }
 0x34f   : > { %v2198_v8 = vunpack.c.l.s8.bf16 %v830_v6  ;;  %v2200_v9 = vunpack.c.l.s8.bf16 %v832_v7  ;;  %v2202_v14 = vunpack.c.h.s8.bf16 %v830_v6  ;;  %v2204_v15 = vunpack.c.h.s8.bf16 %v832_v7  ;;  %v850_v6 = vld [vmem:[%s8057_s24 + $0xb60] sm:$0xff]  ;;  %v852_v7 = vld [vmem:[%s8057_s24 + $0xb70] sm:$0xff] }
 0x351   : > { %4385 = vmatpush1.bf16.msra.mxu0 %v2158_v27  ;;  %5761 = vmatpush1.bf16.msra.mxu1 %v2160_v28  ;;  %v2203_v27 = vunpack.c.h.s8.bf16 %v831_v0  ;;  %v2205_v28 = vunpack.c.h.s8.bf16 %v833_v3  ;;  %v851_v0 = vld [vmem:[%s8057_s24 + $0xb68] sm:$0xff]  ;;  %v853_v3 = vld [vmem:[%s8057_s24 + $0xb78] sm:$0xff] }
 0x352   : > { %4386 = vmatprep.subr.bf16.mxu0 %v2163_v10  ;;  %5762 = vmatprep.subr.bf16.mxu1 %v2165_v13  ;;  %v835_v10 = vld [vmem:[%s8057_s24 + $0xae8] sm:$0xff]  ;;  %v837_v13 = vld [vmem:[%s8057_s24 + $0xaf8] sm:$0xff] }
 0x355   : > { %4387 = vmatpush1.bf16.msra.mxu0 %v2162_v16  ;;  %5763 = vmatpush1.bf16.msra.mxu1 %v2164_v19  ;;  %v2207_v16 = vunpack.c.l.s8.bf16 %v835_v10  ;;  %v2209_v19 = vunpack.c.l.s8.bf16 %v837_v13 }
 0x356   : > { %4388 = vmatprep.subr.bf16.mxu0 %v2167_v20  ;;  %5764 = vmatprep.subr.bf16.mxu1 %v2169_v21  ;;  %v834_v20 = vld [vmem:[%s8057_s24 + $0xae0] sm:$0xff]  ;;  %v836_v21 = vld [vmem:[%s8057_s24 + $0xaf0] sm:$0xff] }
 0x357   : > { %v2206_v39 = vunpack.c.l.s8.bf16 %v834_v20  ;;  %v2208_v40 = vunpack.c.l.s8.bf16 %v836_v21  ;;  %v2210_v26 = vunpack.c.h.s8.bf16 %v834_v20  ;;  %v2212_v29 = vunpack.c.h.s8.bf16 %v836_v21  ;;  %v854_v20 = vld [vmem:[%s8057_s24 + $0xb80] sm:$0xff]  ;;  %v856_v21 = vld [vmem:[%s8057_s24 + $0xb90] sm:$0xff] }
 0x359   : > { %4389 = vmatpush1.bf16.msra.mxu0 %v2166_v22  ;;  %5765 = vmatpush1.bf16.msra.mxu1 %v2168_v25  ;;  %v2211_v22 = vunpack.c.h.s8.bf16 %v835_v10  ;;  %v2213_v25 = vunpack.c.h.s8.bf16 %v837_v13  ;;  %v855_v10 = vld [vmem:[%s8057_s24 + $0xb88] sm:$0xff]  ;;  %v857_v13 = vld [vmem:[%s8057_s24 + $0xb98] sm:$0xff] }
 0x35a   : > { %4390 = vmatprep.subr.bf16.mxu0 %v2171_v45  ;;  %5766 = vmatprep.subr.bf16.mxu1 %v2173_v46  ;;  %v839_v45 = vld [vmem:[%s8057_s24 + $0xb08] sm:$0xff]  ;;  %v841_v46 = vld [vmem:[%s8057_s24 + $0xb18] sm:$0xff] }
 0x35b   : > { %v2221_v38 = vunpack.c.h.s8.bf16 %v841_v46 }
 0x35d   : > { %4391 = vmatpush1.bf16.msra.mxu0 %v2170_v30  ;;  %5767 = vmatpush1.bf16.msra.mxu1 %v2172_v33  ;;  %v2215_v30 = vunpack.c.l.s8.bf16 %v839_v45  ;;  %v2217_v33 = vunpack.c.l.s8.bf16 %v841_v46  ;;  %v861_v46 = vld [vmem:[%s8057_s24 + $0xbb8] sm:$0xff] }
 0x35e   : > { %4392 = vmatprep.subr.bf16.mxu0 %v2175_v51  ;;  %5768 = vmatprep.subr.bf16.mxu1 %v2177_v52  ;;  %v838_v51 = vld [vmem:[%s8057_s24 + $0xb00] sm:$0xff]  ;;  %v840_v52 = vld [vmem:[%s8057_s24 + $0xb10] sm:$0xff] }
 0x35f   : > { %v2218_v61 = vunpack.c.h.s8.bf16 %v838_v51  ;;  %v2220_v62 = vunpack.c.h.s8.bf16 %v840_v52 }
 0x361   : > { %4393 = vmatpush1.bf16.msra.mxu0 %v2174_v36  ;;  %5769 = vmatpush1.bf16.msra.mxu1 %v2176_v37  ;;  %v8554_v36 = vld [vmem:[%s8055_s12 + $0x158] sm:$0xff]  ;;  %v2214_v37 = vunpack.c.l.s8.bf16 %v838_v51  ;;  %v858_v51 = vld [vmem:[%s8057_s24 + $0xba0] sm:$0xff] }
 0x362   : > { %4394 = vmatprep.subr.bf16.mxu0 %v2179_v55  ;;  %5770 = vmatprep.subr.bf16.mxu1 %v2181_v56  ;;  %v2216_v55 = vunpack.c.l.s8.bf16 %v840_v52  ;;  %v2219_v56 = vunpack.c.h.s8.bf16 %v839_v45  ;;  %v859_v45 = vld [vmem:[%s8057_s24 + $0xba8] sm:$0xff]  ;;  %v860_v52 = vld [vmem:[%s8057_s24 + $0xbb0] sm:$0xff] }
 0x365   : > { %4395 = vmatpush1.bf16.msra.mxu0 %v2178_v42  ;;  %5771 = vmatpush1.bf16.msra.mxu1 %v2180_v43  ;;  %v845_v42 = vld [vmem:[%s8057_s24 + $0xb38] sm:$0xff]  ;;  %v7032_v43 = vcombine.high %v8551_v35, %v8554_v36 }
 0x366   : > { %4396 = vmatprep.subr.bf16.mxu0 %v2183_v44  ;;  %5772 = vmatprep.subr.bf16.mxu1 %v2185_v47  ;;  %v2223_v44 = vunpack.c.l.s8.bf16 %v843_v41  ;;  %v2225_v47 = vunpack.c.l.s8.bf16 %v845_v42 }
 0x369   : > { %4397 = vmatpush1.bf16.msra.mxu0 %v2182_v1  ;;  %5773 = vmatpush1.bf16.msra.mxu1 %v2184_v2  ;;  %v2222_v1 = vunpack.c.l.s8.bf16 %v842_v48  ;;  %v2224_v2 = vunpack.c.l.s8.bf16 %v844_v49 }
 0x36a   : > { %4398 = vmatprep.subr.bf16.mxu0 %v2187_v50  ;;  %5774 = vmatprep.subr.bf16.mxu1 %v2189_v53  ;;  %v2227_v50 = vunpack.c.h.s8.bf16 %v843_v41  ;;  %v2229_v53 = vunpack.c.h.s8.bf16 %v845_v42  ;;  %v865_v41 = vld [vmem:[%s8057_s24 + $0xbd8] sm:$0xff]  ;;  %v2258_v42 = vunpack.c.h.s8.bf16 %v858_v51 }
 0x36d   : > { %4399 = vmatpush1.bf16.msra.mxu0 %v2186_v54  ;;  %5775 = vmatpush1.bf16.msra.mxu1 %v2188_v57  ;;  %v2226_v54 = vunpack.c.h.s8.bf16 %v842_v48  ;;  %v2228_v57 = vunpack.c.h.s8.bf16 %v844_v49 }
 0x36e   : > { %4400 = vmatprep.subr.bf16.mxu0 %v2191_v58  ;;  %5776 = vmatprep.subr.bf16.mxu1 %v2193_v59  ;;  %v2231_v58 = vunpack.c.l.s8.bf16 %v847_v31  ;;  %v2233_v59 = vunpack.c.l.s8.bf16 %v849_v32 }
 0x371   : > { %4401 = vmatpush1.bf16.msra.mxu0 %v2190_v60  ;;  %5777 = vmatpush1.bf16.msra.mxu1 %v2192_v63  ;;  %v2230_v60 = vunpack.c.l.s8.bf16 %v846_v11  ;;  %v2232_v63 = vunpack.c.l.s8.bf16 %v848_v12 }
 0x372   : > { %4402 = vmatprep.subr.bf16.mxu0 %v2195_v17  ;;  %5778 = vmatprep.subr.bf16.mxu1 %v2197_v18  ;;  %v2235_v17 = vunpack.c.h.s8.bf16 %v847_v31  ;;  %v2237_v18 = vunpack.c.h.s8.bf16 %v849_v32 }
 0x375   : > { %4403 = vmatpush1.bf16.msra.mxu0 %v2194_v4  ;;  %5779 = vmatpush1.bf16.msra.mxu1 %v2196_v5  ;;  %v2234_v4 = vunpack.c.h.s8.bf16 %v846_v11  ;;  %v2236_v5 = vunpack.c.h.s8.bf16 %v848_v12 }
 0x376   : > { %4404 = vmatprep.subr.bf16.mxu0 %v2199_v23  ;;  %5780 = vmatprep.subr.bf16.mxu1 %v2201_v24  ;;  %v2239_v23 = vunpack.c.l.s8.bf16 %v851_v0  ;;  %v2241_v24 = vunpack.c.l.s8.bf16 %v853_v3 }
 0x379   : > { %4405 = vmatpush1.bf16.msra.mxu0 %v2198_v8  ;;  %5781 = vmatpush1.bf16.msra.mxu1 %v2200_v9  ;;  %v2238_v8 = vunpack.c.l.s8.bf16 %v850_v6  ;;  %v2240_v9 = vunpack.c.l.s8.bf16 %v852_v7 }
 0x37a   : > { %4406 = vmatprep.subr.bf16.mxu0 %v2203_v27  ;;  %5782 = vmatprep.subr.bf16.mxu1 %v2205_v28  ;;  %v2243_v27 = vunpack.c.h.s8.bf16 %v851_v0  ;;  %v2245_v28 = vunpack.c.h.s8.bf16 %v853_v3 }
 0x37d   : > { %4407 = vmatpush1.bf16.msra.mxu0 %v2202_v14  ;;  %5783 = vmatpush1.bf16.msra.mxu1 %v2204_v15  ;;  %v2242_v14 = vunpack.c.h.s8.bf16 %v850_v6  ;;  %v2244_v15 = vunpack.c.h.s8.bf16 %v852_v7  ;;  %v7031_v6 = vcombine.low %v8551_v35, %v8554_v36  ;;  %v8593_v7 = vld [vmem:[%s8055_s12 + $0x60] sm:$0xff] }
 0x37e   : > { %4408 = vmatprep.subr.bf16.mxu0 %v2207_v16  ;;  %5784 = vmatprep.subr.bf16.mxu1 %v2209_v19  ;;  %v2247_v16 = vunpack.c.l.s8.bf16 %v855_v10  ;;  %v2249_v19 = vunpack.c.l.s8.bf16 %v857_v13 }
 0x381   : > { %4409 = vmatpush1.bf16.msra.mxu0 %v2206_v39  ;;  %5785 = vmatpush1.bf16.msra.mxu1 %v2208_v40  ;;  %v2246_v39 = vunpack.c.l.s8.bf16 %v854_v20  ;;  %v2248_v40 = vunpack.c.l.s8.bf16 %v856_v21 }
 0x382   : > { %4410 = vmatprep.subr.bf16.mxu0 %v2211_v22  ;;  %5786 = vmatprep.subr.bf16.mxu1 %v2213_v25  ;;  %v2251_v22 = vunpack.c.h.s8.bf16 %v855_v10  ;;  %v2253_v25 = vunpack.c.h.s8.bf16 %v857_v13  ;;  %v875_v13 = vld [vmem:[%s8057_s24 + $0xc28] sm:$0xff] }
 0x385   : > { %4411 = vmatpush1.bf16.msra.mxu0 %v2210_v26  ;;  %5787 = vmatpush1.bf16.msra.mxu1 %v2212_v29  ;;  %v2250_v26 = vunpack.c.h.s8.bf16 %v854_v20  ;;  %v2252_v29 = vunpack.c.h.s8.bf16 %v856_v21  ;;  %v874_v20 = vld [vmem:[%s8057_s24 + $0xc20] sm:$0xff]  ;;  %v876_v21 = vld [vmem:[%s8057_s24 + $0xc30] sm:$0xff] }
 0x386   : > { %4423 = vmatprep.subr.bf16.mxu0 %v2215_v30  ;;  %5799 = vmatprep.subr.bf16.mxu1 %v2217_v33  ;;  %v2255_v30 = vunpack.c.l.s8.bf16 %v859_v45  ;;  %v2257_v33 = vunpack.c.l.s8.bf16 %v861_v46 }
 0x388   : > { %4413 = vmatmul.mubr.bf16.vlgmr.msra.gmra.mrb[0].mxu0 %v7029_v34  ;;  %5789 = vmatmul.mubr.bf16.vlgmr.msra.gmra.mrb[0].mxu1 %v7029_v34  ;;  %v2254_v34 = vunpack.c.l.s8.bf16 %v858_v51  ;;  %v878_v51 = vld [vmem:[%s8057_s24 + $0xc40] sm:$0xff] }
 0x389   : > { %4424 = vmatpush1.bf16.msra.mxu0 %v2214_v37  ;;  %5800 = vmatpush1.bf16.msra.mxu1 %v2216_v55  ;;  %v2256_v37 = vunpack.c.l.s8.bf16 %v860_v52  ;;  %v2259_v55 = vunpack.c.h.s8.bf16 %v859_v45  ;;  %v879_v45 = vld [vmem:[%s8057_s24 + $0xc48] sm:$0xff] }
 0x38a   : > { %4425 = vmatprep.subr.bf16.mxu0 %v2219_v56  ;;  %5801 = vmatprep.subr.bf16.mxu1 %v2221_v38  ;;  %v2261_v56 = vunpack.c.h.s8.bf16 %v861_v46  ;;  %v863_v38 = vld [vmem:[%s8057_s24 + $0xbc8] sm:$0xff]  ;;  %v881_v46 = vld [vmem:[%s8057_s24 + $0xc58] sm:$0xff] }
 0x38b   : > { %4455 = vmatprep.mubr.bf16.mxu0 %v7032_v43  ;;  %5831 = vmatprep.mubr.bf16.mxu1 %v7032_v43  ;;  %v2260_v43 = vunpack.c.h.s8.bf16 %v860_v52  ;;  %v880_v52 = vld [vmem:[%s8057_s24 + $0xc50] sm:$0xff] }
 0x38d   : > { %4426 = vmatpush1.bf16.msra.mxu0 %v2218_v61  ;;  %5802 = vmatpush1.bf16.msra.mxu1 %v2220_v62  ;;  %v2263_v61 = vunpack.c.l.s8.bf16 %v863_v38  ;;  %v2265_v62 = vunpack.c.l.s8.bf16 %v865_v41 }
 0x38e   : > { %4427 = vmatprep.subr.bf16.mxu0 %v2223_v44  ;;  %5803 = vmatprep.subr.bf16.mxu1 %v2225_v47  ;;  %v862_v44 = vld [vmem:[%s8057_s24 + $0xbc0] sm:$0xff]  ;;  %v864_v47 = vld [vmem:[%s8057_s24 + $0xbd0] sm:$0xff] }
 0x38f   : > { %v2262_v48 = vunpack.c.l.s8.bf16 %v862_v44  ;;  %v2264_v49 = vunpack.c.l.s8.bf16 %v864_v47  ;;  %v2266_v31 = vunpack.c.h.s8.bf16 %v862_v44  ;;  %v2268_v32 = vunpack.c.h.s8.bf16 %v864_v47  ;;  %v882_v44 = vld [vmem:[%s8057_s24 + $0xc60] sm:$0xff]  ;;  %v884_v47 = vld [vmem:[%s8057_s24 + $0xc70] sm:$0xff] }
 0x391   : > { %4428 = vmatpush1.bf16.msra.mxu0 %v2222_v1  ;;  %5804 = vmatpush1.bf16.msra.mxu1 %v2224_v2  ;;  %v2267_v1 = vunpack.c.h.s8.bf16 %v863_v38  ;;  %v2269_v2 = vunpack.c.h.s8.bf16 %v865_v41  ;;  %v883_v38 = vld [vmem:[%s8057_s24 + $0xc68] sm:$0xff]  ;;  %v885_v41 = vld [vmem:[%s8057_s24 + $0xc78] sm:$0xff] }
 0x392   : > { %4429 = vmatprep.subr.bf16.mxu0 %v2227_v50  ;;  %5805 = vmatprep.subr.bf16.mxu1 %v2229_v53  ;;  %v867_v50 = vld [vmem:[%s8057_s24 + $0xbe8] sm:$0xff]  ;;  %v869_v53 = vld [vmem:[%s8057_s24 + $0xbf8] sm:$0xff] }
 0x395   : > { %4430 = vmatpush1.bf16.msra.mxu0 %v2226_v54  ;;  %5806 = vmatpush1.bf16.msra.mxu1 %v2228_v57  ;;  %v2271_v54 = vunpack.c.l.s8.bf16 %v867_v50  ;;  %v2273_v57 = vunpack.c.l.s8.bf16 %v869_v53 }
 0x396   : > { %4431 = vmatprep.subr.bf16.mxu0 %v2231_v58  ;;  %5807 = vmatprep.subr.bf16.mxu1 %v2233_v59  ;;  %v866_v58 = vld [vmem:[%s8057_s24 + $0xbe0] sm:$0xff]  ;;  %v868_v59 = vld [vmem:[%s8057_s24 + $0xbf0] sm:$0xff] }
 0x397   : > { %v2270_v11 = vunpack.c.l.s8.bf16 %v866_v58  ;;  %v2272_v12 = vunpack.c.l.s8.bf16 %v868_v59  ;;  %v2274_v0 = vunpack.c.h.s8.bf16 %v866_v58  ;;  %v2276_v3 = vunpack.c.h.s8.bf16 %v868_v59  ;;  %v886_v58 = vld [vmem:[%s8057_s24 + $0xc80] sm:$0xff]  ;;  %v888_v59 = vld [vmem:[%s8057_s24 + $0xc90] sm:$0xff] }
 0x399   : > { %4432 = vmatpush1.bf16.msra.mxu0 %v2230_v60  ;;  %5808 = vmatpush1.bf16.msra.mxu1 %v2232_v63  ;;  %v2275_v60 = vunpack.c.h.s8.bf16 %v867_v50  ;;  %v2277_v63 = vunpack.c.h.s8.bf16 %v869_v53  ;;  %v887_v50 = vld [vmem:[%s8057_s24 + $0xc88] sm:$0xff]  ;;  %v889_v53 = vld [vmem:[%s8057_s24 + $0xc98] sm:$0xff] }
 0x39a   : > { %4433 = vmatprep.subr.bf16.mxu0 %v2235_v17  ;;  %5809 = vmatprep.subr.bf16.mxu1 %v2237_v18  ;;  %v871_v17 = vld [vmem:[%s8057_s24 + $0xc08] sm:$0xff]  ;;  %v873_v18 = vld [vmem:[%s8057_s24 + $0xc18] sm:$0xff] }
 0x39b   : > { %v2285_v10 = vunpack.c.h.s8.bf16 %v873_v18 }
 0x39d   : > { %4434 = vmatpush1.bf16.msra.mxu0 %v2234_v4  ;;  %5810 = vmatpush1.bf16.msra.mxu1 %v2236_v5  ;;  %v2279_v4 = vunpack.c.l.s8.bf16 %v871_v17  ;;  %v2281_v5 = vunpack.c.l.s8.bf16 %v873_v18  ;;  %v893_v18 = vld [vmem:[%s8057_s24 + $0xcb8] sm:$0xff] }
 0x39e   : > { %4435 = vmatprep.subr.bf16.mxu0 %v2239_v23  ;;  %5811 = vmatprep.subr.bf16.mxu1 %v2241_v24  ;;  %v870_v23 = vld [vmem:[%s8057_s24 + $0xc00] sm:$0xff]  ;;  %v872_v24 = vld [vmem:[%s8057_s24 + $0xc10] sm:$0xff] }
 0x39f   : > { %v2282_v35 = vunpack.c.h.s8.bf16 %v870_v23  ;;  %v2284_v36 = vunpack.c.h.s8.bf16 %v872_v24 }
 0x3a1   : > { %4436 = vmatpush1.bf16.msra.mxu0 %v2238_v8  ;;  %5812 = vmatpush1.bf16.msra.mxu1 %v2240_v9  ;;  %v8596_v8 = vld [vmem:[%s8055_s12 + $0x160] sm:$0xff]  ;;  %v2278_v9 = vunpack.c.l.s8.bf16 %v870_v23 }
 0x3a2   : > { %4437 = vmatprep.subr.bf16.mxu0 %v2243_v27  ;;  %5813 = vmatprep.subr.bf16.mxu1 %v2245_v28  ;;  %v2280_v27 = vunpack.c.l.s8.bf16 %v872_v24  ;;  %v2283_v28 = vunpack.c.h.s8.bf16 %v871_v17  ;;  %v891_v17 = vld [vmem:[%s8057_s24 + $0xca8] sm:$0xff]  ;;  %v890_v23 = vld [vmem:[%s8057_s24 + $0xca0] sm:$0xff]  ;;  %v892_v24 = vld [vmem:[%s8057_s24 + $0xcb0] sm:$0xff] }
 0x3a5   : > { %4438 = vmatpush1.bf16.msra.mxu0 %v2242_v14  ;;  %5814 = vmatpush1.bf16.msra.mxu1 %v2244_v15  ;;  %v877_v14 = vld [vmem:[%s8057_s24 + $0xc38] sm:$0xff]  ;;  %v7034_v15 = vcombine.high %v8593_v7, %v8596_v8 }
 0x3a6   : > { %4439 = vmatprep.subr.bf16.mxu0 %v2247_v16  ;;  %5815 = vmatprep.subr.bf16.mxu1 %v2249_v19  ;;  %v2287_v16 = vunpack.c.l.s8.bf16 %v875_v13  ;;  %v2289_v19 = vunpack.c.l.s8.bf16 %v877_v14 }
 0x3a9   : > { %4440 = vmatpush1.bf16.msra.mxu0 %v2246_v39  ;;  %5816 = vmatpush1.bf16.msra.mxu1 %v2248_v40  ;;  %v2286_v39 = vunpack.c.l.s8.bf16 %v874_v20  ;;  %v2288_v40 = vunpack.c.l.s8.bf16 %v876_v21 }
 0x3aa   : > { %4441 = vmatprep.subr.bf16.mxu0 %v2251_v22  ;;  %5817 = vmatprep.subr.bf16.mxu1 %v2253_v25  ;;  %v2291_v22 = vunpack.c.h.s8.bf16 %v875_v13  ;;  %v2293_v25 = vunpack.c.h.s8.bf16 %v877_v14  ;;  %v897_v13 = vld [vmem:[%s8057_s24 + $0xcd8] sm:$0xff]  ;;  %v2322_v14 = vunpack.c.h.s8.bf16 %v890_v23 }
 0x3ad   : > { %4442 = vmatpush1.bf16.msra.mxu0 %v2250_v26  ;;  %5818 = vmatpush1.bf16.msra.mxu1 %v2252_v29  ;;  %v2290_v26 = vunpack.c.h.s8.bf16 %v874_v20  ;;  %v2292_v29 = vunpack.c.h.s8.bf16 %v876_v21 }
 0x3ae   : > { %4443 = vmatprep.subr.bf16.mxu0 %v2255_v30  ;;  %5819 = vmatprep.subr.bf16.mxu1 %v2257_v33  ;;  %v2295_v30 = vunpack.c.l.s8.bf16 %v879_v45  ;;  %v2297_v33 = vunpack.c.l.s8.bf16 %v881_v46 }
 0x3b1   : > { %4444 = vmatpush1.bf16.msra.mxu0 %v2254_v34  ;;  %5820 = vmatpush1.bf16.msra.mxu1 %v2256_v37  ;;  %v2294_v34 = vunpack.c.l.s8.bf16 %v878_v51  ;;  %v2296_v37 = vunpack.c.l.s8.bf16 %v880_v52 }
 0x3b2   : > { %4445 = vmatprep.subr.bf16.mxu0 %v2259_v55  ;;  %5821 = vmatprep.subr.bf16.mxu1 %v2261_v56  ;;  %v2299_v55 = vunpack.c.h.s8.bf16 %v879_v45  ;;  %v2301_v56 = vunpack.c.h.s8.bf16 %v881_v46 }
 0x3b5   : > { %4446 = vmatpush1.bf16.msra.mxu0 %v2258_v42  ;;  %5822 = vmatpush1.bf16.msra.mxu1 %v2260_v43  ;;  %v2298_v42 = vunpack.c.h.s8.bf16 %v878_v51  ;;  %v2300_v43 = vunpack.c.h.s8.bf16 %v880_v52 }
 0x3b6   : > { %4447 = vmatprep.subr.bf16.mxu0 %v2263_v61  ;;  %5823 = vmatprep.subr.bf16.mxu1 %v2265_v62  ;;  %v2303_v61 = vunpack.c.l.s8.bf16 %v883_v38  ;;  %v2305_v62 = vunpack.c.l.s8.bf16 %v885_v41 }
 0x3b9   : > { %4448 = vmatpush1.bf16.msra.mxu0 %v2262_v48  ;;  %5824 = vmatpush1.bf16.msra.mxu1 %v2264_v49  ;;  %v2302_v48 = vunpack.c.l.s8.bf16 %v882_v44  ;;  %v2304_v49 = vunpack.c.l.s8.bf16 %v884_v47 }
 0x3ba   : > { %4449 = vmatprep.subr.bf16.mxu0 %v2267_v1  ;;  %5825 = vmatprep.subr.bf16.mxu1 %v2269_v2  ;;  %v2307_v1 = vunpack.c.h.s8.bf16 %v883_v38  ;;  %v2309_v2 = vunpack.c.h.s8.bf16 %v885_v41 }
 0x3bd   : > { %4450 = vmatpush1.bf16.msra.mxu0 %v2266_v31  ;;  %5826 = vmatpush1.bf16.msra.mxu1 %v2268_v32  ;;  %v2306_v31 = vunpack.c.h.s8.bf16 %v882_v44  ;;  %v2308_v32 = vunpack.c.h.s8.bf16 %v884_v47  ;;  %v7033_v44 = vcombine.low %v8593_v7, %v8596_v8  ;;  %v8635_v47 = vld [vmem:[%s8055_s12 + $0x68] sm:$0xff] }
 0x3be   : > { %4451 = vmatprep.subr.bf16.mxu0 %v2271_v54  ;;  %5827 = vmatprep.subr.bf16.mxu1 %v2273_v57  ;;  %v2311_v54 = vunpack.c.l.s8.bf16 %v887_v50  ;;  %v2313_v57 = vunpack.c.l.s8.bf16 %v889_v53 }
 0x3c1   : > { %4452 = vmatpush1.bf16.msra.mxu0 %v2270_v11  ;;  %5828 = vmatpush1.bf16.msra.mxu1 %v2272_v12  ;;  %v2310_v11 = vunpack.c.l.s8.bf16 %v886_v58  ;;  %v2312_v12 = vunpack.c.l.s8.bf16 %v888_v59 }
 0x3c2   : > { %4453 = vmatprep.subr.bf16.mxu0 %v2275_v60  ;;  %5829 = vmatprep.subr.bf16.mxu1 %v2277_v63  ;;  %v2315_v60 = vunpack.c.h.s8.bf16 %v887_v50  ;;  %v2317_v63 = vunpack.c.h.s8.bf16 %v889_v53  ;;  %v907_v53 = vld [vmem:[%s8057_s24 + $0xd28] sm:$0xff] }
 0x3c5   : > { %4454 = vmatpush1.bf16.msra.mxu0 %v2274_v0  ;;  %5830 = vmatpush1.bf16.msra.mxu1 %v2276_v3  ;;  %v2314_v0 = vunpack.c.h.s8.bf16 %v886_v58  ;;  %v2316_v3 = vunpack.c.h.s8.bf16 %v888_v59  ;;  %v906_v58 = vld [vmem:[%s8057_s24 + $0xd20] sm:$0xff]  ;;  %v908_v59 = vld [vmem:[%s8057_s24 + $0xd30] sm:$0xff] }
 0x3c6   : > { %4466 = vmatprep.subr.bf16.mxu0 %v2279_v4  ;;  %5842 = vmatprep.subr.bf16.mxu1 %v2281_v5  ;;  %v2319_v4 = vunpack.c.l.s8.bf16 %v891_v17  ;;  %v2321_v5 = vunpack.c.l.s8.bf16 %v893_v18 }
 0x3c8   : > { %4456 = vmatmul.mubr.bf16.vlgmr.msra.gmra.mrb[0].mxu0 %v7031_v6  ;;  %5832 = vmatmul.mubr.bf16.vlgmr.msra.gmra.mrb[0].mxu1 %v7031_v6  ;;  %v2318_v6 = vunpack.c.l.s8.bf16 %v890_v23  ;;  %v910_v23 = vld [vmem:[%s8057_s24 + $0xd40] sm:$0xff] }
 0x3c9   : > { %4467 = vmatpush1.bf16.msra.mxu0 %v2278_v9  ;;  %5843 = vmatpush1.bf16.msra.mxu1 %v2280_v27  ;;  %v2320_v9 = vunpack.c.l.s8.bf16 %v892_v24  ;;  %v2323_v27 = vunpack.c.h.s8.bf16 %v891_v17  ;;  %v911_v17 = vld [vmem:[%s8057_s24 + $0xd48] sm:$0xff] }
 0x3ca   : > { %4468 = vmatprep.subr.bf16.mxu0 %v2283_v28  ;;  %5844 = vmatprep.subr.bf16.mxu1 %v2285_v10  ;;  %v2325_v28 = vunpack.c.h.s8.bf16 %v893_v18  ;;  %v895_v10 = vld [vmem:[%s8057_s24 + $0xcc8] sm:$0xff]  ;;  %v913_v18 = vld [vmem:[%s8057_s24 + $0xd58] sm:$0xff] }
 0x3cb   : > { %4498 = vmatprep.mubr.bf16.mxu0 %v7034_v15  ;;  %5874 = vmatprep.mubr.bf16.mxu1 %v7034_v15  ;;  %v2324_v15 = vunpack.c.h.s8.bf16 %v892_v24  ;;  %v912_v24 = vld [vmem:[%s8057_s24 + $0xd50] sm:$0xff] }
 0x3cd   : > { %4469 = vmatpush1.bf16.msra.mxu0 %v2282_v35  ;;  %5845 = vmatpush1.bf16.msra.mxu1 %v2284_v36  ;;  %v2327_v35 = vunpack.c.l.s8.bf16 %v895_v10  ;;  %v2329_v36 = vunpack.c.l.s8.bf16 %v897_v13 }
 0x3ce   : > { %4470 = vmatprep.subr.bf16.mxu0 %v2287_v16  ;;  %5846 = vmatprep.subr.bf16.mxu1 %v2289_v19  ;;  %v894_v16 = vld [vmem:[%s8057_s24 + $0xcc0] sm:$0xff]  ;;  %v896_v19 = vld [vmem:[%s8057_s24 + $0xcd0] sm:$0xff] }
 0x3cf   : > { %v2326_v20 = vunpack.c.l.s8.bf16 %v894_v16  ;;  %v2328_v21 = vunpack.c.l.s8.bf16 %v896_v19  ;;  %v2330_v45 = vunpack.c.h.s8.bf16 %v894_v16  ;;  %v2332_v46 = vunpack.c.h.s8.bf16 %v896_v19  ;;  %v914_v16 = vld [vmem:[%s8057_s24 + $0xd60] sm:$0xff]  ;;  %v916_v19 = vld [vmem:[%s8057_s24 + $0xd70] sm:$0xff] }
 0x3d1   : > { %4471 = vmatpush1.bf16.msra.mxu0 %v2286_v39  ;;  %5847 = vmatpush1.bf16.msra.mxu1 %v2288_v40  ;;  %v2331_v39 = vunpack.c.h.s8.bf16 %v895_v10  ;;  %v2333_v40 = vunpack.c.h.s8.bf16 %v897_v13  ;;  %v915_v10 = vld [vmem:[%s8057_s24 + $0xd68] sm:$0xff]  ;;  %v917_v13 = vld [vmem:[%s8057_s24 + $0xd78] sm:$0xff] }
 0x3d2   : > { %4472 = vmatprep.subr.bf16.mxu0 %v2291_v22  ;;  %5848 = vmatprep.subr.bf16.mxu1 %v2293_v25  ;;  %v899_v22 = vld [vmem:[%s8057_s24 + $0xce8] sm:$0xff]  ;;  %v901_v25 = vld [vmem:[%s8057_s24 + $0xcf8] sm:$0xff] }
 0x3d5   : > { %4473 = vmatpush1.bf16.msra.mxu0 %v2290_v26  ;;  %5849 = vmatpush1.bf16.msra.mxu1 %v2292_v29  ;;  %v2335_v26 = vunpack.c.l.s8.bf16 %v899_v22  ;;  %v2337_v29 = vunpack.c.l.s8.bf16 %v901_v25 }
 0x3d6   : > { %4474 = vmatprep.subr.bf16.mxu0 %v2295_v30  ;;  %5850 = vmatprep.subr.bf16.mxu1 %v2297_v33  ;;  %v898_v30 = vld [vmem:[%s8057_s24 + $0xce0] sm:$0xff]  ;;  %v900_v33 = vld [vmem:[%s8057_s24 + $0xcf0] sm:$0xff] }
 0x3d7   : > { %v2334_v51 = vunpack.c.l.s8.bf16 %v898_v30  ;;  %v2336_v52 = vunpack.c.l.s8.bf16 %v900_v33  ;;  %v2338_v38 = vunpack.c.h.s8.bf16 %v898_v30  ;;  %v2340_v41 = vunpack.c.h.s8.bf16 %v900_v33  ;;  %v918_v30 = vld [vmem:[%s8057_s24 + $0xd80] sm:$0xff]  ;;  %v920_v33 = vld [vmem:[%s8057_s24 + $0xd90] sm:$0xff] }
 0x3d9   : > { %4475 = vmatpush1.bf16.msra.mxu0 %v2294_v34  ;;  %5851 = vmatpush1.bf16.msra.mxu1 %v2296_v37  ;;  %v2339_v34 = vunpack.c.h.s8.bf16 %v899_v22  ;;  %v2341_v37 = vunpack.c.h.s8.bf16 %v901_v25  ;;  %v919_v22 = vld [vmem:[%s8057_s24 + $0xd88] sm:$0xff]  ;;  %v921_v25 = vld [vmem:[%s8057_s24 + $0xd98] sm:$0xff] }
 0x3da   : > { %4476 = vmatprep.subr.bf16.mxu0 %v2299_v55  ;;  %5852 = vmatprep.subr.bf16.mxu1 %v2301_v56  ;;  %v903_v55 = vld [vmem:[%s8057_s24 + $0xd08] sm:$0xff]  ;;  %v905_v56 = vld [vmem:[%s8057_s24 + $0xd18] sm:$0xff] }
 0x3db   : > { %v2349_v50 = vunpack.c.h.s8.bf16 %v905_v56 }
 0x3dd   : > { %4477 = vmatpush1.bf16.msra.mxu0 %v2298_v42  ;;  %5853 = vmatpush1.bf16.msra.mxu1 %v2300_v43  ;;  %v2343_v42 = vunpack.c.l.s8.bf16 %v903_v55  ;;  %v2345_v43 = vunpack.c.l.s8.bf16 %v905_v56  ;;  %v925_v56 = vld [vmem:[%s8057_s24 + $0xdb8] sm:$0xff] }
 0x3de   : > { %4478 = vmatprep.subr.bf16.mxu0 %v2303_v61  ;;  %5854 = vmatprep.subr.bf16.mxu1 %v2305_v62  ;;  %v902_v61 = vld [vmem:[%s8057_s24 + $0xd00] sm:$0xff]  ;;  %v904_v62 = vld [vmem:[%s8057_s24 + $0xd10] sm:$0xff] }
 0x3df   : > { %v2346_v7 = vunpack.c.h.s8.bf16 %v902_v61  ;;  %v2348_v8 = vunpack.c.h.s8.bf16 %v904_v62 }
 0x3e1   : > { %4479 = vmatpush1.bf16.msra.mxu0 %v2302_v48  ;;  %5855 = vmatpush1.bf16.msra.mxu1 %v2304_v49  ;;  %v8638_v48 = vld [vmem:[%s8055_s12 + $0x168] sm:$0xff]  ;;  %v2342_v49 = vunpack.c.l.s8.bf16 %v902_v61  ;;  %v922_v61 = vld [vmem:[%s8057_s24 + $0xda0] sm:$0xff] }
 0x3e2   : > { %4480 = vmatprep.subr.bf16.mxu0 %v2307_v1  ;;  %5856 = vmatprep.subr.bf16.mxu1 %v2309_v2  ;;  %v2344_v1 = vunpack.c.l.s8.bf16 %v904_v62  ;;  %v2347_v2 = vunpack.c.h.s8.bf16 %v903_v55  ;;  %v923_v55 = vld [vmem:[%s8057_s24 + $0xda8] sm:$0xff]  ;;  %v924_v62 = vld [vmem:[%s8057_s24 + $0xdb0] sm:$0xff] }
 0x3e5   : > { %4481 = vmatpush1.bf16.msra.mxu0 %v2306_v31  ;;  %5857 = vmatpush1.bf16.msra.mxu1 %v2308_v32  ;;  %v909_v31 = vld [vmem:[%s8057_s24 + $0xd38] sm:$0xff]  ;;  %v7036_v32 = vcombine.high %v8635_v47, %v8638_v48 }
 0x3e6   : > { %4482 = vmatprep.subr.bf16.mxu0 %v2311_v54  ;;  %5858 = vmatprep.subr.bf16.mxu1 %v2313_v57  ;;  %v2351_v54 = vunpack.c.l.s8.bf16 %v907_v53  ;;  %v2353_v57 = vunpack.c.l.s8.bf16 %v909_v31 }
 0x3e9   : > { %4483 = vmatpush1.bf16.msra.mxu0 %v2310_v11  ;;  %5859 = vmatpush1.bf16.msra.mxu1 %v2312_v12  ;;  %v2350_v11 = vunpack.c.l.s8.bf16 %v906_v58  ;;  %v2352_v12 = vunpack.c.l.s8.bf16 %v908_v59 }
 0x3ea   : > { %4484 = vmatprep.subr.bf16.mxu0 %v2315_v60  ;;  %5860 = vmatprep.subr.bf16.mxu1 %v2317_v63  ;;  %v2355_v60 = vunpack.c.h.s8.bf16 %v907_v53  ;;  %v2357_v63 = vunpack.c.h.s8.bf16 %v909_v31  ;;  %v929_v53 = vld [vmem:[%s8057_s24 + $0xdd8] sm:$0xff]  ;;  %v2386_v31 = vunpack.c.h.s8.bf16 %v922_v61 }
 0x3ed   : > { %4485 = vmatpush1.bf16.msra.mxu0 %v2314_v0  ;;  %5861 = vmatpush1.bf16.msra.mxu1 %v2316_v3  ;;  %v2354_v0 = vunpack.c.h.s8.bf16 %v906_v58  ;;  %v2356_v3 = vunpack.c.h.s8.bf16 %v908_v59 }
 0x3ee   : > { %4486 = vmatprep.subr.bf16.mxu0 %v2319_v4  ;;  %5862 = vmatprep.subr.bf16.mxu1 %v2321_v5  ;;  %v2359_v4 = vunpack.c.l.s8.bf16 %v911_v17  ;;  %v2361_v5 = vunpack.c.l.s8.bf16 %v913_v18 }
 0x3f1   : > { %4487 = vmatpush1.bf16.msra.mxu0 %v2318_v6  ;;  %5863 = vmatpush1.bf16.msra.mxu1 %v2320_v9  ;;  %v2358_v6 = vunpack.c.l.s8.bf16 %v910_v23  ;;  %v2360_v9 = vunpack.c.l.s8.bf16 %v912_v24 }
 0x3f2   : > { %4488 = vmatprep.subr.bf16.mxu0 %v2323_v27  ;;  %5864 = vmatprep.subr.bf16.mxu1 %v2325_v28  ;;  %v2363_v27 = vunpack.c.h.s8.bf16 %v911_v17  ;;  %v2365_v28 = vunpack.c.h.s8.bf16 %v913_v18 }
 0x3f5   : > { %4489 = vmatpush1.bf16.msra.mxu0 %v2322_v14  ;;  %5865 = vmatpush1.bf16.msra.mxu1 %v2324_v15  ;;  %v2362_v14 = vunpack.c.h.s8.bf16 %v910_v23  ;;  %v2364_v15 = vunpack.c.h.s8.bf16 %v912_v24 }
 0x3f6   : > { %4490 = vmatprep.subr.bf16.mxu0 %v2327_v35  ;;  %5866 = vmatprep.subr.bf16.mxu1 %v2329_v36  ;;  %v2367_v35 = vunpack.c.l.s8.bf16 %v915_v10  ;;  %v2369_v36 = vunpack.c.l.s8.bf16 %v917_v13 }
 0x3f9   : > { %4491 = vmatpush1.bf16.msra.mxu0 %v2326_v20  ;;  %5867 = vmatpush1.bf16.msra.mxu1 %v2328_v21  ;;  %v2366_v20 = vunpack.c.l.s8.bf16 %v914_v16  ;;  %v2368_v21 = vunpack.c.l.s8.bf16 %v916_v19 }
 0x3fa   : > { %4492 = vmatprep.subr.bf16.mxu0 %v2331_v39  ;;  %5868 = vmatprep.subr.bf16.mxu1 %v2333_v40  ;;  %v2371_v39 = vunpack.c.h.s8.bf16 %v915_v10  ;;  %v2373_v40 = vunpack.c.h.s8.bf16 %v917_v13 }
 0x3fd   : > { %4493 = vmatpush1.bf16.msra.mxu0 %v2330_v45  ;;  %5869 = vmatpush1.bf16.msra.mxu1 %v2332_v46  ;;  %v2370_v45 = vunpack.c.h.s8.bf16 %v914_v16  ;;  %v2372_v46 = vunpack.c.h.s8.bf16 %v916_v19  ;;  %v7035_v16 = vcombine.low %v8635_v47, %v8638_v48  ;;  %v8677_v19 = vld [vmem:[%s8055_s12 + $0x70] sm:$0xff] }
 0x3fe   : > { %4494 = vmatprep.subr.bf16.mxu0 %v2335_v26  ;;  %5870 = vmatprep.subr.bf16.mxu1 %v2337_v29  ;;  %v2375_v26 = vunpack.c.l.s8.bf16 %v919_v22  ;;  %v2377_v29 = vunpack.c.l.s8.bf16 %v921_v25 }
 0x401   : > { %4495 = vmatpush1.bf16.msra.mxu0 %v2334_v51  ;;  %5871 = vmatpush1.bf16.msra.mxu1 %v2336_v52  ;;  %v2374_v51 = vunpack.c.l.s8.bf16 %v918_v30  ;;  %v2376_v52 = vunpack.c.l.s8.bf16 %v920_v33 }
 0x402   : > { %4496 = vmatprep.subr.bf16.mxu0 %v2339_v34  ;;  %5872 = vmatprep.subr.bf16.mxu1 %v2341_v37  ;;  %v2379_v34 = vunpack.c.h.s8.bf16 %v919_v22  ;;  %v2381_v37 = vunpack.c.h.s8.bf16 %v921_v25  ;;  %v939_v25 = vld [vmem:[%s8057_s24 + $0xe28] sm:$0xff] }
 0x405   : > { %4497 = vmatpush1.bf16.msra.mxu0 %v2338_v38  ;;  %5873 = vmatpush1.bf16.msra.mxu1 %v2340_v41  ;;  %v2378_v38 = vunpack.c.h.s8.bf16 %v918_v30  ;;  %v2380_v41 = vunpack.c.h.s8.bf16 %v920_v33  ;;  %v938_v30 = vld [vmem:[%s8057_s24 + $0xe20] sm:$0xff]  ;;  %v940_v33 = vld [vmem:[%s8057_s24 + $0xe30] sm:$0xff] }
 0x406   : > { %4509 = vmatprep.subr.bf16.mxu0 %v2343_v42  ;;  %5885 = vmatprep.subr.bf16.mxu1 %v2345_v43  ;;  %v2383_v42 = vunpack.c.l.s8.bf16 %v923_v55  ;;  %v2385_v43 = vunpack.c.l.s8.bf16 %v925_v56 }
 0x408   : > { %4499 = vmatmul.mubr.bf16.vlgmr.msra.gmra.mrb[0].mxu0 %v7033_v44  ;;  %5875 = vmatmul.mubr.bf16.vlgmr.msra.gmra.mrb[0].mxu1 %v7033_v44  ;;  %v2382_v44 = vunpack.c.l.s8.bf16 %v922_v61  ;;  %v942_v61 = vld [vmem:[%s8057_s24 + $0xe40] sm:$0xff] }
 0x409   : > { %4510 = vmatpush1.bf16.msra.mxu0 %v2342_v49  ;;  %5886 = vmatpush1.bf16.msra.mxu1 %v2344_v1  ;;  %v2384_v49 = vunpack.c.l.s8.bf16 %v924_v62  ;;  %v2387_v1 = vunpack.c.h.s8.bf16 %v923_v55  ;;  %v943_v55 = vld [vmem:[%s8057_s24 + $0xe48] sm:$0xff] }
 0x40a   : > { %4511 = vmatprep.subr.bf16.mxu0 %v2347_v2  ;;  %5887 = vmatprep.subr.bf16.mxu1 %v2349_v50  ;;  %v2389_v2 = vunpack.c.h.s8.bf16 %v925_v56  ;;  %v927_v50 = vld [vmem:[%s8057_s24 + $0xdc8] sm:$0xff]  ;;  %v945_v56 = vld [vmem:[%s8057_s24 + $0xe58] sm:$0xff] }
 0x40b   : > { %4541 = vmatprep.mubr.bf16.mxu0 %v7036_v32  ;;  %5917 = vmatprep.mubr.bf16.mxu1 %v7036_v32  ;;  %v2388_v32 = vunpack.c.h.s8.bf16 %v924_v62  ;;  %v944_v62 = vld [vmem:[%s8057_s24 + $0xe50] sm:$0xff] }
 0x40d   : > { %4512 = vmatpush1.bf16.msra.mxu0 %v2346_v7  ;;  %5888 = vmatpush1.bf16.msra.mxu1 %v2348_v8  ;;  %v2391_v7 = vunpack.c.l.s8.bf16 %v927_v50  ;;  %v2393_v8 = vunpack.c.l.s8.bf16 %v929_v53 }
 0x40e   : > { %4513 = vmatprep.subr.bf16.mxu0 %v2351_v54  ;;  %5889 = vmatprep.subr.bf16.mxu1 %v2353_v57  ;;  %v926_v54 = vld [vmem:[%s8057_s24 + $0xdc0] sm:$0xff]  ;;  %v928_v57 = vld [vmem:[%s8057_s24 + $0xdd0] sm:$0xff] }
 0x40f   : > { %v2390_v58 = vunpack.c.l.s8.bf16 %v926_v54  ;;  %v2392_v59 = vunpack.c.l.s8.bf16 %v928_v57  ;;  %v2394_v17 = vunpack.c.h.s8.bf16 %v926_v54  ;;  %v2396_v18 = vunpack.c.h.s8.bf16 %v928_v57  ;;  %v946_v54 = vld [vmem:[%s8057_s24 + $0xe60] sm:$0xff]  ;;  %v948_v57 = vld [vmem:[%s8057_s24 + $0xe70] sm:$0xff] }
 0x411   : > { %4514 = vmatpush1.bf16.msra.mxu0 %v2350_v11  ;;  %5890 = vmatpush1.bf16.msra.mxu1 %v2352_v12  ;;  %v2395_v11 = vunpack.c.h.s8.bf16 %v927_v50  ;;  %v2397_v12 = vunpack.c.h.s8.bf16 %v929_v53  ;;  %v947_v50 = vld [vmem:[%s8057_s24 + $0xe68] sm:$0xff]  ;;  %v949_v53 = vld [vmem:[%s8057_s24 + $0xe78] sm:$0xff] }
 0x412   : > { %4515 = vmatprep.subr.bf16.mxu0 %v2355_v60  ;;  %5891 = vmatprep.subr.bf16.mxu1 %v2357_v63  ;;  %v931_v60 = vld [vmem:[%s8057_s24 + $0xde8] sm:$0xff]  ;;  %v933_v63 = vld [vmem:[%s8057_s24 + $0xdf8] sm:$0xff] }
 0x415   : > { %4516 = vmatpush1.bf16.msra.mxu0 %v2354_v0  ;;  %5892 = vmatpush1.bf16.msra.mxu1 %v2356_v3  ;;  %v2399_v0 = vunpack.c.l.s8.bf16 %v931_v60  ;;  %v2401_v3 = vunpack.c.l.s8.bf16 %v933_v63 }
 0x416   : > { %4517 = vmatprep.subr.bf16.mxu0 %v2359_v4  ;;  %5893 = vmatprep.subr.bf16.mxu1 %v2361_v5  ;;  %v930_v4 = vld [vmem:[%s8057_s24 + $0xde0] sm:$0xff]  ;;  %v932_v5 = vld [vmem:[%s8057_s24 + $0xdf0] sm:$0xff] }
 0x417   : > { %v2398_v23 = vunpack.c.l.s8.bf16 %v930_v4  ;;  %v2400_v24 = vunpack.c.l.s8.bf16 %v932_v5  ;;  %v2402_v10 = vunpack.c.h.s8.bf16 %v930_v4  ;;  %v2404_v13 = vunpack.c.h.s8.bf16 %v932_v5  ;;  %v950_v4 = vld [vmem:[%s8057_s24 + $0xe80] sm:$0xff]  ;;  %v952_v5 = vld [vmem:[%s8057_s24 + $0xe90] sm:$0xff] }
 0x419   : > { %4518 = vmatpush1.bf16.msra.mxu0 %v2358_v6  ;;  %5894 = vmatpush1.bf16.msra.mxu1 %v2360_v9  ;;  %v2403_v6 = vunpack.c.h.s8.bf16 %v931_v60  ;;  %v2405_v9 = vunpack.c.h.s8.bf16 %v933_v63  ;;  %v951_v60 = vld [vmem:[%s8057_s24 + $0xe88] sm:$0xff]  ;;  %v953_v63 = vld [vmem:[%s8057_s24 + $0xe98] sm:$0xff] }
 0x41a   : > { %4519 = vmatprep.subr.bf16.mxu0 %v2363_v27  ;;  %5895 = vmatprep.subr.bf16.mxu1 %v2365_v28  ;;  %v935_v27 = vld [vmem:[%s8057_s24 + $0xe08] sm:$0xff]  ;;  %v937_v28 = vld [vmem:[%s8057_s24 + $0xe18] sm:$0xff] }
 0x41b   : > { %v2413_v22 = vunpack.c.h.s8.bf16 %v937_v28 }
 0x41d   : > { %4520 = vmatpush1.bf16.msra.mxu0 %v2362_v14  ;;  %5896 = vmatpush1.bf16.msra.mxu1 %v2364_v15  ;;  %v2407_v14 = vunpack.c.l.s8.bf16 %v935_v27  ;;  %v2409_v15 = vunpack.c.l.s8.bf16 %v937_v28  ;;  %v957_v28 = vld [vmem:[%s8057_s24 + $0xeb8] sm:$0xff] }
 0x41e   : > { %4521 = vmatprep.subr.bf16.mxu0 %v2367_v35  ;;  %5897 = vmatprep.subr.bf16.mxu1 %v2369_v36  ;;  %v934_v35 = vld [vmem:[%s8057_s24 + $0xe00] sm:$0xff]  ;;  %v936_v36 = vld [vmem:[%s8057_s24 + $0xe10] sm:$0xff] }
 0x41f   : > { %v2410_v47 = vunpack.c.h.s8.bf16 %v934_v35  ;;  %v2412_v48 = vunpack.c.h.s8.bf16 %v936_v36 }
 0x421   : > { %4522 = vmatpush1.bf16.msra.mxu0 %v2366_v20  ;;  %5898 = vmatpush1.bf16.msra.mxu1 %v2368_v21  ;;  %v8680_v20 = vld [vmem:[%s8055_s12 + $0x170] sm:$0xff]  ;;  %v2406_v21 = vunpack.c.l.s8.bf16 %v934_v35  ;;  %v954_v35 = vld [vmem:[%s8057_s24 + $0xea0] sm:$0xff] }
 0x422   : > { %4523 = vmatprep.subr.bf16.mxu0 %v2371_v39  ;;  %5899 = vmatprep.subr.bf16.mxu1 %v2373_v40  ;;  %v2408_v39 = vunpack.c.l.s8.bf16 %v936_v36  ;;  %v2411_v40 = vunpack.c.h.s8.bf16 %v935_v27  ;;  %v955_v27 = vld [vmem:[%s8057_s24 + $0xea8] sm:$0xff]  ;;  %v956_v36 = vld [vmem:[%s8057_s24 + $0xeb0] sm:$0xff] }
 0x425   : > { %4524 = vmatpush1.bf16.msra.mxu0 %v2370_v45  ;;  %5900 = vmatpush1.bf16.msra.mxu1 %v2372_v46  ;;  %v941_v45 = vld [vmem:[%s8057_s24 + $0xe38] sm:$0xff]  ;;  %v7038_v46 = vcombine.high %v8677_v19, %v8680_v20 }
 0x426   : > { %4525 = vmatprep.subr.bf16.mxu0 %v2375_v26  ;;  %5901 = vmatprep.subr.bf16.mxu1 %v2377_v29  ;;  %v2415_v26 = vunpack.c.l.s8.bf16 %v939_v25  ;;  %v2417_v29 = vunpack.c.l.s8.bf16 %v941_v45 }
 0x429   : > { %4526 = vmatpush1.bf16.msra.mxu0 %v2374_v51  ;;  %5902 = vmatpush1.bf16.msra.mxu1 %v2376_v52  ;;  %v2414_v51 = vunpack.c.l.s8.bf16 %v938_v30  ;;  %v2416_v52 = vunpack.c.l.s8.bf16 %v940_v33 }
 0x42a   : > { %4527 = vmatprep.subr.bf16.mxu0 %v2379_v34  ;;  %5903 = vmatprep.subr.bf16.mxu1 %v2381_v37  ;;  %v2419_v34 = vunpack.c.h.s8.bf16 %v939_v25  ;;  %v2421_v37 = vunpack.c.h.s8.bf16 %v941_v45  ;;  %v961_v25 = vld [vmem:[%s8057_s24 + $0xed8] sm:$0xff]  ;;  %v2450_v45 = vunpack.c.h.s8.bf16 %v954_v35 }
 0x42d   : > { %4528 = vmatpush1.bf16.msra.mxu0 %v2378_v38  ;;  %5904 = vmatpush1.bf16.msra.mxu1 %v2380_v41  ;;  %v2418_v38 = vunpack.c.h.s8.bf16 %v938_v30  ;;  %v2420_v41 = vunpack.c.h.s8.bf16 %v940_v33 }
 0x42e   : > { %4529 = vmatprep.subr.bf16.mxu0 %v2383_v42  ;;  %5905 = vmatprep.subr.bf16.mxu1 %v2385_v43  ;;  %v2423_v42 = vunpack.c.l.s8.bf16 %v943_v55  ;;  %v2425_v43 = vunpack.c.l.s8.bf16 %v945_v56 }
 0x431   : > { %4530 = vmatpush1.bf16.msra.mxu0 %v2382_v44  ;;  %5906 = vmatpush1.bf16.msra.mxu1 %v2384_v49  ;;  %v2422_v44 = vunpack.c.l.s8.bf16 %v942_v61  ;;  %v2424_v49 = vunpack.c.l.s8.bf16 %v944_v62 }
 0x432   : > { %4531 = vmatprep.subr.bf16.mxu0 %v2387_v1  ;;  %5907 = vmatprep.subr.bf16.mxu1 %v2389_v2  ;;  %v2427_v1 = vunpack.c.h.s8.bf16 %v943_v55  ;;  %v2429_v2 = vunpack.c.h.s8.bf16 %v945_v56 }
 0x435   : > { %4532 = vmatpush1.bf16.msra.mxu0 %v2386_v31  ;;  %5908 = vmatpush1.bf16.msra.mxu1 %v2388_v32  ;;  %v2426_v31 = vunpack.c.h.s8.bf16 %v942_v61  ;;  %v2428_v32 = vunpack.c.h.s8.bf16 %v944_v62 }
 0x436   : > { %4533 = vmatprep.subr.bf16.mxu0 %v2391_v7  ;;  %5909 = vmatprep.subr.bf16.mxu1 %v2393_v8  ;;  %v2431_v7 = vunpack.c.l.s8.bf16 %v947_v50  ;;  %v2433_v8 = vunpack.c.l.s8.bf16 %v949_v53 }
 0x439   : > { %4534 = vmatpush1.bf16.msra.mxu0 %v2390_v58  ;;  %5910 = vmatpush1.bf16.msra.mxu1 %v2392_v59  ;;  %v2430_v58 = vunpack.c.l.s8.bf16 %v946_v54  ;;  %v2432_v59 = vunpack.c.l.s8.bf16 %v948_v57 }
 0x43a   : > { %4535 = vmatprep.subr.bf16.mxu0 %v2395_v11  ;;  %5911 = vmatprep.subr.bf16.mxu1 %v2397_v12  ;;  %v2435_v11 = vunpack.c.h.s8.bf16 %v947_v50  ;;  %v2437_v12 = vunpack.c.h.s8.bf16 %v949_v53 }
 0x43d   : > { %4536 = vmatpush1.bf16.msra.mxu0 %v2394_v17  ;;  %5912 = vmatpush1.bf16.msra.mxu1 %v2396_v18  ;;  %v2434_v17 = vunpack.c.h.s8.bf16 %v946_v54  ;;  %v2436_v18 = vunpack.c.h.s8.bf16 %v948_v57  ;;  %v7037_v54 = vcombine.low %v8677_v19, %v8680_v20  ;;  %v8719_v57 = vld [vmem:[%s8055_s12 + $0x78] sm:$0xff] }
 0x43e   : > { %4537 = vmatprep.subr.bf16.mxu0 %v2399_v0  ;;  %5913 = vmatprep.subr.bf16.mxu1 %v2401_v3  ;;  %v2439_v0 = vunpack.c.l.s8.bf16 %v951_v60  ;;  %v2441_v3 = vunpack.c.l.s8.bf16 %v953_v63 }
 0x441   : > { %4538 = vmatpush1.bf16.msra.mxu0 %v2398_v23  ;;  %5914 = vmatpush1.bf16.msra.mxu1 %v2400_v24  ;;  %v2438_v23 = vunpack.c.l.s8.bf16 %v950_v4  ;;  %v2440_v24 = vunpack.c.l.s8.bf16 %v952_v5 }
 0x442   : > { %4539 = vmatprep.subr.bf16.mxu0 %v2403_v6  ;;  %5915 = vmatprep.subr.bf16.mxu1 %v2405_v9  ;;  %v2443_v6 = vunpack.c.h.s8.bf16 %v951_v60  ;;  %v2445_v9 = vunpack.c.h.s8.bf16 %v953_v63  ;;  %v971_v63 = vld [vmem:[%s8057_s24 + $0xf28] sm:$0xff] }
 0x445   : > { %4540 = vmatpush1.bf16.msra.mxu0 %v2402_v10  ;;  %5916 = vmatpush1.bf16.msra.mxu1 %v2404_v13  ;;  %v2442_v10 = vunpack.c.h.s8.bf16 %v950_v4  ;;  %v2444_v13 = vunpack.c.h.s8.bf16 %v952_v5  ;;  %v970_v4 = vld [vmem:[%s8057_s24 + $0xf20] sm:$0xff]  ;;  %v972_v5 = vld [vmem:[%s8057_s24 + $0xf30] sm:$0xff] }
 0x446   : > { %4552 = vmatprep.subr.bf16.mxu0 %v2407_v14  ;;  %5928 = vmatprep.subr.bf16.mxu1 %v2409_v15  ;;  %v2447_v14 = vunpack.c.l.s8.bf16 %v955_v27  ;;  %v2449_v15 = vunpack.c.l.s8.bf16 %v957_v28 }
 0x448   : > { %4542 = vmatmul.mubr.bf16.vlgmr.msra.gmra.mrb[0].mxu0 %v7035_v16  ;;  %5918 = vmatmul.mubr.bf16.vlgmr.msra.gmra.mrb[0].mxu1 %v7035_v16  ;;  %v2446_v16 = vunpack.c.l.s8.bf16 %v954_v35  ;;  %v974_v35 = vld [vmem:[%s8057_s24 + $0xf40] sm:$0xff] }
 0x449   : > { %4553 = vmatpush1.bf16.msra.mxu0 %v2406_v21  ;;  %5929 = vmatpush1.bf16.msra.mxu1 %v2408_v39  ;;  %v2448_v21 = vunpack.c.l.s8.bf16 %v956_v36  ;;  %v2451_v39 = vunpack.c.h.s8.bf16 %v955_v27  ;;  %v975_v27 = vld [vmem:[%s8057_s24 + $0xf48] sm:$0xff] }
 0x44a   : > { %4554 = vmatprep.subr.bf16.mxu0 %v2411_v40  ;;  %5930 = vmatprep.subr.bf16.mxu1 %v2413_v22  ;;  %v2453_v40 = vunpack.c.h.s8.bf16 %v957_v28  ;;  %v959_v22 = vld [vmem:[%s8057_s24 + $0xec8] sm:$0xff]  ;;  %v977_v28 = vld [vmem:[%s8057_s24 + $0xf58] sm:$0xff] }
 0x44b   : > { %4584 = vmatprep.mubr.bf16.mxu0 %v7038_v46  ;;  %5960 = vmatprep.mubr.bf16.mxu1 %v7038_v46  ;;  %v2452_v46 = vunpack.c.h.s8.bf16 %v956_v36  ;;  %v976_v36 = vld [vmem:[%s8057_s24 + $0xf50] sm:$0xff] }
 0x44d   : > { %4555 = vmatpush1.bf16.msra.mxu0 %v2410_v47  ;;  %5931 = vmatpush1.bf16.msra.mxu1 %v2412_v48  ;;  %v2455_v47 = vunpack.c.l.s8.bf16 %v959_v22  ;;  %v2457_v48 = vunpack.c.l.s8.bf16 %v961_v25 }
 0x44e   : > { %4556 = vmatprep.subr.bf16.mxu0 %v2415_v26  ;;  %5932 = vmatprep.subr.bf16.mxu1 %v2417_v29  ;;  %v958_v26 = vld [vmem:[%s8057_s24 + $0xec0] sm:$0xff]  ;;  %v960_v29 = vld [vmem:[%s8057_s24 + $0xed0] sm:$0xff] }
 0x44f   : > { %v2454_v30 = vunpack.c.l.s8.bf16 %v958_v26  ;;  %v2456_v33 = vunpack.c.l.s8.bf16 %v960_v29  ;;  %v2458_v55 = vunpack.c.h.s8.bf16 %v958_v26  ;;  %v2460_v56 = vunpack.c.h.s8.bf16 %v960_v29  ;;  %v978_v26 = vld [vmem:[%s8057_s24 + $0xf60] sm:$0xff]  ;;  %v980_v29 = vld [vmem:[%s8057_s24 + $0xf70] sm:$0xff] }
 0x451   : > { %4557 = vmatpush1.bf16.msra.mxu0 %v2414_v51  ;;  %5933 = vmatpush1.bf16.msra.mxu1 %v2416_v52  ;;  %v2459_v51 = vunpack.c.h.s8.bf16 %v959_v22  ;;  %v2461_v52 = vunpack.c.h.s8.bf16 %v961_v25  ;;  %v979_v22 = vld [vmem:[%s8057_s24 + $0xf68] sm:$0xff]  ;;  %v981_v25 = vld [vmem:[%s8057_s24 + $0xf78] sm:$0xff] }
 0x452   : > { %4558 = vmatprep.subr.bf16.mxu0 %v2419_v34  ;;  %5934 = vmatprep.subr.bf16.mxu1 %v2421_v37  ;;  %v963_v34 = vld [vmem:[%s8057_s24 + $0xee8] sm:$0xff]  ;;  %v965_v37 = vld [vmem:[%s8057_s24 + $0xef8] sm:$0xff] }
 0x455   : > { %4559 = vmatpush1.bf16.msra.mxu0 %v2418_v38  ;;  %5935 = vmatpush1.bf16.msra.mxu1 %v2420_v41  ;;  %v2463_v38 = vunpack.c.l.s8.bf16 %v963_v34  ;;  %v2465_v41 = vunpack.c.l.s8.bf16 %v965_v37 }
 0x456   : > { %4560 = vmatprep.subr.bf16.mxu0 %v2423_v42  ;;  %5936 = vmatprep.subr.bf16.mxu1 %v2425_v43  ;;  %v962_v42 = vld [vmem:[%s8057_s24 + $0xee0] sm:$0xff]  ;;  %v964_v43 = vld [vmem:[%s8057_s24 + $0xef0] sm:$0xff] }
 0x457   : > { %v2462_v61 = vunpack.c.l.s8.bf16 %v962_v42  ;;  %v2464_v62 = vunpack.c.l.s8.bf16 %v964_v43  ;;  %v2466_v50 = vunpack.c.h.s8.bf16 %v962_v42  ;;  %v2468_v53 = vunpack.c.h.s8.bf16 %v964_v43  ;;  %v982_v42 = vld [vmem:[%s8057_s24 + $0xf80] sm:$0xff]  ;;  %v984_v43 = vld [vmem:[%s8057_s24 + $0xf90] sm:$0xff] }
 0x459   : > { %4561 = vmatpush1.bf16.msra.mxu0 %v2422_v44  ;;  %5937 = vmatpush1.bf16.msra.mxu1 %v2424_v49  ;;  %v2467_v44 = vunpack.c.h.s8.bf16 %v963_v34  ;;  %v2469_v49 = vunpack.c.h.s8.bf16 %v965_v37  ;;  %v983_v34 = vld [vmem:[%s8057_s24 + $0xf88] sm:$0xff]  ;;  %v985_v37 = vld [vmem:[%s8057_s24 + $0xf98] sm:$0xff] }
 0x45a   : > { %4562 = vmatprep.subr.bf16.mxu0 %v2427_v1  ;;  %5938 = vmatprep.subr.bf16.mxu1 %v2429_v2  ;;  %v967_v1 = vld [vmem:[%s8057_s24 + $0xf08] sm:$0xff]  ;;  %v969_v2 = vld [vmem:[%s8057_s24 + $0xf18] sm:$0xff] }
 0x45b   : > { %v2477_v60 = vunpack.c.h.s8.bf16 %v969_v2 }
 0x45d   : > { %4563 = vmatpush1.bf16.msra.mxu0 %v2426_v31  ;;  %5939 = vmatpush1.bf16.msra.mxu1 %v2428_v32  ;;  %v2471_v31 = vunpack.c.l.s8.bf16 %v967_v1  ;;  %v2473_v32 = vunpack.c.l.s8.bf16 %v969_v2  ;;  %v989_v2 = vld [vmem:[%s8057_s24 + $0xfb8] sm:$0xff] }
 0x45e   : > { %4564 = vmatprep.subr.bf16.mxu0 %v2431_v7  ;;  %5940 = vmatprep.subr.bf16.mxu1 %v2433_v8  ;;  %v966_v7 = vld [vmem:[%s8057_s24 + $0xf00] sm:$0xff]  ;;  %v968_v8 = vld [vmem:[%s8057_s24 + $0xf10] sm:$0xff] }
 0x45f   : > { %v2474_v19 = vunpack.c.h.s8.bf16 %v966_v7  ;;  %v2476_v20 = vunpack.c.h.s8.bf16 %v968_v8 }
 0x461   : > { %4565 = vmatpush1.bf16.msra.mxu0 %v2430_v58  ;;  %5941 = vmatpush1.bf16.msra.mxu1 %v2432_v59  ;;  %v8722_v58 = vld [vmem:[%s8055_s12 + $0x178] sm:$0xff]  ;;  %v2470_v59 = vunpack.c.l.s8.bf16 %v966_v7  ;;  %v986_v7 = vld [vmem:[%s8057_s24 + $0xfa0] sm:$0xff] }
 0x462   : > { %4566 = vmatprep.subr.bf16.mxu0 %v2435_v11  ;;  %5942 = vmatprep.subr.bf16.mxu1 %v2437_v12  ;;  %v2472_v11 = vunpack.c.l.s8.bf16 %v968_v8  ;;  %v2475_v12 = vunpack.c.h.s8.bf16 %v967_v1  ;;  %v987_v1 = vld [vmem:[%s8057_s24 + $0xfa8] sm:$0xff]  ;;  %v988_v8 = vld [vmem:[%s8057_s24 + $0xfb0] sm:$0xff] }
 0x465   : > { %4567 = vmatpush1.bf16.msra.mxu0 %v2434_v17  ;;  %5943 = vmatpush1.bf16.msra.mxu1 %v2436_v18  ;;  %v973_v17 = vld [vmem:[%s8057_s24 + $0xf38] sm:$0xff]  ;;  %v7040_v18 = vcombine.high %v8719_v57, %v8722_v58 }
 0x466   : > { %4568 = vmatprep.subr.bf16.mxu0 %v2439_v0  ;;  %5944 = vmatprep.subr.bf16.mxu1 %v2441_v3  ;;  %v2479_v0 = vunpack.c.l.s8.bf16 %v971_v63  ;;  %v2481_v3 = vunpack.c.l.s8.bf16 %v973_v17 }
 0x469   : > { %4569 = vmatpush1.bf16.msra.mxu0 %v2438_v23  ;;  %5945 = vmatpush1.bf16.msra.mxu1 %v2440_v24  ;;  %v2478_v23 = vunpack.c.l.s8.bf16 %v970_v4  ;;  %v2480_v24 = vunpack.c.l.s8.bf16 %v972_v5 }
 0x46a   : > { %4570 = vmatprep.subr.bf16.mxu0 %v2443_v6  ;;  %5946 = vmatprep.subr.bf16.mxu1 %v2445_v9  ;;  %v2483_v6 = vunpack.c.h.s8.bf16 %v971_v63  ;;  %v2485_v9 = vunpack.c.h.s8.bf16 %v973_v17  ;;  %v993_v63 = vld [vmem:[%s8057_s24 + $0xfd8] sm:$0xff]  ;;  %v2514_v17 = vunpack.c.h.s8.bf16 %v986_v7 }
 0x46d   : > { %4571 = vmatpush1.bf16.msra.mxu0 %v2442_v10  ;;  %5947 = vmatpush1.bf16.msra.mxu1 %v2444_v13  ;;  %v2482_v10 = vunpack.c.h.s8.bf16 %v970_v4  ;;  %v2484_v13 = vunpack.c.h.s8.bf16 %v972_v5 }
 0x46e   : > { %4572 = vmatprep.subr.bf16.mxu0 %v2447_v14  ;;  %5948 = vmatprep.subr.bf16.mxu1 %v2449_v15  ;;  %v2487_v14 = vunpack.c.l.s8.bf16 %v975_v27  ;;  %v2489_v15 = vunpack.c.l.s8.bf16 %v977_v28 }
 0x471   : > { %4573 = vmatpush1.bf16.msra.mxu0 %v2446_v16  ;;  %5949 = vmatpush1.bf16.msra.mxu1 %v2448_v21  ;;  %v2486_v16 = vunpack.c.l.s8.bf16 %v974_v35  ;;  %v2488_v21 = vunpack.c.l.s8.bf16 %v976_v36 }
 0x472   : > { %4574 = vmatprep.subr.bf16.mxu0 %v2451_v39  ;;  %5950 = vmatprep.subr.bf16.mxu1 %v2453_v40  ;;  %v2491_v39 = vunpack.c.h.s8.bf16 %v975_v27  ;;  %v2493_v40 = vunpack.c.h.s8.bf16 %v977_v28 }
 0x475   : > { %4575 = vmatpush1.bf16.msra.mxu0 %v2450_v45  ;;  %5951 = vmatpush1.bf16.msra.mxu1 %v2452_v46  ;;  %v2490_v45 = vunpack.c.h.s8.bf16 %v974_v35  ;;  %v2492_v46 = vunpack.c.h.s8.bf16 %v976_v36 }
 0x476   : > { %4576 = vmatprep.subr.bf16.mxu0 %v2455_v47  ;;  %5952 = vmatprep.subr.bf16.mxu1 %v2457_v48  ;;  %v2495_v47 = vunpack.c.l.s8.bf16 %v979_v22  ;;  %v2497_v48 = vunpack.c.l.s8.bf16 %v981_v25 }
 0x479   : > { %4577 = vmatpush1.bf16.msra.mxu0 %v2454_v30  ;;  %5953 = vmatpush1.bf16.msra.mxu1 %v2456_v33  ;;  %v2494_v30 = vunpack.c.l.s8.bf16 %v978_v26  ;;  %v2496_v33 = vunpack.c.l.s8.bf16 %v980_v29 }
 0x47a   : > { %4578 = vmatprep.subr.bf16.mxu0 %v2459_v51  ;;  %5954 = vmatprep.subr.bf16.mxu1 %v2461_v52  ;;  %v2499_v51 = vunpack.c.h.s8.bf16 %v979_v22  ;;  %v2501_v52 = vunpack.c.h.s8.bf16 %v981_v25 }
 0x47d   : > { %4579 = vmatpush1.bf16.msra.mxu0 %v2458_v55  ;;  %5955 = vmatpush1.bf16.msra.mxu1 %v2460_v56  ;;  %v2498_v55 = vunpack.c.h.s8.bf16 %v978_v26  ;;  %v2500_v56 = vunpack.c.h.s8.bf16 %v980_v29  ;;  %v7039_v26 = vcombine.low %v8719_v57, %v8722_v58  ;;  %v8761_v29 = vld [vmem:[%s8055_s12 + $0x80] sm:$0xff] }
 0x47e   : > { %4580 = vmatprep.subr.bf16.mxu0 %v2463_v38  ;;  %5956 = vmatprep.subr.bf16.mxu1 %v2465_v41  ;;  %v2503_v38 = vunpack.c.l.s8.bf16 %v983_v34  ;;  %v2505_v41 = vunpack.c.l.s8.bf16 %v985_v37 }
 0x481   : > { %4581 = vmatpush1.bf16.msra.mxu0 %v2462_v61  ;;  %5957 = vmatpush1.bf16.msra.mxu1 %v2464_v62  ;;  %v2502_v61 = vunpack.c.l.s8.bf16 %v982_v42  ;;  %v2504_v62 = vunpack.c.l.s8.bf16 %v984_v43 }
 0x482   : > { %4582 = vmatprep.subr.bf16.mxu0 %v2467_v44  ;;  %5958 = vmatprep.subr.bf16.mxu1 %v2469_v49  ;;  %v2507_v44 = vunpack.c.h.s8.bf16 %v983_v34  ;;  %v2509_v49 = vunpack.c.h.s8.bf16 %v985_v37  ;;  %v1003_v37 = vld [vmem:[%s8057_s24 + $0x1028] sm:$0xff] }
 0x485   : > { %4583 = vmatpush1.bf16.msra.mxu0 %v2466_v50  ;;  %5959 = vmatpush1.bf16.msra.mxu1 %v2468_v53  ;;  %v2506_v50 = vunpack.c.h.s8.bf16 %v982_v42  ;;  %v2508_v53 = vunpack.c.h.s8.bf16 %v984_v43  ;;  %v1002_v42 = vld [vmem:[%s8057_s24 + $0x1020] sm:$0xff]  ;;  %v1004_v43 = vld [vmem:[%s8057_s24 + $0x1030] sm:$0xff] }
 0x486   : > { %4595 = vmatprep.subr.bf16.mxu0 %v2471_v31  ;;  %5971 = vmatprep.subr.bf16.mxu1 %v2473_v32  ;;  %v2511_v31 = vunpack.c.l.s8.bf16 %v987_v1  ;;  %v2513_v32 = vunpack.c.l.s8.bf16 %v989_v2 }
 0x488   : > { %4585 = vmatmul.mubr.bf16.vlgmr.msra.gmra.mrb[0].mxu0 %v7037_v54  ;;  %5961 = vmatmul.mubr.bf16.vlgmr.msra.gmra.mrb[0].mxu1 %v7037_v54  ;;  %v2510_v54 = vunpack.c.l.s8.bf16 %v986_v7  ;;  %v1006_v7 = vld [vmem:[%s8057_s24 + $0x1040] sm:$0xff] }
 0x489   : > { %4596 = vmatpush1.bf16.msra.mxu0 %v2470_v59  ;;  %5972 = vmatpush1.bf16.msra.mxu1 %v2472_v11  ;;  %v2512_v59 = vunpack.c.l.s8.bf16 %v988_v8  ;;  %v2515_v11 = vunpack.c.h.s8.bf16 %v987_v1  ;;  %v1007_v1 = vld [vmem:[%s8057_s24 + $0x1048] sm:$0xff] }
 0x48a   : > { %4597 = vmatprep.subr.bf16.mxu0 %v2475_v12  ;;  %5973 = vmatprep.subr.bf16.mxu1 %v2477_v60  ;;  %v2517_v12 = vunpack.c.h.s8.bf16 %v989_v2  ;;  %v991_v60 = vld [vmem:[%s8057_s24 + $0xfc8] sm:$0xff]  ;;  %v1009_v2 = vld [vmem:[%s8057_s24 + $0x1058] sm:$0xff] }
 0x48b   : > { %4627 = vmatprep.mubr.bf16.mxu0 %v7040_v18  ;;  %6003 = vmatprep.mubr.bf16.mxu1 %v7040_v18  ;;  %v2516_v18 = vunpack.c.h.s8.bf16 %v988_v8  ;;  %v1008_v8 = vld [vmem:[%s8057_s24 + $0x1050] sm:$0xff] }
 0x48d   : > { %4598 = vmatpush1.bf16.msra.mxu0 %v2474_v19  ;;  %5974 = vmatpush1.bf16.msra.mxu1 %v2476_v20  ;;  %v2519_v19 = vunpack.c.l.s8.bf16 %v991_v60  ;;  %v2521_v20 = vunpack.c.l.s8.bf16 %v993_v63 }
 0x48e   : > { %4599 = vmatprep.subr.bf16.mxu0 %v2479_v0  ;;  %5975 = vmatprep.subr.bf16.mxu1 %v2481_v3  ;;  %v990_v0 = vld [vmem:[%s8057_s24 + $0xfc0] sm:$0xff]  ;;  %v992_v3 = vld [vmem:[%s8057_s24 + $0xfd0] sm:$0xff] }
 0x48f   : > { %v2518_v4 = vunpack.c.l.s8.bf16 %v990_v0  ;;  %v2520_v5 = vunpack.c.l.s8.bf16 %v992_v3  ;;  %v2522_v27 = vunpack.c.h.s8.bf16 %v990_v0  ;;  %v2524_v28 = vunpack.c.h.s8.bf16 %v992_v3  ;;  %v1010_v0 = vld [vmem:[%s8057_s24 + $0x1060] sm:$0xff]  ;;  %v1012_v3 = vld [vmem:[%s8057_s24 + $0x1070] sm:$0xff] }
 0x491   : > { %4600 = vmatpush1.bf16.msra.mxu0 %v2478_v23  ;;  %5976 = vmatpush1.bf16.msra.mxu1 %v2480_v24  ;;  %v2523_v23 = vunpack.c.h.s8.bf16 %v991_v60  ;;  %v2525_v24 = vunpack.c.h.s8.bf16 %v993_v63  ;;  %v1011_v60 = vld [vmem:[%s8057_s24 + $0x1068] sm:$0xff]  ;;  %v1013_v63 = vld [vmem:[%s8057_s24 + $0x1078] sm:$0xff] }
 0x492   : > { %4601 = vmatprep.subr.bf16.mxu0 %v2483_v6  ;;  %5977 = vmatprep.subr.bf16.mxu1 %v2485_v9  ;;  %v995_v6 = vld [vmem:[%s8057_s24 + $0xfe8] sm:$0xff]  ;;  %v997_v9 = vld [vmem:[%s8057_s24 + $0xff8] sm:$0xff] }
 0x495   : > { %4602 = vmatpush1.bf16.msra.mxu0 %v2482_v10  ;;  %5978 = vmatpush1.bf16.msra.mxu1 %v2484_v13  ;;  %v2527_v10 = vunpack.c.l.s8.bf16 %v995_v6  ;;  %v2529_v13 = vunpack.c.l.s8.bf16 %v997_v9 }
 0x496   : > { %4603 = vmatprep.subr.bf16.mxu0 %v2487_v14  ;;  %5979 = vmatprep.subr.bf16.mxu1 %v2489_v15  ;;  %v994_v14 = vld [vmem:[%s8057_s24 + $0xfe0] sm:$0xff]  ;;  %v996_v15 = vld [vmem:[%s8057_s24 + $0xff0] sm:$0xff] }
 0x497   : > { %v2526_v35 = vunpack.c.l.s8.bf16 %v994_v14  ;;  %v2528_v36 = vunpack.c.l.s8.bf16 %v996_v15  ;;  %v2530_v22 = vunpack.c.h.s8.bf16 %v994_v14  ;;  %v2532_v25 = vunpack.c.h.s8.bf16 %v996_v15  ;;  %v1014_v14 = vld [vmem:[%s8057_s24 + $0x1080] sm:$0xff]  ;;  %v1016_v15 = vld [vmem:[%s8057_s24 + $0x1090] sm:$0xff] }
 0x499   : > { %4604 = vmatpush1.bf16.msra.mxu0 %v2486_v16  ;;  %5980 = vmatpush1.bf16.msra.mxu1 %v2488_v21  ;;  %v2531_v16 = vunpack.c.h.s8.bf16 %v995_v6  ;;  %v2533_v21 = vunpack.c.h.s8.bf16 %v997_v9  ;;  %v1015_v6 = vld [vmem:[%s8057_s24 + $0x1088] sm:$0xff]  ;;  %v1017_v9 = vld [vmem:[%s8057_s24 + $0x1098] sm:$0xff] }
 0x49a   : > { %4605 = vmatprep.subr.bf16.mxu0 %v2491_v39  ;;  %5981 = vmatprep.subr.bf16.mxu1 %v2493_v40  ;;  %v999_v39 = vld [vmem:[%s8057_s24 + $0x1008] sm:$0xff]  ;;  %v1001_v40 = vld [vmem:[%s8057_s24 + $0x1018] sm:$0xff] }
 0x49b   : > { %v2541_v34 = vunpack.c.h.s8.bf16 %v1001_v40 }
 0x49d   : > { %4606 = vmatpush1.bf16.msra.mxu0 %v2490_v45  ;;  %5982 = vmatpush1.bf16.msra.mxu1 %v2492_v46  ;;  %v2535_v45 = vunpack.c.l.s8.bf16 %v999_v39  ;;  %v2537_v46 = vunpack.c.l.s8.bf16 %v1001_v40  ;;  %v1021_v40 = vld [vmem:[%s8057_s24 + $0x10b8] sm:$0xff] }
 0x49e   : > { %4607 = vmatprep.subr.bf16.mxu0 %v2495_v47  ;;  %5983 = vmatprep.subr.bf16.mxu1 %v2497_v48  ;;  %v998_v47 = vld [vmem:[%s8057_s24 + $0x1000] sm:$0xff]  ;;  %v1000_v48 = vld [vmem:[%s8057_s24 + $0x1010] sm:$0xff] }
 0x49f   : > { %v2538_v57 = vunpack.c.h.s8.bf16 %v998_v47  ;;  %v2540_v58 = vunpack.c.h.s8.bf16 %v1000_v48 }
 0x4a1   : > { %4608 = vmatpush1.bf16.msra.mxu0 %v2494_v30  ;;  %5984 = vmatpush1.bf16.msra.mxu1 %v2496_v33  ;;  %v8764_v30 = vld [vmem:[%s8055_s12 + $0x180] sm:$0xff]  ;;  %v2534_v33 = vunpack.c.l.s8.bf16 %v998_v47 }
 0x4a2   : > { %4609 = vmatprep.subr.bf16.mxu0 %v2499_v51  ;;  %5985 = vmatprep.subr.bf16.mxu1 %v2501_v52  ;;  %v2536_v51 = vunpack.c.l.s8.bf16 %v1000_v48  ;;  %v2539_v52 = vunpack.c.h.s8.bf16 %v999_v39  ;;  %v1019_v39 = vld [vmem:[%s8057_s24 + $0x10a8] sm:$0xff]  ;;  %v1018_v47 = vld [vmem:[%s8057_s24 + $0x10a0] sm:$0xff]  ;;  %v1020_v48 = vld [vmem:[%s8057_s24 + $0x10b0] sm:$0xff] }
 0x4a5   : > { %4610 = vmatpush1.bf16.msra.mxu0 %v2498_v55  ;;  %5986 = vmatpush1.bf16.msra.mxu1 %v2500_v56  ;;  %v1005_v55 = vld [vmem:[%s8057_s24 + $0x1038] sm:$0xff]  ;;  %v7042_v56 = vcombine.high %v8761_v29, %v8764_v30 }
 0x4a6   : > { %4611 = vmatprep.subr.bf16.mxu0 %v2503_v38  ;;  %5987 = vmatprep.subr.bf16.mxu1 %v2505_v41  ;;  %v2543_v38 = vunpack.c.l.s8.bf16 %v1003_v37  ;;  %v2545_v41 = vunpack.c.l.s8.bf16 %v1005_v55 }
 0x4a9   : > { %4612 = vmatpush1.bf16.msra.mxu0 %v2502_v61  ;;  %5988 = vmatpush1.bf16.msra.mxu1 %v2504_v62  ;;  %v2542_v61 = vunpack.c.l.s8.bf16 %v1002_v42  ;;  %v2544_v62 = vunpack.c.l.s8.bf16 %v1004_v43 }
 0x4aa   : > { %4613 = vmatprep.subr.bf16.mxu0 %v2507_v44  ;;  %5989 = vmatprep.subr.bf16.mxu1 %v2509_v49  ;;  %v2547_v44 = vunpack.c.h.s8.bf16 %v1003_v37  ;;  %v2549_v49 = vunpack.c.h.s8.bf16 %v1005_v55  ;;  %v1025_v37 = vld [vmem:[%s8057_s24 + $0x10d8] sm:$0xff]  ;;  %v2578_v55 = vunpack.c.h.s8.bf16 %v1018_v47 }
 0x4ad   : > { %4614 = vmatpush1.bf16.msra.mxu0 %v2506_v50  ;;  %5990 = vmatpush1.bf16.msra.mxu1 %v2508_v53  ;;  %v2546_v50 = vunpack.c.h.s8.bf16 %v1002_v42  ;;  %v2548_v53 = vunpack.c.h.s8.bf16 %v1004_v43 }
 0x4ae   : > { %4615 = vmatprep.subr.bf16.mxu0 %v2511_v31  ;;  %5991 = vmatprep.subr.bf16.mxu1 %v2513_v32  ;;  %v2551_v31 = vunpack.c.l.s8.bf16 %v1007_v1  ;;  %v2553_v32 = vunpack.c.l.s8.bf16 %v1009_v2 }
 0x4b1   : > { %4616 = vmatpush1.bf16.msra.mxu0 %v2510_v54  ;;  %5992 = vmatpush1.bf16.msra.mxu1 %v2512_v59  ;;  %v2550_v54 = vunpack.c.l.s8.bf16 %v1006_v7  ;;  %v2552_v59 = vunpack.c.l.s8.bf16 %v1008_v8 }
 0x4b2   : > { %4617 = vmatprep.subr.bf16.mxu0 %v2515_v11  ;;  %5993 = vmatprep.subr.bf16.mxu1 %v2517_v12  ;;  %v2555_v11 = vunpack.c.h.s8.bf16 %v1007_v1  ;;  %v2557_v12 = vunpack.c.h.s8.bf16 %v1009_v2 }
 0x4b5   : > { %4618 = vmatpush1.bf16.msra.mxu0 %v2514_v17  ;;  %5994 = vmatpush1.bf16.msra.mxu1 %v2516_v18  ;;  %v2554_v17 = vunpack.c.h.s8.bf16 %v1006_v7  ;;  %v2556_v18 = vunpack.c.h.s8.bf16 %v1008_v8 }
 0x4b6   : > { %4619 = vmatprep.subr.bf16.mxu0 %v2519_v19  ;;  %5995 = vmatprep.subr.bf16.mxu1 %v2521_v20  ;;  %v2559_v19 = vunpack.c.l.s8.bf16 %v1011_v60  ;;  %v2561_v20 = vunpack.c.l.s8.bf16 %v1013_v63 }
 0x4b9   : > { %4620 = vmatpush1.bf16.msra.mxu0 %v2518_v4  ;;  %5996 = vmatpush1.bf16.msra.mxu1 %v2520_v5  ;;  %v2558_v4 = vunpack.c.l.s8.bf16 %v1010_v0  ;;  %v2560_v5 = vunpack.c.l.s8.bf16 %v1012_v3 }
 0x4ba   : > { %4621 = vmatprep.subr.bf16.mxu0 %v2523_v23  ;;  %5997 = vmatprep.subr.bf16.mxu1 %v2525_v24  ;;  %v2563_v23 = vunpack.c.h.s8.bf16 %v1011_v60  ;;  %v2565_v24 = vunpack.c.h.s8.bf16 %v1013_v63 }
 0x4bd   : > { %4622 = vmatpush1.bf16.msra.mxu0 %v2522_v27  ;;  %5998 = vmatpush1.bf16.msra.mxu1 %v2524_v28  ;;  %v2562_v27 = vunpack.c.h.s8.bf16 %v1010_v0  ;;  %v2564_v28 = vunpack.c.h.s8.bf16 %v1012_v3  ;;  %v7041_v0 = vcombine.low %v8761_v29, %v8764_v30  ;;  %v8803_v3 = vld [vmem:[%s8055_s12 + $0x88] sm:$0xff] }
 0x4be   : > { %4623 = vmatprep.subr.bf16.mxu0 %v2527_v10  ;;  %5999 = vmatprep.subr.bf16.mxu1 %v2529_v13  ;;  %v2567_v10 = vunpack.c.l.s8.bf16 %v1015_v6  ;;  %v2569_v13 = vunpack.c.l.s8.bf16 %v1017_v9 }
 0x4c1   : > { %4624 = vmatpush1.bf16.msra.mxu0 %v2526_v35  ;;  %6000 = vmatpush1.bf16.msra.mxu1 %v2528_v36  ;;  %v2566_v35 = vunpack.c.l.s8.bf16 %v1014_v14  ;;  %v2568_v36 = vunpack.c.l.s8.bf16 %v1016_v15 }
 0x4c2   : > { %4625 = vmatprep.subr.bf16.mxu0 %v2531_v16  ;;  %6001 = vmatprep.subr.bf16.mxu1 %v2533_v21  ;;  %v2571_v16 = vunpack.c.h.s8.bf16 %v1015_v6  ;;  %v2573_v21 = vunpack.c.h.s8.bf16 %v1017_v9  ;;  %v1035_v9 = vld [vmem:[%s8057_s24 + $0x1128] sm:$0xff] }
 0x4c5   : > { %4626 = vmatpush1.bf16.msra.mxu0 %v2530_v22  ;;  %6002 = vmatpush1.bf16.msra.mxu1 %v2532_v25  ;;  %v2570_v22 = vunpack.c.h.s8.bf16 %v1014_v14  ;;  %v2572_v25 = vunpack.c.h.s8.bf16 %v1016_v15  ;;  %v1034_v14 = vld [vmem:[%s8057_s24 + $0x1120] sm:$0xff]  ;;  %v1036_v15 = vld [vmem:[%s8057_s24 + $0x1130] sm:$0xff] }
 0x4c6   : > { %4638 = vmatprep.subr.bf16.mxu0 %v2535_v45  ;;  %6014 = vmatprep.subr.bf16.mxu1 %v2537_v46  ;;  %v2575_v45 = vunpack.c.l.s8.bf16 %v1019_v39  ;;  %v2577_v46 = vunpack.c.l.s8.bf16 %v1021_v40 }
 0x4c8   : > { %4628 = vmatmul.mubr.bf16.vlgmr.msra.gmra.mrb[0].mxu0 %v7039_v26  ;;  %6004 = vmatmul.mubr.bf16.vlgmr.msra.gmra.mrb[0].mxu1 %v7039_v26  ;;  %v2574_v26 = vunpack.c.l.s8.bf16 %v1018_v47  ;;  %v1038_v47 = vld [vmem:[%s8057_s24 + $0x1140] sm:$0xff] }
 0x4c9   : > { %4639 = vmatpush1.bf16.msra.mxu0 %v2534_v33  ;;  %6015 = vmatpush1.bf16.msra.mxu1 %v2536_v51  ;;  %v2576_v33 = vunpack.c.l.s8.bf16 %v1020_v48  ;;  %v2579_v51 = vunpack.c.h.s8.bf16 %v1019_v39  ;;  %v1039_v39 = vld [vmem:[%s8057_s24 + $0x1148] sm:$0xff] }
 0x4ca   : > { %4640 = vmatprep.subr.bf16.mxu0 %v2539_v52  ;;  %6016 = vmatprep.subr.bf16.mxu1 %v2541_v34  ;;  %v2581_v52 = vunpack.c.h.s8.bf16 %v1021_v40  ;;  %v1023_v34 = vld [vmem:[%s8057_s24 + $0x10c8] sm:$0xff]  ;;  %v1041_v40 = vld [vmem:[%s8057_s24 + $0x1158] sm:$0xff] }
 0x4cb   : > { %4670 = vmatprep.mubr.bf16.mxu0 %v7042_v56  ;;  %6046 = vmatprep.mubr.bf16.mxu1 %v7042_v56  ;;  %v2580_v56 = vunpack.c.h.s8.bf16 %v1020_v48  ;;  %v1040_v48 = vld [vmem:[%s8057_s24 + $0x1150] sm:$0xff] }
 0x4cd   : > { %4641 = vmatpush1.bf16.msra.mxu0 %v2538_v57  ;;  %6017 = vmatpush1.bf16.msra.mxu1 %v2540_v58  ;;  %v2583_v57 = vunpack.c.l.s8.bf16 %v1023_v34  ;;  %v2585_v58 = vunpack.c.l.s8.bf16 %v1025_v37 }
 0x4ce   : > { %4642 = vmatprep.subr.bf16.mxu0 %v2543_v38  ;;  %6018 = vmatprep.subr.bf16.mxu1 %v2545_v41  ;;  %v1022_v38 = vld [vmem:[%s8057_s24 + $0x10c0] sm:$0xff]  ;;  %v1024_v41 = vld [vmem:[%s8057_s24 + $0x10d0] sm:$0xff] }
 0x4cf   : > { %v2582_v42 = vunpack.c.l.s8.bf16 %v1022_v38  ;;  %v2584_v43 = vunpack.c.l.s8.bf16 %v1024_v41  ;;  %v2586_v1 = vunpack.c.h.s8.bf16 %v1022_v38  ;;  %v2588_v2 = vunpack.c.h.s8.bf16 %v1024_v41  ;;  %v1042_v38 = vld [vmem:[%s8057_s24 + $0x1160] sm:$0xff]  ;;  %v1044_v41 = vld [vmem:[%s8057_s24 + $0x1170] sm:$0xff] }
 0x4d1   : > { %4643 = vmatpush1.bf16.msra.mxu0 %v2542_v61  ;;  %6019 = vmatpush1.bf16.msra.mxu1 %v2544_v62  ;;  %v2587_v61 = vunpack.c.h.s8.bf16 %v1023_v34  ;;  %v2589_v62 = vunpack.c.h.s8.bf16 %v1025_v37  ;;  %v1043_v34 = vld [vmem:[%s8057_s24 + $0x1168] sm:$0xff]  ;;  %v1045_v37 = vld [vmem:[%s8057_s24 + $0x1178] sm:$0xff] }
 0x4d2   : > { %4644 = vmatprep.subr.bf16.mxu0 %v2547_v44  ;;  %6020 = vmatprep.subr.bf16.mxu1 %v2549_v49  ;;  %v1027_v44 = vld [vmem:[%s8057_s24 + $0x10e8] sm:$0xff]  ;;  %v1029_v49 = vld [vmem:[%s8057_s24 + $0x10f8] sm:$0xff] }
 0x4d5   : > { %4645 = vmatpush1.bf16.msra.mxu0 %v2546_v50  ;;  %6021 = vmatpush1.bf16.msra.mxu1 %v2548_v53  ;;  %v2591_v50 = vunpack.c.l.s8.bf16 %v1027_v44  ;;  %v2593_v53 = vunpack.c.l.s8.bf16 %v1029_v49 }
 0x4d6   : > { %4646 = vmatprep.subr.bf16.mxu0 %v2551_v31  ;;  %6022 = vmatprep.subr.bf16.mxu1 %v2553_v32  ;;  %v1026_v31 = vld [vmem:[%s8057_s24 + $0x10e0] sm:$0xff]  ;;  %v1028_v32 = vld [vmem:[%s8057_s24 + $0x10f0] sm:$0xff] }
 0x4d7   : > { %v2590_v7 = vunpack.c.l.s8.bf16 %v1026_v31  ;;  %v2592_v8 = vunpack.c.l.s8.bf16 %v1028_v32  ;;  %v2594_v60 = vunpack.c.h.s8.bf16 %v1026_v31  ;;  %v2596_v63 = vunpack.c.h.s8.bf16 %v1028_v32  ;;  %v1046_v31 = vld [vmem:[%s8057_s24 + $0x1180] sm:$0xff]  ;;  %v1048_v32 = vld [vmem:[%s8057_s24 + $0x1190] sm:$0xff] }
 0x4d9   : > { %4647 = vmatpush1.bf16.msra.mxu0 %v2550_v54  ;;  %6023 = vmatpush1.bf16.msra.mxu1 %v2552_v59  ;;  %v2595_v54 = vunpack.c.h.s8.bf16 %v1027_v44  ;;  %v2597_v59 = vunpack.c.h.s8.bf16 %v1029_v49  ;;  %v1047_v44 = vld [vmem:[%s8057_s24 + $0x1188] sm:$0xff]  ;;  %v1049_v49 = vld [vmem:[%s8057_s24 + $0x1198] sm:$0xff] }
 0x4da   : > { %4648 = vmatprep.subr.bf16.mxu0 %v2555_v11  ;;  %6024 = vmatprep.subr.bf16.mxu1 %v2557_v12  ;;  %v1031_v11 = vld [vmem:[%s8057_s24 + $0x1108] sm:$0xff]  ;;  %v1033_v12 = vld [vmem:[%s8057_s24 + $0x1118] sm:$0xff] }
 0x4db   : > { %v2605_v6 = vunpack.c.h.s8.bf16 %v1033_v12 }
 0x4dd   : > { %4649 = vmatpush1.bf16.msra.mxu0 %v2554_v17  ;;  %6025 = vmatpush1.bf16.msra.mxu1 %v2556_v18  ;;  %v2599_v17 = vunpack.c.l.s8.bf16 %v1031_v11  ;;  %v2601_v18 = vunpack.c.l.s8.bf16 %v1033_v12  ;;  %v1053_v12 = vld [vmem:[%s8057_s24 + $0x11b8] sm:$0xff] }
 0x4de   : > { %4650 = vmatprep.subr.bf16.mxu0 %v2559_v19  ;;  %6026 = vmatprep.subr.bf16.mxu1 %v2561_v20  ;;  %v1030_v19 = vld [vmem:[%s8057_s24 + $0x1100] sm:$0xff]  ;;  %v1032_v20 = vld [vmem:[%s8057_s24 + $0x1110] sm:$0xff] }
 0x4df   : > { %v2602_v29 = vunpack.c.h.s8.bf16 %v1030_v19  ;;  %v2604_v30 = vunpack.c.h.s8.bf16 %v1032_v20 }
 0x4e1   : > { %4651 = vmatpush1.bf16.msra.mxu0 %v2558_v4  ;;  %6027 = vmatpush1.bf16.msra.mxu1 %v2560_v5  ;;  %v8806_v4 = vld [vmem:[%s8055_s12 + $0x188] sm:$0xff]  ;;  %v2598_v5 = vunpack.c.l.s8.bf16 %v1030_v19  ;;  %v1050_v19 = vld [vmem:[%s8057_s24 + $0x11a0] sm:$0xff] }
 0x4e2   : > { %4652 = vmatprep.subr.bf16.mxu0 %v2563_v23  ;;  %6028 = vmatprep.subr.bf16.mxu1 %v2565_v24  ;;  %v2600_v23 = vunpack.c.l.s8.bf16 %v1032_v20  ;;  %v2603_v24 = vunpack.c.h.s8.bf16 %v1031_v11  ;;  %v1051_v11 = vld [vmem:[%s8057_s24 + $0x11a8] sm:$0xff]  ;;  %v1052_v20 = vld [vmem:[%s8057_s24 + $0x11b0] sm:$0xff] }
 0x4e5   : > { %4653 = vmatpush1.bf16.msra.mxu0 %v2562_v27  ;;  %6029 = vmatpush1.bf16.msra.mxu1 %v2564_v28  ;;  %v1037_v27 = vld [vmem:[%s8057_s24 + $0x1138] sm:$0xff]  ;;  %v7044_v28 = vcombine.high %v8803_v3, %v8806_v4 }
 0x4e6   : > { %4654 = vmatprep.subr.bf16.mxu0 %v2567_v10  ;;  %6030 = vmatprep.subr.bf16.mxu1 %v2569_v13  ;;  %v2607_v10 = vunpack.c.l.s8.bf16 %v1035_v9  ;;  %v2609_v13 = vunpack.c.l.s8.bf16 %v1037_v27 }
 0x4e9   : > { %4655 = vmatpush1.bf16.msra.mxu0 %v2566_v35  ;;  %6031 = vmatpush1.bf16.msra.mxu1 %v2568_v36  ;;  %v2606_v35 = vunpack.c.l.s8.bf16 %v1034_v14  ;;  %v2608_v36 = vunpack.c.l.s8.bf16 %v1036_v15 }
 0x4ea   : > { %4656 = vmatprep.subr.bf16.mxu0 %v2571_v16  ;;  %6032 = vmatprep.subr.bf16.mxu1 %v2573_v21  ;;  %v2611_v16 = vunpack.c.h.s8.bf16 %v1035_v9  ;;  %v2613_v21 = vunpack.c.h.s8.bf16 %v1037_v27  ;;  %v1057_v9 = vld [vmem:[%s8057_s24 + $0x11d8] sm:$0xff]  ;;  %v2642_v27 = vunpack.c.h.s8.bf16 %v1050_v19 }
 0x4ed   : > { %4657 = vmatpush1.bf16.msra.mxu0 %v2570_v22  ;;  %6033 = vmatpush1.bf16.msra.mxu1 %v2572_v25  ;;  %v2610_v22 = vunpack.c.h.s8.bf16 %v1034_v14  ;;  %v2612_v25 = vunpack.c.h.s8.bf16 %v1036_v15 }
 0x4ee   : > { %4658 = vmatprep.subr.bf16.mxu0 %v2575_v45  ;;  %6034 = vmatprep.subr.bf16.mxu1 %v2577_v46  ;;  %v2615_v45 = vunpack.c.l.s8.bf16 %v1039_v39  ;;  %v2617_v46 = vunpack.c.l.s8.bf16 %v1041_v40 }
 0x4f1   : > { %4659 = vmatpush1.bf16.msra.mxu0 %v2574_v26  ;;  %6035 = vmatpush1.bf16.msra.mxu1 %v2576_v33  ;;  %v2614_v26 = vunpack.c.l.s8.bf16 %v1038_v47  ;;  %v2616_v33 = vunpack.c.l.s8.bf16 %v1040_v48 }
 0x4f2   : > { %4660 = vmatprep.subr.bf16.mxu0 %v2579_v51  ;;  %6036 = vmatprep.subr.bf16.mxu1 %v2581_v52  ;;  %v2619_v51 = vunpack.c.h.s8.bf16 %v1039_v39  ;;  %v2621_v52 = vunpack.c.h.s8.bf16 %v1041_v40 }
 0x4f5   : > { %4661 = vmatpush1.bf16.msra.mxu0 %v2578_v55  ;;  %6037 = vmatpush1.bf16.msra.mxu1 %v2580_v56  ;;  %v2618_v55 = vunpack.c.h.s8.bf16 %v1038_v47  ;;  %v2620_v56 = vunpack.c.h.s8.bf16 %v1040_v48 }
 0x4f6   : > { %4662 = vmatprep.subr.bf16.mxu0 %v2583_v57  ;;  %6038 = vmatprep.subr.bf16.mxu1 %v2585_v58  ;;  %v2623_v57 = vunpack.c.l.s8.bf16 %v1043_v34  ;;  %v2625_v58 = vunpack.c.l.s8.bf16 %v1045_v37 }
 0x4f9   : > { %4663 = vmatpush1.bf16.msra.mxu0 %v2582_v42  ;;  %6039 = vmatpush1.bf16.msra.mxu1 %v2584_v43  ;;  %v2622_v42 = vunpack.c.l.s8.bf16 %v1042_v38  ;;  %v2624_v43 = vunpack.c.l.s8.bf16 %v1044_v41 }
 0x4fa   : > { %4664 = vmatprep.subr.bf16.mxu0 %v2587_v61  ;;  %6040 = vmatprep.subr.bf16.mxu1 %v2589_v62  ;;  %v2627_v61 = vunpack.c.h.s8.bf16 %v1043_v34  ;;  %v2629_v62 = vunpack.c.h.s8.bf16 %v1045_v37 }
 0x4fd   : > { %4665 = vmatpush1.bf16.msra.mxu0 %v2586_v1  ;;  %6041 = vmatpush1.bf16.msra.mxu1 %v2588_v2  ;;  %v2626_v1 = vunpack.c.h.s8.bf16 %v1042_v38  ;;  %v2628_v2 = vunpack.c.h.s8.bf16 %v1044_v41  ;;  %v7043_v38 = vcombine.low %v8803_v3, %v8806_v4  ;;  %v8845_v41 = vld [vmem:[%s8055_s12 + $0x90] sm:$0xff] }
 0x4fe   : > { %4666 = vmatprep.subr.bf16.mxu0 %v2591_v50  ;;  %6042 = vmatprep.subr.bf16.mxu1 %v2593_v53  ;;  %v2631_v50 = vunpack.c.l.s8.bf16 %v1047_v44  ;;  %v2633_v53 = vunpack.c.l.s8.bf16 %v1049_v49 }
 0x501   : > { %4667 = vmatpush1.bf16.msra.mxu0 %v2590_v7  ;;  %6043 = vmatpush1.bf16.msra.mxu1 %v2592_v8  ;;  %v2630_v7 = vunpack.c.l.s8.bf16 %v1046_v31  ;;  %v2632_v8 = vunpack.c.l.s8.bf16 %v1048_v32 }
 0x502   : > { %4668 = vmatprep.subr.bf16.mxu0 %v2595_v54  ;;  %6044 = vmatprep.subr.bf16.mxu1 %v2597_v59  ;;  %v2635_v54 = vunpack.c.h.s8.bf16 %v1047_v44  ;;  %v2637_v59 = vunpack.c.h.s8.bf16 %v1049_v49  ;;  %v1067_v49 = vld [vmem:[%s8057_s24 + $0x1228] sm:$0xff] }
 0x505   : > { %4669 = vmatpush1.bf16.msra.mxu0 %v2594_v60  ;;  %6045 = vmatpush1.bf16.msra.mxu1 %v2596_v63  ;;  %v2634_v60 = vunpack.c.h.s8.bf16 %v1046_v31  ;;  %v2636_v63 = vunpack.c.h.s8.bf16 %v1048_v32  ;;  %v1066_v31 = vld [vmem:[%s8057_s24 + $0x1220] sm:$0xff]  ;;  %v1068_v32 = vld [vmem:[%s8057_s24 + $0x1230] sm:$0xff] }
 0x506   : > { %4681 = vmatprep.subr.bf16.mxu0 %v2599_v17  ;;  %6057 = vmatprep.subr.bf16.mxu1 %v2601_v18  ;;  %v2639_v17 = vunpack.c.l.s8.bf16 %v1051_v11  ;;  %v2641_v18 = vunpack.c.l.s8.bf16 %v1053_v12 }
 0x508   : > { %4671 = vmatmul.mubr.bf16.vlgmr.msra.gmra.mrb[0].mxu0 %v7041_v0  ;;  %6047 = vmatmul.mubr.bf16.vlgmr.msra.gmra.mrb[0].mxu1 %v7041_v0  ;;  %v2638_v0 = vunpack.c.l.s8.bf16 %v1050_v19  ;;  %v1070_v19 = vld [vmem:[%s8057_s24 + $0x1240] sm:$0xff] }
 0x509   : > { %4682 = vmatpush1.bf16.msra.mxu0 %v2598_v5  ;;  %6058 = vmatpush1.bf16.msra.mxu1 %v2600_v23  ;;  %v2640_v5 = vunpack.c.l.s8.bf16 %v1052_v20  ;;  %v2643_v23 = vunpack.c.h.s8.bf16 %v1051_v11  ;;  %v1071_v11 = vld [vmem:[%s8057_s24 + $0x1248] sm:$0xff] }
 0x50a   : > { %4683 = vmatprep.subr.bf16.mxu0 %v2603_v24  ;;  %6059 = vmatprep.subr.bf16.mxu1 %v2605_v6  ;;  %v2645_v24 = vunpack.c.h.s8.bf16 %v1053_v12  ;;  %v1055_v6 = vld [vmem:[%s8057_s24 + $0x11c8] sm:$0xff]  ;;  %v1073_v12 = vld [vmem:[%s8057_s24 + $0x1258] sm:$0xff] }
 0x50b   : > { %4713 = vmatprep.mubr.bf16.mxu0 %v7044_v28  ;;  %6089 = vmatprep.mubr.bf16.mxu1 %v7044_v28  ;;  %v2644_v28 = vunpack.c.h.s8.bf16 %v1052_v20  ;;  %v1072_v20 = vld [vmem:[%s8057_s24 + $0x1250] sm:$0xff] }
 0x50d   : > { %4684 = vmatpush1.bf16.msra.mxu0 %v2602_v29  ;;  %6060 = vmatpush1.bf16.msra.mxu1 %v2604_v30  ;;  %v2647_v29 = vunpack.c.l.s8.bf16 %v1055_v6  ;;  %v2649_v30 = vunpack.c.l.s8.bf16 %v1057_v9 }
 0x50e   : > { %4685 = vmatprep.subr.bf16.mxu0 %v2607_v10  ;;  %6061 = vmatprep.subr.bf16.mxu1 %v2609_v13  ;;  %v1054_v10 = vld [vmem:[%s8057_s24 + $0x11c0] sm:$0xff]  ;;  %v1056_v13 = vld [vmem:[%s8057_s24 + $0x11d0] sm:$0xff] }
 0x50f   : > { %v2646_v14 = vunpack.c.l.s8.bf16 %v1054_v10  ;;  %v2648_v15 = vunpack.c.l.s8.bf16 %v1056_v13  ;;  %v2650_v39 = vunpack.c.h.s8.bf16 %v1054_v10  ;;  %v2652_v40 = vunpack.c.h.s8.bf16 %v1056_v13  ;;  %v1074_v10 = vld [vmem:[%s8057_s24 + $0x1260] sm:$0xff]  ;;  %v1076_v13 = vld [vmem:[%s8057_s24 + $0x1270] sm:$0xff] }
 0x511   : > { %4686 = vmatpush1.bf16.msra.mxu0 %v2606_v35  ;;  %6062 = vmatpush1.bf16.msra.mxu1 %v2608_v36  ;;  %v2651_v35 = vunpack.c.h.s8.bf16 %v1055_v6  ;;  %v2653_v36 = vunpack.c.h.s8.bf16 %v1057_v9  ;;  %v1075_v6 = vld [vmem:[%s8057_s24 + $0x1268] sm:$0xff]  ;;  %v1077_v9 = vld [vmem:[%s8057_s24 + $0x1278] sm:$0xff] }
 0x512   : > { %4687 = vmatprep.subr.bf16.mxu0 %v2611_v16  ;;  %6063 = vmatprep.subr.bf16.mxu1 %v2613_v21  ;;  %v1059_v16 = vld [vmem:[%s8057_s24 + $0x11e8] sm:$0xff]  ;;  %v1061_v21 = vld [vmem:[%s8057_s24 + $0x11f8] sm:$0xff] }
 0x515   : > { %4688 = vmatpush1.bf16.msra.mxu0 %v2610_v22  ;;  %6064 = vmatpush1.bf16.msra.mxu1 %v2612_v25  ;;  %v2655_v22 = vunpack.c.l.s8.bf16 %v1059_v16  ;;  %v2657_v25 = vunpack.c.l.s8.bf16 %v1061_v21 }
 0x516   : > { %4689 = vmatprep.subr.bf16.mxu0 %v2615_v45  ;;  %6065 = vmatprep.subr.bf16.mxu1 %v2617_v46  ;;  %v1058_v45 = vld [vmem:[%s8057_s24 + $0x11e0] sm:$0xff]  ;;  %v1060_v46 = vld [vmem:[%s8057_s24 + $0x11f0] sm:$0xff] }
 0x517   : > { %v2654_v47 = vunpack.c.l.s8.bf16 %v1058_v45  ;;  %v2656_v48 = vunpack.c.l.s8.bf16 %v1060_v46  ;;  %v2658_v34 = vunpack.c.h.s8.bf16 %v1058_v45  ;;  %v2660_v37 = vunpack.c.h.s8.bf16 %v1060_v46  ;;  %v1078_v45 = vld [vmem:[%s8057_s24 + $0x1280] sm:$0xff]  ;;  %v1080_v46 = vld [vmem:[%s8057_s24 + $0x1290] sm:$0xff] }
 0x519   : > { %4690 = vmatpush1.bf16.msra.mxu0 %v2614_v26  ;;  %6066 = vmatpush1.bf16.msra.mxu1 %v2616_v33  ;;  %v2659_v26 = vunpack.c.h.s8.bf16 %v1059_v16  ;;  %v2661_v33 = vunpack.c.h.s8.bf16 %v1061_v21  ;;  %v1079_v16 = vld [vmem:[%s8057_s24 + $0x1288] sm:$0xff]  ;;  %v1081_v21 = vld [vmem:[%s8057_s24 + $0x1298] sm:$0xff] }
 0x51a   : > { %4691 = vmatprep.subr.bf16.mxu0 %v2619_v51  ;;  %6067 = vmatprep.subr.bf16.mxu1 %v2621_v52  ;;  %v1063_v51 = vld [vmem:[%s8057_s24 + $0x1208] sm:$0xff]  ;;  %v1065_v52 = vld [vmem:[%s8057_s24 + $0x1218] sm:$0xff] }
 0x51b   : > { %v2669_v44 = vunpack.c.h.s8.bf16 %v1065_v52 }
 0x51d   : > { %4692 = vmatpush1.bf16.msra.mxu0 %v2618_v55  ;;  %6068 = vmatpush1.bf16.msra.mxu1 %v2620_v56  ;;  %v2663_v55 = vunpack.c.l.s8.bf16 %v1063_v51  ;;  %v2665_v56 = vunpack.c.l.s8.bf16 %v1065_v52  ;;  %v1085_v52 = vld [vmem:[%s8057_s24 + $0x12b8] sm:$0xff] }
 0x51e   : > { %4693 = vmatprep.subr.bf16.mxu0 %v2623_v57  ;;  %6069 = vmatprep.subr.bf16.mxu1 %v2625_v58  ;;  %v1062_v57 = vld [vmem:[%s8057_s24 + $0x1200] sm:$0xff]  ;;  %v1064_v58 = vld [vmem:[%s8057_s24 + $0x1210] sm:$0xff] }
 0x51f   : > { %v2666_v3 = vunpack.c.h.s8.bf16 %v1062_v57  ;;  %v2668_v4 = vunpack.c.h.s8.bf16 %v1064_v58 }
 0x521   : > { %4694 = vmatpush1.bf16.msra.mxu0 %v2622_v42  ;;  %6070 = vmatpush1.bf16.msra.mxu1 %v2624_v43  ;;  %v8848_v42 = vld [vmem:[%s8055_s12 + $0x190] sm:$0xff]  ;;  %v2662_v43 = vunpack.c.l.s8.bf16 %v1062_v57  ;;  %v1082_v57 = vld [vmem:[%s8057_s24 + $0x12a0] sm:$0xff] }
 0x522   : > { %4695 = vmatprep.subr.bf16.mxu0 %v2627_v61  ;;  %6071 = vmatprep.subr.bf16.mxu1 %v2629_v62  ;;  %v2664_v61 = vunpack.c.l.s8.bf16 %v1064_v58  ;;  %v2667_v62 = vunpack.c.h.s8.bf16 %v1063_v51  ;;  %v1083_v51 = vld [vmem:[%s8057_s24 + $0x12a8] sm:$0xff]  ;;  %v1084_v58 = vld [vmem:[%s8057_s24 + $0x12b0] sm:$0xff] }
 0x525   : > { %4696 = vmatpush1.bf16.msra.mxu0 %v2626_v1  ;;  %6072 = vmatpush1.bf16.msra.mxu1 %v2628_v2  ;;  %v1069_v1 = vld [vmem:[%s8057_s24 + $0x1238] sm:$0xff]  ;;  %v7046_v2 = vcombine.high %v8845_v41, %v8848_v42 }
 0x526   : > { %4697 = vmatprep.subr.bf16.mxu0 %v2631_v50  ;;  %6073 = vmatprep.subr.bf16.mxu1 %v2633_v53  ;;  %v2671_v50 = vunpack.c.l.s8.bf16 %v1067_v49  ;;  %v2673_v53 = vunpack.c.l.s8.bf16 %v1069_v1 }
 0x529   : > { %4698 = vmatpush1.bf16.msra.mxu0 %v2630_v7  ;;  %6074 = vmatpush1.bf16.msra.mxu1 %v2632_v8  ;;  %v2670_v7 = vunpack.c.l.s8.bf16 %v1066_v31  ;;  %v2672_v8 = vunpack.c.l.s8.bf16 %v1068_v32 }
 0x52a   : > { %4699 = vmatprep.subr.bf16.mxu0 %v2635_v54  ;;  %6075 = vmatprep.subr.bf16.mxu1 %v2637_v59  ;;  %v2675_v54 = vunpack.c.h.s8.bf16 %v1067_v49  ;;  %v2677_v59 = vunpack.c.h.s8.bf16 %v1069_v1  ;;  %v1089_v49 = vld [vmem:[%s8057_s24 + $0x12d8] sm:$0xff]  ;;  %v2706_v1 = vunpack.c.h.s8.bf16 %v1082_v57 }
 0x52d   : > { %4700 = vmatpush1.bf16.msra.mxu0 %v2634_v60  ;;  %6076 = vmatpush1.bf16.msra.mxu1 %v2636_v63  ;;  %v2674_v60 = vunpack.c.h.s8.bf16 %v1066_v31  ;;  %v2676_v63 = vunpack.c.h.s8.bf16 %v1068_v32 }
 0x52e   : > { %4701 = vmatprep.subr.bf16.mxu0 %v2639_v17  ;;  %6077 = vmatprep.subr.bf16.mxu1 %v2641_v18  ;;  %v2679_v17 = vunpack.c.l.s8.bf16 %v1071_v11  ;;  %v2681_v18 = vunpack.c.l.s8.bf16 %v1073_v12 }
 0x531   : > { %4702 = vmatpush1.bf16.msra.mxu0 %v2638_v0  ;;  %6078 = vmatpush1.bf16.msra.mxu1 %v2640_v5  ;;  %v2678_v0 = vunpack.c.l.s8.bf16 %v1070_v19  ;;  %v2680_v5 = vunpack.c.l.s8.bf16 %v1072_v20 }
 0x532   : > { %4703 = vmatprep.subr.bf16.mxu0 %v2643_v23  ;;  %6079 = vmatprep.subr.bf16.mxu1 %v2645_v24  ;;  %v2683_v23 = vunpack.c.h.s8.bf16 %v1071_v11  ;;  %v2685_v24 = vunpack.c.h.s8.bf16 %v1073_v12 }
 0x535   : > { %4704 = vmatpush1.bf16.msra.mxu0 %v2642_v27  ;;  %6080 = vmatpush1.bf16.msra.mxu1 %v2644_v28  ;;  %v2682_v27 = vunpack.c.h.s8.bf16 %v1070_v19  ;;  %v2684_v28 = vunpack.c.h.s8.bf16 %v1072_v20 }
 0x536   : > { %4705 = vmatprep.subr.bf16.mxu0 %v2647_v29  ;;  %6081 = vmatprep.subr.bf16.mxu1 %v2649_v30  ;;  %v2687_v29 = vunpack.c.l.s8.bf16 %v1075_v6  ;;  %v2689_v30 = vunpack.c.l.s8.bf16 %v1077_v9 }
 0x539   : > { %4706 = vmatpush1.bf16.msra.mxu0 %v2646_v14  ;;  %6082 = vmatpush1.bf16.msra.mxu1 %v2648_v15  ;;  %v2686_v14 = vunpack.c.l.s8.bf16 %v1074_v10  ;;  %v2688_v15 = vunpack.c.l.s8.bf16 %v1076_v13 }
 0x53a   : > { %4707 = vmatprep.subr.bf16.mxu0 %v2651_v35  ;;  %6083 = vmatprep.subr.bf16.mxu1 %v2653_v36  ;;  %v2691_v35 = vunpack.c.h.s8.bf16 %v1075_v6  ;;  %v2693_v36 = vunpack.c.h.s8.bf16 %v1077_v9 }
 0x53d   : > { %4708 = vmatpush1.bf16.msra.mxu0 %v2650_v39  ;;  %6084 = vmatpush1.bf16.msra.mxu1 %v2652_v40  ;;  %v2690_v39 = vunpack.c.h.s8.bf16 %v1074_v10  ;;  %v2692_v40 = vunpack.c.h.s8.bf16 %v1076_v13  ;;  %v7045_v10 = vcombine.low %v8845_v41, %v8848_v42  ;;  %v8887_v13 = vld [vmem:[%s8055_s12 + $0x98] sm:$0xff] }
 0x53e   : > { %4709 = vmatprep.subr.bf16.mxu0 %v2655_v22  ;;  %6085 = vmatprep.subr.bf16.mxu1 %v2657_v25  ;;  %v2695_v22 = vunpack.c.l.s8.bf16 %v1079_v16  ;;  %v2697_v25 = vunpack.c.l.s8.bf16 %v1081_v21 }
 0x541   : > { %4710 = vmatpush1.bf16.msra.mxu0 %v2654_v47  ;;  %6086 = vmatpush1.bf16.msra.mxu1 %v2656_v48  ;;  %v2694_v47 = vunpack.c.l.s8.bf16 %v1078_v45  ;;  %v2696_v48 = vunpack.c.l.s8.bf16 %v1080_v46 }
 0x542   : > { %4711 = vmatprep.subr.bf16.mxu0 %v2659_v26  ;;  %6087 = vmatprep.subr.bf16.mxu1 %v2661_v33  ;;  %v2699_v26 = vunpack.c.h.s8.bf16 %v1079_v16  ;;  %v2701_v33 = vunpack.c.h.s8.bf16 %v1081_v21  ;;  %v1099_v21 = vld [vmem:[%s8057_s24 + $0x1328] sm:$0xff] }
 0x545   : > { %4712 = vmatpush1.bf16.msra.mxu0 %v2658_v34  ;;  %6088 = vmatpush1.bf16.msra.mxu1 %v2660_v37  ;;  %v2698_v34 = vunpack.c.h.s8.bf16 %v1078_v45  ;;  %v2700_v37 = vunpack.c.h.s8.bf16 %v1080_v46  ;;  %v1098_v45 = vld [vmem:[%s8057_s24 + $0x1320] sm:$0xff]  ;;  %v1100_v46 = vld [vmem:[%s8057_s24 + $0x1330] sm:$0xff] }
 0x546   : > { %4724 = vmatprep.subr.bf16.mxu0 %v2663_v55  ;;  %6100 = vmatprep.subr.bf16.mxu1 %v2665_v56  ;;  %v2703_v55 = vunpack.c.l.s8.bf16 %v1083_v51  ;;  %v2705_v56 = vunpack.c.l.s8.bf16 %v1085_v52 }
 0x548   : > { %4714 = vmatmul.mubr.bf16.vlgmr.msra.gmra.mrb[0].mxu0 %v7043_v38  ;;  %6090 = vmatmul.mubr.bf16.vlgmr.msra.gmra.mrb[0].mxu1 %v7043_v38  ;;  %v2702_v38 = vunpack.c.l.s8.bf16 %v1082_v57  ;;  %v1102_v57 = vld [vmem:[%s8057_s24 + $0x1340] sm:$0xff] }
 0x549   : > { %4725 = vmatpush1.bf16.msra.mxu0 %v2662_v43  ;;  %6101 = vmatpush1.bf16.msra.mxu1 %v2664_v61  ;;  %v2704_v43 = vunpack.c.l.s8.bf16 %v1084_v58  ;;  %v2707_v61 = vunpack.c.h.s8.bf16 %v1083_v51  ;;  %v1103_v51 = vld [vmem:[%s8057_s24 + $0x1348] sm:$0xff] }
 0x54a   : > { %4726 = vmatprep.subr.bf16.mxu0 %v2667_v62  ;;  %6102 = vmatprep.subr.bf16.mxu1 %v2669_v44  ;;  %v2709_v62 = vunpack.c.h.s8.bf16 %v1085_v52  ;;  %v1087_v44 = vld [vmem:[%s8057_s24 + $0x12c8] sm:$0xff]  ;;  %v1105_v52 = vld [vmem:[%s8057_s24 + $0x1358] sm:$0xff] }
 0x54b   : > { %4756 = vmatprep.mubr.bf16.mxu0 %v7046_v2  ;;  %6132 = vmatprep.mubr.bf16.mxu1 %v7046_v2  ;;  %v2708_v2 = vunpack.c.h.s8.bf16 %v1084_v58  ;;  %v1104_v58 = vld [vmem:[%s8057_s24 + $0x1350] sm:$0xff] }
 0x54d   : > { %4727 = vmatpush1.bf16.msra.mxu0 %v2666_v3  ;;  %6103 = vmatpush1.bf16.msra.mxu1 %v2668_v4  ;;  %v2711_v3 = vunpack.c.l.s8.bf16 %v1087_v44  ;;  %v2713_v4 = vunpack.c.l.s8.bf16 %v1089_v49 }
 0x54e   : > { %4728 = vmatprep.subr.bf16.mxu0 %v2671_v50  ;;  %6104 = vmatprep.subr.bf16.mxu1 %v2673_v53  ;;  %v1086_v50 = vld [vmem:[%s8057_s24 + $0x12c0] sm:$0xff]  ;;  %v1088_v53 = vld [vmem:[%s8057_s24 + $0x12d0] sm:$0xff] }
 0x54f   : > { %v2710_v31 = vunpack.c.l.s8.bf16 %v1086_v50  ;;  %v2712_v32 = vunpack.c.l.s8.bf16 %v1088_v53  ;;  %v2714_v11 = vunpack.c.h.s8.bf16 %v1086_v50  ;;  %v2716_v12 = vunpack.c.h.s8.bf16 %v1088_v53  ;;  %v1106_v50 = vld [vmem:[%s8057_s24 + $0x1360] sm:$0xff]  ;;  %v1108_v53 = vld [vmem:[%s8057_s24 + $0x1370] sm:$0xff] }
 0x551   : > { %4729 = vmatpush1.bf16.msra.mxu0 %v2670_v7  ;;  %6105 = vmatpush1.bf16.msra.mxu1 %v2672_v8  ;;  %v2715_v7 = vunpack.c.h.s8.bf16 %v1087_v44  ;;  %v2717_v8 = vunpack.c.h.s8.bf16 %v1089_v49  ;;  %v1107_v44 = vld [vmem:[%s8057_s24 + $0x1368] sm:$0xff]  ;;  %v1109_v49 = vld [vmem:[%s8057_s24 + $0x1378] sm:$0xff] }
 0x552   : > { %4730 = vmatprep.subr.bf16.mxu0 %v2675_v54  ;;  %6106 = vmatprep.subr.bf16.mxu1 %v2677_v59  ;;  %v1091_v54 = vld [vmem:[%s8057_s24 + $0x12e8] sm:$0xff]  ;;  %v1093_v59 = vld [vmem:[%s8057_s24 + $0x12f8] sm:$0xff] }
 0x555   : > { %4731 = vmatpush1.bf16.msra.mxu0 %v2674_v60  ;;  %6107 = vmatpush1.bf16.msra.mxu1 %v2676_v63  ;;  %v2719_v60 = vunpack.c.l.s8.bf16 %v1091_v54  ;;  %v2721_v63 = vunpack.c.l.s8.bf16 %v1093_v59 }
 0x556   : > { %4732 = vmatprep.subr.bf16.mxu0 %v2679_v17  ;;  %6108 = vmatprep.subr.bf16.mxu1 %v2681_v18  ;;  %v1090_v17 = vld [vmem:[%s8057_s24 + $0x12e0] sm:$0xff]  ;;  %v1092_v18 = vld [vmem:[%s8057_s24 + $0x12f0] sm:$0xff] }
 0x557   : > { %v2718_v19 = vunpack.c.l.s8.bf16 %v1090_v17  ;;  %v2720_v20 = vunpack.c.l.s8.bf16 %v1092_v18  ;;  %v2722_v6 = vunpack.c.h.s8.bf16 %v1090_v17  ;;  %v2724_v9 = vunpack.c.h.s8.bf16 %v1092_v18  ;;  %v1110_v17 = vld [vmem:[%s8057_s24 + $0x1380] sm:$0xff]  ;;  %v1112_v18 = vld [vmem:[%s8057_s24 + $0x1390] sm:$0xff] }
 0x559   : > { %4733 = vmatpush1.bf16.msra.mxu0 %v2678_v0  ;;  %6109 = vmatpush1.bf16.msra.mxu1 %v2680_v5  ;;  %v2723_v0 = vunpack.c.h.s8.bf16 %v1091_v54  ;;  %v2725_v5 = vunpack.c.h.s8.bf16 %v1093_v59  ;;  %v1111_v54 = vld [vmem:[%s8057_s24 + $0x1388] sm:$0xff]  ;;  %v1113_v59 = vld [vmem:[%s8057_s24 + $0x1398] sm:$0xff] }
 0x55a   : > { %4734 = vmatprep.subr.bf16.mxu0 %v2683_v23  ;;  %6110 = vmatprep.subr.bf16.mxu1 %v2685_v24  ;;  %v1095_v23 = vld [vmem:[%s8057_s24 + $0x1308] sm:$0xff]  ;;  %v1097_v24 = vld [vmem:[%s8057_s24 + $0x1318] sm:$0xff] }
 0x55b   : > { %v2733_v16 = vunpack.c.h.s8.bf16 %v1097_v24 }
 0x55d   : > { %4735 = vmatpush1.bf16.msra.mxu0 %v2682_v27  ;;  %6111 = vmatpush1.bf16.msra.mxu1 %v2684_v28  ;;  %v2727_v27 = vunpack.c.l.s8.bf16 %v1095_v23  ;;  %v2729_v28 = vunpack.c.l.s8.bf16 %v1097_v24  ;;  %v1117_v24 = vld [vmem:[%s8057_s24 + $0x13b8] sm:$0xff] }
 0x55e   : > { %4736 = vmatprep.subr.bf16.mxu0 %v2687_v29  ;;  %6112 = vmatprep.subr.bf16.mxu1 %v2689_v30  ;;  %v1094_v29 = vld [vmem:[%s8057_s24 + $0x1300] sm:$0xff]  ;;  %v1096_v30 = vld [vmem:[%s8057_s24 + $0x1310] sm:$0xff] }
 0x55f   : > { %v2730_v41 = vunpack.c.h.s8.bf16 %v1094_v29  ;;  %v2732_v42 = vunpack.c.h.s8.bf16 %v1096_v30 }
 0x561   : > { %4737 = vmatpush1.bf16.msra.mxu0 %v2686_v14  ;;  %6113 = vmatpush1.bf16.msra.mxu1 %v2688_v15  ;;  %v8890_v14 = vld [vmem:[%s8055_s12 + $0x198] sm:$0xff]  ;;  %v2726_v15 = vunpack.c.l.s8.bf16 %v1094_v29  ;;  %v1114_v29 = vld [vmem:[%s8057_s24 + $0x13a0] sm:$0xff] }
 0x562   : > { %4738 = vmatprep.subr.bf16.mxu0 %v2691_v35  ;;  %6114 = vmatprep.subr.bf16.mxu1 %v2693_v36  ;;  %v2728_v35 = vunpack.c.l.s8.bf16 %v1096_v30  ;;  %v2731_v36 = vunpack.c.h.s8.bf16 %v1095_v23  ;;  %v1115_v23 = vld [vmem:[%s8057_s24 + $0x13a8] sm:$0xff]  ;;  %v1116_v30 = vld [vmem:[%s8057_s24 + $0x13b0] sm:$0xff] }
 0x565   : > { %4739 = vmatpush1.bf16.msra.mxu0 %v2690_v39  ;;  %6115 = vmatpush1.bf16.msra.mxu1 %v2692_v40  ;;  %v1101_v39 = vld [vmem:[%s8057_s24 + $0x1338] sm:$0xff]  ;;  %v7048_v40 = vcombine.high %v8887_v13, %v8890_v14 }
 0x566   : > { %4740 = vmatprep.subr.bf16.mxu0 %v2695_v22  ;;  %6116 = vmatprep.subr.bf16.mxu1 %v2697_v25  ;;  %v2735_v22 = vunpack.c.l.s8.bf16 %v1099_v21  ;;  %v2737_v25 = vunpack.c.l.s8.bf16 %v1101_v39 }
 0x569   : > { %4741 = vmatpush1.bf16.msra.mxu0 %v2694_v47  ;;  %6117 = vmatpush1.bf16.msra.mxu1 %v2696_v48  ;;  %v2734_v47 = vunpack.c.l.s8.bf16 %v1098_v45  ;;  %v2736_v48 = vunpack.c.l.s8.bf16 %v1100_v46 }
 0x56a   : > { %4742 = vmatprep.subr.bf16.mxu0 %v2699_v26  ;;  %6118 = vmatprep.subr.bf16.mxu1 %v2701_v33  ;;  %v2739_v26 = vunpack.c.h.s8.bf16 %v1099_v21  ;;  %v2741_v33 = vunpack.c.h.s8.bf16 %v1101_v39  ;;  %v1121_v21 = vld [vmem:[%s8057_s24 + $0x13d8] sm:$0xff]  ;;  %v2770_v39 = vunpack.c.h.s8.bf16 %v1114_v29 }
 0x56d   : > { %4743 = vmatpush1.bf16.msra.mxu0 %v2698_v34  ;;  %6119 = vmatpush1.bf16.msra.mxu1 %v2700_v37  ;;  %v2738_v34 = vunpack.c.h.s8.bf16 %v1098_v45  ;;  %v2740_v37 = vunpack.c.h.s8.bf16 %v1100_v46 }
 0x56e   : > { %4744 = vmatprep.subr.bf16.mxu0 %v2703_v55  ;;  %6120 = vmatprep.subr.bf16.mxu1 %v2705_v56  ;;  %v2743_v55 = vunpack.c.l.s8.bf16 %v1103_v51  ;;  %v2745_v56 = vunpack.c.l.s8.bf16 %v1105_v52 }
 0x571   : > { %4745 = vmatpush1.bf16.msra.mxu0 %v2702_v38  ;;  %6121 = vmatpush1.bf16.msra.mxu1 %v2704_v43  ;;  %v2742_v38 = vunpack.c.l.s8.bf16 %v1102_v57  ;;  %v2744_v43 = vunpack.c.l.s8.bf16 %v1104_v58 }
 0x572   : > { %4746 = vmatprep.subr.bf16.mxu0 %v2707_v61  ;;  %6122 = vmatprep.subr.bf16.mxu1 %v2709_v62  ;;  %v2747_v61 = vunpack.c.h.s8.bf16 %v1103_v51  ;;  %v2749_v62 = vunpack.c.h.s8.bf16 %v1105_v52 }
 0x575   : > { %4747 = vmatpush1.bf16.msra.mxu0 %v2706_v1  ;;  %6123 = vmatpush1.bf16.msra.mxu1 %v2708_v2  ;;  %v2746_v1 = vunpack.c.h.s8.bf16 %v1102_v57  ;;  %v2748_v2 = vunpack.c.h.s8.bf16 %v1104_v58 }
 0x576   : > { %4748 = vmatprep.subr.bf16.mxu0 %v2711_v3  ;;  %6124 = vmatprep.subr.bf16.mxu1 %v2713_v4  ;;  %v2751_v3 = vunpack.c.l.s8.bf16 %v1107_v44  ;;  %v2753_v4 = vunpack.c.l.s8.bf16 %v1109_v49 }
 0x579   : > { %4749 = vmatpush1.bf16.msra.mxu0 %v2710_v31  ;;  %6125 = vmatpush1.bf16.msra.mxu1 %v2712_v32  ;;  %v2750_v31 = vunpack.c.l.s8.bf16 %v1106_v50  ;;  %v2752_v32 = vunpack.c.l.s8.bf16 %v1108_v53 }
 0x57a   : > { %4750 = vmatprep.subr.bf16.mxu0 %v2715_v7  ;;  %6126 = vmatprep.subr.bf16.mxu1 %v2717_v8  ;;  %v2755_v7 = vunpack.c.h.s8.bf16 %v1107_v44  ;;  %v2757_v8 = vunpack.c.h.s8.bf16 %v1109_v49 }
 0x57d   : > { %4751 = vmatpush1.bf16.msra.mxu0 %v2714_v11  ;;  %6127 = vmatpush1.bf16.msra.mxu1 %v2716_v12  ;;  %v2754_v11 = vunpack.c.h.s8.bf16 %v1106_v50  ;;  %v2756_v12 = vunpack.c.h.s8.bf16 %v1108_v53  ;;  %v7047_v50 = vcombine.low %v8887_v13, %v8890_v14  ;;  %v8929_v53 = vld [vmem:[%s8055_s12 + $0xa0] sm:$0xff] }
 0x57e   : > { %4752 = vmatprep.subr.bf16.mxu0 %v2719_v60  ;;  %6128 = vmatprep.subr.bf16.mxu1 %v2721_v63  ;;  %v2759_v60 = vunpack.c.l.s8.bf16 %v1111_v54  ;;  %v2761_v63 = vunpack.c.l.s8.bf16 %v1113_v59 }
 0x581   : > { %4753 = vmatpush1.bf16.msra.mxu0 %v2718_v19  ;;  %6129 = vmatpush1.bf16.msra.mxu1 %v2720_v20  ;;  %v2758_v19 = vunpack.c.l.s8.bf16 %v1110_v17  ;;  %v2760_v20 = vunpack.c.l.s8.bf16 %v1112_v18 }
 0x582   : > { %4754 = vmatprep.subr.bf16.mxu0 %v2723_v0  ;;  %6130 = vmatprep.subr.bf16.mxu1 %v2725_v5  ;;  %v2763_v0 = vunpack.c.h.s8.bf16 %v1111_v54  ;;  %v2765_v5 = vunpack.c.h.s8.bf16 %v1113_v59  ;;  %v1131_v59 = vld [vmem:[%s8057_s24 + $0x1428] sm:$0xff] }
 0x585   : > { %4755 = vmatpush1.bf16.msra.mxu0 %v2722_v6  ;;  %6131 = vmatpush1.bf16.msra.mxu1 %v2724_v9  ;;  %v2762_v6 = vunpack.c.h.s8.bf16 %v1110_v17  ;;  %v2764_v9 = vunpack.c.h.s8.bf16 %v1112_v18  ;;  %v1130_v17 = vld [vmem:[%s8057_s24 + $0x1420] sm:$0xff]  ;;  %v1132_v18 = vld [vmem:[%s8057_s24 + $0x1430] sm:$0xff] }
 0x586   : > { %4767 = vmatprep.subr.bf16.mxu0 %v2727_v27  ;;  %6143 = vmatprep.subr.bf16.mxu1 %v2729_v28  ;;  %v2767_v27 = vunpack.c.l.s8.bf16 %v1115_v23  ;;  %v2769_v28 = vunpack.c.l.s8.bf16 %v1117_v24 }
 0x588   : > { %4757 = vmatmul.mubr.bf16.vlgmr.msra.gmra.mrb[0].mxu0 %v7045_v10  ;;  %6133 = vmatmul.mubr.bf16.vlgmr.msra.gmra.mrb[0].mxu1 %v7045_v10  ;;  %v2766_v10 = vunpack.c.l.s8.bf16 %v1114_v29  ;;  %v1134_v29 = vld [vmem:[%s8057_s24 + $0x1440] sm:$0xff] }
 0x589   : > { %4768 = vmatpush1.bf16.msra.mxu0 %v2726_v15  ;;  %6144 = vmatpush1.bf16.msra.mxu1 %v2728_v35  ;;  %v2768_v15 = vunpack.c.l.s8.bf16 %v1116_v30  ;;  %v2771_v35 = vunpack.c.h.s8.bf16 %v1115_v23  ;;  %v1135_v23 = vld [vmem:[%s8057_s24 + $0x1448] sm:$0xff] }
 0x58a   : > { %4769 = vmatprep.subr.bf16.mxu0 %v2731_v36  ;;  %6145 = vmatprep.subr.bf16.mxu1 %v2733_v16  ;;  %v2773_v36 = vunpack.c.h.s8.bf16 %v1117_v24  ;;  %v1119_v16 = vld [vmem:[%s8057_s24 + $0x13c8] sm:$0xff]  ;;  %v1137_v24 = vld [vmem:[%s8057_s24 + $0x1458] sm:$0xff] }
 0x58b   : > { %4799 = vmatprep.mubr.bf16.mxu0 %v7048_v40  ;;  %6175 = vmatprep.mubr.bf16.mxu1 %v7048_v40  ;;  %v2772_v40 = vunpack.c.h.s8.bf16 %v1116_v30  ;;  %v1136_v30 = vld [vmem:[%s8057_s24 + $0x1450] sm:$0xff] }
 0x58d   : > { %4770 = vmatpush1.bf16.msra.mxu0 %v2730_v41  ;;  %6146 = vmatpush1.bf16.msra.mxu1 %v2732_v42  ;;  %v2775_v41 = vunpack.c.l.s8.bf16 %v1119_v16  ;;  %v2777_v42 = vunpack.c.l.s8.bf16 %v1121_v21 }
 0x58e   : > { %4771 = vmatprep.subr.bf16.mxu0 %v2735_v22  ;;  %6147 = vmatprep.subr.bf16.mxu1 %v2737_v25  ;;  %v1118_v22 = vld [vmem:[%s8057_s24 + $0x13c0] sm:$0xff]  ;;  %v1120_v25 = vld [vmem:[%s8057_s24 + $0x13d0] sm:$0xff] }
 0x58f   : > { %v2774_v45 = vunpack.c.l.s8.bf16 %v1118_v22  ;;  %v2776_v46 = vunpack.c.l.s8.bf16 %v1120_v25  ;;  %v2778_v51 = vunpack.c.h.s8.bf16 %v1118_v22  ;;  %v2780_v52 = vunpack.c.h.s8.bf16 %v1120_v25  ;;  %v1138_v22 = vld [vmem:[%s8057_s24 + $0x1460] sm:$0xff]  ;;  %v1140_v25 = vld [vmem:[%s8057_s24 + $0x1470] sm:$0xff] }
 0x591   : > { %4772 = vmatpush1.bf16.msra.mxu0 %v2734_v47  ;;  %6148 = vmatpush1.bf16.msra.mxu1 %v2736_v48  ;;  %v2779_v47 = vunpack.c.h.s8.bf16 %v1119_v16  ;;  %v2781_v48 = vunpack.c.h.s8.bf16 %v1121_v21  ;;  %v1139_v16 = vld [vmem:[%s8057_s24 + $0x1468] sm:$0xff]  ;;  %v1141_v21 = vld [vmem:[%s8057_s24 + $0x1478] sm:$0xff] }
 0x592   : > { %4773 = vmatprep.subr.bf16.mxu0 %v2739_v26  ;;  %6149 = vmatprep.subr.bf16.mxu1 %v2741_v33  ;;  %v1123_v26 = vld [vmem:[%s8057_s24 + $0x13e8] sm:$0xff]  ;;  %v1125_v33 = vld [vmem:[%s8057_s24 + $0x13f8] sm:$0xff] }
 0x595   : > { %4774 = vmatpush1.bf16.msra.mxu0 %v2738_v34  ;;  %6150 = vmatpush1.bf16.msra.mxu1 %v2740_v37  ;;  %v2783_v34 = vunpack.c.l.s8.bf16 %v1123_v26  ;;  %v2785_v37 = vunpack.c.l.s8.bf16 %v1125_v33 }
 0x596   : > { %4775 = vmatprep.subr.bf16.mxu0 %v2743_v55  ;;  %6151 = vmatprep.subr.bf16.mxu1 %v2745_v56  ;;  %v1122_v55 = vld [vmem:[%s8057_s24 + $0x13e0] sm:$0xff]  ;;  %v1124_v56 = vld [vmem:[%s8057_s24 + $0x13f0] sm:$0xff] }
 0x597   : > { %v2782_v57 = vunpack.c.l.s8.bf16 %v1122_v55  ;;  %v2784_v58 = vunpack.c.l.s8.bf16 %v1124_v56  ;;  %v2786_v44 = vunpack.c.h.s8.bf16 %v1122_v55  ;;  %v2788_v49 = vunpack.c.h.s8.bf16 %v1124_v56  ;;  %v1142_v55 = vld [vmem:[%s8057_s24 + $0x1480] sm:$0xff]  ;;  %v1144_v56 = vld [vmem:[%s8057_s24 + $0x1490] sm:$0xff] }
 0x599   : > { %4776 = vmatpush1.bf16.msra.mxu0 %v2742_v38  ;;  %6152 = vmatpush1.bf16.msra.mxu1 %v2744_v43  ;;  %v2787_v38 = vunpack.c.h.s8.bf16 %v1123_v26  ;;  %v2789_v43 = vunpack.c.h.s8.bf16 %v1125_v33  ;;  %v1143_v26 = vld [vmem:[%s8057_s24 + $0x1488] sm:$0xff]  ;;  %v1145_v33 = vld [vmem:[%s8057_s24 + $0x1498] sm:$0xff] }
 0x59a   : > { %4777 = vmatprep.subr.bf16.mxu0 %v2747_v61  ;;  %6153 = vmatprep.subr.bf16.mxu1 %v2749_v62  ;;  %v1127_v61 = vld [vmem:[%s8057_s24 + $0x1408] sm:$0xff]  ;;  %v1129_v62 = vld [vmem:[%s8057_s24 + $0x1418] sm:$0xff] }
 0x59b   : > { %v2797_v54 = vunpack.c.h.s8.bf16 %v1129_v62 }
 0x59d   : > { %4778 = vmatpush1.bf16.msra.mxu0 %v2746_v1  ;;  %6154 = vmatpush1.bf16.msra.mxu1 %v2748_v2  ;;  %v2791_v1 = vunpack.c.l.s8.bf16 %v1127_v61  ;;  %v2793_v2 = vunpack.c.l.s8.bf16 %v1129_v62  ;;  %v1149_v62 = vld [vmem:[%s8057_s24 + $0x14b8] sm:$0xff] }
 0x59e   : > { %4779 = vmatprep.subr.bf16.mxu0 %v2751_v3  ;;  %6155 = vmatprep.subr.bf16.mxu1 %v2753_v4  ;;  %v1126_v3 = vld [vmem:[%s8057_s24 + $0x1400] sm:$0xff]  ;;  %v1128_v4 = vld [vmem:[%s8057_s24 + $0x1410] sm:$0xff] }
 0x59f   : > { %v2794_v13 = vunpack.c.h.s8.bf16 %v1126_v3  ;;  %v2796_v14 = vunpack.c.h.s8.bf16 %v1128_v4 }
 0x5a1   : > { %4780 = vmatpush1.bf16.msra.mxu0 %v2750_v31  ;;  %6156 = vmatpush1.bf16.msra.mxu1 %v2752_v32  ;;  %v8932_v31 = vld [vmem:[%s8055_s12 + $0x1a0] sm:$0xff]  ;;  %v2790_v32 = vunpack.c.l.s8.bf16 %v1126_v3 }
 0x5a2   : > { %4781 = vmatprep.subr.bf16.mxu0 %v2755_v7  ;;  %6157 = vmatprep.subr.bf16.mxu1 %v2757_v8  ;;  %v2792_v7 = vunpack.c.l.s8.bf16 %v1128_v4  ;;  %v2795_v8 = vunpack.c.h.s8.bf16 %v1127_v61  ;;  %v1147_v61 = vld [vmem:[%s8057_s24 + $0x14a8] sm:$0xff]  ;;  %v1146_v3 = vld [vmem:[%s8057_s24 + $0x14a0] sm:$0xff]  ;;  %v1148_v4 = vld [vmem:[%s8057_s24 + $0x14b0] sm:$0xff] }
 0x5a5   : > { %4782 = vmatpush1.bf16.msra.mxu0 %v2754_v11  ;;  %6158 = vmatpush1.bf16.msra.mxu1 %v2756_v12  ;;  %v1133_v11 = vld [vmem:[%s8057_s24 + $0x1438] sm:$0xff]  ;;  %v7050_v12 = vcombine.high %v8929_v53, %v8932_v31 }
 0x5a6   : > { %4783 = vmatprep.subr.bf16.mxu0 %v2759_v60  ;;  %6159 = vmatprep.subr.bf16.mxu1 %v2761_v63  ;;  %v2799_v60 = vunpack.c.l.s8.bf16 %v1131_v59  ;;  %v2801_v63 = vunpack.c.l.s8.bf16 %v1133_v11 }
 0x5a9   : > { %4784 = vmatpush1.bf16.msra.mxu0 %v2758_v19  ;;  %6160 = vmatpush1.bf16.msra.mxu1 %v2760_v20  ;;  %v2798_v19 = vunpack.c.l.s8.bf16 %v1130_v17  ;;  %v2800_v20 = vunpack.c.l.s8.bf16 %v1132_v18 }
 0x5aa   : > { %4785 = vmatprep.subr.bf16.mxu0 %v2763_v0  ;;  %6161 = vmatprep.subr.bf16.mxu1 %v2765_v5  ;;  %v2803_v0 = vunpack.c.h.s8.bf16 %v1131_v59  ;;  %v2805_v5 = vunpack.c.h.s8.bf16 %v1133_v11  ;;  %v1153_v59 = vld [vmem:[%s8057_s24 + $0x14d8] sm:$0xff]  ;;  %v2834_v11 = vunpack.c.h.s8.bf16 %v1146_v3 }
 0x5ad   : > { %4786 = vmatpush1.bf16.msra.mxu0 %v2762_v6  ;;  %6162 = vmatpush1.bf16.msra.mxu1 %v2764_v9  ;;  %v2802_v6 = vunpack.c.h.s8.bf16 %v1130_v17  ;;  %v2804_v9 = vunpack.c.h.s8.bf16 %v1132_v18 }
 0x5ae   : > { %4787 = vmatprep.subr.bf16.mxu0 %v2767_v27  ;;  %6163 = vmatprep.subr.bf16.mxu1 %v2769_v28  ;;  %v2807_v27 = vunpack.c.l.s8.bf16 %v1135_v23  ;;  %v2809_v28 = vunpack.c.l.s8.bf16 %v1137_v24 }
 0x5b1   : > { %4788 = vmatpush1.bf16.msra.mxu0 %v2766_v10  ;;  %6164 = vmatpush1.bf16.msra.mxu1 %v2768_v15  ;;  %v2806_v10 = vunpack.c.l.s8.bf16 %v1134_v29  ;;  %v2808_v15 = vunpack.c.l.s8.bf16 %v1136_v30 }
 0x5b2   : > { %4789 = vmatprep.subr.bf16.mxu0 %v2771_v35  ;;  %6165 = vmatprep.subr.bf16.mxu1 %v2773_v36  ;;  %v2811_v35 = vunpack.c.h.s8.bf16 %v1135_v23  ;;  %v2813_v36 = vunpack.c.h.s8.bf16 %v1137_v24 }
 0x5b5   : > { %4790 = vmatpush1.bf16.msra.mxu0 %v2770_v39  ;;  %6166 = vmatpush1.bf16.msra.mxu1 %v2772_v40  ;;  %v2810_v39 = vunpack.c.h.s8.bf16 %v1134_v29  ;;  %v2812_v40 = vunpack.c.h.s8.bf16 %v1136_v30 }
 0x5b6   : > { %4791 = vmatprep.subr.bf16.mxu0 %v2775_v41  ;;  %6167 = vmatprep.subr.bf16.mxu1 %v2777_v42  ;;  %v2815_v41 = vunpack.c.l.s8.bf16 %v1139_v16  ;;  %v2817_v42 = vunpack.c.l.s8.bf16 %v1141_v21 }
 0x5b9   : > { %4792 = vmatpush1.bf16.msra.mxu0 %v2774_v45  ;;  %6168 = vmatpush1.bf16.msra.mxu1 %v2776_v46  ;;  %v2814_v45 = vunpack.c.l.s8.bf16 %v1138_v22  ;;  %v2816_v46 = vunpack.c.l.s8.bf16 %v1140_v25 }
 0x5ba   : > { %4793 = vmatprep.subr.bf16.mxu0 %v2779_v47  ;;  %6169 = vmatprep.subr.bf16.mxu1 %v2781_v48  ;;  %v2819_v47 = vunpack.c.h.s8.bf16 %v1139_v16  ;;  %v2821_v48 = vunpack.c.h.s8.bf16 %v1141_v21 }
 0x5bd   : > { %4794 = vmatpush1.bf16.msra.mxu0 %v2778_v51  ;;  %6170 = vmatpush1.bf16.msra.mxu1 %v2780_v52  ;;  %v2818_v51 = vunpack.c.h.s8.bf16 %v1138_v22  ;;  %v2820_v52 = vunpack.c.h.s8.bf16 %v1140_v25  ;;  %v7049_v22 = vcombine.low %v8929_v53, %v8932_v31  ;;  %v8971_v25 = vld [vmem:[%s8055_s12 + $0xa8] sm:$0xff] }
 0x5be   : > { %4795 = vmatprep.subr.bf16.mxu0 %v2783_v34  ;;  %6171 = vmatprep.subr.bf16.mxu1 %v2785_v37  ;;  %v2823_v34 = vunpack.c.l.s8.bf16 %v1143_v26  ;;  %v2825_v37 = vunpack.c.l.s8.bf16 %v1145_v33 }
 0x5c1   : > { %4796 = vmatpush1.bf16.msra.mxu0 %v2782_v57  ;;  %6172 = vmatpush1.bf16.msra.mxu1 %v2784_v58  ;;  %v2822_v57 = vunpack.c.l.s8.bf16 %v1142_v55  ;;  %v2824_v58 = vunpack.c.l.s8.bf16 %v1144_v56 }
 0x5c2   : > { %4797 = vmatprep.subr.bf16.mxu0 %v2787_v38  ;;  %6173 = vmatprep.subr.bf16.mxu1 %v2789_v43  ;;  %v2827_v38 = vunpack.c.h.s8.bf16 %v1143_v26  ;;  %v2829_v43 = vunpack.c.h.s8.bf16 %v1145_v33  ;;  %v1163_v33 = vld [vmem:[%s8057_s24 + $0x1528] sm:$0xff] }
 0x5c5   : > { %4798 = vmatpush1.bf16.msra.mxu0 %v2786_v44  ;;  %6174 = vmatpush1.bf16.msra.mxu1 %v2788_v49  ;;  %v2826_v44 = vunpack.c.h.s8.bf16 %v1142_v55  ;;  %v2828_v49 = vunpack.c.h.s8.bf16 %v1144_v56  ;;  %v1162_v55 = vld [vmem:[%s8057_s24 + $0x1520] sm:$0xff]  ;;  %v1164_v56 = vld [vmem:[%s8057_s24 + $0x1530] sm:$0xff] }
 0x5c6   : > { %4810 = vmatprep.subr.bf16.mxu0 %v2791_v1  ;;  %6186 = vmatprep.subr.bf16.mxu1 %v2793_v2  ;;  %v2831_v1 = vunpack.c.l.s8.bf16 %v1147_v61  ;;  %v2833_v2 = vunpack.c.l.s8.bf16 %v1149_v62 }
 0x5c8   : > { %4800 = vmatmul.mubr.bf16.vlgmr.msra.gmra.mrb[0].mxu0 %v7047_v50  ;;  %6176 = vmatmul.mubr.bf16.vlgmr.msra.gmra.mrb[0].mxu1 %v7047_v50  ;;  %v2830_v50 = vunpack.c.l.s8.bf16 %v1146_v3  ;;  %v1166_v3 = vld [vmem:[%s8057_s24 + $0x1540] sm:$0xff] }
 0x5c9   : > { %4811 = vmatpush1.bf16.msra.mxu0 %v2790_v32  ;;  %6187 = vmatpush1.bf16.msra.mxu1 %v2792_v7  ;;  %v2832_v32 = vunpack.c.l.s8.bf16 %v1148_v4  ;;  %v2835_v7 = vunpack.c.h.s8.bf16 %v1147_v61  ;;  %v1167_v61 = vld [vmem:[%s8057_s24 + $0x1548] sm:$0xff] }
 0x5ca   : > { %4812 = vmatprep.subr.bf16.mxu0 %v2795_v8  ;;  %6188 = vmatprep.subr.bf16.mxu1 %v2797_v54  ;;  %v2837_v8 = vunpack.c.h.s8.bf16 %v1149_v62  ;;  %v1151_v54 = vld [vmem:[%s8057_s24 + $0x14c8] sm:$0xff]  ;;  %v1169_v62 = vld [vmem:[%s8057_s24 + $0x1558] sm:$0xff] }
 0x5cb   : > { %4842 = vmatprep.mubr.bf16.mxu0 %v7050_v12  ;;  %6218 = vmatprep.mubr.bf16.mxu1 %v7050_v12  ;;  %v2836_v12 = vunpack.c.h.s8.bf16 %v1148_v4  ;;  %v1168_v4 = vld [vmem:[%s8057_s24 + $0x1550] sm:$0xff] }
 0x5cd   : > { %4813 = vmatpush1.bf16.msra.mxu0 %v2794_v13  ;;  %6189 = vmatpush1.bf16.msra.mxu1 %v2796_v14  ;;  %v2839_v13 = vunpack.c.l.s8.bf16 %v1151_v54  ;;  %v2841_v14 = vunpack.c.l.s8.bf16 %v1153_v59 }
 0x5ce   : > { %4814 = vmatprep.subr.bf16.mxu0 %v2799_v60  ;;  %6190 = vmatprep.subr.bf16.mxu1 %v2801_v63  ;;  %v1150_v60 = vld [vmem:[%s8057_s24 + $0x14c0] sm:$0xff]  ;;  %v1152_v63 = vld [vmem:[%s8057_s24 + $0x14d0] sm:$0xff] }
 0x5cf   : > { %v2838_v17 = vunpack.c.l.s8.bf16 %v1150_v60  ;;  %v2840_v18 = vunpack.c.l.s8.bf16 %v1152_v63  ;;  %v2842_v23 = vunpack.c.h.s8.bf16 %v1150_v60  ;;  %v2844_v24 = vunpack.c.h.s8.bf16 %v1152_v63  ;;  %v1170_v60 = vld [vmem:[%s8057_s24 + $0x1560] sm:$0xff]  ;;  %v1172_v63 = vld [vmem:[%s8057_s24 + $0x1570] sm:$0xff] }
 0x5d1   : > { %4815 = vmatpush1.bf16.msra.mxu0 %v2798_v19  ;;  %6191 = vmatpush1.bf16.msra.mxu1 %v2800_v20  ;;  %v2843_v19 = vunpack.c.h.s8.bf16 %v1151_v54  ;;  %v2845_v20 = vunpack.c.h.s8.bf16 %v1153_v59  ;;  %v1171_v54 = vld [vmem:[%s8057_s24 + $0x1568] sm:$0xff]  ;;  %v1173_v59 = vld [vmem:[%s8057_s24 + $0x1578] sm:$0xff] }
 0x5d2   : > { %4816 = vmatprep.subr.bf16.mxu0 %v2803_v0  ;;  %6192 = vmatprep.subr.bf16.mxu1 %v2805_v5  ;;  %v1155_v0 = vld [vmem:[%s8057_s24 + $0x14e8] sm:$0xff]  ;;  %v1157_v5 = vld [vmem:[%s8057_s24 + $0x14f8] sm:$0xff] }
 0x5d5   : > { %4817 = vmatpush1.bf16.msra.mxu0 %v2802_v6  ;;  %6193 = vmatpush1.bf16.msra.mxu1 %v2804_v9  ;;  %v2847_v6 = vunpack.c.l.s8.bf16 %v1155_v0  ;;  %v2849_v9 = vunpack.c.l.s8.bf16 %v1157_v5 }
 0x5d6   : > { %4818 = vmatprep.subr.bf16.mxu0 %v2807_v27  ;;  %6194 = vmatprep.subr.bf16.mxu1 %v2809_v28  ;;  %v1154_v27 = vld [vmem:[%s8057_s24 + $0x14e0] sm:$0xff]  ;;  %v1156_v28 = vld [vmem:[%s8057_s24 + $0x14f0] sm:$0xff] }
 0x5d7   : > { %v2846_v29 = vunpack.c.l.s8.bf16 %v1154_v27  ;;  %v2848_v30 = vunpack.c.l.s8.bf16 %v1156_v28  ;;  %v2850_v16 = vunpack.c.h.s8.bf16 %v1154_v27  ;;  %v2852_v21 = vunpack.c.h.s8.bf16 %v1156_v28  ;;  %v1174_v27 = vld [vmem:[%s8057_s24 + $0x1580] sm:$0xff]  ;;  %v1176_v28 = vld [vmem:[%s8057_s24 + $0x1590] sm:$0xff] }
 0x5d9   : > { %4819 = vmatpush1.bf16.msra.mxu0 %v2806_v10  ;;  %6195 = vmatpush1.bf16.msra.mxu1 %v2808_v15  ;;  %v2851_v10 = vunpack.c.h.s8.bf16 %v1155_v0  ;;  %v2853_v15 = vunpack.c.h.s8.bf16 %v1157_v5  ;;  %v1175_v0 = vld [vmem:[%s8057_s24 + $0x1588] sm:$0xff]  ;;  %v1177_v5 = vld [vmem:[%s8057_s24 + $0x1598] sm:$0xff] }
 0x5da   : > { %4820 = vmatprep.subr.bf16.mxu0 %v2811_v35  ;;  %6196 = vmatprep.subr.bf16.mxu1 %v2813_v36  ;;  %v1159_v35 = vld [vmem:[%s8057_s24 + $0x1508] sm:$0xff]  ;;  %v1161_v36 = vld [vmem:[%s8057_s24 + $0x1518] sm:$0xff] }
 0x5db   : > { %v2861_v26 = vunpack.c.h.s8.bf16 %v1161_v36 }
 0x5dd   : > { %4821 = vmatpush1.bf16.msra.mxu0 %v2810_v39  ;;  %6197 = vmatpush1.bf16.msra.mxu1 %v2812_v40  ;;  %v2855_v39 = vunpack.c.l.s8.bf16 %v1159_v35  ;;  %v2857_v40 = vunpack.c.l.s8.bf16 %v1161_v36  ;;  %v1181_v36 = vld [vmem:[%s8057_s24 + $0x15b8] sm:$0xff] }
 0x5de   : > { %4822 = vmatprep.subr.bf16.mxu0 %v2815_v41  ;;  %6198 = vmatprep.subr.bf16.mxu1 %v2817_v42  ;;  %v1158_v41 = vld [vmem:[%s8057_s24 + $0x1500] sm:$0xff]  ;;  %v1160_v42 = vld [vmem:[%s8057_s24 + $0x1510] sm:$0xff] }
 0x5df   : > { %v2858_v53 = vunpack.c.h.s8.bf16 %v1158_v41  ;;  %v2860_v31 = vunpack.c.h.s8.bf16 %v1160_v42 }
 0x5e1   : > { %4823 = vmatpush1.bf16.msra.mxu0 %v2814_v45  ;;  %6199 = vmatpush1.bf16.msra.mxu1 %v2816_v46  ;;  %v8974_v45 = vld [vmem:[%s8055_s12 + $0x1a8] sm:$0xff]  ;;  %v2854_v46 = vunpack.c.l.s8.bf16 %v1158_v41  ;;  %v1178_v41 = vld [vmem:[%s8057_s24 + $0x15a0] sm:$0xff] }
 0x5e2   : > { %4824 = vmatprep.subr.bf16.mxu0 %v2819_v47  ;;  %6200 = vmatprep.subr.bf16.mxu1 %v2821_v48  ;;  %v2856_v47 = vunpack.c.l.s8.bf16 %v1160_v42  ;;  %v2859_v48 = vunpack.c.h.s8.bf16 %v1159_v35  ;;  %v1179_v35 = vld [vmem:[%s8057_s24 + $0x15a8] sm:$0xff]  ;;  %v1180_v42 = vld [vmem:[%s8057_s24 + $0x15b0] sm:$0xff] }
 0x5e5   : > { %4825 = vmatpush1.bf16.msra.mxu0 %v2818_v51  ;;  %6201 = vmatpush1.bf16.msra.mxu1 %v2820_v52  ;;  %v1165_v51 = vld [vmem:[%s8057_s24 + $0x1538] sm:$0xff]  ;;  %v7052_v52 = vcombine.high %v8971_v25, %v8974_v45 }
 0x5e6   : > { %4826 = vmatprep.subr.bf16.mxu0 %v2823_v34  ;;  %6202 = vmatprep.subr.bf16.mxu1 %v2825_v37  ;;  %v2863_v34 = vunpack.c.l.s8.bf16 %v1163_v33  ;;  %v2865_v37 = vunpack.c.l.s8.bf16 %v1165_v51 }
 0x5e9   : > { %4827 = vmatpush1.bf16.msra.mxu0 %v2822_v57  ;;  %6203 = vmatpush1.bf16.msra.mxu1 %v2824_v58  ;;  %v2862_v57 = vunpack.c.l.s8.bf16 %v1162_v55  ;;  %v2864_v58 = vunpack.c.l.s8.bf16 %v1164_v56 }
 0x5ea   : > { %4828 = vmatprep.subr.bf16.mxu0 %v2827_v38  ;;  %6204 = vmatprep.subr.bf16.mxu1 %v2829_v43  ;;  %v2867_v38 = vunpack.c.h.s8.bf16 %v1163_v33  ;;  %v2869_v43 = vunpack.c.h.s8.bf16 %v1165_v51  ;;  %v1185_v33 = vld [vmem:[%s8057_s24 + $0x15d8] sm:$0xff]  ;;  %v2898_v51 = vunpack.c.h.s8.bf16 %v1178_v41 }
 0x5ed   : > { %4829 = vmatpush1.bf16.msra.mxu0 %v2826_v44  ;;  %6205 = vmatpush1.bf16.msra.mxu1 %v2828_v49  ;;  %v2866_v44 = vunpack.c.h.s8.bf16 %v1162_v55  ;;  %v2868_v49 = vunpack.c.h.s8.bf16 %v1164_v56 }
 0x5ee   : > { %4830 = vmatprep.subr.bf16.mxu0 %v2831_v1  ;;  %6206 = vmatprep.subr.bf16.mxu1 %v2833_v2  ;;  %v2871_v1 = vunpack.c.l.s8.bf16 %v1167_v61  ;;  %v2873_v2 = vunpack.c.l.s8.bf16 %v1169_v62 }
 0x5f1   : > { %4831 = vmatpush1.bf16.msra.mxu0 %v2830_v50  ;;  %6207 = vmatpush1.bf16.msra.mxu1 %v2832_v32  ;;  %v2870_v50 = vunpack.c.l.s8.bf16 %v1166_v3  ;;  %v2872_v32 = vunpack.c.l.s8.bf16 %v1168_v4 }
 0x5f2   : > { %4832 = vmatprep.subr.bf16.mxu0 %v2835_v7  ;;  %6208 = vmatprep.subr.bf16.mxu1 %v2837_v8  ;;  %v2875_v7 = vunpack.c.h.s8.bf16 %v1167_v61  ;;  %v2877_v8 = vunpack.c.h.s8.bf16 %v1169_v62 }
 0x5f5   : > { %4833 = vmatpush1.bf16.msra.mxu0 %v2834_v11  ;;  %6209 = vmatpush1.bf16.msra.mxu1 %v2836_v12  ;;  %v2874_v11 = vunpack.c.h.s8.bf16 %v1166_v3  ;;  %v2876_v12 = vunpack.c.h.s8.bf16 %v1168_v4 }
 0x5f6   : > { %4834 = vmatprep.subr.bf16.mxu0 %v2839_v13  ;;  %6210 = vmatprep.subr.bf16.mxu1 %v2841_v14  ;;  %v2879_v13 = vunpack.c.l.s8.bf16 %v1171_v54  ;;  %v2881_v14 = vunpack.c.l.s8.bf16 %v1173_v59 }
 0x5f9   : > { %4835 = vmatpush1.bf16.msra.mxu0 %v2838_v17  ;;  %6211 = vmatpush1.bf16.msra.mxu1 %v2840_v18  ;;  %v2878_v17 = vunpack.c.l.s8.bf16 %v1170_v60  ;;  %v2880_v18 = vunpack.c.l.s8.bf16 %v1172_v63 }
 0x5fa   : > { %4836 = vmatprep.subr.bf16.mxu0 %v2843_v19  ;;  %6212 = vmatprep.subr.bf16.mxu1 %v2845_v20  ;;  %v2883_v19 = vunpack.c.h.s8.bf16 %v1171_v54  ;;  %v2885_v20 = vunpack.c.h.s8.bf16 %v1173_v59 }
 0x5fd   : > { %4837 = vmatpush1.bf16.msra.mxu0 %v2842_v23  ;;  %6213 = vmatpush1.bf16.msra.mxu1 %v2844_v24  ;;  %v2882_v23 = vunpack.c.h.s8.bf16 %v1170_v60  ;;  %v2884_v24 = vunpack.c.h.s8.bf16 %v1172_v63  ;;  %v7051_v60 = vcombine.low %v8971_v25, %v8974_v45  ;;  %v9013_v63 = vld [vmem:[%s8055_s12 + $0xb0] sm:$0xff] }
 0x5fe   : > { %4838 = vmatprep.subr.bf16.mxu0 %v2847_v6  ;;  %6214 = vmatprep.subr.bf16.mxu1 %v2849_v9  ;;  %v2887_v6 = vunpack.c.l.s8.bf16 %v1175_v0  ;;  %v2889_v9 = vunpack.c.l.s8.bf16 %v1177_v5 }
 0x601   : > { %4839 = vmatpush1.bf16.msra.mxu0 %v2846_v29  ;;  %6215 = vmatpush1.bf16.msra.mxu1 %v2848_v30  ;;  %v2886_v29 = vunpack.c.l.s8.bf16 %v1174_v27  ;;  %v2888_v30 = vunpack.c.l.s8.bf16 %v1176_v28 }
 0x602   : > { %4840 = vmatprep.subr.bf16.mxu0 %v2851_v10  ;;  %6216 = vmatprep.subr.bf16.mxu1 %v2853_v15  ;;  %v2891_v10 = vunpack.c.h.s8.bf16 %v1175_v0  ;;  %v2893_v15 = vunpack.c.h.s8.bf16 %v1177_v5  ;;  %v1195_v5 = vld [vmem:[%s8057_s24 + $0x1628] sm:$0xff] }
 0x605   : > { %4841 = vmatpush1.bf16.msra.mxu0 %v2850_v16  ;;  %6217 = vmatpush1.bf16.msra.mxu1 %v2852_v21  ;;  %v2890_v16 = vunpack.c.h.s8.bf16 %v1174_v27  ;;  %v2892_v21 = vunpack.c.h.s8.bf16 %v1176_v28  ;;  %v1194_v27 = vld [vmem:[%s8057_s24 + $0x1620] sm:$0xff]  ;;  %v1196_v28 = vld [vmem:[%s8057_s24 + $0x1630] sm:$0xff] }
 0x606   : > { %4853 = vmatprep.subr.bf16.mxu0 %v2855_v39  ;;  %6229 = vmatprep.subr.bf16.mxu1 %v2857_v40  ;;  %v2895_v39 = vunpack.c.l.s8.bf16 %v1179_v35  ;;  %v2897_v40 = vunpack.c.l.s8.bf16 %v1181_v36 }
 0x608   : > { %4843 = vmatmul.mubr.bf16.vlgmr.msra.gmra.mrb[0].mxu0 %v7049_v22  ;;  %6219 = vmatmul.mubr.bf16.vlgmr.msra.gmra.mrb[0].mxu1 %v7049_v22  ;;  %v2894_v22 = vunpack.c.l.s8.bf16 %v1178_v41  ;;  %v1198_v41 = vld [vmem:[%s8057_s24 + $0x1640] sm:$0xff] }
 0x609   : > { %4854 = vmatpush1.bf16.msra.mxu0 %v2854_v46  ;;  %6230 = vmatpush1.bf16.msra.mxu1 %v2856_v47  ;;  %v2896_v46 = vunpack.c.l.s8.bf16 %v1180_v42  ;;  %v2899_v47 = vunpack.c.h.s8.bf16 %v1179_v35  ;;  %v1199_v35 = vld [vmem:[%s8057_s24 + $0x1648] sm:$0xff] }
 0x60a   : > { %4855 = vmatprep.subr.bf16.mxu0 %v2859_v48  ;;  %6231 = vmatprep.subr.bf16.mxu1 %v2861_v26  ;;  %v2901_v48 = vunpack.c.h.s8.bf16 %v1181_v36  ;;  %v1183_v26 = vld [vmem:[%s8057_s24 + $0x15c8] sm:$0xff]  ;;  %v1201_v36 = vld [vmem:[%s8057_s24 + $0x1658] sm:$0xff] }
 0x60b   : > { %4885 = vmatprep.mubr.bf16.mxu0 %v7052_v52  ;;  %6261 = vmatprep.mubr.bf16.mxu1 %v7052_v52  ;;  %v2900_v52 = vunpack.c.h.s8.bf16 %v1180_v42  ;;  %v1200_v42 = vld [vmem:[%s8057_s24 + $0x1650] sm:$0xff] }
 0x60d   : > { %4856 = vmatpush1.bf16.msra.mxu0 %v2858_v53  ;;  %6232 = vmatpush1.bf16.msra.mxu1 %v2860_v31  ;;  %v2903_v53 = vunpack.c.l.s8.bf16 %v1183_v26  ;;  %v2905_v31 = vunpack.c.l.s8.bf16 %v1185_v33 }
 0x60e   : > { %4857 = vmatprep.subr.bf16.mxu0 %v2863_v34  ;;  %6233 = vmatprep.subr.bf16.mxu1 %v2865_v37  ;;  %v1182_v34 = vld [vmem:[%s8057_s24 + $0x15c0] sm:$0xff]  ;;  %v1184_v37 = vld [vmem:[%s8057_s24 + $0x15d0] sm:$0xff] }
 0x60f   : > { %v2902_v55 = vunpack.c.l.s8.bf16 %v1182_v34  ;;  %v2904_v56 = vunpack.c.l.s8.bf16 %v1184_v37  ;;  %v2906_v61 = vunpack.c.h.s8.bf16 %v1182_v34  ;;  %v2908_v62 = vunpack.c.h.s8.bf16 %v1184_v37  ;;  %v1202_v34 = vld [vmem:[%s8057_s24 + $0x1660] sm:$0xff]  ;;  %v1204_v37 = vld [vmem:[%s8057_s24 + $0x1670] sm:$0xff] }
 0x611   : > { %4858 = vmatpush1.bf16.msra.mxu0 %v2862_v57  ;;  %6234 = vmatpush1.bf16.msra.mxu1 %v2864_v58  ;;  %v2907_v57 = vunpack.c.h.s8.bf16 %v1183_v26  ;;  %v2909_v58 = vunpack.c.h.s8.bf16 %v1185_v33  ;;  %v1203_v26 = vld [vmem:[%s8057_s24 + $0x1668] sm:$0xff]  ;;  %v1205_v33 = vld [vmem:[%s8057_s24 + $0x1678] sm:$0xff] }
 0x612   : > { %4859 = vmatprep.subr.bf16.mxu0 %v2867_v38  ;;  %6235 = vmatprep.subr.bf16.mxu1 %v2869_v43  ;;  %v1187_v38 = vld [vmem:[%s8057_s24 + $0x15e8] sm:$0xff]  ;;  %v1189_v43 = vld [vmem:[%s8057_s24 + $0x15f8] sm:$0xff] }
 0x615   : > { %4860 = vmatpush1.bf16.msra.mxu0 %v2866_v44  ;;  %6236 = vmatpush1.bf16.msra.mxu1 %v2868_v49  ;;  %v2911_v44 = vunpack.c.l.s8.bf16 %v1187_v38  ;;  %v2913_v49 = vunpack.c.l.s8.bf16 %v1189_v43 }
 0x616   : > { %4861 = vmatprep.subr.bf16.mxu0 %v2871_v1  ;;  %6237 = vmatprep.subr.bf16.mxu1 %v2873_v2  ;;  %v1186_v1 = vld [vmem:[%s8057_s24 + $0x15e0] sm:$0xff]  ;;  %v1188_v2 = vld [vmem:[%s8057_s24 + $0x15f0] sm:$0xff] }
 0x617   : > { %v2910_v3 = vunpack.c.l.s8.bf16 %v1186_v1  ;;  %v2912_v4 = vunpack.c.l.s8.bf16 %v1188_v2  ;;  %v2914_v54 = vunpack.c.h.s8.bf16 %v1186_v1  ;;  %v2916_v59 = vunpack.c.h.s8.bf16 %v1188_v2  ;;  %v1206_v1 = vld [vmem:[%s8057_s24 + $0x1680] sm:$0xff]  ;;  %v1208_v2 = vld [vmem:[%s8057_s24 + $0x1690] sm:$0xff] }
 0x619   : > { %4862 = vmatpush1.bf16.msra.mxu0 %v2870_v50  ;;  %6238 = vmatpush1.bf16.msra.mxu1 %v2872_v32  ;;  %v2915_v50 = vunpack.c.h.s8.bf16 %v1187_v38  ;;  %v2917_v32 = vunpack.c.h.s8.bf16 %v1189_v43  ;;  %v1207_v38 = vld [vmem:[%s8057_s24 + $0x1688] sm:$0xff]  ;;  %v1209_v43 = vld [vmem:[%s8057_s24 + $0x1698] sm:$0xff] }
 0x61a   : > { %4863 = vmatprep.subr.bf16.mxu0 %v2875_v7  ;;  %6239 = vmatprep.subr.bf16.mxu1 %v2877_v8  ;;  %v1191_v7 = vld [vmem:[%s8057_s24 + $0x1608] sm:$0xff]  ;;  %v1193_v8 = vld [vmem:[%s8057_s24 + $0x1618] sm:$0xff] }
 0x61b   : > { %v2925_v0 = vunpack.c.h.s8.bf16 %v1193_v8 }
 0x61d   : > { %4864 = vmatpush1.bf16.msra.mxu0 %v2874_v11  ;;  %6240 = vmatpush1.bf16.msra.mxu1 %v2876_v12  ;;  %v2919_v11 = vunpack.c.l.s8.bf16 %v1191_v7  ;;  %v2921_v12 = vunpack.c.l.s8.bf16 %v1193_v8  ;;  %v1213_v8 = vld [vmem:[%s8057_s24 + $0x16b8] sm:$0xff] }
 0x61e   : > { %4865 = vmatprep.subr.bf16.mxu0 %v2879_v13  ;;  %6241 = vmatprep.subr.bf16.mxu1 %v2881_v14  ;;  %v1190_v13 = vld [vmem:[%s8057_s24 + $0x1600] sm:$0xff]  ;;  %v1192_v14 = vld [vmem:[%s8057_s24 + $0x1610] sm:$0xff] }
 0x61f   : > { %v2922_v25 = vunpack.c.h.s8.bf16 %v1190_v13  ;;  %v2924_v45 = vunpack.c.h.s8.bf16 %v1192_v14 }
 0x621   : > { %4866 = vmatpush1.bf16.msra.mxu0 %v2878_v17  ;;  %6242 = vmatpush1.bf16.msra.mxu1 %v2880_v18  ;;  %v9016_v17 = vld [vmem:[%s8055_s12 + $0x1b0] sm:$0xff]  ;;  %v2918_v18 = vunpack.c.l.s8.bf16 %v1190_v13  ;;  %v1210_v13 = vld [vmem:[%s8057_s24 + $0x16a0] sm:$0xff] }
 0x622   : > { %4867 = vmatprep.subr.bf16.mxu0 %v2883_v19  ;;  %6243 = vmatprep.subr.bf16.mxu1 %v2885_v20  ;;  %v2920_v19 = vunpack.c.l.s8.bf16 %v1192_v14  ;;  %v2923_v20 = vunpack.c.h.s8.bf16 %v1191_v7  ;;  %v1211_v7 = vld [vmem:[%s8057_s24 + $0x16a8] sm:$0xff]  ;;  %v1212_v14 = vld [vmem:[%s8057_s24 + $0x16b0] sm:$0xff] }
 0x625   : > { %4868 = vmatpush1.bf16.msra.mxu0 %v2882_v23  ;;  %6244 = vmatpush1.bf16.msra.mxu1 %v2884_v24  ;;  %v1197_v23 = vld [vmem:[%s8057_s24 + $0x1638] sm:$0xff]  ;;  %v7054_v24 = vcombine.high %v9013_v63, %v9016_v17 }
 0x626   : > { %4869 = vmatprep.subr.bf16.mxu0 %v2887_v6  ;;  %6245 = vmatprep.subr.bf16.mxu1 %v2889_v9  ;;  %v2927_v6 = vunpack.c.l.s8.bf16 %v1195_v5  ;;  %v2929_v9 = vunpack.c.l.s8.bf16 %v1197_v23 }
 0x629   : > { %4870 = vmatpush1.bf16.msra.mxu0 %v2886_v29  ;;  %6246 = vmatpush1.bf16.msra.mxu1 %v2888_v30  ;;  %v2926_v29 = vunpack.c.l.s8.bf16 %v1194_v27  ;;  %v2928_v30 = vunpack.c.l.s8.bf16 %v1196_v28 }
 0x62a   : > { %4871 = vmatprep.subr.bf16.mxu0 %v2891_v10  ;;  %6247 = vmatprep.subr.bf16.mxu1 %v2893_v15  ;;  %v2931_v10 = vunpack.c.h.s8.bf16 %v1195_v5  ;;  %v2933_v15 = vunpack.c.h.s8.bf16 %v1197_v23  ;;  %v1217_v5 = vld [vmem:[%s8057_s24 + $0x16d8] sm:$0xff]  ;;  %v2962_v23 = vunpack.c.h.s8.bf16 %v1210_v13 }
 0x62d   : > { %4872 = vmatpush1.bf16.msra.mxu0 %v2890_v16  ;;  %6248 = vmatpush1.bf16.msra.mxu1 %v2892_v21  ;;  %v2930_v16 = vunpack.c.h.s8.bf16 %v1194_v27  ;;  %v2932_v21 = vunpack.c.h.s8.bf16 %v1196_v28 }
 0x62e   : > { %4873 = vmatprep.subr.bf16.mxu0 %v2895_v39  ;;  %6249 = vmatprep.subr.bf16.mxu1 %v2897_v40  ;;  %v2935_v39 = vunpack.c.l.s8.bf16 %v1199_v35  ;;  %v2937_v40 = vunpack.c.l.s8.bf16 %v1201_v36 }
 0x631   : > { %4874 = vmatpush1.bf16.msra.mxu0 %v2894_v22  ;;  %6250 = vmatpush1.bf16.msra.mxu1 %v2896_v46  ;;  %v2934_v22 = vunpack.c.l.s8.bf16 %v1198_v41  ;;  %v2936_v46 = vunpack.c.l.s8.bf16 %v1200_v42 }
 0x632   : > { %4875 = vmatprep.subr.bf16.mxu0 %v2899_v47  ;;  %6251 = vmatprep.subr.bf16.mxu1 %v2901_v48  ;;  %v2939_v47 = vunpack.c.h.s8.bf16 %v1199_v35  ;;  %v2941_v48 = vunpack.c.h.s8.bf16 %v1201_v36 }
 0x635   : > { %4876 = vmatpush1.bf16.msra.mxu0 %v2898_v51  ;;  %6252 = vmatpush1.bf16.msra.mxu1 %v2900_v52  ;;  %v2938_v51 = vunpack.c.h.s8.bf16 %v1198_v41  ;;  %v2940_v52 = vunpack.c.h.s8.bf16 %v1200_v42 }
 0x636   : > { %4877 = vmatprep.subr.bf16.mxu0 %v2903_v53  ;;  %6253 = vmatprep.subr.bf16.mxu1 %v2905_v31  ;;  %v2943_v53 = vunpack.c.l.s8.bf16 %v1203_v26  ;;  %v2945_v31 = vunpack.c.l.s8.bf16 %v1205_v33 }
 0x639   : > { %4878 = vmatpush1.bf16.msra.mxu0 %v2902_v55  ;;  %6254 = vmatpush1.bf16.msra.mxu1 %v2904_v56  ;;  %v2942_v55 = vunpack.c.l.s8.bf16 %v1202_v34  ;;  %v2944_v56 = vunpack.c.l.s8.bf16 %v1204_v37 }
 0x63a   : > { %4879 = vmatprep.subr.bf16.mxu0 %v2907_v57  ;;  %6255 = vmatprep.subr.bf16.mxu1 %v2909_v58  ;;  %v2947_v57 = vunpack.c.h.s8.bf16 %v1203_v26  ;;  %v2949_v58 = vunpack.c.h.s8.bf16 %v1205_v33 }
 0x63d   : > { %4880 = vmatpush1.bf16.msra.mxu0 %v2906_v61  ;;  %6256 = vmatpush1.bf16.msra.mxu1 %v2908_v62  ;;  %v2946_v61 = vunpack.c.h.s8.bf16 %v1202_v34  ;;  %v2948_v62 = vunpack.c.h.s8.bf16 %v1204_v37  ;;  %v7053_v34 = vcombine.low %v9013_v63, %v9016_v17  ;;  %v9055_v37 = vld [vmem:[%s8055_s12 + $0xb8] sm:$0xff] }
 0x63e   : > { %4881 = vmatprep.subr.bf16.mxu0 %v2911_v44  ;;  %6257 = vmatprep.subr.bf16.mxu1 %v2913_v49  ;;  %v2951_v44 = vunpack.c.l.s8.bf16 %v1207_v38  ;;  %v2953_v49 = vunpack.c.l.s8.bf16 %v1209_v43 }
 0x641   : > { %4882 = vmatpush1.bf16.msra.mxu0 %v2910_v3  ;;  %6258 = vmatpush1.bf16.msra.mxu1 %v2912_v4  ;;  %v2950_v3 = vunpack.c.l.s8.bf16 %v1206_v1  ;;  %v2952_v4 = vunpack.c.l.s8.bf16 %v1208_v2 }
 0x642   : > { %4883 = vmatprep.subr.bf16.mxu0 %v2915_v50  ;;  %6259 = vmatprep.subr.bf16.mxu1 %v2917_v32  ;;  %v2955_v50 = vunpack.c.h.s8.bf16 %v1207_v38  ;;  %v2957_v32 = vunpack.c.h.s8.bf16 %v1209_v43  ;;  %v1227_v43 = vld [vmem:[%s8057_s24 + $0x1728] sm:$0xff] }
 0x645   : > { %4884 = vmatpush1.bf16.msra.mxu0 %v2914_v54  ;;  %6260 = vmatpush1.bf16.msra.mxu1 %v2916_v59  ;;  %v2954_v54 = vunpack.c.h.s8.bf16 %v1206_v1  ;;  %v2956_v59 = vunpack.c.h.s8.bf16 %v1208_v2  ;;  %v1226_v1 = vld [vmem:[%s8057_s24 + $0x1720] sm:$0xff]  ;;  %v1228_v2 = vld [vmem:[%s8057_s24 + $0x1730] sm:$0xff] }
 0x646   : > { %4896 = vmatprep.subr.bf16.mxu0 %v2919_v11  ;;  %6272 = vmatprep.subr.bf16.mxu1 %v2921_v12  ;;  %v2959_v11 = vunpack.c.l.s8.bf16 %v1211_v7  ;;  %v2961_v12 = vunpack.c.l.s8.bf16 %v1213_v8 }
 0x648   : > { %4886 = vmatmul.mubr.bf16.vlgmr.msra.gmra.mrb[0].mxu0 %v7051_v60  ;;  %6262 = vmatmul.mubr.bf16.vlgmr.msra.gmra.mrb[0].mxu1 %v7051_v60  ;;  %v2958_v60 = vunpack.c.l.s8.bf16 %v1210_v13  ;;  %v1230_v13 = vld [vmem:[%s8057_s24 + $0x1740] sm:$0xff] }
 0x649   : > { %4897 = vmatpush1.bf16.msra.mxu0 %v2918_v18  ;;  %6273 = vmatpush1.bf16.msra.mxu1 %v2920_v19  ;;  %v2960_v18 = vunpack.c.l.s8.bf16 %v1212_v14  ;;  %v2963_v19 = vunpack.c.h.s8.bf16 %v1211_v7  ;;  %v1231_v7 = vld [vmem:[%s8057_s24 + $0x1748] sm:$0xff] }
 0x64a   : > { %4898 = vmatprep.subr.bf16.mxu0 %v2923_v20  ;;  %6274 = vmatprep.subr.bf16.mxu1 %v2925_v0  ;;  %v2965_v20 = vunpack.c.h.s8.bf16 %v1213_v8  ;;  %v1215_v0 = vld [vmem:[%s8057_s24 + $0x16c8] sm:$0xff]  ;;  %v1233_v8 = vld [vmem:[%s8057_s24 + $0x1758] sm:$0xff] }
 0x64b   : > { %4928 = vmatprep.mubr.bf16.mxu0 %v7054_v24  ;;  %6304 = vmatprep.mubr.bf16.mxu1 %v7054_v24  ;;  %v2964_v24 = vunpack.c.h.s8.bf16 %v1212_v14  ;;  %v1232_v14 = vld [vmem:[%s8057_s24 + $0x1750] sm:$0xff] }
 0x64d   : > { %4899 = vmatpush1.bf16.msra.mxu0 %v2922_v25  ;;  %6275 = vmatpush1.bf16.msra.mxu1 %v2924_v45  ;;  %v2967_v25 = vunpack.c.l.s8.bf16 %v1215_v0  ;;  %v2969_v45 = vunpack.c.l.s8.bf16 %v1217_v5 }
 0x64e   : > { %4900 = vmatprep.subr.bf16.mxu0 %v2927_v6  ;;  %6276 = vmatprep.subr.bf16.mxu1 %v2929_v9  ;;  %v1214_v6 = vld [vmem:[%s8057_s24 + $0x16c0] sm:$0xff]  ;;  %v1216_v9 = vld [vmem:[%s8057_s24 + $0x16d0] sm:$0xff] }
 0x64f   : > { %v2966_v27 = vunpack.c.l.s8.bf16 %v1214_v6  ;;  %v2968_v28 = vunpack.c.l.s8.bf16 %v1216_v9  ;;  %v2970_v35 = vunpack.c.h.s8.bf16 %v1214_v6  ;;  %v2972_v36 = vunpack.c.h.s8.bf16 %v1216_v9  ;;  %v1234_v6 = vld [vmem:[%s8057_s24 + $0x1760] sm:$0xff]  ;;  %v1236_v9 = vld [vmem:[%s8057_s24 + $0x1770] sm:$0xff] }
 0x651   : > { %4901 = vmatpush1.bf16.msra.mxu0 %v2926_v29  ;;  %6277 = vmatpush1.bf16.msra.mxu1 %v2928_v30  ;;  %v2971_v29 = vunpack.c.h.s8.bf16 %v1215_v0  ;;  %v2973_v30 = vunpack.c.h.s8.bf16 %v1217_v5  ;;  %v1235_v0 = vld [vmem:[%s8057_s24 + $0x1768] sm:$0xff]  ;;  %v1237_v5 = vld [vmem:[%s8057_s24 + $0x1778] sm:$0xff] }
 0x652   : > { %4902 = vmatprep.subr.bf16.mxu0 %v2931_v10  ;;  %6278 = vmatprep.subr.bf16.mxu1 %v2933_v15  ;;  %v1219_v10 = vld [vmem:[%s8057_s24 + $0x16e8] sm:$0xff]  ;;  %v1221_v15 = vld [vmem:[%s8057_s24 + $0x16f8] sm:$0xff] }
 0x655   : > { %4903 = vmatpush1.bf16.msra.mxu0 %v2930_v16  ;;  %6279 = vmatpush1.bf16.msra.mxu1 %v2932_v21  ;;  %v2975_v16 = vunpack.c.l.s8.bf16 %v1219_v10  ;;  %v2977_v21 = vunpack.c.l.s8.bf16 %v1221_v15 }
 0x656   : > { %4904 = vmatprep.subr.bf16.mxu0 %v2935_v39  ;;  %6280 = vmatprep.subr.bf16.mxu1 %v2937_v40  ;;  %v1218_v39 = vld [vmem:[%s8057_s24 + $0x16e0] sm:$0xff]  ;;  %v1220_v40 = vld [vmem:[%s8057_s24 + $0x16f0] sm:$0xff] }
 0x657   : > { %v2974_v41 = vunpack.c.l.s8.bf16 %v1218_v39  ;;  %v2976_v42 = vunpack.c.l.s8.bf16 %v1220_v40  ;;  %v2978_v26 = vunpack.c.h.s8.bf16 %v1218_v39  ;;  %v2980_v33 = vunpack.c.h.s8.bf16 %v1220_v40  ;;  %v1238_v39 = vld [vmem:[%s8057_s24 + $0x1780] sm:$0xff]  ;;  %v1240_v40 = vld [vmem:[%s8057_s24 + $0x1790] sm:$0xff] }
 0x659   : > { %4905 = vmatpush1.bf16.msra.mxu0 %v2934_v22  ;;  %6281 = vmatpush1.bf16.msra.mxu1 %v2936_v46  ;;  %v2979_v22 = vunpack.c.h.s8.bf16 %v1219_v10  ;;  %v2981_v46 = vunpack.c.h.s8.bf16 %v1221_v15  ;;  %v1239_v10 = vld [vmem:[%s8057_s24 + $0x1788] sm:$0xff]  ;;  %v1241_v15 = vld [vmem:[%s8057_s24 + $0x1798] sm:$0xff] }
 0x65a   : > { %4906 = vmatprep.subr.bf16.mxu0 %v2939_v47  ;;  %6282 = vmatprep.subr.bf16.mxu1 %v2941_v48  ;;  %v1223_v47 = vld [vmem:[%s8057_s24 + $0x1708] sm:$0xff]  ;;  %v1225_v48 = vld [vmem:[%s8057_s24 + $0x1718] sm:$0xff] }
 0x65b   : > { %v2989_v38 = vunpack.c.h.s8.bf16 %v1225_v48 }
 0x65d   : > { %4907 = vmatpush1.bf16.msra.mxu0 %v2938_v51  ;;  %6283 = vmatpush1.bf16.msra.mxu1 %v2940_v52  ;;  %v2983_v51 = vunpack.c.l.s8.bf16 %v1223_v47  ;;  %v2985_v52 = vunpack.c.l.s8.bf16 %v1225_v48  ;;  %v1245_v48 = vld [vmem:[%s8057_s24 + $0x17b8] sm:$0xff] }
 0x65e   : > { %4908 = vmatprep.subr.bf16.mxu0 %v2943_v53  ;;  %6284 = vmatprep.subr.bf16.mxu1 %v2945_v31  ;;  %v1222_v53 = vld [vmem:[%s8057_s24 + $0x1700] sm:$0xff]  ;;  %v1224_v31 = vld [vmem:[%s8057_s24 + $0x1710] sm:$0xff] }
 0x65f   : > { %v2986_v63 = vunpack.c.h.s8.bf16 %v1222_v53  ;;  %v2988_v17 = vunpack.c.h.s8.bf16 %v1224_v31 }
 0x661   : > { %4909 = vmatpush1.bf16.msra.mxu0 %v2942_v55  ;;  %6285 = vmatpush1.bf16.msra.mxu1 %v2944_v56  ;;  %v9058_v55 = vld [vmem:[%s8055_s12 + $0x1b8] sm:$0xff]  ;;  %v2982_v56 = vunpack.c.l.s8.bf16 %v1222_v53  ;;  %v1242_v53 = vld [vmem:[%s8057_s24 + $0x17a0] sm:$0xff] }
 0x662   : > { %4910 = vmatprep.subr.bf16.mxu0 %v2947_v57  ;;  %6286 = vmatprep.subr.bf16.mxu1 %v2949_v58  ;;  %v2984_v57 = vunpack.c.l.s8.bf16 %v1224_v31  ;;  %v2987_v58 = vunpack.c.h.s8.bf16 %v1223_v47  ;;  %v1243_v47 = vld [vmem:[%s8057_s24 + $0x17a8] sm:$0xff]  ;;  %v1244_v31 = vld [vmem:[%s8057_s24 + $0x17b0] sm:$0xff] }
 0x665   : > { %4911 = vmatpush1.bf16.msra.mxu0 %v2946_v61  ;;  %6287 = vmatpush1.bf16.msra.mxu1 %v2948_v62  ;;  %v1229_v61 = vld [vmem:[%s8057_s24 + $0x1738] sm:$0xff]  ;;  %v7056_v62 = vcombine.high %v9055_v37, %v9058_v55 }
 0x666   : > { %4912 = vmatprep.subr.bf16.mxu0 %v2951_v44  ;;  %6288 = vmatprep.subr.bf16.mxu1 %v2953_v49  ;;  %v2991_v44 = vunpack.c.l.s8.bf16 %v1227_v43  ;;  %v2993_v49 = vunpack.c.l.s8.bf16 %v1229_v61 }
 0x669   : > { %4913 = vmatpush1.bf16.msra.mxu0 %v2950_v3  ;;  %6289 = vmatpush1.bf16.msra.mxu1 %v2952_v4  ;;  %v2990_v3 = vunpack.c.l.s8.bf16 %v1226_v1  ;;  %v2992_v4 = vunpack.c.l.s8.bf16 %v1228_v2 }
 0x66a   : > { %4914 = vmatprep.subr.bf16.mxu0 %v2955_v50  ;;  %6290 = vmatprep.subr.bf16.mxu1 %v2957_v32  ;;  %v2995_v50 = vunpack.c.h.s8.bf16 %v1227_v43  ;;  %v2997_v32 = vunpack.c.h.s8.bf16 %v1229_v61  ;;  %v1249_v43 = vld [vmem:[%s8057_s24 + $0x17d8] sm:$0xff]  ;;  %v3026_v61 = vunpack.c.h.s8.bf16 %v1242_v53 }
 0x66d   : > { %4915 = vmatpush1.bf16.msra.mxu0 %v2954_v54  ;;  %6291 = vmatpush1.bf16.msra.mxu1 %v2956_v59  ;;  %v2994_v54 = vunpack.c.h.s8.bf16 %v1226_v1  ;;  %v2996_v59 = vunpack.c.h.s8.bf16 %v1228_v2 }
 0x66e   : > { %4916 = vmatprep.subr.bf16.mxu0 %v2959_v11  ;;  %6292 = vmatprep.subr.bf16.mxu1 %v2961_v12  ;;  %v2999_v11 = vunpack.c.l.s8.bf16 %v1231_v7  ;;  %v3001_v12 = vunpack.c.l.s8.bf16 %v1233_v8 }
 0x671   : > { %4917 = vmatpush1.bf16.msra.mxu0 %v2958_v60  ;;  %6293 = vmatpush1.bf16.msra.mxu1 %v2960_v18  ;;  %v2998_v60 = vunpack.c.l.s8.bf16 %v1230_v13  ;;  %v3000_v18 = vunpack.c.l.s8.bf16 %v1232_v14 }
 0x672   : > { %4918 = vmatprep.subr.bf16.mxu0 %v2963_v19  ;;  %6294 = vmatprep.subr.bf16.mxu1 %v2965_v20  ;;  %v3003_v19 = vunpack.c.h.s8.bf16 %v1231_v7  ;;  %v3005_v20 = vunpack.c.h.s8.bf16 %v1233_v8 }
 0x675   : > { %4919 = vmatpush1.bf16.msra.mxu0 %v2962_v23  ;;  %6295 = vmatpush1.bf16.msra.mxu1 %v2964_v24  ;;  %v3002_v23 = vunpack.c.h.s8.bf16 %v1230_v13  ;;  %v3004_v24 = vunpack.c.h.s8.bf16 %v1232_v14 }
 0x676   : > { %4920 = vmatprep.subr.bf16.mxu0 %v2967_v25  ;;  %6296 = vmatprep.subr.bf16.mxu1 %v2969_v45  ;;  %v3007_v25 = vunpack.c.l.s8.bf16 %v1235_v0  ;;  %v3009_v45 = vunpack.c.l.s8.bf16 %v1237_v5 }
 0x679   : > { %4921 = vmatpush1.bf16.msra.mxu0 %v2966_v27  ;;  %6297 = vmatpush1.bf16.msra.mxu1 %v2968_v28  ;;  %v3006_v27 = vunpack.c.l.s8.bf16 %v1234_v6  ;;  %v3008_v28 = vunpack.c.l.s8.bf16 %v1236_v9 }
 0x67a   : > { %4922 = vmatprep.subr.bf16.mxu0 %v2971_v29  ;;  %6298 = vmatprep.subr.bf16.mxu1 %v2973_v30  ;;  %v3011_v29 = vunpack.c.h.s8.bf16 %v1235_v0  ;;  %v3013_v30 = vunpack.c.h.s8.bf16 %v1237_v5 }
 0x67d   : > { %4923 = vmatpush1.bf16.msra.mxu0 %v2970_v35  ;;  %6299 = vmatpush1.bf16.msra.mxu1 %v2972_v36  ;;  %v3010_v35 = vunpack.c.h.s8.bf16 %v1234_v6  ;;  %v3012_v36 = vunpack.c.h.s8.bf16 %v1236_v9  ;;  %v7055_v6 = vcombine.low %v9055_v37, %v9058_v55  ;;  %v9097_v9 = vld [vmem:[%s8055_s12 + $0xc0] sm:$0xff] }
 0x67e   : > { %4924 = vmatprep.subr.bf16.mxu0 %v2975_v16  ;;  %6300 = vmatprep.subr.bf16.mxu1 %v2977_v21  ;;  %v3015_v16 = vunpack.c.l.s8.bf16 %v1239_v10  ;;  %v3017_v21 = vunpack.c.l.s8.bf16 %v1241_v15 }
 0x681   : > { %4925 = vmatpush1.bf16.msra.mxu0 %v2974_v41  ;;  %6301 = vmatpush1.bf16.msra.mxu1 %v2976_v42  ;;  %v3014_v41 = vunpack.c.l.s8.bf16 %v1238_v39  ;;  %v3016_v42 = vunpack.c.l.s8.bf16 %v1240_v40 }
 0x682   : > { %4926 = vmatprep.subr.bf16.mxu0 %v2979_v22  ;;  %6302 = vmatprep.subr.bf16.mxu1 %v2981_v46  ;;  %v3019_v22 = vunpack.c.h.s8.bf16 %v1239_v10  ;;  %v3021_v46 = vunpack.c.h.s8.bf16 %v1241_v15  ;;  %v1259_v15 = vld [vmem:[%s8057_s24 + $0x1828] sm:$0xff] }
 0x685   : > { %4927 = vmatpush1.bf16.msra.mxu0 %v2978_v26  ;;  %6303 = vmatpush1.bf16.msra.mxu1 %v2980_v33  ;;  %v3018_v26 = vunpack.c.h.s8.bf16 %v1238_v39  ;;  %v3020_v33 = vunpack.c.h.s8.bf16 %v1240_v40  ;;  %v1258_v39 = vld [vmem:[%s8057_s24 + $0x1820] sm:$0xff]  ;;  %v1260_v40 = vld [vmem:[%s8057_s24 + $0x1830] sm:$0xff] }
 0x686   : > { %4939 = vmatprep.subr.bf16.mxu0 %v2983_v51  ;;  %6315 = vmatprep.subr.bf16.mxu1 %v2985_v52  ;;  %v3023_v51 = vunpack.c.l.s8.bf16 %v1243_v47  ;;  %v3025_v52 = vunpack.c.l.s8.bf16 %v1245_v48 }
 0x688   : > { %4929 = vmatmul.mubr.bf16.vlgmr.msra.gmra.mrb[0].mxu0 %v7053_v34  ;;  %6305 = vmatmul.mubr.bf16.vlgmr.msra.gmra.mrb[0].mxu1 %v7053_v34  ;;  %v3022_v34 = vunpack.c.l.s8.bf16 %v1242_v53  ;;  %v1262_v53 = vld [vmem:[%s8057_s24 + $0x1840] sm:$0xff] }
 0x689   : > { %4940 = vmatpush1.bf16.msra.mxu0 %v2982_v56  ;;  %6316 = vmatpush1.bf16.msra.mxu1 %v2984_v57  ;;  %v3024_v56 = vunpack.c.l.s8.bf16 %v1244_v31  ;;  %v3027_v57 = vunpack.c.h.s8.bf16 %v1243_v47  ;;  %v1263_v47 = vld [vmem:[%s8057_s24 + $0x1848] sm:$0xff] }
 0x68a   : > { %4941 = vmatprep.subr.bf16.mxu0 %v2987_v58  ;;  %6317 = vmatprep.subr.bf16.mxu1 %v2989_v38  ;;  %v3029_v58 = vunpack.c.h.s8.bf16 %v1245_v48  ;;  %v1247_v38 = vld [vmem:[%s8057_s24 + $0x17c8] sm:$0xff]  ;;  %v1265_v48 = vld [vmem:[%s8057_s24 + $0x1858] sm:$0xff] }
 0x68b   : > { %4971 = vmatprep.mubr.bf16.mxu0 %v7056_v62  ;;  %6347 = vmatprep.mubr.bf16.mxu1 %v7056_v62  ;;  %v3028_v62 = vunpack.c.h.s8.bf16 %v1244_v31  ;;  %v1264_v31 = vld [vmem:[%s8057_s24 + $0x1850] sm:$0xff] }
 0x68d   : > { %4942 = vmatpush1.bf16.msra.mxu0 %v2986_v63  ;;  %6318 = vmatpush1.bf16.msra.mxu1 %v2988_v17  ;;  %v3031_v63 = vunpack.c.l.s8.bf16 %v1247_v38  ;;  %v3033_v17 = vunpack.c.l.s8.bf16 %v1249_v43 }
 0x68e   : > { %4943 = vmatprep.subr.bf16.mxu0 %v2991_v44  ;;  %6319 = vmatprep.subr.bf16.mxu1 %v2993_v49  ;;  %v1246_v44 = vld [vmem:[%s8057_s24 + $0x17c0] sm:$0xff]  ;;  %v1248_v49 = vld [vmem:[%s8057_s24 + $0x17d0] sm:$0xff] }
 0x68f   : > { %v3030_v1 = vunpack.c.l.s8.bf16 %v1246_v44  ;;  %v3032_v2 = vunpack.c.l.s8.bf16 %v1248_v49  ;;  %v3034_v7 = vunpack.c.h.s8.bf16 %v1246_v44  ;;  %v3036_v8 = vunpack.c.h.s8.bf16 %v1248_v49  ;;  %v1266_v44 = vld [vmem:[%s8057_s24 + $0x1860] sm:$0xff]  ;;  %v1268_v49 = vld [vmem:[%s8057_s24 + $0x1870] sm:$0xff] }
 0x691   : > { %4944 = vmatpush1.bf16.msra.mxu0 %v2990_v3  ;;  %6320 = vmatpush1.bf16.msra.mxu1 %v2992_v4  ;;  %v3035_v3 = vunpack.c.h.s8.bf16 %v1247_v38  ;;  %v3037_v4 = vunpack.c.h.s8.bf16 %v1249_v43  ;;  %v1267_v38 = vld [vmem:[%s8057_s24 + $0x1868] sm:$0xff]  ;;  %v1269_v43 = vld [vmem:[%s8057_s24 + $0x1878] sm:$0xff] }
 0x692   : > { %4945 = vmatprep.subr.bf16.mxu0 %v2995_v50  ;;  %6321 = vmatprep.subr.bf16.mxu1 %v2997_v32  ;;  %v1251_v50 = vld [vmem:[%s8057_s24 + $0x17e8] sm:$0xff]  ;;  %v1253_v32 = vld [vmem:[%s8057_s24 + $0x17f8] sm:$0xff] }
 0x695   : > { %4946 = vmatpush1.bf16.msra.mxu0 %v2994_v54  ;;  %6322 = vmatpush1.bf16.msra.mxu1 %v2996_v59  ;;  %v3039_v54 = vunpack.c.l.s8.bf16 %v1251_v50  ;;  %v3041_v59 = vunpack.c.l.s8.bf16 %v1253_v32 }
 0x696   : > { %4947 = vmatprep.subr.bf16.mxu0 %v2999_v11  ;;  %6323 = vmatprep.subr.bf16.mxu1 %v3001_v12  ;;  %v1250_v11 = vld [vmem:[%s8057_s24 + $0x17e0] sm:$0xff]  ;;  %v1252_v12 = vld [vmem:[%s8057_s24 + $0x17f0] sm:$0xff] }
 0x697   : > { %v3038_v13 = vunpack.c.l.s8.bf16 %v1250_v11  ;;  %v3040_v14 = vunpack.c.l.s8.bf16 %v1252_v12  ;;  %v3042_v0 = vunpack.c.h.s8.bf16 %v1250_v11  ;;  %v3044_v5 = vunpack.c.h.s8.bf16 %v1252_v12  ;;  %v1270_v11 = vld [vmem:[%s8057_s24 + $0x1880] sm:$0xff]  ;;  %v1272_v12 = vld [vmem:[%s8057_s24 + $0x1890] sm:$0xff] }
 0x699   : > { %4948 = vmatpush1.bf16.msra.mxu0 %v2998_v60  ;;  %6324 = vmatpush1.bf16.msra.mxu1 %v3000_v18  ;;  %v3043_v60 = vunpack.c.h.s8.bf16 %v1251_v50  ;;  %v3045_v18 = vunpack.c.h.s8.bf16 %v1253_v32  ;;  %v1271_v50 = vld [vmem:[%s8057_s24 + $0x1888] sm:$0xff]  ;;  %v1273_v32 = vld [vmem:[%s8057_s24 + $0x1898] sm:$0xff] }
 0x69a   : > { %4949 = vmatprep.subr.bf16.mxu0 %v3003_v19  ;;  %6325 = vmatprep.subr.bf16.mxu1 %v3005_v20  ;;  %v1255_v19 = vld [vmem:[%s8057_s24 + $0x1808] sm:$0xff]  ;;  %v1257_v20 = vld [vmem:[%s8057_s24 + $0x1818] sm:$0xff] }
 0x69b   : > { %v3053_v10 = vunpack.c.h.s8.bf16 %v1257_v20 }
 0x69d   : > { %4950 = vmatpush1.bf16.msra.mxu0 %v3002_v23  ;;  %6326 = vmatpush1.bf16.msra.mxu1 %v3004_v24  ;;  %v3047_v23 = vunpack.c.l.s8.bf16 %v1255_v19  ;;  %v3049_v24 = vunpack.c.l.s8.bf16 %v1257_v20  ;;  %v1277_v20 = vld [vmem:[%s8057_s24 + $0x18b8] sm:$0xff] }
 0x69e   : > { %4951 = vmatprep.subr.bf16.mxu0 %v3007_v25  ;;  %6327 = vmatprep.subr.bf16.mxu1 %v3009_v45  ;;  %v1254_v25 = vld [vmem:[%s8057_s24 + $0x1800] sm:$0xff]  ;;  %v1256_v45 = vld [vmem:[%s8057_s24 + $0x1810] sm:$0xff] }
 0x69f   : > { %v3050_v37 = vunpack.c.h.s8.bf16 %v1254_v25  ;;  %v3052_v55 = vunpack.c.h.s8.bf16 %v1256_v45 }
 0x6a1   : > { %4952 = vmatpush1.bf16.msra.mxu0 %v3006_v27  ;;  %6328 = vmatpush1.bf16.msra.mxu1 %v3008_v28  ;;  %v9100_v27 = vld [vmem:[%s8055_s12 + $0x1c0] sm:$0xff]  ;;  %v3046_v28 = vunpack.c.l.s8.bf16 %v1254_v25 }
 0x6a2   : > { %4953 = vmatprep.subr.bf16.mxu0 %v3011_v29  ;;  %6329 = vmatprep.subr.bf16.mxu1 %v3013_v30  ;;  %v3048_v29 = vunpack.c.l.s8.bf16 %v1256_v45  ;;  %v3051_v30 = vunpack.c.h.s8.bf16 %v1255_v19  ;;  %v1275_v19 = vld [vmem:[%s8057_s24 + $0x18a8] sm:$0xff]  ;;  %v1274_v25 = vld [vmem:[%s8057_s24 + $0x18a0] sm:$0xff]  ;;  %v1276_v45 = vld [vmem:[%s8057_s24 + $0x18b0] sm:$0xff] }
 0x6a5   : > { %4954 = vmatpush1.bf16.msra.mxu0 %v3010_v35  ;;  %6330 = vmatpush1.bf16.msra.mxu1 %v3012_v36  ;;  %v1261_v35 = vld [vmem:[%s8057_s24 + $0x1838] sm:$0xff]  ;;  %v7058_v36 = vcombine.high %v9097_v9, %v9100_v27 }
 0x6a6   : > { %4955 = vmatprep.subr.bf16.mxu0 %v3015_v16  ;;  %6331 = vmatprep.subr.bf16.mxu1 %v3017_v21  ;;  %v3055_v16 = vunpack.c.l.s8.bf16 %v1259_v15  ;;  %v3057_v21 = vunpack.c.l.s8.bf16 %v1261_v35 }
 0x6a9   : > { %4956 = vmatpush1.bf16.msra.mxu0 %v3014_v41  ;;  %6332 = vmatpush1.bf16.msra.mxu1 %v3016_v42  ;;  %v3054_v41 = vunpack.c.l.s8.bf16 %v1258_v39  ;;  %v3056_v42 = vunpack.c.l.s8.bf16 %v1260_v40 }
 0x6aa   : > { %4957 = vmatprep.subr.bf16.mxu0 %v3019_v22  ;;  %6333 = vmatprep.subr.bf16.mxu1 %v3021_v46  ;;  %v3059_v22 = vunpack.c.h.s8.bf16 %v1259_v15  ;;  %v3061_v46 = vunpack.c.h.s8.bf16 %v1261_v35  ;;  %v1281_v15 = vld [vmem:[%s8057_s24 + $0x18d8] sm:$0xff]  ;;  %v3090_v35 = vunpack.c.h.s8.bf16 %v1274_v25 }
 0x6ad   : > { %4958 = vmatpush1.bf16.msra.mxu0 %v3018_v26  ;;  %6334 = vmatpush1.bf16.msra.mxu1 %v3020_v33  ;;  %v3058_v26 = vunpack.c.h.s8.bf16 %v1258_v39  ;;  %v3060_v33 = vunpack.c.h.s8.bf16 %v1260_v40 }
 0x6ae   : > { %4959 = vmatprep.subr.bf16.mxu0 %v3023_v51  ;;  %6335 = vmatprep.subr.bf16.mxu1 %v3025_v52  ;;  %v3063_v51 = vunpack.c.l.s8.bf16 %v1263_v47  ;;  %v3065_v52 = vunpack.c.l.s8.bf16 %v1265_v48 }
 0x6b1   : > { %4960 = vmatpush1.bf16.msra.mxu0 %v3022_v34  ;;  %6336 = vmatpush1.bf16.msra.mxu1 %v3024_v56  ;;  %v3062_v34 = vunpack.c.l.s8.bf16 %v1262_v53  ;;  %v3064_v56 = vunpack.c.l.s8.bf16 %v1264_v31 }
 0x6b2   : > { %4961 = vmatprep.subr.bf16.mxu0 %v3027_v57  ;;  %6337 = vmatprep.subr.bf16.mxu1 %v3029_v58  ;;  %v3067_v57 = vunpack.c.h.s8.bf16 %v1263_v47  ;;  %v3069_v58 = vunpack.c.h.s8.bf16 %v1265_v48 }
 0x6b5   : > { %4962 = vmatpush1.bf16.msra.mxu0 %v3026_v61  ;;  %6338 = vmatpush1.bf16.msra.mxu1 %v3028_v62  ;;  %v3066_v61 = vunpack.c.h.s8.bf16 %v1262_v53  ;;  %v3068_v62 = vunpack.c.h.s8.bf16 %v1264_v31 }
 0x6b6   : > { %4963 = vmatprep.subr.bf16.mxu0 %v3031_v63  ;;  %6339 = vmatprep.subr.bf16.mxu1 %v3033_v17  ;;  %v3071_v63 = vunpack.c.l.s8.bf16 %v1267_v38  ;;  %v3073_v17 = vunpack.c.l.s8.bf16 %v1269_v43 }
 0x6b9   : > { %4964 = vmatpush1.bf16.msra.mxu0 %v3030_v1  ;;  %6340 = vmatpush1.bf16.msra.mxu1 %v3032_v2  ;;  %v3070_v1 = vunpack.c.l.s8.bf16 %v1266_v44  ;;  %v3072_v2 = vunpack.c.l.s8.bf16 %v1268_v49 }
 0x6ba   : > { %4965 = vmatprep.subr.bf16.mxu0 %v3035_v3  ;;  %6341 = vmatprep.subr.bf16.mxu1 %v3037_v4  ;;  %v3075_v3 = vunpack.c.h.s8.bf16 %v1267_v38  ;;  %v3077_v4 = vunpack.c.h.s8.bf16 %v1269_v43 }
 0x6bd   : > { %4966 = vmatpush1.bf16.msra.mxu0 %v3034_v7  ;;  %6342 = vmatpush1.bf16.msra.mxu1 %v3036_v8  ;;  %v3074_v7 = vunpack.c.h.s8.bf16 %v1266_v44  ;;  %v3076_v8 = vunpack.c.h.s8.bf16 %v1268_v49  ;;  %v7057_v44 = vcombine.low %v9097_v9, %v9100_v27  ;;  %v9139_v49 = vld [vmem:[%s8055_s12 + $0xc8] sm:$0xff] }
 0x6be   : > { %4967 = vmatprep.subr.bf16.mxu0 %v3039_v54  ;;  %6343 = vmatprep.subr.bf16.mxu1 %v3041_v59  ;;  %v3079_v54 = vunpack.c.l.s8.bf16 %v1271_v50  ;;  %v3081_v59 = vunpack.c.l.s8.bf16 %v1273_v32 }
 0x6c1   : > { %4968 = vmatpush1.bf16.msra.mxu0 %v3038_v13  ;;  %6344 = vmatpush1.bf16.msra.mxu1 %v3040_v14  ;;  %v3078_v13 = vunpack.c.l.s8.bf16 %v1270_v11  ;;  %v3080_v14 = vunpack.c.l.s8.bf16 %v1272_v12 }
 0x6c2   : > { %4969 = vmatprep.subr.bf16.mxu0 %v3043_v60  ;;  %6345 = vmatprep.subr.bf16.mxu1 %v3045_v18  ;;  %v3083_v60 = vunpack.c.h.s8.bf16 %v1271_v50  ;;  %v3085_v18 = vunpack.c.h.s8.bf16 %v1273_v32  ;;  %v1291_v32 = vld [vmem:[%s8057_s24 + $0x1928] sm:$0xff] }
 0x6c5   : > { %4970 = vmatpush1.bf16.msra.mxu0 %v3042_v0  ;;  %6346 = vmatpush1.bf16.msra.mxu1 %v3044_v5  ;;  %v3082_v0 = vunpack.c.h.s8.bf16 %v1270_v11  ;;  %v3084_v5 = vunpack.c.h.s8.bf16 %v1272_v12  ;;  %v1290_v11 = vld [vmem:[%s8057_s24 + $0x1920] sm:$0xff]  ;;  %v1292_v12 = vld [vmem:[%s8057_s24 + $0x1930] sm:$0xff] }
 0x6c6   : > { %4982 = vmatprep.subr.bf16.mxu0 %v3047_v23  ;;  %6358 = vmatprep.subr.bf16.mxu1 %v3049_v24  ;;  %v3087_v23 = vunpack.c.l.s8.bf16 %v1275_v19  ;;  %v3089_v24 = vunpack.c.l.s8.bf16 %v1277_v20 }
 0x6c8   : > { %4972 = vmatmul.mubr.bf16.vlgmr.msra.gmra.mrb[0].mxu0 %v7055_v6  ;;  %6348 = vmatmul.mubr.bf16.vlgmr.msra.gmra.mrb[0].mxu1 %v7055_v6  ;;  %v3086_v6 = vunpack.c.l.s8.bf16 %v1274_v25  ;;  %v1294_v25 = vld [vmem:[%s8057_s24 + $0x1940] sm:$0xff] }
 0x6c9   : > { %4983 = vmatpush1.bf16.msra.mxu0 %v3046_v28  ;;  %6359 = vmatpush1.bf16.msra.mxu1 %v3048_v29  ;;  %v3088_v28 = vunpack.c.l.s8.bf16 %v1276_v45  ;;  %v3091_v29 = vunpack.c.h.s8.bf16 %v1275_v19  ;;  %v1295_v19 = vld [vmem:[%s8057_s24 + $0x1948] sm:$0xff] }
 0x6ca   : > { %4984 = vmatprep.subr.bf16.mxu0 %v3051_v30  ;;  %6360 = vmatprep.subr.bf16.mxu1 %v3053_v10  ;;  %v3093_v30 = vunpack.c.h.s8.bf16 %v1277_v20  ;;  %v1279_v10 = vld [vmem:[%s8057_s24 + $0x18c8] sm:$0xff]  ;;  %v1297_v20 = vld [vmem:[%s8057_s24 + $0x1958] sm:$0xff] }
 0x6cb   : > { %5014 = vmatprep.mubr.bf16.mxu0 %v7058_v36  ;;  %6390 = vmatprep.mubr.bf16.mxu1 %v7058_v36  ;;  %v3092_v36 = vunpack.c.h.s8.bf16 %v1276_v45  ;;  %v1296_v45 = vld [vmem:[%s8057_s24 + $0x1950] sm:$0xff] }
 0x6cd   : > { %4985 = vmatpush1.bf16.msra.mxu0 %v3050_v37  ;;  %6361 = vmatpush1.bf16.msra.mxu1 %v3052_v55  ;;  %v3095_v37 = vunpack.c.l.s8.bf16 %v1279_v10  ;;  %v3097_v55 = vunpack.c.l.s8.bf16 %v1281_v15 }
 0x6ce   : > { %4986 = vmatprep.subr.bf16.mxu0 %v3055_v16  ;;  %6362 = vmatprep.subr.bf16.mxu1 %v3057_v21  ;;  %v1278_v16 = vld [vmem:[%s8057_s24 + $0x18c0] sm:$0xff]  ;;  %v1280_v21 = vld [vmem:[%s8057_s24 + $0x18d0] sm:$0xff] }
 0x6cf   : > { %v3094_v39 = vunpack.c.l.s8.bf16 %v1278_v16  ;;  %v3096_v40 = vunpack.c.l.s8.bf16 %v1280_v21  ;;  %v3098_v47 = vunpack.c.h.s8.bf16 %v1278_v16  ;;  %v3100_v48 = vunpack.c.h.s8.bf16 %v1280_v21  ;;  %v1298_v16 = vld [vmem:[%s8057_s24 + $0x1960] sm:$0xff]  ;;  %v1300_v21 = vld [vmem:[%s8057_s24 + $0x1970] sm:$0xff] }
 0x6d1   : > { %4987 = vmatpush1.bf16.msra.mxu0 %v3054_v41  ;;  %6363 = vmatpush1.bf16.msra.mxu1 %v3056_v42  ;;  %v3099_v41 = vunpack.c.h.s8.bf16 %v1279_v10  ;;  %v3101_v42 = vunpack.c.h.s8.bf16 %v1281_v15  ;;  %v1299_v10 = vld [vmem:[%s8057_s24 + $0x1968] sm:$0xff]  ;;  %v1301_v15 = vld [vmem:[%s8057_s24 + $0x1978] sm:$0xff] }
 0x6d2   : > { %4988 = vmatprep.subr.bf16.mxu0 %v3059_v22  ;;  %6364 = vmatprep.subr.bf16.mxu1 %v3061_v46  ;;  %v1283_v22 = vld [vmem:[%s8057_s24 + $0x18e8] sm:$0xff]  ;;  %v1285_v46 = vld [vmem:[%s8057_s24 + $0x18f8] sm:$0xff] }
 0x6d5   : > { %4989 = vmatpush1.bf16.msra.mxu0 %v3058_v26  ;;  %6365 = vmatpush1.bf16.msra.mxu1 %v3060_v33  ;;  %v3103_v26 = vunpack.c.l.s8.bf16 %v1283_v22  ;;  %v3105_v33 = vunpack.c.l.s8.bf16 %v1285_v46 }
 0x6d6   : > { %4990 = vmatprep.subr.bf16.mxu0 %v3063_v51  ;;  %6366 = vmatprep.subr.bf16.mxu1 %v3065_v52  ;;  %v1282_v51 = vld [vmem:[%s8057_s24 + $0x18e0] sm:$0xff]  ;;  %v1284_v52 = vld [vmem:[%s8057_s24 + $0x18f0] sm:$0xff] }
 0x6d7   : > { %v3102_v53 = vunpack.c.l.s8.bf16 %v1282_v51  ;;  %v3104_v31 = vunpack.c.l.s8.bf16 %v1284_v52  ;;  %v3106_v38 = vunpack.c.h.s8.bf16 %v1282_v51  ;;  %v3108_v43 = vunpack.c.h.s8.bf16 %v1284_v52  ;;  %v1302_v51 = vld [vmem:[%s8057_s24 + $0x1980] sm:$0xff]  ;;  %v1304_v52 = vld [vmem:[%s8057_s24 + $0x1990] sm:$0xff] }
 0x6d9   : > { %4991 = vmatpush1.bf16.msra.mxu0 %v3062_v34  ;;  %6367 = vmatpush1.bf16.msra.mxu1 %v3064_v56  ;;  %v3107_v34 = vunpack.c.h.s8.bf16 %v1283_v22  ;;  %v3109_v56 = vunpack.c.h.s8.bf16 %v1285_v46  ;;  %v1303_v22 = vld [vmem:[%s8057_s24 + $0x1988] sm:$0xff]  ;;  %v1305_v46 = vld [vmem:[%s8057_s24 + $0x1998] sm:$0xff] }
 0x6da   : > { %4992 = vmatprep.subr.bf16.mxu0 %v3067_v57  ;;  %6368 = vmatprep.subr.bf16.mxu1 %v3069_v58  ;;  %v1287_v57 = vld [vmem:[%s8057_s24 + $0x1908] sm:$0xff]  ;;  %v1289_v58 = vld [vmem:[%s8057_s24 + $0x1918] sm:$0xff] }
 0x6db   : > { %v3117_v50 = vunpack.c.h.s8.bf16 %v1289_v58 }
 0x6dd   : > { %4993 = vmatpush1.bf16.msra.mxu0 %v3066_v61  ;;  %6369 = vmatpush1.bf16.msra.mxu1 %v3068_v62  ;;  %v3111_v61 = vunpack.c.l.s8.bf16 %v1287_v57  ;;  %v3113_v62 = vunpack.c.l.s8.bf16 %v1289_v58  ;;  %v1309_v58 = vld [vmem:[%s8057_s24 + $0x19b8] sm:$0xff] }
 0x6de   : > { %4994 = vmatprep.subr.bf16.mxu0 %v3071_v63  ;;  %6370 = vmatprep.subr.bf16.mxu1 %v3073_v17  ;;  %v1286_v63 = vld [vmem:[%s8057_s24 + $0x1900] sm:$0xff]  ;;  %v1288_v17 = vld [vmem:[%s8057_s24 + $0x1910] sm:$0xff] }
 0x6df   : > { %v3114_v9 = vunpack.c.h.s8.bf16 %v1286_v63  ;;  %v3116_v27 = vunpack.c.h.s8.bf16 %v1288_v17 }
 0x6e1   : > { %4995 = vmatpush1.bf16.msra.mxu0 %v3070_v1  ;;  %6371 = vmatpush1.bf16.msra.mxu1 %v3072_v2  ;;  %v9142_v1 = vld [vmem:[%s8055_s12 + $0x1c8] sm:$0xff]  ;;  %v3110_v2 = vunpack.c.l.s8.bf16 %v1286_v63  ;;  %v1306_v63 = vld [vmem:[%s8057_s24 + $0x19a0] sm:$0xff] }
 0x6e2   : > { %4996 = vmatprep.subr.bf16.mxu0 %v3075_v3  ;;  %6372 = vmatprep.subr.bf16.mxu1 %v3077_v4  ;;  %v3112_v3 = vunpack.c.l.s8.bf16 %v1288_v17  ;;  %v3115_v4 = vunpack.c.h.s8.bf16 %v1287_v57  ;;  %v1307_v57 = vld [vmem:[%s8057_s24 + $0x19a8] sm:$0xff]  ;;  %v1308_v17 = vld [vmem:[%s8057_s24 + $0x19b0] sm:$0xff] }
 0x6e5   : > { %4997 = vmatpush1.bf16.msra.mxu0 %v3074_v7  ;;  %6373 = vmatpush1.bf16.msra.mxu1 %v3076_v8  ;;  %v1293_v7 = vld [vmem:[%s8057_s24 + $0x1938] sm:$0xff]  ;;  %v7060_v8 = vcombine.high %v9139_v49, %v9142_v1 }
 0x6e6   : > { %4998 = vmatprep.subr.bf16.mxu0 %v3079_v54  ;;  %6374 = vmatprep.subr.bf16.mxu1 %v3081_v59  ;;  %v3119_v54 = vunpack.c.l.s8.bf16 %v1291_v32  ;;  %v3121_v59 = vunpack.c.l.s8.bf16 %v1293_v7 }
 0x6e9   : > { %4999 = vmatpush1.bf16.msra.mxu0 %v3078_v13  ;;  %6375 = vmatpush1.bf16.msra.mxu1 %v3080_v14  ;;  %v3118_v13 = vunpack.c.l.s8.bf16 %v1290_v11  ;;  %v3120_v14 = vunpack.c.l.s8.bf16 %v1292_v12 }
 0x6ea   : > { %5000 = vmatprep.subr.bf16.mxu0 %v3083_v60  ;;  %6376 = vmatprep.subr.bf16.mxu1 %v3085_v18  ;;  %v3123_v60 = vunpack.c.h.s8.bf16 %v1291_v32  ;;  %v3125_v18 = vunpack.c.h.s8.bf16 %v1293_v7  ;;  %v1313_v32 = vld [vmem:[%s8057_s24 + $0x19d8] sm:$0xff]  ;;  %v3154_v7 = vunpack.c.h.s8.bf16 %v1306_v63 }
 0x6ed   : > { %5001 = vmatpush1.bf16.msra.mxu0 %v3082_v0  ;;  %6377 = vmatpush1.bf16.msra.mxu1 %v3084_v5  ;;  %v3122_v0 = vunpack.c.h.s8.bf16 %v1290_v11  ;;  %v3124_v5 = vunpack.c.h.s8.bf16 %v1292_v12 }
 0x6ee   : > { %5002 = vmatprep.subr.bf16.mxu0 %v3087_v23  ;;  %6378 = vmatprep.subr.bf16.mxu1 %v3089_v24  ;;  %v3127_v23 = vunpack.c.l.s8.bf16 %v1295_v19  ;;  %v3129_v24 = vunpack.c.l.s8.bf16 %v1297_v20 }
 0x6f1   : > { %5003 = vmatpush1.bf16.msra.mxu0 %v3086_v6  ;;  %6379 = vmatpush1.bf16.msra.mxu1 %v3088_v28  ;;  %v3126_v6 = vunpack.c.l.s8.bf16 %v1294_v25  ;;  %v3128_v28 = vunpack.c.l.s8.bf16 %v1296_v45 }
 0x6f2   : > { %5004 = vmatprep.subr.bf16.mxu0 %v3091_v29  ;;  %6380 = vmatprep.subr.bf16.mxu1 %v3093_v30  ;;  %v3131_v29 = vunpack.c.h.s8.bf16 %v1295_v19  ;;  %v3133_v30 = vunpack.c.h.s8.bf16 %v1297_v20 }
 0x6f5   : > { %5005 = vmatpush1.bf16.msra.mxu0 %v3090_v35  ;;  %6381 = vmatpush1.bf16.msra.mxu1 %v3092_v36  ;;  %v3130_v35 = vunpack.c.h.s8.bf16 %v1294_v25  ;;  %v3132_v36 = vunpack.c.h.s8.bf16 %v1296_v45 }
 0x6f6   : > { %5006 = vmatprep.subr.bf16.mxu0 %v3095_v37  ;;  %6382 = vmatprep.subr.bf16.mxu1 %v3097_v55  ;;  %v3135_v37 = vunpack.c.l.s8.bf16 %v1299_v10  ;;  %v3137_v55 = vunpack.c.l.s8.bf16 %v1301_v15 }
 0x6f9   : > { %5007 = vmatpush1.bf16.msra.mxu0 %v3094_v39  ;;  %6383 = vmatpush1.bf16.msra.mxu1 %v3096_v40  ;;  %v3134_v39 = vunpack.c.l.s8.bf16 %v1298_v16  ;;  %v3136_v40 = vunpack.c.l.s8.bf16 %v1300_v21 }
 0x6fa   : > { %5008 = vmatprep.subr.bf16.mxu0 %v3099_v41  ;;  %6384 = vmatprep.subr.bf16.mxu1 %v3101_v42  ;;  %v3139_v41 = vunpack.c.h.s8.bf16 %v1299_v10  ;;  %v3141_v42 = vunpack.c.h.s8.bf16 %v1301_v15 }
 0x6fd   : > { %5009 = vmatpush1.bf16.msra.mxu0 %v3098_v47  ;;  %6385 = vmatpush1.bf16.msra.mxu1 %v3100_v48  ;;  %v3138_v47 = vunpack.c.h.s8.bf16 %v1298_v16  ;;  %v3140_v48 = vunpack.c.h.s8.bf16 %v1300_v21  ;;  %v7059_v16 = vcombine.low %v9139_v49, %v9142_v1  ;;  %v9181_v21 = vld [vmem:[%s8055_s12 + $0xd0] sm:$0xff] }
 0x6fe   : > { %5010 = vmatprep.subr.bf16.mxu0 %v3103_v26  ;;  %6386 = vmatprep.subr.bf16.mxu1 %v3105_v33  ;;  %v3143_v26 = vunpack.c.l.s8.bf16 %v1303_v22  ;;  %v3145_v33 = vunpack.c.l.s8.bf16 %v1305_v46 }
 0x701   : > { %5011 = vmatpush1.bf16.msra.mxu0 %v3102_v53  ;;  %6387 = vmatpush1.bf16.msra.mxu1 %v3104_v31  ;;  %v3142_v53 = vunpack.c.l.s8.bf16 %v1302_v51  ;;  %v3144_v31 = vunpack.c.l.s8.bf16 %v1304_v52 }
 0x702   : > { %5012 = vmatprep.subr.bf16.mxu0 %v3107_v34  ;;  %6388 = vmatprep.subr.bf16.mxu1 %v3109_v56  ;;  %v3147_v34 = vunpack.c.h.s8.bf16 %v1303_v22  ;;  %v3149_v56 = vunpack.c.h.s8.bf16 %v1305_v46  ;;  %v1323_v46 = vld [vmem:[%s8057_s24 + $0x1a28] sm:$0xff] }
 0x705   : > { %5013 = vmatpush1.bf16.msra.mxu0 %v3106_v38  ;;  %6389 = vmatpush1.bf16.msra.mxu1 %v3108_v43  ;;  %v3146_v38 = vunpack.c.h.s8.bf16 %v1302_v51  ;;  %v3148_v43 = vunpack.c.h.s8.bf16 %v1304_v52  ;;  %v1322_v51 = vld [vmem:[%s8057_s24 + $0x1a20] sm:$0xff]  ;;  %v1324_v52 = vld [vmem:[%s8057_s24 + $0x1a30] sm:$0xff] }
 0x706   : > { %5025 = vmatprep.subr.bf16.mxu0 %v3111_v61  ;;  %6401 = vmatprep.subr.bf16.mxu1 %v3113_v62  ;;  %v3151_v61 = vunpack.c.l.s8.bf16 %v1307_v57  ;;  %v3153_v62 = vunpack.c.l.s8.bf16 %v1309_v58 }
 0x708   : > { %5015 = vmatmul.mubr.bf16.vlgmr.msra.gmra.mrb[0].mxu0 %v7057_v44  ;;  %6391 = vmatmul.mubr.bf16.vlgmr.msra.gmra.mrb[0].mxu1 %v7057_v44  ;;  %v3150_v44 = vunpack.c.l.s8.bf16 %v1306_v63  ;;  %v1326_v63 = vld [vmem:[%s8057_s24 + $0x1a40] sm:$0xff] }
 0x709   : > { %5026 = vmatpush1.bf16.msra.mxu0 %v3110_v2  ;;  %6402 = vmatpush1.bf16.msra.mxu1 %v3112_v3  ;;  %v3152_v2 = vunpack.c.l.s8.bf16 %v1308_v17  ;;  %v3155_v3 = vunpack.c.h.s8.bf16 %v1307_v57  ;;  %v1327_v57 = vld [vmem:[%s8057_s24 + $0x1a48] sm:$0xff] }
 0x70a   : > { %5027 = vmatprep.subr.bf16.mxu0 %v3115_v4  ;;  %6403 = vmatprep.subr.bf16.mxu1 %v3117_v50  ;;  %v3157_v4 = vunpack.c.h.s8.bf16 %v1309_v58  ;;  %v1311_v50 = vld [vmem:[%s8057_s24 + $0x19c8] sm:$0xff]  ;;  %v1329_v58 = vld [vmem:[%s8057_s24 + $0x1a58] sm:$0xff] }
 0x70b   : > { %5057 = vmatprep.mubr.bf16.mxu0 %v7060_v8  ;;  %6433 = vmatprep.mubr.bf16.mxu1 %v7060_v8  ;;  %v3156_v8 = vunpack.c.h.s8.bf16 %v1308_v17  ;;  %v1328_v17 = vld [vmem:[%s8057_s24 + $0x1a50] sm:$0xff] }
 0x70d   : > { %5028 = vmatpush1.bf16.msra.mxu0 %v3114_v9  ;;  %6404 = vmatpush1.bf16.msra.mxu1 %v3116_v27  ;;  %v3159_v9 = vunpack.c.l.s8.bf16 %v1311_v50  ;;  %v3161_v27 = vunpack.c.l.s8.bf16 %v1313_v32 }
 0x70e   : > { %5029 = vmatprep.subr.bf16.mxu0 %v3119_v54  ;;  %6405 = vmatprep.subr.bf16.mxu1 %v3121_v59  ;;  %v1310_v54 = vld [vmem:[%s8057_s24 + $0x19c0] sm:$0xff]  ;;  %v1312_v59 = vld [vmem:[%s8057_s24 + $0x19d0] sm:$0xff] }
 0x70f   : > { %v3158_v11 = vunpack.c.l.s8.bf16 %v1310_v54  ;;  %v3160_v12 = vunpack.c.l.s8.bf16 %v1312_v59  ;;  %v3162_v19 = vunpack.c.h.s8.bf16 %v1310_v54  ;;  %v3164_v20 = vunpack.c.h.s8.bf16 %v1312_v59  ;;  %v1330_v54 = vld [vmem:[%s8057_s24 + $0x1a60] sm:$0xff]  ;;  %v1332_v59 = vld [vmem:[%s8057_s24 + $0x1a70] sm:$0xff] }
 0x711   : > { %5030 = vmatpush1.bf16.msra.mxu0 %v3118_v13  ;;  %6406 = vmatpush1.bf16.msra.mxu1 %v3120_v14  ;;  %v3163_v13 = vunpack.c.h.s8.bf16 %v1311_v50  ;;  %v3165_v14 = vunpack.c.h.s8.bf16 %v1313_v32  ;;  %v1331_v50 = vld [vmem:[%s8057_s24 + $0x1a68] sm:$0xff]  ;;  %v1333_v32 = vld [vmem:[%s8057_s24 + $0x1a78] sm:$0xff] }
 0x712   : > { %5031 = vmatprep.subr.bf16.mxu0 %v3123_v60  ;;  %6407 = vmatprep.subr.bf16.mxu1 %v3125_v18  ;;  %v1315_v60 = vld [vmem:[%s8057_s24 + $0x19e8] sm:$0xff]  ;;  %v1317_v18 = vld [vmem:[%s8057_s24 + $0x19f8] sm:$0xff] }
 0x715   : > { %5032 = vmatpush1.bf16.msra.mxu0 %v3122_v0  ;;  %6408 = vmatpush1.bf16.msra.mxu1 %v3124_v5  ;;  %v3167_v0 = vunpack.c.l.s8.bf16 %v1315_v60  ;;  %v3169_v5 = vunpack.c.l.s8.bf16 %v1317_v18 }
 0x716   : > { %5033 = vmatprep.subr.bf16.mxu0 %v3127_v23  ;;  %6409 = vmatprep.subr.bf16.mxu1 %v3129_v24  ;;  %v1314_v23 = vld [vmem:[%s8057_s24 + $0x19e0] sm:$0xff]  ;;  %v1316_v24 = vld [vmem:[%s8057_s24 + $0x19f0] sm:$0xff] }
 0x717   : > { %v3166_v25 = vunpack.c.l.s8.bf16 %v1314_v23  ;;  %v3168_v45 = vunpack.c.l.s8.bf16 %v1316_v24  ;;  %v3170_v10 = vunpack.c.h.s8.bf16 %v1314_v23  ;;  %v3172_v15 = vunpack.c.h.s8.bf16 %v1316_v24  ;;  %v1334_v23 = vld [vmem:[%s8057_s24 + $0x1a80] sm:$0xff]  ;;  %v1336_v24 = vld [vmem:[%s8057_s24 + $0x1a90] sm:$0xff] }
 0x719   : > { %5034 = vmatpush1.bf16.msra.mxu0 %v3126_v6  ;;  %6410 = vmatpush1.bf16.msra.mxu1 %v3128_v28  ;;  %v3171_v6 = vunpack.c.h.s8.bf16 %v1315_v60  ;;  %v3173_v28 = vunpack.c.h.s8.bf16 %v1317_v18  ;;  %v1335_v60 = vld [vmem:[%s8057_s24 + $0x1a88] sm:$0xff]  ;;  %v1337_v18 = vld [vmem:[%s8057_s24 + $0x1a98] sm:$0xff] }
 0x71a   : > { %5035 = vmatprep.subr.bf16.mxu0 %v3131_v29  ;;  %6411 = vmatprep.subr.bf16.mxu1 %v3133_v30  ;;  %v1319_v29 = vld [vmem:[%s8057_s24 + $0x1a08] sm:$0xff]  ;;  %v1321_v30 = vld [vmem:[%s8057_s24 + $0x1a18] sm:$0xff] }
 0x71b   : > { %v3181_v22 = vunpack.c.h.s8.bf16 %v1321_v30 }
 0x71d   : > { %5036 = vmatpush1.bf16.msra.mxu0 %v3130_v35  ;;  %6412 = vmatpush1.bf16.msra.mxu1 %v3132_v36  ;;  %v3175_v35 = vunpack.c.l.s8.bf16 %v1319_v29  ;;  %v3177_v36 = vunpack.c.l.s8.bf16 %v1321_v30  ;;  %v1341_v30 = vld [vmem:[%s8057_s24 + $0x1ab8] sm:$0xff] }
 0x71e   : > { %5037 = vmatprep.subr.bf16.mxu0 %v3135_v37  ;;  %6413 = vmatprep.subr.bf16.mxu1 %v3137_v55  ;;  %v1318_v37 = vld [vmem:[%s8057_s24 + $0x1a00] sm:$0xff]  ;;  %v1320_v55 = vld [vmem:[%s8057_s24 + $0x1a10] sm:$0xff] }
 0x71f   : > { %v3178_v49 = vunpack.c.h.s8.bf16 %v1318_v37  ;;  %v3180_v1 = vunpack.c.h.s8.bf16 %v1320_v55 }
 0x721   : > { %5038 = vmatpush1.bf16.msra.mxu0 %v3134_v39  ;;  %6414 = vmatpush1.bf16.msra.mxu1 %v3136_v40  ;;  %v9184_v39 = vld [vmem:[%s8055_s12 + $0x1d0] sm:$0xff]  ;;  %v3174_v40 = vunpack.c.l.s8.bf16 %v1318_v37  ;;  %v1338_v37 = vld [vmem:[%s8057_s24 + $0x1aa0] sm:$0xff] }
 0x722   : > { %5039 = vmatprep.subr.bf16.mxu0 %v3139_v41  ;;  %6415 = vmatprep.subr.bf16.mxu1 %v3141_v42  ;;  %v3176_v41 = vunpack.c.l.s8.bf16 %v1320_v55  ;;  %v3179_v42 = vunpack.c.h.s8.bf16 %v1319_v29  ;;  %v1339_v29 = vld [vmem:[%s8057_s24 + $0x1aa8] sm:$0xff]  ;;  %v1340_v55 = vld [vmem:[%s8057_s24 + $0x1ab0] sm:$0xff] }
 0x725   : > { %5040 = vmatpush1.bf16.msra.mxu0 %v3138_v47  ;;  %6416 = vmatpush1.bf16.msra.mxu1 %v3140_v48  ;;  %v1325_v47 = vld [vmem:[%s8057_s24 + $0x1a38] sm:$0xff]  ;;  %v7062_v48 = vcombine.high %v9181_v21, %v9184_v39 }
 0x726   : > { %5041 = vmatprep.subr.bf16.mxu0 %v3143_v26  ;;  %6417 = vmatprep.subr.bf16.mxu1 %v3145_v33  ;;  %v3183_v26 = vunpack.c.l.s8.bf16 %v1323_v46  ;;  %v3185_v33 = vunpack.c.l.s8.bf16 %v1325_v47 }
 0x729   : > { %5042 = vmatpush1.bf16.msra.mxu0 %v3142_v53  ;;  %6418 = vmatpush1.bf16.msra.mxu1 %v3144_v31  ;;  %v3182_v53 = vunpack.c.l.s8.bf16 %v1322_v51  ;;  %v3184_v31 = vunpack.c.l.s8.bf16 %v1324_v52 }
 0x72a   : > { %5043 = vmatprep.subr.bf16.mxu0 %v3147_v34  ;;  %6419 = vmatprep.subr.bf16.mxu1 %v3149_v56  ;;  %v3187_v34 = vunpack.c.h.s8.bf16 %v1323_v46  ;;  %v3189_v56 = vunpack.c.h.s8.bf16 %v1325_v47  ;;  %v1345_v46 = vld [vmem:[%s8057_s24 + $0x1ad8] sm:$0xff]  ;;  %v3218_v47 = vunpack.c.h.s8.bf16 %v1338_v37 }
 0x72d   : > { %5044 = vmatpush1.bf16.msra.mxu0 %v3146_v38  ;;  %6420 = vmatpush1.bf16.msra.mxu1 %v3148_v43  ;;  %v3186_v38 = vunpack.c.h.s8.bf16 %v1322_v51  ;;  %v3188_v43 = vunpack.c.h.s8.bf16 %v1324_v52 }
 0x72e   : > { %5045 = vmatprep.subr.bf16.mxu0 %v3151_v61  ;;  %6421 = vmatprep.subr.bf16.mxu1 %v3153_v62  ;;  %v3191_v61 = vunpack.c.l.s8.bf16 %v1327_v57  ;;  %v3193_v62 = vunpack.c.l.s8.bf16 %v1329_v58 }
 0x731   : > { %5046 = vmatpush1.bf16.msra.mxu0 %v3150_v44  ;;  %6422 = vmatpush1.bf16.msra.mxu1 %v3152_v2  ;;  %v3190_v44 = vunpack.c.l.s8.bf16 %v1326_v63  ;;  %v3192_v2 = vunpack.c.l.s8.bf16 %v1328_v17 }
 0x732   : > { %5047 = vmatprep.subr.bf16.mxu0 %v3155_v3  ;;  %6423 = vmatprep.subr.bf16.mxu1 %v3157_v4  ;;  %v3195_v3 = vunpack.c.h.s8.bf16 %v1327_v57  ;;  %v3197_v4 = vunpack.c.h.s8.bf16 %v1329_v58 }
 0x735   : > { %5048 = vmatpush1.bf16.msra.mxu0 %v3154_v7  ;;  %6424 = vmatpush1.bf16.msra.mxu1 %v3156_v8  ;;  %v3194_v7 = vunpack.c.h.s8.bf16 %v1326_v63  ;;  %v3196_v8 = vunpack.c.h.s8.bf16 %v1328_v17 }
 0x736   : > { %5049 = vmatprep.subr.bf16.mxu0 %v3159_v9  ;;  %6425 = vmatprep.subr.bf16.mxu1 %v3161_v27  ;;  %v3199_v9 = vunpack.c.l.s8.bf16 %v1331_v50  ;;  %v3201_v27 = vunpack.c.l.s8.bf16 %v1333_v32 }
 0x739   : > { %5050 = vmatpush1.bf16.msra.mxu0 %v3158_v11  ;;  %6426 = vmatpush1.bf16.msra.mxu1 %v3160_v12  ;;  %v3198_v11 = vunpack.c.l.s8.bf16 %v1330_v54  ;;  %v3200_v12 = vunpack.c.l.s8.bf16 %v1332_v59 }
 0x73a   : > { %5051 = vmatprep.subr.bf16.mxu0 %v3163_v13  ;;  %6427 = vmatprep.subr.bf16.mxu1 %v3165_v14  ;;  %v3203_v13 = vunpack.c.h.s8.bf16 %v1331_v50  ;;  %v3205_v14 = vunpack.c.h.s8.bf16 %v1333_v32 }
 0x73d   : > { %5052 = vmatpush1.bf16.msra.mxu0 %v3162_v19  ;;  %6428 = vmatpush1.bf16.msra.mxu1 %v3164_v20  ;;  %v3202_v19 = vunpack.c.h.s8.bf16 %v1330_v54  ;;  %v3204_v20 = vunpack.c.h.s8.bf16 %v1332_v59  ;;  %v7061_v54 = vcombine.low %v9181_v21, %v9184_v39  ;;  %v9223_v59 = vld [vmem:[%s8055_s12 + $0xd8] sm:$0xff] }
 0x73e   : > { %5053 = vmatprep.subr.bf16.mxu0 %v3167_v0  ;;  %6429 = vmatprep.subr.bf16.mxu1 %v3169_v5  ;;  %v3207_v0 = vunpack.c.l.s8.bf16 %v1335_v60  ;;  %v3209_v5 = vunpack.c.l.s8.bf16 %v1337_v18 }
 0x741   : > { %5054 = vmatpush1.bf16.msra.mxu0 %v3166_v25  ;;  %6430 = vmatpush1.bf16.msra.mxu1 %v3168_v45  ;;  %v3206_v25 = vunpack.c.l.s8.bf16 %v1334_v23  ;;  %v3208_v45 = vunpack.c.l.s8.bf16 %v1336_v24 }
 0x742   : > { %5055 = vmatprep.subr.bf16.mxu0 %v3171_v6  ;;  %6431 = vmatprep.subr.bf16.mxu1 %v3173_v28  ;;  %v3211_v6 = vunpack.c.h.s8.bf16 %v1335_v60  ;;  %v3213_v28 = vunpack.c.h.s8.bf16 %v1337_v18  ;;  %v1355_v18 = vld [vmem:[%s8057_s24 + $0x1b28] sm:$0xff] }
 0x745   : > { %5056 = vmatpush1.bf16.msra.mxu0 %v3170_v10  ;;  %6432 = vmatpush1.bf16.msra.mxu1 %v3172_v15  ;;  %v3210_v10 = vunpack.c.h.s8.bf16 %v1334_v23  ;;  %v3212_v15 = vunpack.c.h.s8.bf16 %v1336_v24  ;;  %v1354_v23 = vld [vmem:[%s8057_s24 + $0x1b20] sm:$0xff]  ;;  %v1356_v24 = vld [vmem:[%s8057_s24 + $0x1b30] sm:$0xff] }
 0x746   : > { %5068 = vmatprep.subr.bf16.mxu0 %v3175_v35  ;;  %6444 = vmatprep.subr.bf16.mxu1 %v3177_v36  ;;  %v3215_v35 = vunpack.c.l.s8.bf16 %v1339_v29  ;;  %v3217_v36 = vunpack.c.l.s8.bf16 %v1341_v30 }
 0x748   : > { %5058 = vmatmul.mubr.bf16.vlgmr.msra.gmra.mrb[0].mxu0 %v7059_v16  ;;  %6434 = vmatmul.mubr.bf16.vlgmr.msra.gmra.mrb[0].mxu1 %v7059_v16  ;;  %v3214_v16 = vunpack.c.l.s8.bf16 %v1338_v37  ;;  %v1358_v37 = vld [vmem:[%s8057_s24 + $0x1b40] sm:$0xff] }
 0x749   : > { %5069 = vmatpush1.bf16.msra.mxu0 %v3174_v40  ;;  %6445 = vmatpush1.bf16.msra.mxu1 %v3176_v41  ;;  %v3216_v40 = vunpack.c.l.s8.bf16 %v1340_v55  ;;  %v3219_v41 = vunpack.c.h.s8.bf16 %v1339_v29  ;;  %v1359_v29 = vld [vmem:[%s8057_s24 + $0x1b48] sm:$0xff] }
 0x74a   : > { %5070 = vmatprep.subr.bf16.mxu0 %v3179_v42  ;;  %6446 = vmatprep.subr.bf16.mxu1 %v3181_v22  ;;  %v3221_v42 = vunpack.c.h.s8.bf16 %v1341_v30  ;;  %v1343_v22 = vld [vmem:[%s8057_s24 + $0x1ac8] sm:$0xff]  ;;  %v1361_v30 = vld [vmem:[%s8057_s24 + $0x1b58] sm:$0xff] }
 0x74b   : > { %5100 = vmatprep.mubr.bf16.mxu0 %v7062_v48  ;;  %6476 = vmatprep.mubr.bf16.mxu1 %v7062_v48  ;;  %v3220_v48 = vunpack.c.h.s8.bf16 %v1340_v55  ;;  %v1360_v55 = vld [vmem:[%s8057_s24 + $0x1b50] sm:$0xff] }
 0x74d   : > { %5071 = vmatpush1.bf16.msra.mxu0 %v3178_v49  ;;  %6447 = vmatpush1.bf16.msra.mxu1 %v3180_v1  ;;  %v3223_v49 = vunpack.c.l.s8.bf16 %v1343_v22  ;;  %v3225_v1 = vunpack.c.l.s8.bf16 %v1345_v46 }
 0x74e   : > { %5072 = vmatprep.subr.bf16.mxu0 %v3183_v26  ;;  %6448 = vmatprep.subr.bf16.mxu1 %v3185_v33  ;;  %v1342_v26 = vld [vmem:[%s8057_s24 + $0x1ac0] sm:$0xff]  ;;  %v1344_v33 = vld [vmem:[%s8057_s24 + $0x1ad0] sm:$0xff] }
 0x74f   : > { %v3222_v51 = vunpack.c.l.s8.bf16 %v1342_v26  ;;  %v3224_v52 = vunpack.c.l.s8.bf16 %v1344_v33  ;;  %v3226_v57 = vunpack.c.h.s8.bf16 %v1342_v26  ;;  %v3228_v58 = vunpack.c.h.s8.bf16 %v1344_v33  ;;  %v1362_v26 = vld [vmem:[%s8057_s24 + $0x1b60] sm:$0xff]  ;;  %v1364_v33 = vld [vmem:[%s8057_s24 + $0x1b70] sm:$0xff] }
 0x751   : > { %5073 = vmatpush1.bf16.msra.mxu0 %v3182_v53  ;;  %6449 = vmatpush1.bf16.msra.mxu1 %v3184_v31  ;;  %v3227_v53 = vunpack.c.h.s8.bf16 %v1343_v22  ;;  %v3229_v31 = vunpack.c.h.s8.bf16 %v1345_v46  ;;  %v1363_v22 = vld [vmem:[%s8057_s24 + $0x1b68] sm:$0xff]  ;;  %v1365_v46 = vld [vmem:[%s8057_s24 + $0x1b78] sm:$0xff] }
 0x752   : > { %5074 = vmatprep.subr.bf16.mxu0 %v3187_v34  ;;  %6450 = vmatprep.subr.bf16.mxu1 %v3189_v56  ;;  %v1347_v34 = vld [vmem:[%s8057_s24 + $0x1ae8] sm:$0xff]  ;;  %v1349_v56 = vld [vmem:[%s8057_s24 + $0x1af8] sm:$0xff] }
 0x755   : > { %5075 = vmatpush1.bf16.msra.mxu0 %v3186_v38  ;;  %6451 = vmatpush1.bf16.msra.mxu1 %v3188_v43  ;;  %v3231_v38 = vunpack.c.l.s8.bf16 %v1347_v34  ;;  %v3233_v43 = vunpack.c.l.s8.bf16 %v1349_v56 }
 0x756   : > { %5076 = vmatprep.subr.bf16.mxu0 %v3191_v61  ;;  %6452 = vmatprep.subr.bf16.mxu1 %v3193_v62  ;;  %v1346_v61 = vld [vmem:[%s8057_s24 + $0x1ae0] sm:$0xff]  ;;  %v1348_v62 = vld [vmem:[%s8057_s24 + $0x1af0] sm:$0xff] }
 0x757   : > { %v3230_v63 = vunpack.c.l.s8.bf16 %v1346_v61  ;;  %v3232_v17 = vunpack.c.l.s8.bf16 %v1348_v62  ;;  %v3234_v50 = vunpack.c.h.s8.bf16 %v1346_v61  ;;  %v3236_v32 = vunpack.c.h.s8.bf16 %v1348_v62  ;;  %v1366_v61 = vld [vmem:[%s8057_s24 + $0x1b80] sm:$0xff]  ;;  %v1368_v62 = vld [vmem:[%s8057_s24 + $0x1b90] sm:$0xff] }
 0x759   : > { %5077 = vmatpush1.bf16.msra.mxu0 %v3190_v44  ;;  %6453 = vmatpush1.bf16.msra.mxu1 %v3192_v2  ;;  %v3235_v44 = vunpack.c.h.s8.bf16 %v1347_v34  ;;  %v3237_v2 = vunpack.c.h.s8.bf16 %v1349_v56  ;;  %v1367_v34 = vld [vmem:[%s8057_s24 + $0x1b88] sm:$0xff]  ;;  %v1369_v56 = vld [vmem:[%s8057_s24 + $0x1b98] sm:$0xff] }
 0x75a   : > { %5078 = vmatprep.subr.bf16.mxu0 %v3195_v3  ;;  %6454 = vmatprep.subr.bf16.mxu1 %v3197_v4  ;;  %v1351_v3 = vld [vmem:[%s8057_s24 + $0x1b08] sm:$0xff]  ;;  %v1353_v4 = vld [vmem:[%s8057_s24 + $0x1b18] sm:$0xff] }
 0x75b   : > { %v3245_v60 = vunpack.c.h.s8.bf16 %v1353_v4 }
 0x75d   : > { %5079 = vmatpush1.bf16.msra.mxu0 %v3194_v7  ;;  %6455 = vmatpush1.bf16.msra.mxu1 %v3196_v8  ;;  %v3239_v7 = vunpack.c.l.s8.bf16 %v1351_v3  ;;  %v3241_v8 = vunpack.c.l.s8.bf16 %v1353_v4  ;;  %v1373_v4 = vld [vmem:[%s8057_s24 + $0x1bb8] sm:$0xff] }
 0x75e   : > { %5080 = vmatprep.subr.bf16.mxu0 %v3199_v9  ;;  %6456 = vmatprep.subr.bf16.mxu1 %v3201_v27  ;;  %v1350_v9 = vld [vmem:[%s8057_s24 + $0x1b00] sm:$0xff]  ;;  %v1352_v27 = vld [vmem:[%s8057_s24 + $0x1b10] sm:$0xff] }
 0x75f   : > { %v3242_v21 = vunpack.c.h.s8.bf16 %v1350_v9  ;;  %v3244_v39 = vunpack.c.h.s8.bf16 %v1352_v27 }
 0x761   : > { %5081 = vmatpush1.bf16.msra.mxu0 %v3198_v11  ;;  %6457 = vmatpush1.bf16.msra.mxu1 %v3200_v12  ;;  %v9226_v11 = vld [vmem:[%s8055_s12 + $0x1d8] sm:$0xff]  ;;  %v3238_v12 = vunpack.c.l.s8.bf16 %v1350_v9  ;;  %v1370_v9 = vld [vmem:[%s8057_s24 + $0x1ba0] sm:$0xff] }
 0x762   : > { %5082 = vmatprep.subr.bf16.mxu0 %v3203_v13  ;;  %6458 = vmatprep.subr.bf16.mxu1 %v3205_v14  ;;  %v3240_v13 = vunpack.c.l.s8.bf16 %v1352_v27  ;;  %v3243_v14 = vunpack.c.h.s8.bf16 %v1351_v3  ;;  %v1371_v3 = vld [vmem:[%s8057_s24 + $0x1ba8] sm:$0xff]  ;;  %v1372_v27 = vld [vmem:[%s8057_s24 + $0x1bb0] sm:$0xff] }
 0x765   : > { %5083 = vmatpush1.bf16.msra.mxu0 %v3202_v19  ;;  %6459 = vmatpush1.bf16.msra.mxu1 %v3204_v20  ;;  %v1357_v19 = vld [vmem:[%s8057_s24 + $0x1b38] sm:$0xff]  ;;  %v7064_v20 = vcombine.high %v9223_v59, %v9226_v11 }
 0x766   : > { %5084 = vmatprep.subr.bf16.mxu0 %v3207_v0  ;;  %6460 = vmatprep.subr.bf16.mxu1 %v3209_v5  ;;  %v3247_v0 = vunpack.c.l.s8.bf16 %v1355_v18  ;;  %v3249_v5 = vunpack.c.l.s8.bf16 %v1357_v19 }
 0x769   : > { %5085 = vmatpush1.bf16.msra.mxu0 %v3206_v25  ;;  %6461 = vmatpush1.bf16.msra.mxu1 %v3208_v45  ;;  %v3246_v25 = vunpack.c.l.s8.bf16 %v1354_v23  ;;  %v3248_v45 = vunpack.c.l.s8.bf16 %v1356_v24 }
 0x76a   : > { %5086 = vmatprep.subr.bf16.mxu0 %v3211_v6  ;;  %6462 = vmatprep.subr.bf16.mxu1 %v3213_v28  ;;  %v3251_v6 = vunpack.c.h.s8.bf16 %v1355_v18  ;;  %v3253_v28 = vunpack.c.h.s8.bf16 %v1357_v19  ;;  %v1377_v18 = vld [vmem:[%s8057_s24 + $0x1bd8] sm:$0xff]  ;;  %v3282_v19 = vunpack.c.h.s8.bf16 %v1370_v9 }
 0x76d   : > { %5087 = vmatpush1.bf16.msra.mxu0 %v3210_v10  ;;  %6463 = vmatpush1.bf16.msra.mxu1 %v3212_v15  ;;  %v3250_v10 = vunpack.c.h.s8.bf16 %v1354_v23  ;;  %v3252_v15 = vunpack.c.h.s8.bf16 %v1356_v24 }
 0x76e   : > { %5088 = vmatprep.subr.bf16.mxu0 %v3215_v35  ;;  %6464 = vmatprep.subr.bf16.mxu1 %v3217_v36  ;;  %v3255_v35 = vunpack.c.l.s8.bf16 %v1359_v29  ;;  %v3257_v36 = vunpack.c.l.s8.bf16 %v1361_v30 }
 0x771   : > { %5089 = vmatpush1.bf16.msra.mxu0 %v3214_v16  ;;  %6465 = vmatpush1.bf16.msra.mxu1 %v3216_v40  ;;  %v3254_v16 = vunpack.c.l.s8.bf16 %v1358_v37  ;;  %v3256_v40 = vunpack.c.l.s8.bf16 %v1360_v55 }
 0x772   : > { %5090 = vmatprep.subr.bf16.mxu0 %v3219_v41  ;;  %6466 = vmatprep.subr.bf16.mxu1 %v3221_v42  ;;  %v3259_v41 = vunpack.c.h.s8.bf16 %v1359_v29  ;;  %v3261_v42 = vunpack.c.h.s8.bf16 %v1361_v30 }
 0x775   : > { %5091 = vmatpush1.bf16.msra.mxu0 %v3218_v47  ;;  %6467 = vmatpush1.bf16.msra.mxu1 %v3220_v48  ;;  %v3258_v47 = vunpack.c.h.s8.bf16 %v1358_v37  ;;  %v3260_v48 = vunpack.c.h.s8.bf16 %v1360_v55 }
 0x776   : > { %5092 = vmatprep.subr.bf16.mxu0 %v3223_v49  ;;  %6468 = vmatprep.subr.bf16.mxu1 %v3225_v1  ;;  %v3263_v49 = vunpack.c.l.s8.bf16 %v1363_v22  ;;  %v3265_v1 = vunpack.c.l.s8.bf16 %v1365_v46 }
 0x779   : > { %5093 = vmatpush1.bf16.msra.mxu0 %v3222_v51  ;;  %6469 = vmatpush1.bf16.msra.mxu1 %v3224_v52  ;;  %v3262_v51 = vunpack.c.l.s8.bf16 %v1362_v26  ;;  %v3264_v52 = vunpack.c.l.s8.bf16 %v1364_v33 }
 0x77a   : > { %5094 = vmatprep.subr.bf16.mxu0 %v3227_v53  ;;  %6470 = vmatprep.subr.bf16.mxu1 %v3229_v31  ;;  %v3267_v53 = vunpack.c.h.s8.bf16 %v1363_v22  ;;  %v3269_v31 = vunpack.c.h.s8.bf16 %v1365_v46 }
 0x77d   : > { %5095 = vmatpush1.bf16.msra.mxu0 %v3226_v57  ;;  %6471 = vmatpush1.bf16.msra.mxu1 %v3228_v58  ;;  %v3266_v57 = vunpack.c.h.s8.bf16 %v1362_v26  ;;  %v3268_v58 = vunpack.c.h.s8.bf16 %v1364_v33  ;;  %v7063_v26 = vcombine.low %v9223_v59, %v9226_v11  ;;  %v9265_v33 = vld [vmem:[%s8055_s12 + $0xe0] sm:$0xff] }
 0x77e   : > { %5096 = vmatprep.subr.bf16.mxu0 %v3231_v38  ;;  %6472 = vmatprep.subr.bf16.mxu1 %v3233_v43  ;;  %v3271_v38 = vunpack.c.l.s8.bf16 %v1367_v34  ;;  %v3273_v43 = vunpack.c.l.s8.bf16 %v1369_v56 }
 0x781   : > { %5097 = vmatpush1.bf16.msra.mxu0 %v3230_v63  ;;  %6473 = vmatpush1.bf16.msra.mxu1 %v3232_v17  ;;  %v3270_v63 = vunpack.c.l.s8.bf16 %v1366_v61  ;;  %v3272_v17 = vunpack.c.l.s8.bf16 %v1368_v62 }
 0x782   : > { %5098 = vmatprep.subr.bf16.mxu0 %v3235_v44  ;;  %6474 = vmatprep.subr.bf16.mxu1 %v3237_v2  ;;  %v3275_v44 = vunpack.c.h.s8.bf16 %v1367_v34  ;;  %v3277_v2 = vunpack.c.h.s8.bf16 %v1369_v56  ;;  %v1387_v56 = vld [vmem:[%s8057_s24 + $0x1c28] sm:$0xff] }
 0x785   : > { %5099 = vmatpush1.bf16.msra.mxu0 %v3234_v50  ;;  %6475 = vmatpush1.bf16.msra.mxu1 %v3236_v32  ;;  %v3274_v50 = vunpack.c.h.s8.bf16 %v1366_v61  ;;  %v3276_v32 = vunpack.c.h.s8.bf16 %v1368_v62  ;;  %v1386_v61 = vld [vmem:[%s8057_s24 + $0x1c20] sm:$0xff]  ;;  %v1388_v62 = vld [vmem:[%s8057_s24 + $0x1c30] sm:$0xff] }
 0x786   : > { %5111 = vmatprep.subr.bf16.mxu0 %v3239_v7  ;;  %6487 = vmatprep.subr.bf16.mxu1 %v3241_v8  ;;  %v3279_v7 = vunpack.c.l.s8.bf16 %v1371_v3  ;;  %v3281_v8 = vunpack.c.l.s8.bf16 %v1373_v4 }
 0x788   : > { %5101 = vmatmul.mubr.bf16.vlgmr.msra.gmra.mrb[0].mxu0 %v7061_v54  ;;  %6477 = vmatmul.mubr.bf16.vlgmr.msra.gmra.mrb[0].mxu1 %v7061_v54  ;;  %v3278_v54 = vunpack.c.l.s8.bf16 %v1370_v9  ;;  %v1390_v9 = vld [vmem:[%s8057_s24 + $0x1c40] sm:$0xff] }
 0x789   : > { %5112 = vmatpush1.bf16.msra.mxu0 %v3238_v12  ;;  %6488 = vmatpush1.bf16.msra.mxu1 %v3240_v13  ;;  %v3280_v12 = vunpack.c.l.s8.bf16 %v1372_v27  ;;  %v3283_v13 = vunpack.c.h.s8.bf16 %v1371_v3  ;;  %v1391_v3 = vld [vmem:[%s8057_s24 + $0x1c48] sm:$0xff] }
 0x78a   : > { %5113 = vmatprep.subr.bf16.mxu0 %v3243_v14  ;;  %6489 = vmatprep.subr.bf16.mxu1 %v3245_v60  ;;  %v3285_v14 = vunpack.c.h.s8.bf16 %v1373_v4  ;;  %v1375_v60 = vld [vmem:[%s8057_s24 + $0x1bc8] sm:$0xff]  ;;  %v1393_v4 = vld [vmem:[%s8057_s24 + $0x1c58] sm:$0xff] }
 0x78b   : > { %5143 = vmatprep.mubr.bf16.mxu0 %v7064_v20  ;;  %6519 = vmatprep.mubr.bf16.mxu1 %v7064_v20  ;;  %v3284_v20 = vunpack.c.h.s8.bf16 %v1372_v27  ;;  %v1392_v27 = vld [vmem:[%s8057_s24 + $0x1c50] sm:$0xff] }
 0x78d   : > { %5114 = vmatpush1.bf16.msra.mxu0 %v3242_v21  ;;  %6490 = vmatpush1.bf16.msra.mxu1 %v3244_v39  ;;  %v3287_v21 = vunpack.c.l.s8.bf16 %v1375_v60  ;;  %v3289_v39 = vunpack.c.l.s8.bf16 %v1377_v18 }
 0x78e   : > { %5115 = vmatprep.subr.bf16.mxu0 %v3247_v0  ;;  %6491 = vmatprep.subr.bf16.mxu1 %v3249_v5  ;;  %v1374_v0 = vld [vmem:[%s8057_s24 + $0x1bc0] sm:$0xff]  ;;  %v1376_v5 = vld [vmem:[%s8057_s24 + $0x1bd0] sm:$0xff] }
 0x78f   : > { %v3286_v23 = vunpack.c.l.s8.bf16 %v1374_v0  ;;  %v3288_v24 = vunpack.c.l.s8.bf16 %v1376_v5  ;;  %v3290_v29 = vunpack.c.h.s8.bf16 %v1374_v0  ;;  %v3292_v30 = vunpack.c.h.s8.bf16 %v1376_v5  ;;  %v1394_v0 = vld [vmem:[%s8057_s24 + $0x1c60] sm:$0xff]  ;;  %v1396_v5 = vld [vmem:[%s8057_s24 + $0x1c70] sm:$0xff] }
 0x791   : > { %5116 = vmatpush1.bf16.msra.mxu0 %v3246_v25  ;;  %6492 = vmatpush1.bf16.msra.mxu1 %v3248_v45  ;;  %v3291_v25 = vunpack.c.h.s8.bf16 %v1375_v60  ;;  %v3293_v45 = vunpack.c.h.s8.bf16 %v1377_v18  ;;  %v1395_v60 = vld [vmem:[%s8057_s24 + $0x1c68] sm:$0xff]  ;;  %v1397_v18 = vld [vmem:[%s8057_s24 + $0x1c78] sm:$0xff] }
 0x792   : > { %5117 = vmatprep.subr.bf16.mxu0 %v3251_v6  ;;  %6493 = vmatprep.subr.bf16.mxu1 %v3253_v28  ;;  %v1379_v6 = vld [vmem:[%s8057_s24 + $0x1be8] sm:$0xff]  ;;  %v1381_v28 = vld [vmem:[%s8057_s24 + $0x1bf8] sm:$0xff] }
 0x795   : > { %5118 = vmatpush1.bf16.msra.mxu0 %v3250_v10  ;;  %6494 = vmatpush1.bf16.msra.mxu1 %v3252_v15  ;;  %v3295_v10 = vunpack.c.l.s8.bf16 %v1379_v6  ;;  %v3297_v15 = vunpack.c.l.s8.bf16 %v1381_v28 }
 0x796   : > { %5119 = vmatprep.subr.bf16.mxu0 %v3255_v35  ;;  %6495 = vmatprep.subr.bf16.mxu1 %v3257_v36  ;;  %v1378_v35 = vld [vmem:[%s8057_s24 + $0x1be0] sm:$0xff]  ;;  %v1380_v36 = vld [vmem:[%s8057_s24 + $0x1bf0] sm:$0xff] }
 0x797   : > { %v3294_v37 = vunpack.c.l.s8.bf16 %v1378_v35  ;;  %v3296_v55 = vunpack.c.l.s8.bf16 %v1380_v36  ;;  %v3298_v22 = vunpack.c.h.s8.bf16 %v1378_v35  ;;  %v3300_v46 = vunpack.c.h.s8.bf16 %v1380_v36  ;;  %v1398_v35 = vld [vmem:[%s8057_s24 + $0x1c80] sm:$0xff]  ;;  %v1400_v36 = vld [vmem:[%s8057_s24 + $0x1c90] sm:$0xff] }
 0x799   : > { %5120 = vmatpush1.bf16.msra.mxu0 %v3254_v16  ;;  %6496 = vmatpush1.bf16.msra.mxu1 %v3256_v40  ;;  %v3299_v16 = vunpack.c.h.s8.bf16 %v1379_v6  ;;  %v3301_v40 = vunpack.c.h.s8.bf16 %v1381_v28  ;;  %v1399_v6 = vld [vmem:[%s8057_s24 + $0x1c88] sm:$0xff]  ;;  %v1401_v28 = vld [vmem:[%s8057_s24 + $0x1c98] sm:$0xff] }
 0x79a   : > { %5121 = vmatprep.subr.bf16.mxu0 %v3259_v41  ;;  %6497 = vmatprep.subr.bf16.mxu1 %v3261_v42  ;;  %v1383_v41 = vld [vmem:[%s8057_s24 + $0x1c08] sm:$0xff]  ;;  %v1385_v42 = vld [vmem:[%s8057_s24 + $0x1c18] sm:$0xff] }
 0x79b   : > { %v3309_v34 = vunpack.c.h.s8.bf16 %v1385_v42 }
 0x79d   : > { %5122 = vmatpush1.bf16.msra.mxu0 %v3258_v47  ;;  %6498 = vmatpush1.bf16.msra.mxu1 %v3260_v48  ;;  %v3303_v47 = vunpack.c.l.s8.bf16 %v1383_v41  ;;  %v3305_v48 = vunpack.c.l.s8.bf16 %v1385_v42  ;;  %v1405_v42 = vld [vmem:[%s8057_s24 + $0x1cb8] sm:$0xff] }
 0x79e   : > { %5123 = vmatprep.subr.bf16.mxu0 %v3263_v49  ;;  %6499 = vmatprep.subr.bf16.mxu1 %v3265_v1  ;;  %v1382_v49 = vld [vmem:[%s8057_s24 + $0x1c00] sm:$0xff]  ;;  %v1384_v1 = vld [vmem:[%s8057_s24 + $0x1c10] sm:$0xff] }
 0x79f   : > { %v3306_v59 = vunpack.c.h.s8.bf16 %v1382_v49  ;;  %v3308_v11 = vunpack.c.h.s8.bf16 %v1384_v1 }
 0x7a1   : > { %5124 = vmatpush1.bf16.msra.mxu0 %v3262_v51  ;;  %6500 = vmatpush1.bf16.msra.mxu1 %v3264_v52  ;;  %v9268_v51 = vld [vmem:[%s8055_s12 + $0x1e0] sm:$0xff]  ;;  %v3302_v52 = vunpack.c.l.s8.bf16 %v1382_v49 }
 0x7a2   : > { %5125 = vmatprep.subr.bf16.mxu0 %v3267_v53  ;;  %6501 = vmatprep.subr.bf16.mxu1 %v3269_v31  ;;  %v3304_v53 = vunpack.c.l.s8.bf16 %v1384_v1  ;;  %v3307_v31 = vunpack.c.h.s8.bf16 %v1383_v41  ;;  %v1403_v41 = vld [vmem:[%s8057_s24 + $0x1ca8] sm:$0xff]  ;;  %v1402_v49 = vld [vmem:[%s8057_s24 + $0x1ca0] sm:$0xff]  ;;  %v1404_v1 = vld [vmem:[%s8057_s24 + $0x1cb0] sm:$0xff] }
 0x7a5   : > { %5126 = vmatpush1.bf16.msra.mxu0 %v3266_v57  ;;  %6502 = vmatpush1.bf16.msra.mxu1 %v3268_v58  ;;  %v1389_v57 = vld [vmem:[%s8057_s24 + $0x1c38] sm:$0xff]  ;;  %v7066_v58 = vcombine.high %v9265_v33, %v9268_v51 }
 0x7a6   : > { %5127 = vmatprep.subr.bf16.mxu0 %v3271_v38  ;;  %6503 = vmatprep.subr.bf16.mxu1 %v3273_v43  ;;  %v3311_v38 = vunpack.c.l.s8.bf16 %v1387_v56  ;;  %v3313_v43 = vunpack.c.l.s8.bf16 %v1389_v57 }
 0x7a9   : > { %5128 = vmatpush1.bf16.msra.mxu0 %v3270_v63  ;;  %6504 = vmatpush1.bf16.msra.mxu1 %v3272_v17  ;;  %v3310_v63 = vunpack.c.l.s8.bf16 %v1386_v61  ;;  %v3312_v17 = vunpack.c.l.s8.bf16 %v1388_v62 }
 0x7aa   : > { %5129 = vmatprep.subr.bf16.mxu0 %v3275_v44  ;;  %6505 = vmatprep.subr.bf16.mxu1 %v3277_v2  ;;  %v3315_v44 = vunpack.c.h.s8.bf16 %v1387_v56  ;;  %v3317_v2 = vunpack.c.h.s8.bf16 %v1389_v57  ;;  %v1409_v56 = vld [vmem:[%s8057_s24 + $0x1cd8] sm:$0xff]  ;;  %v3346_v57 = vunpack.c.h.s8.bf16 %v1402_v49 }
 0x7ad   : > { %5130 = vmatpush1.bf16.msra.mxu0 %v3274_v50  ;;  %6506 = vmatpush1.bf16.msra.mxu1 %v3276_v32  ;;  %v3314_v50 = vunpack.c.h.s8.bf16 %v1386_v61  ;;  %v3316_v32 = vunpack.c.h.s8.bf16 %v1388_v62 }
 0x7ae   : > { %5131 = vmatprep.subr.bf16.mxu0 %v3279_v7  ;;  %6507 = vmatprep.subr.bf16.mxu1 %v3281_v8  ;;  %v3319_v7 = vunpack.c.l.s8.bf16 %v1391_v3  ;;  %v3321_v8 = vunpack.c.l.s8.bf16 %v1393_v4 }
 0x7b1   : > { %5132 = vmatpush1.bf16.msra.mxu0 %v3278_v54  ;;  %6508 = vmatpush1.bf16.msra.mxu1 %v3280_v12  ;;  %v3318_v54 = vunpack.c.l.s8.bf16 %v1390_v9  ;;  %v3320_v12 = vunpack.c.l.s8.bf16 %v1392_v27 }
 0x7b2   : > { %5133 = vmatprep.subr.bf16.mxu0 %v3283_v13  ;;  %6509 = vmatprep.subr.bf16.mxu1 %v3285_v14  ;;  %v3323_v13 = vunpack.c.h.s8.bf16 %v1391_v3  ;;  %v3325_v14 = vunpack.c.h.s8.bf16 %v1393_v4 }
 0x7b5   : > { %5134 = vmatpush1.bf16.msra.mxu0 %v3282_v19  ;;  %6510 = vmatpush1.bf16.msra.mxu1 %v3284_v20  ;;  %v3322_v19 = vunpack.c.h.s8.bf16 %v1390_v9  ;;  %v3324_v20 = vunpack.c.h.s8.bf16 %v1392_v27 }
 0x7b6   : > { %5135 = vmatprep.subr.bf16.mxu0 %v3287_v21  ;;  %6511 = vmatprep.subr.bf16.mxu1 %v3289_v39  ;;  %v3327_v21 = vunpack.c.l.s8.bf16 %v1395_v60  ;;  %v3329_v39 = vunpack.c.l.s8.bf16 %v1397_v18 }
 0x7b9   : > { %5136 = vmatpush1.bf16.msra.mxu0 %v3286_v23  ;;  %6512 = vmatpush1.bf16.msra.mxu1 %v3288_v24  ;;  %v3326_v23 = vunpack.c.l.s8.bf16 %v1394_v0  ;;  %v3328_v24 = vunpack.c.l.s8.bf16 %v1396_v5 }
 0x7ba   : > { %5137 = vmatprep.subr.bf16.mxu0 %v3291_v25  ;;  %6513 = vmatprep.subr.bf16.mxu1 %v3293_v45  ;;  %v3331_v25 = vunpack.c.h.s8.bf16 %v1395_v60  ;;  %v3333_v45 = vunpack.c.h.s8.bf16 %v1397_v18 }
 0x7bd   : > { %5138 = vmatpush1.bf16.msra.mxu0 %v3290_v29  ;;  %6514 = vmatpush1.bf16.msra.mxu1 %v3292_v30  ;;  %v3330_v29 = vunpack.c.h.s8.bf16 %v1394_v0  ;;  %v3332_v30 = vunpack.c.h.s8.bf16 %v1396_v5  ;;  %v7065_v0 = vcombine.low %v9265_v33, %v9268_v51  ;;  %v9307_v5 = vld [vmem:[%s8055_s12 + $0xe8] sm:$0xff] }
 0x7be   : > { %5139 = vmatprep.subr.bf16.mxu0 %v3295_v10  ;;  %6515 = vmatprep.subr.bf16.mxu1 %v3297_v15  ;;  %v3335_v10 = vunpack.c.l.s8.bf16 %v1399_v6  ;;  %v3337_v15 = vunpack.c.l.s8.bf16 %v1401_v28 }
 0x7c1   : > { %5140 = vmatpush1.bf16.msra.mxu0 %v3294_v37  ;;  %6516 = vmatpush1.bf16.msra.mxu1 %v3296_v55  ;;  %v3334_v37 = vunpack.c.l.s8.bf16 %v1398_v35  ;;  %v3336_v55 = vunpack.c.l.s8.bf16 %v1400_v36 }
 0x7c2   : > { %5141 = vmatprep.subr.bf16.mxu0 %v3299_v16  ;;  %6517 = vmatprep.subr.bf16.mxu1 %v3301_v40  ;;  %v3339_v16 = vunpack.c.h.s8.bf16 %v1399_v6  ;;  %v3341_v40 = vunpack.c.h.s8.bf16 %v1401_v28  ;;  %v1419_v28 = vld [vmem:[%s8057_s24 + $0x1d28] sm:$0xff] }
 0x7c5   : > { %5142 = vmatpush1.bf16.msra.mxu0 %v3298_v22  ;;  %6518 = vmatpush1.bf16.msra.mxu1 %v3300_v46  ;;  %v3338_v22 = vunpack.c.h.s8.bf16 %v1398_v35  ;;  %v3340_v46 = vunpack.c.h.s8.bf16 %v1400_v36  ;;  %v1418_v35 = vld [vmem:[%s8057_s24 + $0x1d20] sm:$0xff]  ;;  %v1420_v36 = vld [vmem:[%s8057_s24 + $0x1d30] sm:$0xff] }
 0x7c6   : > { %5154 = vmatprep.subr.bf16.mxu0 %v3303_v47  ;;  %6530 = vmatprep.subr.bf16.mxu1 %v3305_v48  ;;  %v3343_v47 = vunpack.c.l.s8.bf16 %v1403_v41  ;;  %v3345_v48 = vunpack.c.l.s8.bf16 %v1405_v42 }
 0x7c8   : > { %5144 = vmatmul.mubr.bf16.vlgmr.msra.gmra.mrb[0].mxu0 %v7063_v26  ;;  %6520 = vmatmul.mubr.bf16.vlgmr.msra.gmra.mrb[0].mxu1 %v7063_v26  ;;  %v3342_v26 = vunpack.c.l.s8.bf16 %v1402_v49  ;;  %v1422_v49 = vld [vmem:[%s8057_s24 + $0x1d40] sm:$0xff] }
 0x7c9   : > { %5155 = vmatpush1.bf16.msra.mxu0 %v3302_v52  ;;  %6531 = vmatpush1.bf16.msra.mxu1 %v3304_v53  ;;  %v3344_v52 = vunpack.c.l.s8.bf16 %v1404_v1  ;;  %v3347_v53 = vunpack.c.h.s8.bf16 %v1403_v41  ;;  %v1423_v41 = vld [vmem:[%s8057_s24 + $0x1d48] sm:$0xff] }
 0x7ca   : > { %5156 = vmatprep.subr.bf16.mxu0 %v3307_v31  ;;  %6532 = vmatprep.subr.bf16.mxu1 %v3309_v34  ;;  %v3349_v31 = vunpack.c.h.s8.bf16 %v1405_v42  ;;  %v1407_v34 = vld [vmem:[%s8057_s24 + $0x1cc8] sm:$0xff]  ;;  %v1425_v42 = vld [vmem:[%s8057_s24 + $0x1d58] sm:$0xff] }
 0x7cb   : > { %5186 = vmatprep.mubr.bf16.mxu0 %v7066_v58  ;;  %6562 = vmatprep.mubr.bf16.mxu1 %v7066_v58  ;;  %v3348_v58 = vunpack.c.h.s8.bf16 %v1404_v1  ;;  %v1424_v1 = vld [vmem:[%s8057_s24 + $0x1d50] sm:$0xff] }
 0x7cd   : > { %5157 = vmatpush1.bf16.msra.mxu0 %v3306_v59  ;;  %6533 = vmatpush1.bf16.msra.mxu1 %v3308_v11  ;;  %v3351_v59 = vunpack.c.l.s8.bf16 %v1407_v34  ;;  %v3353_v11 = vunpack.c.l.s8.bf16 %v1409_v56 }
 0x7ce   : > { %5158 = vmatprep.subr.bf16.mxu0 %v3311_v38  ;;  %6534 = vmatprep.subr.bf16.mxu1 %v3313_v43  ;;  %v1406_v38 = vld [vmem:[%s8057_s24 + $0x1cc0] sm:$0xff]  ;;  %v1408_v43 = vld [vmem:[%s8057_s24 + $0x1cd0] sm:$0xff] }
 0x7cf   : > { %v3350_v61 = vunpack.c.l.s8.bf16 %v1406_v38  ;;  %v3352_v62 = vunpack.c.l.s8.bf16 %v1408_v43  ;;  %v3354_v3 = vunpack.c.h.s8.bf16 %v1406_v38  ;;  %v3356_v4 = vunpack.c.h.s8.bf16 %v1408_v43  ;;  %v1426_v38 = vld [vmem:[%s8057_s24 + $0x1d60] sm:$0xff]  ;;  %v1428_v43 = vld [vmem:[%s8057_s24 + $0x1d70] sm:$0xff] }
 0x7d1   : > { %5159 = vmatpush1.bf16.msra.mxu0 %v3310_v63  ;;  %6535 = vmatpush1.bf16.msra.mxu1 %v3312_v17  ;;  %v3355_v63 = vunpack.c.h.s8.bf16 %v1407_v34  ;;  %v3357_v17 = vunpack.c.h.s8.bf16 %v1409_v56  ;;  %v1427_v34 = vld [vmem:[%s8057_s24 + $0x1d68] sm:$0xff]  ;;  %v1429_v56 = vld [vmem:[%s8057_s24 + $0x1d78] sm:$0xff] }
 0x7d2   : > { %5160 = vmatprep.subr.bf16.mxu0 %v3315_v44  ;;  %6536 = vmatprep.subr.bf16.mxu1 %v3317_v2  ;;  %v1411_v44 = vld [vmem:[%s8057_s24 + $0x1ce8] sm:$0xff]  ;;  %v1413_v2 = vld [vmem:[%s8057_s24 + $0x1cf8] sm:$0xff] }
 0x7d5   : > { %5161 = vmatpush1.bf16.msra.mxu0 %v3314_v50  ;;  %6537 = vmatpush1.bf16.msra.mxu1 %v3316_v32  ;;  %v3359_v50 = vunpack.c.l.s8.bf16 %v1411_v44  ;;  %v3361_v32 = vunpack.c.l.s8.bf16 %v1413_v2 }
 0x7d6   : > { %5162 = vmatprep.subr.bf16.mxu0 %v3319_v7  ;;  %6538 = vmatprep.subr.bf16.mxu1 %v3321_v8  ;;  %v1410_v7 = vld [vmem:[%s8057_s24 + $0x1ce0] sm:$0xff]  ;;  %v1412_v8 = vld [vmem:[%s8057_s24 + $0x1cf0] sm:$0xff] }
 0x7d7   : > { %v3358_v9 = vunpack.c.l.s8.bf16 %v1410_v7  ;;  %v3360_v27 = vunpack.c.l.s8.bf16 %v1412_v8  ;;  %v3362_v60 = vunpack.c.h.s8.bf16 %v1410_v7  ;;  %v3364_v18 = vunpack.c.h.s8.bf16 %v1412_v8  ;;  %v1430_v7 = vld [vmem:[%s8057_s24 + $0x1d80] sm:$0xff]  ;;  %v1432_v8 = vld [vmem:[%s8057_s24 + $0x1d90] sm:$0xff] }
 0x7d9   : > { %5163 = vmatpush1.bf16.msra.mxu0 %v3318_v54  ;;  %6539 = vmatpush1.bf16.msra.mxu1 %v3320_v12  ;;  %v3363_v54 = vunpack.c.h.s8.bf16 %v1411_v44  ;;  %v3365_v12 = vunpack.c.h.s8.bf16 %v1413_v2  ;;  %v1431_v44 = vld [vmem:[%s8057_s24 + $0x1d88] sm:$0xff]  ;;  %v1433_v2 = vld [vmem:[%s8057_s24 + $0x1d98] sm:$0xff] }
 0x7da   : > { %5164 = vmatprep.subr.bf16.mxu0 %v3323_v13  ;;  %6540 = vmatprep.subr.bf16.mxu1 %v3325_v14  ;;  %v1415_v13 = vld [vmem:[%s8057_s24 + $0x1d08] sm:$0xff]  ;;  %v1417_v14 = vld [vmem:[%s8057_s24 + $0x1d18] sm:$0xff] }
 0x7db   : > { %v3373_v6 = vunpack.c.h.s8.bf16 %v1417_v14 }
 0x7dd   : > { %5165 = vmatpush1.bf16.msra.mxu0 %v3322_v19  ;;  %6541 = vmatpush1.bf16.msra.mxu1 %v3324_v20  ;;  %v3367_v19 = vunpack.c.l.s8.bf16 %v1415_v13  ;;  %v3369_v20 = vunpack.c.l.s8.bf16 %v1417_v14  ;;  %v1437_v14 = vld [vmem:[%s8057_s24 + $0x1db8] sm:$0xff] }
 0x7de   : > { %5166 = vmatprep.subr.bf16.mxu0 %v3327_v21  ;;  %6542 = vmatprep.subr.bf16.mxu1 %v3329_v39  ;;  %v1414_v21 = vld [vmem:[%s8057_s24 + $0x1d00] sm:$0xff]  ;;  %v1416_v39 = vld [vmem:[%s8057_s24 + $0x1d10] sm:$0xff] }
 0x7df   : > { %v3370_v33 = vunpack.c.h.s8.bf16 %v1414_v21  ;;  %v3372_v51 = vunpack.c.h.s8.bf16 %v1416_v39 }
 0x7e1   : > { %5167 = vmatpush1.bf16.msra.mxu0 %v3326_v23  ;;  %6543 = vmatpush1.bf16.msra.mxu1 %v3328_v24  ;;  %v9310_v23 = vld [vmem:[%s8055_s12 + $0x1e8] sm:$0xff]  ;;  %v3366_v24 = vunpack.c.l.s8.bf16 %v1414_v21  ;;  %v1434_v21 = vld [vmem:[%s8057_s24 + $0x1da0] sm:$0xff] }
 0x7e2   : > { %5168 = vmatprep.subr.bf16.mxu0 %v3331_v25  ;;  %6544 = vmatprep.subr.bf16.mxu1 %v3333_v45  ;;  %v3368_v25 = vunpack.c.l.s8.bf16 %v1416_v39  ;;  %v3371_v45 = vunpack.c.h.s8.bf16 %v1415_v13  ;;  %v1435_v13 = vld [vmem:[%s8057_s24 + $0x1da8] sm:$0xff]  ;;  %v1436_v39 = vld [vmem:[%s8057_s24 + $0x1db0] sm:$0xff] }
 0x7e5   : > { %5169 = vmatpush1.bf16.msra.mxu0 %v3330_v29  ;;  %6545 = vmatpush1.bf16.msra.mxu1 %v3332_v30  ;;  %v1421_v29 = vld [vmem:[%s8057_s24 + $0x1d38] sm:$0xff]  ;;  %v7068_v30 = vcombine.high %v9307_v5, %v9310_v23 }
 0x7e6   : > { %5170 = vmatprep.subr.bf16.mxu0 %v3335_v10  ;;  %6546 = vmatprep.subr.bf16.mxu1 %v3337_v15  ;;  %v3375_v10 = vunpack.c.l.s8.bf16 %v1419_v28  ;;  %v3377_v15 = vunpack.c.l.s8.bf16 %v1421_v29 }
 0x7e9   : > { %5171 = vmatpush1.bf16.msra.mxu0 %v3334_v37  ;;  %6547 = vmatpush1.bf16.msra.mxu1 %v3336_v55  ;;  %v3374_v37 = vunpack.c.l.s8.bf16 %v1418_v35  ;;  %v3376_v55 = vunpack.c.l.s8.bf16 %v1420_v36 }
 0x7ea   : > { %5172 = vmatprep.subr.bf16.mxu0 %v3339_v16  ;;  %6548 = vmatprep.subr.bf16.mxu1 %v3341_v40  ;;  %v3379_v16 = vunpack.c.h.s8.bf16 %v1419_v28  ;;  %v3381_v40 = vunpack.c.h.s8.bf16 %v1421_v29  ;;  %v1441_v28 = vld [vmem:[%s8057_s24 + $0x1dd8] sm:$0xff]  ;;  %v3410_v29 = vunpack.c.h.s8.bf16 %v1434_v21 }
 0x7ed   : > { %5173 = vmatpush1.bf16.msra.mxu0 %v3338_v22  ;;  %6549 = vmatpush1.bf16.msra.mxu1 %v3340_v46  ;;  %v3378_v22 = vunpack.c.h.s8.bf16 %v1418_v35  ;;  %v3380_v46 = vunpack.c.h.s8.bf16 %v1420_v36 }
 0x7ee   : > { %5174 = vmatprep.subr.bf16.mxu0 %v3343_v47  ;;  %6550 = vmatprep.subr.bf16.mxu1 %v3345_v48  ;;  %v3383_v47 = vunpack.c.l.s8.bf16 %v1423_v41  ;;  %v3385_v48 = vunpack.c.l.s8.bf16 %v1425_v42 }
 0x7f1   : > { %5175 = vmatpush1.bf16.msra.mxu0 %v3342_v26  ;;  %6551 = vmatpush1.bf16.msra.mxu1 %v3344_v52  ;;  %v3382_v26 = vunpack.c.l.s8.bf16 %v1422_v49  ;;  %v3384_v52 = vunpack.c.l.s8.bf16 %v1424_v1 }
 0x7f2   : > { %5176 = vmatprep.subr.bf16.mxu0 %v3347_v53  ;;  %6552 = vmatprep.subr.bf16.mxu1 %v3349_v31  ;;  %v3387_v53 = vunpack.c.h.s8.bf16 %v1423_v41  ;;  %v3389_v31 = vunpack.c.h.s8.bf16 %v1425_v42 }
 0x7f5   : > { %5177 = vmatpush1.bf16.msra.mxu0 %v3346_v57  ;;  %6553 = vmatpush1.bf16.msra.mxu1 %v3348_v58  ;;  %v3386_v57 = vunpack.c.h.s8.bf16 %v1422_v49  ;;  %v3388_v58 = vunpack.c.h.s8.bf16 %v1424_v1 }
 0x7f6   : > { %5178 = vmatprep.subr.bf16.mxu0 %v3351_v59  ;;  %6554 = vmatprep.subr.bf16.mxu1 %v3353_v11  ;;  %v3391_v59 = vunpack.c.l.s8.bf16 %v1427_v34  ;;  %v3393_v11 = vunpack.c.l.s8.bf16 %v1429_v56 }
 0x7f9   : > { %5179 = vmatpush1.bf16.msra.mxu0 %v3350_v61  ;;  %6555 = vmatpush1.bf16.msra.mxu1 %v3352_v62  ;;  %v3390_v61 = vunpack.c.l.s8.bf16 %v1426_v38  ;;  %v3392_v62 = vunpack.c.l.s8.bf16 %v1428_v43 }
 0x7fa   : > { %5180 = vmatprep.subr.bf16.mxu0 %v3355_v63  ;;  %6556 = vmatprep.subr.bf16.mxu1 %v3357_v17  ;;  %v3395_v63 = vunpack.c.h.s8.bf16 %v1427_v34  ;;  %v3397_v17 = vunpack.c.h.s8.bf16 %v1429_v56 }
 0x7fd   : > { %5181 = vmatpush1.bf16.msra.mxu0 %v3354_v3  ;;  %6557 = vmatpush1.bf16.msra.mxu1 %v3356_v4  ;;  %v3394_v3 = vunpack.c.h.s8.bf16 %v1426_v38  ;;  %v3396_v4 = vunpack.c.h.s8.bf16 %v1428_v43  ;;  %v7067_v38 = vcombine.low %v9307_v5, %v9310_v23  ;;  %v9349_v43 = vld [vmem:[%s8055_s12 + $0xf0] sm:$0xff] }
 0x7fe   : > { %5182 = vmatprep.subr.bf16.mxu0 %v3359_v50  ;;  %6558 = vmatprep.subr.bf16.mxu1 %v3361_v32  ;;  %v3399_v50 = vunpack.c.l.s8.bf16 %v1431_v44  ;;  %v3401_v32 = vunpack.c.l.s8.bf16 %v1433_v2 }
 0x801   : > { %5183 = vmatpush1.bf16.msra.mxu0 %v3358_v9  ;;  %6559 = vmatpush1.bf16.msra.mxu1 %v3360_v27  ;;  %v3398_v9 = vunpack.c.l.s8.bf16 %v1430_v7  ;;  %v3400_v27 = vunpack.c.l.s8.bf16 %v1432_v8 }
 0x802   : > { %5184 = vmatprep.subr.bf16.mxu0 %v3363_v54  ;;  %6560 = vmatprep.subr.bf16.mxu1 %v3365_v12  ;;  %v3403_v54 = vunpack.c.h.s8.bf16 %v1431_v44  ;;  %v3405_v12 = vunpack.c.h.s8.bf16 %v1433_v2  ;;  %v1451_v2 = vld [vmem:[%s8057_s24 + $0x1e28] sm:$0xff] }
 0x805   : > { %5185 = vmatpush1.bf16.msra.mxu0 %v3362_v60  ;;  %6561 = vmatpush1.bf16.msra.mxu1 %v3364_v18  ;;  %v3402_v60 = vunpack.c.h.s8.bf16 %v1430_v7  ;;  %v3404_v18 = vunpack.c.h.s8.bf16 %v1432_v8  ;;  %v1450_v7 = vld [vmem:[%s8057_s24 + $0x1e20] sm:$0xff]  ;;  %v1452_v8 = vld [vmem:[%s8057_s24 + $0x1e30] sm:$0xff] }
 0x806   : > { %5197 = vmatprep.subr.bf16.mxu0 %v3367_v19  ;;  %6573 = vmatprep.subr.bf16.mxu1 %v3369_v20  ;;  %v3407_v19 = vunpack.c.l.s8.bf16 %v1435_v13  ;;  %v3409_v20 = vunpack.c.l.s8.bf16 %v1437_v14 }
 0x808   : > { %5187 = vmatmul.mubr.bf16.vlgmr.msra.gmra.mrb[0].mxu0 %v7065_v0  ;;  %6563 = vmatmul.mubr.bf16.vlgmr.msra.gmra.mrb[0].mxu1 %v7065_v0  ;;  %v3406_v0 = vunpack.c.l.s8.bf16 %v1434_v21  ;;  %v1454_v21 = vld [vmem:[%s8057_s24 + $0x1e40] sm:$0xff] }
 0x809   : > { %5198 = vmatpush1.bf16.msra.mxu0 %v3366_v24  ;;  %6574 = vmatpush1.bf16.msra.mxu1 %v3368_v25  ;;  %v3408_v24 = vunpack.c.l.s8.bf16 %v1436_v39  ;;  %v3411_v25 = vunpack.c.h.s8.bf16 %v1435_v13  ;;  %v1455_v13 = vld [vmem:[%s8057_s24 + $0x1e48] sm:$0xff] }
 0x80a   : > { %5199 = vmatprep.subr.bf16.mxu0 %v3371_v45  ;;  %6575 = vmatprep.subr.bf16.mxu1 %v3373_v6  ;;  %v3413_v45 = vunpack.c.h.s8.bf16 %v1437_v14  ;;  %v1439_v6 = vld [vmem:[%s8057_s24 + $0x1dc8] sm:$0xff]  ;;  %v1457_v14 = vld [vmem:[%s8057_s24 + $0x1e58] sm:$0xff] }
 0x80b   : > { %5229 = vmatprep.mubr.bf16.mxu0 %v7068_v30  ;;  %6605 = vmatprep.mubr.bf16.mxu1 %v7068_v30  ;;  %v3412_v30 = vunpack.c.h.s8.bf16 %v1436_v39  ;;  %v1456_v39 = vld [vmem:[%s8057_s24 + $0x1e50] sm:$0xff] }
 0x80d   : > { %5200 = vmatpush1.bf16.msra.mxu0 %v3370_v33  ;;  %6576 = vmatpush1.bf16.msra.mxu1 %v3372_v51  ;;  %v3415_v33 = vunpack.c.l.s8.bf16 %v1439_v6  ;;  %v3417_v51 = vunpack.c.l.s8.bf16 %v1441_v28 }
 0x80e   : > { %5201 = vmatprep.subr.bf16.mxu0 %v3375_v10  ;;  %6577 = vmatprep.subr.bf16.mxu1 %v3377_v15  ;;  %v1438_v10 = vld [vmem:[%s8057_s24 + $0x1dc0] sm:$0xff]  ;;  %v1440_v15 = vld [vmem:[%s8057_s24 + $0x1dd0] sm:$0xff] }
 0x80f   : > { %v3414_v35 = vunpack.c.l.s8.bf16 %v1438_v10  ;;  %v3416_v36 = vunpack.c.l.s8.bf16 %v1440_v15  ;;  %v3418_v41 = vunpack.c.h.s8.bf16 %v1438_v10  ;;  %v3420_v42 = vunpack.c.h.s8.bf16 %v1440_v15  ;;  %v1458_v10 = vld [vmem:[%s8057_s24 + $0x1e60] sm:$0xff]  ;;  %v1460_v15 = vld [vmem:[%s8057_s24 + $0x1e70] sm:$0xff] }
 0x811   : > { %5202 = vmatpush1.bf16.msra.mxu0 %v3374_v37  ;;  %6578 = vmatpush1.bf16.msra.mxu1 %v3376_v55  ;;  %v3419_v37 = vunpack.c.h.s8.bf16 %v1439_v6  ;;  %v3421_v55 = vunpack.c.h.s8.bf16 %v1441_v28  ;;  %v1459_v6 = vld [vmem:[%s8057_s24 + $0x1e68] sm:$0xff]  ;;  %v1461_v28 = vld [vmem:[%s8057_s24 + $0x1e78] sm:$0xff] }
 0x812   : > { %5203 = vmatprep.subr.bf16.mxu0 %v3379_v16  ;;  %6579 = vmatprep.subr.bf16.mxu1 %v3381_v40  ;;  %v1443_v16 = vld [vmem:[%s8057_s24 + $0x1de8] sm:$0xff]  ;;  %v1445_v40 = vld [vmem:[%s8057_s24 + $0x1df8] sm:$0xff] }
 0x815   : > { %5204 = vmatpush1.bf16.msra.mxu0 %v3378_v22  ;;  %6580 = vmatpush1.bf16.msra.mxu1 %v3380_v46  ;;  %v3423_v22 = vunpack.c.l.s8.bf16 %v1443_v16  ;;  %v3425_v46 = vunpack.c.l.s8.bf16 %v1445_v40 }
 0x816   : > { %5205 = vmatprep.subr.bf16.mxu0 %v3383_v47  ;;  %6581 = vmatprep.subr.bf16.mxu1 %v3385_v48  ;;  %v1442_v47 = vld [vmem:[%s8057_s24 + $0x1de0] sm:$0xff]  ;;  %v1444_v48 = vld [vmem:[%s8057_s24 + $0x1df0] sm:$0xff] }
 0x817   : > { %v3422_v49 = vunpack.c.l.s8.bf16 %v1442_v47  ;;  %v3424_v1 = vunpack.c.l.s8.bf16 %v1444_v48  ;;  %v3426_v34 = vunpack.c.h.s8.bf16 %v1442_v47  ;;  %v3428_v56 = vunpack.c.h.s8.bf16 %v1444_v48  ;;  %v1462_v47 = vld [vmem:[%s8057_s24 + $0x1e80] sm:$0xff]  ;;  %v1464_v48 = vld [vmem:[%s8057_s24 + $0x1e90] sm:$0xff] }
 0x819   : > { %5206 = vmatpush1.bf16.msra.mxu0 %v3382_v26  ;;  %6582 = vmatpush1.bf16.msra.mxu1 %v3384_v52  ;;  %v3427_v26 = vunpack.c.h.s8.bf16 %v1443_v16  ;;  %v3429_v52 = vunpack.c.h.s8.bf16 %v1445_v40  ;;  %v1463_v16 = vld [vmem:[%s8057_s24 + $0x1e88] sm:$0xff]  ;;  %v1465_v40 = vld [vmem:[%s8057_s24 + $0x1e98] sm:$0xff] }
 0x81a   : > { %5207 = vmatprep.subr.bf16.mxu0 %v3387_v53  ;;  %6583 = vmatprep.subr.bf16.mxu1 %v3389_v31  ;;  %v1447_v53 = vld [vmem:[%s8057_s24 + $0x1e08] sm:$0xff]  ;;  %v1449_v31 = vld [vmem:[%s8057_s24 + $0x1e18] sm:$0xff] }
 0x81b   : > { %v3437_v44 = vunpack.c.h.s8.bf16 %v1449_v31 }
 0x81d   : > { %5208 = vmatpush1.bf16.msra.mxu0 %v3386_v57  ;;  %6584 = vmatpush1.bf16.msra.mxu1 %v3388_v58  ;;  %v3431_v57 = vunpack.c.l.s8.bf16 %v1447_v53  ;;  %v3433_v58 = vunpack.c.l.s8.bf16 %v1449_v31  ;;  %v1469_v31 = vld [vmem:[%s8057_s24 + $0x1eb8] sm:$0xff] }
 0x81e   : > { %5209 = vmatprep.subr.bf16.mxu0 %v3391_v59  ;;  %6585 = vmatprep.subr.bf16.mxu1 %v3393_v11  ;;  %v1446_v59 = vld [vmem:[%s8057_s24 + $0x1e00] sm:$0xff]  ;;  %v1448_v11 = vld [vmem:[%s8057_s24 + $0x1e10] sm:$0xff] }
 0x81f   : > { %v3434_v5 = vunpack.c.h.s8.bf16 %v1446_v59  ;;  %v3436_v23 = vunpack.c.h.s8.bf16 %v1448_v11 }
 0x821   : > { %5210 = vmatpush1.bf16.msra.mxu0 %v3390_v61  ;;  %6586 = vmatpush1.bf16.msra.mxu1 %v3392_v62  ;;  %v9352_v61 = vld [vmem:[%s8055_s12 + $0x1f0] sm:$0xff]  ;;  %v3430_v62 = vunpack.c.l.s8.bf16 %v1446_v59  ;;  %v1466_v59 = vld [vmem:[%s8057_s24 + $0x1ea0] sm:$0xff] }
 0x822   : > { %5211 = vmatprep.subr.bf16.mxu0 %v3395_v63  ;;  %6587 = vmatprep.subr.bf16.mxu1 %v3397_v17  ;;  %v3432_v63 = vunpack.c.l.s8.bf16 %v1448_v11  ;;  %v3435_v17 = vunpack.c.h.s8.bf16 %v1447_v53  ;;  %v1467_v53 = vld [vmem:[%s8057_s24 + $0x1ea8] sm:$0xff]  ;;  %v1468_v11 = vld [vmem:[%s8057_s24 + $0x1eb0] sm:$0xff] }
 0x825   : > { %5212 = vmatpush1.bf16.msra.mxu0 %v3394_v3  ;;  %6588 = vmatpush1.bf16.msra.mxu1 %v3396_v4  ;;  %v1453_v3 = vld [vmem:[%s8057_s24 + $0x1e38] sm:$0xff]  ;;  %v7070_v4 = vcombine.high %v9349_v43, %v9352_v61 }
 0x826   : > { %5213 = vmatprep.subr.bf16.mxu0 %v3399_v50  ;;  %6589 = vmatprep.subr.bf16.mxu1 %v3401_v32  ;;  %v3439_v50 = vunpack.c.l.s8.bf16 %v1451_v2  ;;  %v3441_v32 = vunpack.c.l.s8.bf16 %v1453_v3 }
 0x829   : > { %5214 = vmatpush1.bf16.msra.mxu0 %v3398_v9  ;;  %6590 = vmatpush1.bf16.msra.mxu1 %v3400_v27  ;;  %v3438_v9 = vunpack.c.l.s8.bf16 %v1450_v7  ;;  %v3440_v27 = vunpack.c.l.s8.bf16 %v1452_v8 }
 0x82a   : > { %5215 = vmatprep.subr.bf16.mxu0 %v3403_v54  ;;  %6591 = vmatprep.subr.bf16.mxu1 %v3405_v12  ;;  %v3443_v54 = vunpack.c.h.s8.bf16 %v1451_v2  ;;  %v3445_v12 = vunpack.c.h.s8.bf16 %v1453_v3  ;;  %v1473_v2 = vld [vmem:[%s8057_s24 + $0x1ed8] sm:$0xff]  ;;  %v3474_v3 = vunpack.c.h.s8.bf16 %v1466_v59 }
 0x82d   : > { %5216 = vmatpush1.bf16.msra.mxu0 %v3402_v60  ;;  %6592 = vmatpush1.bf16.msra.mxu1 %v3404_v18  ;;  %v3442_v60 = vunpack.c.h.s8.bf16 %v1450_v7  ;;  %v3444_v18 = vunpack.c.h.s8.bf16 %v1452_v8 }
 0x82e   : > { %5217 = vmatprep.subr.bf16.mxu0 %v3407_v19  ;;  %6593 = vmatprep.subr.bf16.mxu1 %v3409_v20  ;;  %v3447_v19 = vunpack.c.l.s8.bf16 %v1455_v13  ;;  %v3449_v20 = vunpack.c.l.s8.bf16 %v1457_v14 }
 0x831   : > { %5218 = vmatpush1.bf16.msra.mxu0 %v3406_v0  ;;  %6594 = vmatpush1.bf16.msra.mxu1 %v3408_v24  ;;  %v3446_v0 = vunpack.c.l.s8.bf16 %v1454_v21  ;;  %v3448_v24 = vunpack.c.l.s8.bf16 %v1456_v39 }
 0x832   : > { %5219 = vmatprep.subr.bf16.mxu0 %v3411_v25  ;;  %6595 = vmatprep.subr.bf16.mxu1 %v3413_v45  ;;  %v3451_v25 = vunpack.c.h.s8.bf16 %v1455_v13  ;;  %v3453_v45 = vunpack.c.h.s8.bf16 %v1457_v14 }
 0x835   : > { %5220 = vmatpush1.bf16.msra.mxu0 %v3410_v29  ;;  %6596 = vmatpush1.bf16.msra.mxu1 %v3412_v30  ;;  %v3450_v29 = vunpack.c.h.s8.bf16 %v1454_v21  ;;  %v3452_v30 = vunpack.c.h.s8.bf16 %v1456_v39 }
 0x836   : > { %5221 = vmatprep.subr.bf16.mxu0 %v3415_v33  ;;  %6597 = vmatprep.subr.bf16.mxu1 %v3417_v51  ;;  %v3455_v33 = vunpack.c.l.s8.bf16 %v1459_v6  ;;  %v3457_v51 = vunpack.c.l.s8.bf16 %v1461_v28 }
 0x839   : > { %5222 = vmatpush1.bf16.msra.mxu0 %v3414_v35  ;;  %6598 = vmatpush1.bf16.msra.mxu1 %v3416_v36  ;;  %v3454_v35 = vunpack.c.l.s8.bf16 %v1458_v10  ;;  %v3456_v36 = vunpack.c.l.s8.bf16 %v1460_v15 }
 0x83a   : > { %5223 = vmatprep.subr.bf16.mxu0 %v3419_v37  ;;  %6599 = vmatprep.subr.bf16.mxu1 %v3421_v55  ;;  %v3459_v37 = vunpack.c.h.s8.bf16 %v1459_v6  ;;  %v3461_v55 = vunpack.c.h.s8.bf16 %v1461_v28 }
 0x83d   : > { %5224 = vmatpush1.bf16.msra.mxu0 %v3418_v41  ;;  %6600 = vmatpush1.bf16.msra.mxu1 %v3420_v42  ;;  %v3458_v41 = vunpack.c.h.s8.bf16 %v1458_v10  ;;  %v3460_v42 = vunpack.c.h.s8.bf16 %v1460_v15  ;;  %v7069_v10 = vcombine.low %v9349_v43, %v9352_v61  ;;  %v9391_v15 = vld [vmem:[%s8055_s12 + $0xf8] sm:$0xff] }
 0x83e   : > { %5225 = vmatprep.subr.bf16.mxu0 %v3423_v22  ;;  %6601 = vmatprep.subr.bf16.mxu1 %v3425_v46  ;;  %v3463_v22 = vunpack.c.l.s8.bf16 %v1463_v16  ;;  %v3465_v46 = vunpack.c.l.s8.bf16 %v1465_v40 }
 0x841   : > { %5226 = vmatpush1.bf16.msra.mxu0 %v3422_v49  ;;  %6602 = vmatpush1.bf16.msra.mxu1 %v3424_v1  ;;  %v3462_v49 = vunpack.c.l.s8.bf16 %v1462_v47  ;;  %v3464_v1 = vunpack.c.l.s8.bf16 %v1464_v48 }
 0x842   : > { %5227 = vmatprep.subr.bf16.mxu0 %v3427_v26  ;;  %6603 = vmatprep.subr.bf16.mxu1 %v3429_v52  ;;  %v3467_v26 = vunpack.c.h.s8.bf16 %v1463_v16  ;;  %v3469_v52 = vunpack.c.h.s8.bf16 %v1465_v40  ;;  %v1483_v40 = vld [vmem:[%s8057_s24 + $0x1f28] sm:$0xff] }
 0x845   : > { %5228 = vmatpush1.bf16.msra.mxu0 %v3426_v34  ;;  %6604 = vmatpush1.bf16.msra.mxu1 %v3428_v56  ;;  %v3466_v34 = vunpack.c.h.s8.bf16 %v1462_v47  ;;  %v3468_v56 = vunpack.c.h.s8.bf16 %v1464_v48  ;;  %v1482_v47 = vld [vmem:[%s8057_s24 + $0x1f20] sm:$0xff]  ;;  %v1484_v48 = vld [vmem:[%s8057_s24 + $0x1f30] sm:$0xff] }
 0x846   : > { %5240 = vmatprep.subr.bf16.mxu0 %v3431_v57  ;;  %6616 = vmatprep.subr.bf16.mxu1 %v3433_v58  ;;  %v3471_v57 = vunpack.c.l.s8.bf16 %v1467_v53  ;;  %v3473_v58 = vunpack.c.l.s8.bf16 %v1469_v31 }
 0x848   : > { %5230 = vmatmul.mubr.bf16.vlgmr.msra.gmra.mrb[0].mxu0 %v7067_v38  ;;  %6606 = vmatmul.mubr.bf16.vlgmr.msra.gmra.mrb[0].mxu1 %v7067_v38  ;;  %v3470_v38 = vunpack.c.l.s8.bf16 %v1466_v59  ;;  %v1486_v59 = vld [vmem:[%s8057_s24 + $0x1f40] sm:$0xff] }
 0x849   : > { %5241 = vmatpush1.bf16.msra.mxu0 %v3430_v62  ;;  %6617 = vmatpush1.bf16.msra.mxu1 %v3432_v63  ;;  %v3472_v62 = vunpack.c.l.s8.bf16 %v1468_v11  ;;  %v3475_v63 = vunpack.c.h.s8.bf16 %v1467_v53  ;;  %v1487_v53 = vld [vmem:[%s8057_s24 + $0x1f48] sm:$0xff] }
 0x84a   : > { %5242 = vmatprep.subr.bf16.mxu0 %v3435_v17  ;;  %6618 = vmatprep.subr.bf16.mxu1 %v3437_v44  ;;  %v3477_v17 = vunpack.c.h.s8.bf16 %v1469_v31  ;;  %v1471_v44 = vld [vmem:[%s8057_s24 + $0x1ec8] sm:$0xff]  ;;  %v1489_v31 = vld [vmem:[%s8057_s24 + $0x1f58] sm:$0xff] }
 0x84b   : > { %5272 = vmatprep.mubr.bf16.mxu0 %v7070_v4  ;;  %6648 = vmatprep.mubr.bf16.mxu1 %v7070_v4  ;;  %v3476_v4 = vunpack.c.h.s8.bf16 %v1468_v11  ;;  %v1488_v11 = vld [vmem:[%s8057_s24 + $0x1f50] sm:$0xff] }
 0x84d   : > { %5243 = vmatpush1.bf16.msra.mxu0 %v3434_v5  ;;  %6619 = vmatpush1.bf16.msra.mxu1 %v3436_v23  ;;  %v3479_v5 = vunpack.c.l.s8.bf16 %v1471_v44  ;;  %v3481_v23 = vunpack.c.l.s8.bf16 %v1473_v2 }
 0x84e   : > { %5244 = vmatprep.subr.bf16.mxu0 %v3439_v50  ;;  %6620 = vmatprep.subr.bf16.mxu1 %v3441_v32  ;;  %v1470_v50 = vld [vmem:[%s8057_s24 + $0x1ec0] sm:$0xff]  ;;  %v1472_v32 = vld [vmem:[%s8057_s24 + $0x1ed0] sm:$0xff] }
 0x84f   : > { %v3478_v7 = vunpack.c.l.s8.bf16 %v1470_v50  ;;  %v3480_v8 = vunpack.c.l.s8.bf16 %v1472_v32  ;;  %v3482_v13 = vunpack.c.h.s8.bf16 %v1470_v50  ;;  %v3484_v14 = vunpack.c.h.s8.bf16 %v1472_v32  ;;  %v1490_v50 = vld [vmem:[%s8057_s24 + $0x1f60] sm:$0xff]  ;;  %v1492_v32 = vld [vmem:[%s8057_s24 + $0x1f70] sm:$0xff] }
 0x851   : > { %5245 = vmatpush1.bf16.msra.mxu0 %v3438_v9  ;;  %6621 = vmatpush1.bf16.msra.mxu1 %v3440_v27  ;;  %v3483_v9 = vunpack.c.h.s8.bf16 %v1471_v44  ;;  %v3485_v27 = vunpack.c.h.s8.bf16 %v1473_v2  ;;  %v1491_v44 = vld [vmem:[%s8057_s24 + $0x1f68] sm:$0xff]  ;;  %v1493_v2 = vld [vmem:[%s8057_s24 + $0x1f78] sm:$0xff] }
 0x852   : > { %5246 = vmatprep.subr.bf16.mxu0 %v3443_v54  ;;  %6622 = vmatprep.subr.bf16.mxu1 %v3445_v12  ;;  %v1475_v54 = vld [vmem:[%s8057_s24 + $0x1ee8] sm:$0xff]  ;;  %v1477_v12 = vld [vmem:[%s8057_s24 + $0x1ef8] sm:$0xff] }
 0x855   : > { %5247 = vmatpush1.bf16.msra.mxu0 %v3442_v60  ;;  %6623 = vmatpush1.bf16.msra.mxu1 %v3444_v18  ;;  %v3487_v60 = vunpack.c.l.s8.bf16 %v1475_v54  ;;  %v3489_v18 = vunpack.c.l.s8.bf16 %v1477_v12 }
 0x856   : > { %5248 = vmatprep.subr.bf16.mxu0 %v3447_v19  ;;  %6624 = vmatprep.subr.bf16.mxu1 %v3449_v20  ;;  %v1474_v19 = vld [vmem:[%s8057_s24 + $0x1ee0] sm:$0xff]  ;;  %v1476_v20 = vld [vmem:[%s8057_s24 + $0x1ef0] sm:$0xff] }
 0x857   : > { %v3486_v21 = vunpack.c.l.s8.bf16 %v1474_v19  ;;  %v3488_v39 = vunpack.c.l.s8.bf16 %v1476_v20  ;;  %v3490_v6 = vunpack.c.h.s8.bf16 %v1474_v19  ;;  %v3492_v28 = vunpack.c.h.s8.bf16 %v1476_v20  ;;  %v1494_v19 = vld [vmem:[%s8057_s24 + $0x1f80] sm:$0xff]  ;;  %v1496_v20 = vld [vmem:[%s8057_s24 + $0x1f90] sm:$0xff] }
 0x859   : > { %5249 = vmatpush1.bf16.msra.mxu0 %v3446_v0  ;;  %6625 = vmatpush1.bf16.msra.mxu1 %v3448_v24  ;;  %v3491_v0 = vunpack.c.h.s8.bf16 %v1475_v54  ;;  %v3493_v24 = vunpack.c.h.s8.bf16 %v1477_v12  ;;  %v1495_v54 = vld [vmem:[%s8057_s24 + $0x1f88] sm:$0xff]  ;;  %v1497_v12 = vld [vmem:[%s8057_s24 + $0x1f98] sm:$0xff] }
 0x85a   : > { %5250 = vmatprep.subr.bf16.mxu0 %v3451_v25  ;;  %6626 = vmatprep.subr.bf16.mxu1 %v3453_v45  ;;  %v1479_v25 = vld [vmem:[%s8057_s24 + $0x1f08] sm:$0xff]  ;;  %v1481_v45 = vld [vmem:[%s8057_s24 + $0x1f18] sm:$0xff] }
 0x85b   : > { %v3501_v16 = vunpack.c.h.s8.bf16 %v1481_v45 }
 0x85d   : > { %5251 = vmatpush1.bf16.msra.mxu0 %v3450_v29  ;;  %6627 = vmatpush1.bf16.msra.mxu1 %v3452_v30  ;;  %v3495_v29 = vunpack.c.l.s8.bf16 %v1479_v25  ;;  %v3497_v30 = vunpack.c.l.s8.bf16 %v1481_v45  ;;  %v1501_v45 = vld [vmem:[%s8057_s24 + $0x1fb8] sm:$0xff] }
 0x85e   : > { %5252 = vmatprep.subr.bf16.mxu0 %v3455_v33  ;;  %6628 = vmatprep.subr.bf16.mxu1 %v3457_v51  ;;  %v1478_v33 = vld [vmem:[%s8057_s24 + $0x1f00] sm:$0xff]  ;;  %v1480_v51 = vld [vmem:[%s8057_s24 + $0x1f10] sm:$0xff] }
 0x85f   : > { %v3498_v43 = vunpack.c.h.s8.bf16 %v1478_v33  ;;  %v3500_v61 = vunpack.c.h.s8.bf16 %v1480_v51 }
 0x861   : > { %5253 = vmatpush1.bf16.msra.mxu0 %v3454_v35  ;;  %6629 = vmatpush1.bf16.msra.mxu1 %v3456_v36  ;;  %v9394_v35 = vld [vmem:[%s8055_s12 + $0x1f8] sm:$0xff]  ;;  %v3494_v36 = vunpack.c.l.s8.bf16 %v1478_v33  ;;  %v1498_v33 = vld [vmem:[%s8057_s24 + $0x1fa0] sm:$0xff] }
 0x862   : > { %5254 = vmatprep.subr.bf16.mxu0 %v3459_v37  ;;  %6630 = vmatprep.subr.bf16.mxu1 %v3461_v55  ;;  %v3496_v37 = vunpack.c.l.s8.bf16 %v1480_v51  ;;  %v3499_v55 = vunpack.c.h.s8.bf16 %v1479_v25  ;;  %v1499_v25 = vld [vmem:[%s8057_s24 + $0x1fa8] sm:$0xff]  ;;  %v1500_v51 = vld [vmem:[%s8057_s24 + $0x1fb0] sm:$0xff] }
 0x865   : > { %5255 = vmatpush1.bf16.msra.mxu0 %v3458_v41  ;;  %6631 = vmatpush1.bf16.msra.mxu1 %v3460_v42  ;;  %v1485_v41 = vld [vmem:[%s8057_s24 + $0x1f38] sm:$0xff]  ;;  %v7072_v42 = vcombine.high %v9391_v15, %v9394_v35 }
 0x866   : > { %5256 = vmatprep.subr.bf16.mxu0 %v3463_v22  ;;  %6632 = vmatprep.subr.bf16.mxu1 %v3465_v46  ;;  %v3503_v22 = vunpack.c.l.s8.bf16 %v1483_v40  ;;  %v3505_v46 = vunpack.c.l.s8.bf16 %v1485_v41 }
 0x869   : > { %5257 = vmatpush1.bf16.msra.mxu0 %v3462_v49  ;;  %6633 = vmatpush1.bf16.msra.mxu1 %v3464_v1  ;;  %v3502_v49 = vunpack.c.l.s8.bf16 %v1482_v47  ;;  %v3504_v1 = vunpack.c.l.s8.bf16 %v1484_v48 }
 0x86a   : > { %5258 = vmatprep.subr.bf16.mxu0 %v3467_v26  ;;  %6634 = vmatprep.subr.bf16.mxu1 %v3469_v52  ;;  %v3507_v26 = vunpack.c.h.s8.bf16 %v1483_v40  ;;  %v3509_v52 = vunpack.c.h.s8.bf16 %v1485_v41  ;;  %v1505_v40 = vld [vmem:[%s8057_s24 + $0x1fd8] sm:$0xff]  ;;  %v3538_v41 = vunpack.c.h.s8.bf16 %v1498_v33 }
 0x86d   : > { %5259 = vmatpush1.bf16.msra.mxu0 %v3466_v34  ;;  %6635 = vmatpush1.bf16.msra.mxu1 %v3468_v56  ;;  %v3506_v34 = vunpack.c.h.s8.bf16 %v1482_v47  ;;  %v3508_v56 = vunpack.c.h.s8.bf16 %v1484_v48 }
 0x86e   : > { %5260 = vmatprep.subr.bf16.mxu0 %v3471_v57  ;;  %6636 = vmatprep.subr.bf16.mxu1 %v3473_v58  ;;  %v3511_v57 = vunpack.c.l.s8.bf16 %v1487_v53  ;;  %v3513_v58 = vunpack.c.l.s8.bf16 %v1489_v31 }
 0x871   : > { %5261 = vmatpush1.bf16.msra.mxu0 %v3470_v38  ;;  %6637 = vmatpush1.bf16.msra.mxu1 %v3472_v62  ;;  %v3510_v38 = vunpack.c.l.s8.bf16 %v1486_v59  ;;  %v3512_v62 = vunpack.c.l.s8.bf16 %v1488_v11 }
 0x872   : > { %5262 = vmatprep.subr.bf16.mxu0 %v3475_v63  ;;  %6638 = vmatprep.subr.bf16.mxu1 %v3477_v17  ;;  %v3515_v63 = vunpack.c.h.s8.bf16 %v1487_v53  ;;  %v3517_v17 = vunpack.c.h.s8.bf16 %v1489_v31 }
 0x875   : > { %5263 = vmatpush1.bf16.msra.mxu0 %v3474_v3  ;;  %6639 = vmatpush1.bf16.msra.mxu1 %v3476_v4  ;;  %v3514_v3 = vunpack.c.h.s8.bf16 %v1486_v59  ;;  %v3516_v4 = vunpack.c.h.s8.bf16 %v1488_v11 }
 0x876   : > { %5264 = vmatprep.subr.bf16.mxu0 %v3479_v5  ;;  %6640 = vmatprep.subr.bf16.mxu1 %v3481_v23  ;;  %v3519_v5 = vunpack.c.l.s8.bf16 %v1491_v44  ;;  %v3521_v23 = vunpack.c.l.s8.bf16 %v1493_v2 }
 0x879   : > { %5265 = vmatpush1.bf16.msra.mxu0 %v3478_v7  ;;  %6641 = vmatpush1.bf16.msra.mxu1 %v3480_v8  ;;  %v3518_v7 = vunpack.c.l.s8.bf16 %v1490_v50  ;;  %v3520_v8 = vunpack.c.l.s8.bf16 %v1492_v32 }
 0x87a   : > { %5266 = vmatprep.subr.bf16.mxu0 %v3483_v9  ;;  %6642 = vmatprep.subr.bf16.mxu1 %v3485_v27  ;;  %v3523_v9 = vunpack.c.h.s8.bf16 %v1491_v44  ;;  %v3525_v27 = vunpack.c.h.s8.bf16 %v1493_v2  ;;  %v7071_v44 = vcombine.low %v9391_v15, %v9394_v35  ;;  %v3558_v2 = vld [vmem:[%s8073_s14] sm:$0xff] }
 0x87d   : > { %5267 = vmatpush1.bf16.msra.mxu0 %v3482_v13  ;;  %6643 = vmatpush1.bf16.msra.mxu1 %v3484_v14  ;;  %v3522_v13 = vunpack.c.h.s8.bf16 %v1490_v50  ;;  %v3524_v14 = vunpack.c.h.s8.bf16 %v1492_v32  ;;  %v3562_v32 = vld [vmem:[%s8073_s14 + $0x20] sm:$0xff] }
 0x87e   : > { %5268 = vmatprep.subr.bf16.mxu0 %v3487_v60  ;;  %6644 = vmatprep.subr.bf16.mxu1 %v3489_v18  ;;  %v3527_v60 = vunpack.c.l.s8.bf16 %v1495_v54  ;;  %v3529_v18 = vunpack.c.l.s8.bf16 %v1497_v12 }
 0x881   : > { %5269 = vmatpush1.bf16.msra.mxu0 %v3486_v21  ;;  %6645 = vmatpush1.bf16.msra.mxu1 %v3488_v39  ;;  %v3526_v21 = vunpack.c.l.s8.bf16 %v1494_v19  ;;  %v3528_v39 = vunpack.c.l.s8.bf16 %v1496_v20 }
 0x882   : > { %5270 = vmatprep.subr.bf16.mxu0 %v3491_v0  ;;  %6646 = vmatprep.subr.bf16.mxu1 %v3493_v24  ;;  %v3531_v0 = vunpack.c.h.s8.bf16 %v1495_v54  ;;  %v3533_v24 = vunpack.c.h.s8.bf16 %v1497_v12  ;;  %v3565_v54 = vld [vmem:[%s8073_s14 + $0x38] sm:$0xff] }
 0x885   : > { %5271 = vmatpush1.bf16.msra.mxu0 %v3490_v6  ;;  %6647 = vmatpush1.bf16.msra.mxu1 %v3492_v28  ;;  %v3530_v6 = vunpack.c.h.s8.bf16 %v1494_v19  ;;  %v3532_v28 = vunpack.c.h.s8.bf16 %v1496_v20 }
 0x886   : > { %5283 = vmatprep.subr.bf16.mxu0 %v3495_v29  ;;  %6659 = vmatprep.subr.bf16.mxu1 %v3497_v30  ;;  %v3535_v29 = vunpack.c.l.s8.bf16 %v1499_v25  ;;  %v3537_v30 = vunpack.c.l.s8.bf16 %v1501_v45 }
 0x888   : > { %5273 = vmatmul.mubr.bf16.vlgmr.msra.gmra.mrb[0].mxu0 %v7069_v10  ;;  %6649 = vmatmul.mubr.bf16.vlgmr.msra.gmra.mrb[0].mxu1 %v7069_v10  ;;  %v3534_v10 = vunpack.c.l.s8.bf16 %v1498_v33 }
 0x889   : > { %5284 = vmatpush1.bf16.msra.mxu0 %v3494_v36  ;;  %6660 = vmatpush1.bf16.msra.mxu1 %v3496_v37  ;;  %v3536_v36 = vunpack.c.l.s8.bf16 %v1500_v51  ;;  %v3539_v37 = vunpack.c.h.s8.bf16 %v1499_v25 }
 0x88a   : > { %5285 = vmatprep.subr.bf16.mxu0 %v3499_v55  ;;  %6661 = vmatprep.subr.bf16.mxu1 %v3501_v16  ;;  %v3541_v55 = vunpack.c.h.s8.bf16 %v1501_v45  ;;  %v1503_v16 = vld [vmem:[%s8057_s24 + $0x1fc8] sm:$0xff]  ;;  %v6730_v45 = vld [vmem:[%s421_s30] sm:$0xf] (!%p7073_p11) }
 0x88b   : > { %5315 = vmatprep.mubr.bf16.mxu0 %v7072_v42  ;;  %6691 = vmatprep.mubr.bf16.mxu1 %v7072_v42  ;;  %v3540_v42 = vunpack.c.h.s8.bf16 %v1500_v51 }
 0x88d   : > { %5286 = vmatpush1.bf16.msra.mxu0 %v3498_v43  ;;  %6662 = vmatpush1.bf16.msra.mxu1 %v3500_v61  ;;  %v3543_v43 = vunpack.c.l.s8.bf16 %v1503_v16  ;;  %v3545_v61 = vunpack.c.l.s8.bf16 %v1505_v40 }
 0x88e   : > { %5287 = vmatprep.subr.bf16.mxu0 %v3503_v22  ;;  %6663 = vmatprep.subr.bf16.mxu1 %v3505_v46  ;;  %v1502_v22 = vld [vmem:[%s8057_s24 + $0x1fc0] sm:$0xff]  ;;  %v1504_v46 = vld [vmem:[%s8057_s24 + $0x1fd0] sm:$0xff] }
 0x88f   : > { %v3542_v47 = vunpack.c.l.s8.bf16 %v1502_v22  ;;  %v3544_v48 = vunpack.c.l.s8.bf16 %v1504_v46  ;;  %v3546_v53 = vunpack.c.h.s8.bf16 %v1502_v22  ;;  %v3548_v31 = vunpack.c.h.s8.bf16 %v1504_v46 }
 0x891   : > { %5288 = vmatpush1.bf16.msra.mxu0 %v3502_v49  ;;  %6664 = vmatpush1.bf16.msra.mxu1 %v3504_v1  ;;  %v3547_v49 = vunpack.c.h.s8.bf16 %v1503_v16  ;;  %v3549_v1 = vunpack.c.h.s8.bf16 %v1505_v40 }
 0x892   : > { %5289 = vmatprep.subr.bf16.mxu0 %v3507_v26  ;;  %6665 = vmatprep.subr.bf16.mxu1 %v3509_v52  ;;  %v1507_v26 = vld [vmem:[%s8057_s24 + $0x1fe8] sm:$0xff]  ;;  %v1509_v52 = vld [vmem:[%s8057_s24 + $0x1ff8] sm:$0xff] }
 0x895   : > { %5290 = vmatpush1.bf16.msra.mxu0 %v3506_v34  ;;  %6666 = vmatpush1.bf16.msra.mxu1 %v3508_v56  ;;  %v3551_v34 = vunpack.c.l.s8.bf16 %v1507_v26  ;;  %v3553_v56 = vunpack.c.l.s8.bf16 %v1509_v52 }
 0x896   : > { %5291 = vmatprep.subr.bf16.mxu0 %v3511_v57  ;;  %6667 = vmatprep.subr.bf16.mxu1 %v3513_v58  ;;  %v1506_v57 = vld [vmem:[%s8057_s24 + $0x1fe0] sm:$0xff]  ;;  %v1508_v58 = vld [vmem:[%s8057_s24 + $0x1ff0] sm:$0xff] }
 0x897   : > { %v3550_v59 = vunpack.c.l.s8.bf16 %v1506_v57  ;;  %v3552_v11 = vunpack.c.l.s8.bf16 %v1508_v58 }
 0x899   : > { %5292 = vmatpush1.bf16.msra.mxu0 %v3510_v38  ;;  %6668 = vmatpush1.bf16.msra.mxu1 %v3512_v62  ;;  %v3555_v38 = vunpack.c.h.s8.bf16 %v1507_v26  ;;  %v3557_v62 = vunpack.c.h.s8.bf16 %v1509_v52 }
 0x89a   : > { %5293 = vmatprep.subr.bf16.mxu0 %v3515_v63  ;;  %6669 = vmatprep.subr.bf16.mxu1 %v3517_v17  ;;  %v3554_v63 = vunpack.c.h.s8.bf16 %v1506_v57  ;;  %v3556_v17 = vunpack.c.h.s8.bf16 %v1508_v58 }
 0x89d   : > { %5294 = vmatpush1.bf16.msra.mxu0 %v3514_v3  ;;  %6670 = vmatpush1.bf16.msra.mxu1 %v3516_v4  ;;  %v3560_v3 = vld [vmem:[%s8073_s14 + $0x10] sm:$0xff]  ;;  %v3559_v4 = vld [vmem:[%s8073_s14 + $0x8] sm:$0xff] }
 0x89e   : > { %5295 = vmatprep.subr.bf16.mxu0 %v3519_v5  ;;  %6671 = vmatprep.subr.bf16.mxu1 %v3521_v23  ;;  %v3561_v5 = vld [vmem:[%s8073_s14 + $0x18] sm:$0xff] }
 0x8a1   : > { %5296 = vmatpush1.bf16.msra.mxu0 %v3518_v7  ;;  %6672 = vmatpush1.bf16.msra.mxu1 %v3520_v8  ;;  %v3564_v7 = vld [vmem:[%s8073_s14 + $0x30] sm:$0xff] }
 0x8a2   : > { %5297 = vmatprep.subr.bf16.mxu0 %v3523_v9  ;;  %6673 = vmatprep.subr.bf16.mxu1 %v3525_v27  ;;  %v3563_v27 = vld [vmem:[%s8073_s14 + $0x28] sm:$0xff] }
 0x8a5   : > { %5298 = vmatpush1.bf16.msra.mxu0 %v3522_v13  ;;  %6674 = vmatpush1.bf16.msra.mxu1 %v3524_v14 }
 0x8a6   : > { %5299 = vmatprep.subr.bf16.mxu0 %v3527_v60  ;;  %6675 = vmatprep.subr.bf16.mxu1 %v3529_v18 }
 0x8a9   : > { %5300 = vmatpush1.bf16.msra.mxu0 %v3526_v21  ;;  %6676 = vmatpush1.bf16.msra.mxu1 %v3528_v39 }
 0x8aa   : > { %5301 = vmatprep.subr.bf16.mxu0 %v3531_v0  ;;  %6677 = vmatprep.subr.bf16.mxu1 %v3533_v24  ;;  %v6732_v24 = vlaneseq (!%p7073_p11) }
 0x8ac   : > { %v6733_v25 = vshrl.u32 (!%p7073_p11), %v6732_v24, 7 }
 0x8ad   : > { %5302 = vmatpush1.bf16.msra.mxu0 %v3530_v6  ;;  %6678 = vmatpush1.bf16.msra.mxu1 %v3532_v28  ;;  %v6760_v6 = vld [vmem:[%s430_s7] sm:$0xf] (!%p7073_p11) }
 0x8ae   : > { %5303 = vmatprep.subr.bf16.mxu0 %v3535_v29  ;;  %6679 = vmatprep.subr.bf16.mxu1 %v3537_v30  ;;  %v6734_v29 = vsub.s32 (!%p7073_p11), 0, %v6733_v25  ;;  %v6738_v33 = vsub.s32 (!%p7073_p11), 1, %v6733_v25  ;;  %v6742_v51 = vsub.s32 (!%p7073_p11), 2, %v6733_v25 }
 0x8b0   : > { %v6735_v16 = vrot.slane (!%p7073_p11), %v6730_v45, %v6734_v29  ;;  %v6765_v40 = vrot.slane (!%p7073_p11), %v6760_v6, %v6734_v29  ;;  %v6743_v46 = vrot.slane (!%p7073_p11), %v6730_v45, %v6742_v51 }
 0x8b1   : > { %5304 = vmatpush1.bf16.msra.mxu0 %v3534_v10  ;;  %6680 = vmatpush1.bf16.msra.mxu1 %v3536_v36  ;;  %v6746_v10 = vsub.s32 (!%p7073_p11), 3, %v6733_v25 }
 0x8b2   : > { %5305 = vmatprep.subr.bf16.mxu0 %v3539_v37  ;;  %6681 = vmatprep.subr.bf16.mxu1 %v3541_v55 }
 0x8b5   : > { %5306 = vmatpush1.bf16.msra.mxu0 %v3538_v41  ;;  %6682 = vmatpush1.bf16.msra.mxu1 %v3540_v42  ;;  %v6739_v41 = vrot.slane (!%p7073_p11), %v6730_v45, %v6738_v33  ;;  %v6769_v42 = vrot.slane (!%p7073_p11), %v6760_v6, %v6738_v33 }
 0x8b6   : > { %5307 = vmatprep.subr.bf16.mxu0 %v3543_v43  ;;  %6683 = vmatprep.subr.bf16.mxu1 %v3545_v61 }
 0x8b9   : > { %5308 = vmatpush1.bf16.msra.mxu0 %v3542_v47  ;;  %6684 = vmatpush1.bf16.msra.mxu1 %v3544_v48  ;;  %v6773_v47 = vrot.slane (!%p7073_p11), %v6760_v6, %v6742_v51  ;;  %v6747_v48 = vrot.slane (!%p7073_p11), %v6730_v45, %v6746_v10 }
 0x8ba   : > { %5309 = vmatprep.subr.bf16.mxu0 %v3547_v49  ;;  %6685 = vmatprep.subr.bf16.mxu1 %v3549_v1  ;;  %v6777_v49 = vrot.slane (!%p7073_p11), %v6760_v6, %v6746_v10 }
 0x8bd   : > { %5310 = vmatpush1.bf16.msra.mxu0 %v3546_v53  ;;  %6686 = vmatpush1.bf16.msra.mxu1 %v3548_v31 }
 0x8be   : > { %5311 = vmatprep.subr.bf16.mxu0 %v3551_v34  ;;  %6687 = vmatprep.subr.bf16.mxu1 %v3553_v56 }
 0x8c1   : > { %5312 = vmatpush1.bf16.msra.mxu0 %v3550_v59  ;;  %6688 = vmatpush1.bf16.msra.mxu1 %v3552_v11 }
 0x8c2   : > { %5313 = vmatprep.subr.bf16.mxu0 %v3555_v38  ;;  %6689 = vmatprep.subr.bf16.mxu1 %v3557_v62 }
 0x8c5   : > { %5314 = vmatpush1.bf16.msra.mxu0 %v3554_v63  ;;  %6690 = vmatpush1.bf16.msra.mxu1 %v3556_v17 }
 0x8c8   : > { %5316 = vmatmul.mubr.bf16.vlgmr.msra.gmra.mrb[0].mxu0 %v7071_v44  ;;  %6692 = vmatmul.mubr.bf16.vlgmr.msra.gmra.mrb[0].mxu1 %v7071_v44 }
 0x99b   : > { %v5317_v23 = vpop.f32.mrb[0].mxu0  ;;  %v6693_v50 = vpop.f32.mrb[0].mxu1  ;;  %6721 = sbr.rel (%p7073_p11) target bundleno = 2480 (0x9b0), region = 79 }
 0x99c   : > { %v6702_v8 = vadd.f32 %v5317_v23, %v3558_v2  ;;  %v6704_v9 = vadd.f32 %v6693_v50, %v3560_v3  ;;  %v5319_v15 = vpop.f32.mrb[1].mxu0  ;;  %v6695_v35 = vpop.f32.mrb[1].mxu1 }
 0x99d   : > { %v6703_v12 = vadd.f32 %v5319_v15, %v3559_v4  ;;  %v6705_v13 = vadd.f32 %v6695_v35, %v3561_v5  ;;  %v5321_v14 = vpop.f32.mrb[2].mxu0  ;;  %v6697_v60 = vpop.f32.mrb[2].mxu1 }
 0x99e   : > { %6710 = vst [vmem:[%s8073_s14] sm:$0xff] %v6702_v8  ;;  %6712 = vst [vmem:[%s8073_s14 + $0x10] sm:$0xff] %v6704_v9  ;;  %v6706_v18 = vadd.f32 %v5321_v14, %v3562_v32  ;;  %v6708_v19 = vadd.f32 %v6697_v60, %v3564_v7  ;;  %v5323_v20 = vpop.f32.mrb[3].mxu0  ;;  %v6699_v21 = vpop.f32.mrb[3].mxu1 }
 0x99f   : > { %6711 = vst [vmem:[%s8073_s14 + $0x8] sm:$0xff] %v6703_v12  ;;  %6713 = vst [vmem:[%s8073_s14 + $0x18] sm:$0xff] %v6705_v13  ;;  %v6707_v39 = vadd.f32 %v5323_v20, %v3563_v27  ;;  %v6709_v0 = vadd.f32 %v6699_v21, %v3565_v54 }
 0x9a0   : > { %6714 = vst [vmem:[%s8073_s14 + $0x20] sm:$0xff] %v6706_v18  ;;  %6716 = vst [vmem:[%s8073_s14 + $0x30] sm:$0xff] %v6708_v19 }
 0x9a1   : > { %6715 = vst [vmem:[%s8073_s14 + $0x28] sm:$0xff] %v6707_v39  ;;  %6717 = vst [vmem:[%s8073_s14 + $0x38] sm:$0xff] %v6709_v0 }
 0x9a5   : > { %v6722_v28 = vld [vmem:[%s8073_s14] sm:$0xff]  ;;  %v6724_v36 = vld [vmem:[%s8073_s14 + $0x10] sm:$0xff] }
 0x9a6   : > { %v6723_v30 = vld [vmem:[%s8073_s14 + $0x8] sm:$0xff]  ;;  %v6725_v43 = vld [vmem:[%s8073_s14 + $0x18] sm:$0xff]  ;;  %v6752_v1 = vmul.f32 %v6735_v16, %v6722_v28  ;;  %v6754_v31 = vmul.f32 %v6743_v46, %v6724_v36 }
 0x9a7   : > { %v6726_v37 = vld [vmem:[%s8073_s14 + $0x20] sm:$0xff]  ;;  %v6728_v61 = vld [vmem:[%s8073_s14 + $0x30] sm:$0xff]  ;;  %v6753_v26 = vmul.f32 %v6739_v41, %v6723_v30  ;;  %v6755_v34 = vmul.f32 %v6747_v48, %v6725_v43 }
 0x9a8   : > { %v6727_v55 = vld [vmem:[%s8073_s14 + $0x28] sm:$0xff]  ;;  %v6729_v22 = vld [vmem:[%s8073_s14 + $0x38] sm:$0xff]  ;;  %v6756_v52 = vmul.f32 %v6735_v16, %v6726_v37  ;;  %v6758_v56 = vmul.f32 %v6743_v46, %v6728_v61  ;;  %v6782_v58 = vadd.f32 %v6765_v40, %v6752_v1  ;;  %v6784_v62 = vadd.f32 %v6773_v47, %v6754_v31 }
 0x9a9   : > { %v6757_v53 = vmul.f32 %v6739_v41, %v6727_v55  ;;  %v6759_v57 = vmul.f32 %v6747_v48, %v6729_v22  ;;  %v6783_v59 = vadd.f32 %v6769_v42, %v6753_v26  ;;  %v6785_v63 = vadd.f32 %v6777_v49, %v6755_v34 }
 0x9aa   : > { %v6786_v11 = vadd.f32 %v6765_v40, %v6756_v52  ;;  %v6788_v17 = vadd.f32 %v6773_v47, %v6758_v56  ;;  %v6790_v2 = vmax.f32 %v6782_v58, 0.0  ;;  %v6792_v23 = vmax.f32 %v6784_v62, 0.0 }
 0x9ab   : > { %v6787_v38 = vadd.f32 %v6769_v42, %v6757_v53  ;;  %v6789_v44 = vadd.f32 %v6777_v49, %v6759_v57  ;;  %v6791_v3 = vmax.f32 %v6783_v59, 0.0  ;;  %v6793_v50 = vmax.f32 %v6785_v63, 0.0 }
 0x9ac   : > { %v6794_v4 = vmax.f32 %v6786_v11, 0.0  ;;  %v6796_v32 = vmax.f32 %v6788_v17, 0.0  ;;  %6798 = vst [vmem:[%s8073_s14] sm:$0xff] %v6790_v2  ;;  %6800 = vst [vmem:[%s8073_s14 + $0x10] sm:$0xff] %v6792_v23 }
 0x9ad   : > { %v6795_v5 = vmax.f32 %v6787_v38, 0.0  ;;  %v6797_v7 = vmax.f32 %v6789_v44, 0.0  ;;  %6799 = vst [vmem:[%s8073_s14 + $0x8] sm:$0xff] %v6791_v3  ;;  %6801 = vst [vmem:[%s8073_s14 + $0x18] sm:$0xff] %v6793_v50 }
 0x9ae   : > { %6802 = vst [vmem:[%s8073_s14 + $0x20] sm:$0xff] %v6794_v4  ;;  %6804 = vst [vmem:[%s8073_s14 + $0x30] sm:$0xff] %v6796_v32 }
 0x9af   : > { %6803 = vst [vmem:[%s8073_s14 + $0x28] sm:$0xff] %v6795_v5  ;;  %6805 = vst [vmem:[%s8073_s14 + $0x38] sm:$0xff] %v6797_v7 }
 0x9b0 PF: > { %p9558_p12 = scmp.ne.s32.totalorder %s9552_s8, 0 }
 0x9b1   : > { %s9559_s23 = sld [smem:[#allocation13_spill]] (%p9558_p12) }
 0x9b2   : > { %6812 = sbr.rel (!%p9558_p12) target bundleno = 2493 (0x9bd), region = 83  ;;  %s9560_s11 = sld [smem:[#allocation21_spill]] (%p9558_p12) }
 0x9b3   : > { %v6828_v8 = vld [vmem:[%s8073_s14] sm:$0xff] (%p9558_p12)  ;;  %v6832_v15 = vld [vmem:[%s8073_s14 + $0x10] sm:$0xff] (%p9558_p12) }
 0x9b4   : > { %v6830_v9 = vld [vmem:[%s8073_s14 + $0x8] sm:$0xff] (%p9558_p12)  ;;  %v6834_v35 = vld [vmem:[%s8073_s14 + $0x18] sm:$0xff] (%p9558_p12) }
 0x9b5   : > { %v6836_v27 = vld [vmem:[%s8073_s14 + $0x20] sm:$0xff] (%p9558_p12)  ;;  %v6840_v12 = vld [vmem:[%s8073_s14 + $0x30] sm:$0xff] (%p9558_p12) }
 0x9b6   : > { %v6838_v54 = vld [vmem:[%s8073_s14 + $0x28] sm:$0xff] (%p9558_p12)  ;;  %v6842_v13 = vld [vmem:[%s8073_s14 + $0x38] sm:$0xff] (%p9558_p12) }
 0x9b7   : > { %s7083_s28 = sshll.u32 (%p9558_p12), %s9559_s23, 5 }
 0x9b8   : > { %s6815_s15 = scalar_lea.vmem (%p9558_p12), %s9560_s11, %s7083_s28 }
 0x9b9   : > { %6829 = vst [vmem:[%s6815_s15] sm:$0xff] %v6828_v8  ;;  %6831 = vst [vmem:[%s6815_s15 + $0x8] sm:$0xff] %v6830_v9 }
 0x9ba   : > { %6833 = vst [vmem:[%s6815_s15 + $0x10] sm:$0xff] %v6832_v15  ;;  %6835 = vst [vmem:[%s6815_s15 + $0x18] sm:$0xff] %v6834_v35 }
 0x9bb   : > { %6837 = vst [vmem:[%s6815_s15 + $0x40] sm:$0xff] %v6836_v27  ;;  %6839 = vst [vmem:[%s6815_s15 + $0x48] sm:$0xff] %v6838_v54 }
 0x9bc   : > { %6841 = vst [vmem:[%s6815_s15 + $0x50] sm:$0xff] %v6840_v12  ;;  %6843 = vst [vmem:[%s6815_s15 + $0x58] sm:$0xff] %v6842_v13 }
 0x9bd PF: > { %s20_s27 = sadd.s32 1, %s7640_s27   ;;  %s9562_s0 = sld [smem:[#allocation11_spill]] }
 0x9be   : > { %p9480_p4 = scmp.ge.s32.totalorder %s20_s27, 24   ;;  %s9563_s17 = sld [smem:[#allocation18_spill]] }
 0x9bf   : > { %s9564_s5 = sld [smem:[#allocation17_spill]]  ;;  %s9565_s21 = sld [smem:[#allocation12_spill]] }
 0x9c0   : > { %s9566_s22 = sld [smem:[#allocation16_spill]]  ;;  %s9567_s2 = sld [smem:[#allocation14_spill]] }
 0x9c1   : > { %s9568_s4 = sld [smem:[#allocation15_spill]]  ;;  %s9569_s15 = smov %s7596_s16 }
 0x9c2   : > { %s9571_s18 = smov %s7608_s19  ;;  %s9572_s19 = smov %s7612_s20 }
 0x9c3   : > { %s9570_s16 = smov %s9562_s0  ;;  %s9574_s23 = smov %s7632_s25 }
 0x9c4   : > { %s9575_s24 = smov %s7636_s26  ;;  %19 = sbr.rel (!%p9480_p4) target bundleno = 14 (0xe), region = 162 }
 0x9c5   : > { %s9573_s20 = smov %s9564_s5 }
 0x9c6   : > { %s9576_s25 = smov %s9567_s2 }
 0x9c7   : > { %s9577_s26 = smov %s9568_s4 }
 0x9cb   :  { %6859 = vsyncpa [#allocation4], 1 }
 0x9cc   :  { %6861 = vsyncpa [#allocation4 + $0x1], 1 }
 0x9cd   :  { %6862 = vsyncpa [#allocation6], 1 }
 0x9ce   :  { %6864 = vsyncpa [#allocation6 + $0x1], 1 }

// kernel: discriminator_forward.3
= control target key start
LH: loop header
LB: loop body
LE: loop exit
PB: predicated region body
PF: predicated region fallthrough
CT: control target
= control target key end

     0   :  { %s4724_s1 = inlined_call_operand.vmem [shape: bf16[1024,512], index: 1, kind: input, shape index: {}]   ;;  %s4725_s0 = inlined_call_operand.vmem [shape: f32[16,1024], index: 0, kind: input, shape index: {}]   ;;  %s4726_s3 = inlined_call_operand.vmem [shape: bf16[512,256], index: 3, kind: input, shape index: {}]   ;;  %s4727_s2 = inlined_call_operand.vmem [shape: f32[1,512], index: 2, kind: input, shape index: {}]   ;;  %s4728_s5 = inlined_call_operand.vmem [shape: bf16[256,128], index: 5, kind: input, shape index: {}]   ;;  %s4729_s4 = inlined_call_operand.vmem [shape: f32[1,256], index: 4, kind: input, shape index: {}]   ;;  %s4730_s6 = inlined_call_operand.vmem [shape: f32[1,128], index: 6, kind: input, shape index: {}]   ;;  %s4731_s7 = inlined_call_operand.vmem [shape: f32[16,128], index: 7, kind: output, shape index: {}]  }
   0x1   :  { %v3048_v0 = vld [vmem:[%s4724_s1 + $0x4] ss:$16 sps:$4 sm:$0xff]   ;;  %v3052_v2 = vld [vmem:[%s4724_s1] ss:$16 sps:$4 sm:$0xff]   ;;  %v28_v46 = vld [vmem:[%s4725_s0 + $0x8] sm:$0xff] }
   0x2   :  { %v3050_v1 = vld [vmem:[%s4724_s1 + $0x204] ss:$16 sps:$4 sm:$0xff]   ;;  %1609 = vmatprep.subr.bf16.mxu1 %v3048_v0  ;;  %v3053_v3 = vld [vmem:[%s4724_s1 + $0x200] ss:$16 sps:$4 sm:$0xff]   ;;  %v36_v49 = vld [vmem:[%s4725_s0 + $0x48] sm:$0xff] }
   0x3   :  { %1652 = vmatprep.subr.bf16.mxu0 %v3050_v1  ;;  %v3054_v4 = vld [vmem:[%s4724_s1 + $0x24] ss:$16 sps:$4 sm:$0xff]   ;;  %1610 = vmatpush1.bf16.msra.mxu1 %v3052_v2  ;;  %v3058_v6 = vld [vmem:[%s4724_s1 + $0x20] ss:$16 sps:$4 sm:$0xff]   ;;  %v3742_v50 = vpack.c.bf16 %v36_v49, %v28_v46  ;;  %v30_v51 = vld [vmem:[%s4725_s0 + $0x18] sm:$0xff] }
   0x4   :  { %1653 = vmatpush1.bf16.msra.mxu0 %v3053_v3  ;;  %v3056_v5 = vld [vmem:[%s4724_s1 + $0x224] ss:$16 sps:$4 sm:$0xff]   ;;  %1611 = vmatprep.subr.bf16.mxu1 %v3054_v4  ;;  %v3059_v7 = vld [vmem:[%s4724_s1 + $0x220] ss:$16 sps:$4 sm:$0xff]   ;;  %v38_v52 = vld [vmem:[%s4725_s0 + $0x58] sm:$0xff] }
   0x5   :  { %1654 = vmatprep.subr.bf16.mxu0 %v3056_v5  ;;  %v3060_v8 = vld [vmem:[%s4724_s1 + $0x44] ss:$16 sps:$4 sm:$0xff]   ;;  %v3064_v10 = vld [vmem:[%s4724_s1 + $0x40] ss:$16 sps:$4 sm:$0xff]   ;;  %v3756_v55 = vpack.c.bf16 %v38_v52, %v30_v51  ;;  %1641 = vmatprep.mubr.bf16.mxu1 %v3742_v50  ;;  %v3189_v46 = vld [vmem:[%s4724_s1 + $0xe8] ss:$16 sps:$4 sm:$0xff]  }
   0x6   :  { %v3062_v9 = vld [vmem:[%s4724_s1 + $0x244] ss:$16 sps:$4 sm:$0xff]   ;;  %v3065_v11 = vld [vmem:[%s4724_s1 + $0x240] ss:$16 sps:$4 sm:$0xff]   ;;  %v3203_v52 = vld [vmem:[%s4724_s1 + $0x12c] ss:$16 sps:$4 sm:$0xff]  }
   0x7   :  { %1612 = vmatpush1.bf16.msra.mxu1 %v3058_v6  ;;  %v3066_v12 = vld [vmem:[%s4724_s1 + $0x64] ss:$16 sps:$4 sm:$0xff]   ;;  %v3070_v14 = vld [vmem:[%s4724_s1 + $0x60] ss:$16 sps:$4 sm:$0xff]   ;;  %1684 = vmatprep.mubr.bf16.mxu0 %v3756_v55 }
   0x8   :  { %1655 = vmatpush1.bf16.msra.mxu0 %v3059_v7  ;;  %1613 = vmatprep.subr.bf16.mxu1 %v3060_v8  ;;  %v3068_v13 = vld [vmem:[%s4724_s1 + $0x264] ss:$16 sps:$4 sm:$0xff]   ;;  %v3071_v15 = vld [vmem:[%s4724_s1 + $0x260] ss:$16 sps:$4 sm:$0xff]  }
   0x9   :  { %1656 = vmatprep.subr.bf16.mxu0 %v3062_v9  ;;  %v3072_v16 = vld [vmem:[%s4724_s1 + $0x84] ss:$16 sps:$4 sm:$0xff]   ;;  %v3076_v18 = vld [vmem:[%s4724_s1 + $0x80] ss:$16 sps:$4 sm:$0xff]  }
   0xa   :  { %v3074_v17 = vld [vmem:[%s4724_s1 + $0x284] ss:$16 sps:$4 sm:$0xff]   ;;  %v3077_v19 = vld [vmem:[%s4724_s1 + $0x280] ss:$16 sps:$4 sm:$0xff]  }
   0xb   :  { %1614 = vmatpush1.bf16.msra.mxu1 %v3064_v10  ;;  %v3078_v20 = vld [vmem:[%s4724_s1 + $0xa4] ss:$16 sps:$4 sm:$0xff]   ;;  %v3082_v22 = vld [vmem:[%s4724_s1 + $0xa0] ss:$16 sps:$4 sm:$0xff]  }
   0xc   :  { %1657 = vmatpush1.bf16.msra.mxu0 %v3065_v11  ;;  %1615 = vmatprep.subr.bf16.mxu1 %v3066_v12  ;;  %v3080_v21 = vld [vmem:[%s4724_s1 + $0x2a4] ss:$16 sps:$4 sm:$0xff]   ;;  %v3083_v23 = vld [vmem:[%s4724_s1 + $0x2a0] ss:$16 sps:$4 sm:$0xff]   ;;  %v3149_v11 = vld [vmem:[%s4724_s1 + $0xc] ss:$16 sps:$4 sm:$0xff]  }
   0xd   :  { %1658 = vmatprep.subr.bf16.mxu0 %v3068_v13  ;;  %v3084_v24 = vld [vmem:[%s4724_s1 + $0xc4] ss:$16 sps:$4 sm:$0xff]   ;;  %v3088_v26 = vld [vmem:[%s4724_s1 + $0xc0] ss:$16 sps:$4 sm:$0xff]  }
   0xe   :  { %v3086_v25 = vld [vmem:[%s4724_s1 + $0x2c4] ss:$16 sps:$4 sm:$0xff]   ;;  %v3089_v27 = vld [vmem:[%s4724_s1 + $0x2c0] ss:$16 sps:$4 sm:$0xff]  }
   0xf   :  { %1616 = vmatpush1.bf16.msra.mxu1 %v3070_v14  ;;  %v3090_v28 = vld [vmem:[%s4724_s1 + $0xe4] ss:$16 sps:$4 sm:$0xff]   ;;  %v3094_v30 = vld [vmem:[%s4724_s1 + $0xe0] ss:$16 sps:$4 sm:$0xff]   ;;  %v3147_v14 = vld [vmem:[%s4724_s1 + $0x8] ss:$16 sps:$4 sm:$0xff]  }
  0x10   :  { %1659 = vmatpush1.bf16.msra.mxu0 %v3071_v15  ;;  %1617 = vmatprep.subr.bf16.mxu1 %v3072_v16  ;;  %v3092_v29 = vld [vmem:[%s4724_s1 + $0x2e4] ss:$16 sps:$4 sm:$0xff]   ;;  %v3095_v31 = vld [vmem:[%s4724_s1 + $0x2e0] ss:$16 sps:$4 sm:$0xff]  }
  0x11   :  { %1660 = vmatprep.subr.bf16.mxu0 %v3074_v17  ;;  %v3096_v32 = vld [vmem:[%s4724_s1 + $0x104] ss:$16 sps:$4 sm:$0xff]   ;;  %v3100_v34 = vld [vmem:[%s4724_s1 + $0x100] ss:$16 sps:$4 sm:$0xff]   ;;  %v3155_v17 = vld [vmem:[%s4724_s1 + $0x2c] ss:$16 sps:$4 sm:$0xff]  }
  0x12   :  { %v3098_v33 = vld [vmem:[%s4724_s1 + $0x304] ss:$16 sps:$4 sm:$0xff]   ;;  %v3101_v35 = vld [vmem:[%s4724_s1 + $0x300] ss:$16 sps:$4 sm:$0xff]  }
  0x13   :  { %1618 = vmatpush1.bf16.msra.mxu1 %v3076_v18  ;;  %v3102_v36 = vld [vmem:[%s4724_s1 + $0x124] ss:$16 sps:$4 sm:$0xff]   ;;  %v3106_v38 = vld [vmem:[%s4724_s1 + $0x120] ss:$16 sps:$4 sm:$0xff]  }
  0x14   :  { %1661 = vmatpush1.bf16.msra.mxu0 %v3077_v19  ;;  %1619 = vmatprep.subr.bf16.mxu1 %v3078_v20  ;;  %v3104_v37 = vld [vmem:[%s4724_s1 + $0x324] ss:$16 sps:$4 sm:$0xff]   ;;  %v3107_v39 = vld [vmem:[%s4724_s1 + $0x320] ss:$16 sps:$4 sm:$0xff]   ;;  %v3153_v19 = vld [vmem:[%s4724_s1 + $0x28] ss:$16 sps:$4 sm:$0xff]  }
  0x15   :  { %1662 = vmatprep.subr.bf16.mxu0 %v3080_v21  ;;  %v3108_v40 = vld [vmem:[%s4724_s1 + $0x144] ss:$16 sps:$4 sm:$0xff]   ;;  %v3112_v42 = vld [vmem:[%s4724_s1 + $0x140] ss:$16 sps:$4 sm:$0xff]   ;;  %v3161_v21 = vld [vmem:[%s4724_s1 + $0x4c] ss:$16 sps:$4 sm:$0xff]  }
  0x16   :  { %v3110_v41 = vld [vmem:[%s4724_s1 + $0x344] ss:$16 sps:$4 sm:$0xff]   ;;  %v3113_v43 = vld [vmem:[%s4724_s1 + $0x340] ss:$16 sps:$4 sm:$0xff]  }
  0x17   :  { %1620 = vmatpush1.bf16.msra.mxu1 %v3082_v22  ;;  %v3114_v44 = vld [vmem:[%s4724_s1 + $0x164] ss:$16 sps:$4 sm:$0xff]   ;;  %v3118_v47 = vld [vmem:[%s4724_s1 + $0x160] ss:$16 sps:$4 sm:$0xff]  }
  0x18   :  { %1663 = vmatpush1.bf16.msra.mxu0 %v3083_v23  ;;  %1621 = vmatprep.subr.bf16.mxu1 %v3084_v24  ;;  %v3116_v45 = vld [vmem:[%s4724_s1 + $0x364] ss:$16 sps:$4 sm:$0xff]   ;;  %v3119_v48 = vld [vmem:[%s4724_s1 + $0x360] ss:$16 sps:$4 sm:$0xff]   ;;  %v3159_v23 = vld [vmem:[%s4724_s1 + $0x48] ss:$16 sps:$4 sm:$0xff]  }
  0x19   :  { %1664 = vmatprep.subr.bf16.mxu0 %v3086_v25  ;;  %v3120_v53 = vld [vmem:[%s4724_s1 + $0x184] ss:$16 sps:$4 sm:$0xff]   ;;  %v3124_v56 = vld [vmem:[%s4724_s1 + $0x180] ss:$16 sps:$4 sm:$0xff]   ;;  %v3167_v25 = vld [vmem:[%s4724_s1 + $0x6c] ss:$16 sps:$4 sm:$0xff]  }
  0x1a   :  { %v3122_v54 = vld [vmem:[%s4724_s1 + $0x384] ss:$16 sps:$4 sm:$0xff]   ;;  %v3125_v57 = vld [vmem:[%s4724_s1 + $0x380] ss:$16 sps:$4 sm:$0xff]  }
  0x1b   :  { %1622 = vmatpush1.bf16.msra.mxu1 %v3088_v26  ;;  %v3126_v58 = vld [vmem:[%s4724_s1 + $0x1a4] ss:$16 sps:$4 sm:$0xff]   ;;  %v3130_v60 = vld [vmem:[%s4724_s1 + $0x1a0] ss:$16 sps:$4 sm:$0xff]  }
  0x1c   :  { %1665 = vmatpush1.bf16.msra.mxu0 %v3089_v27  ;;  %1623 = vmatprep.subr.bf16.mxu1 %v3090_v28  ;;  %v3128_v59 = vld [vmem:[%s4724_s1 + $0x3a4] ss:$16 sps:$4 sm:$0xff]   ;;  %v3131_v61 = vld [vmem:[%s4724_s1 + $0x3a0] ss:$16 sps:$4 sm:$0xff]   ;;  %v3165_v27 = vld [vmem:[%s4724_s1 + $0x68] ss:$16 sps:$4 sm:$0xff]  }
  0x1d   :  { %1666 = vmatprep.subr.bf16.mxu0 %v3092_v29  ;;  %v3132_v62 = vld [vmem:[%s4724_s1 + $0x1c4] ss:$16 sps:$4 sm:$0xff]   ;;  %v3136_v0 = vld [vmem:[%s4724_s1 + $0x1c0] ss:$16 sps:$4 sm:$0xff]   ;;  %v3173_v29 = vld [vmem:[%s4724_s1 + $0x8c] ss:$16 sps:$4 sm:$0xff]  }
  0x1e   :  { %v3134_v63 = vld [vmem:[%s4724_s1 + $0x3c4] ss:$16 sps:$4 sm:$0xff]   ;;  %v3137_v1 = vld [vmem:[%s4724_s1 + $0x3c0] ss:$16 sps:$4 sm:$0xff]  }
  0x1f   :  { %1624 = vmatpush1.bf16.msra.mxu1 %v3094_v30  ;;  %v3138_v2 = vld [vmem:[%s4724_s1 + $0x1e4] ss:$16 sps:$4 sm:$0xff]   ;;  %v3142_v4 = vld [vmem:[%s4724_s1 + $0x1e0] ss:$16 sps:$4 sm:$0xff]  }
  0x20   :  { %1667 = vmatpush1.bf16.msra.mxu0 %v3095_v31  ;;  %1625 = vmatprep.subr.bf16.mxu1 %v3096_v32  ;;  %v3140_v3 = vld [vmem:[%s4724_s1 + $0x3e4] ss:$16 sps:$4 sm:$0xff]   ;;  %v3143_v5 = vld [vmem:[%s4724_s1 + $0x3e0] ss:$16 sps:$4 sm:$0xff]   ;;  %v3171_v31 = vld [vmem:[%s4724_s1 + $0x88] ss:$16 sps:$4 sm:$0xff]  }
  0x21   :  { %1668 = vmatprep.subr.bf16.mxu0 %v3098_v33  ;;  %v27_v6 = vld [vmem:[%s4725_s0] sm:$0xff]  ;;  %v29_v9 = vld [vmem:[%s4725_s0 + $0x10] sm:$0xff]  ;;  %v3179_v33 = vld [vmem:[%s4724_s1 + $0xac] ss:$16 sps:$4 sm:$0xff]  }
  0x22   :  { %v35_v7 = vld [vmem:[%s4725_s0 + $0x40] sm:$0xff]  ;;  %v37_v10 = vld [vmem:[%s4725_s0 + $0x50] sm:$0xff] }
  0x23   :  { %1626 = vmatpush1.bf16.msra.mxu1 %v3100_v34  ;;  %v3146_v8 = vld [vmem:[%s4724_s1 + $0x404] ss:$16 sps:$4 sm:$0xff]   ;;  %v3820_v12 = vpack.c.bf16 %v35_v7, %v27_v6  ;;  %v3144_v13 = vld [vmem:[%s4724_s1 + $0x400] ss:$16 sps:$4 sm:$0xff]   ;;  %v3828_v15 = vpack.c.bf16 %v37_v10, %v29_v9  ;;  %v3225_v7 = vld [vmem:[%s4724_s1 + $0x1a8] ss:$16 sps:$4 sm:$0xff]  }
  0x24   :  { %1669 = vmatpush1.bf16.msra.mxu0 %v3101_v35  ;;  %1627 = vmatprep.subr.bf16.mxu1 %v3102_v36  ;;  %v3152_v16 = vld [vmem:[%s4724_s1 + $0x424] ss:$16 sps:$4 sm:$0xff]   ;;  %v3150_v18 = vld [vmem:[%s4724_s1 + $0x420] ss:$16 sps:$4 sm:$0xff]   ;;  %v3177_v35 = vld [vmem:[%s4724_s1 + $0xa8] ss:$16 sps:$4 sm:$0xff]  }
  0x25   :  { %1670 = vmatprep.subr.bf16.mxu0 %v3104_v37  ;;  %v3158_v20 = vld [vmem:[%s4724_s1 + $0x444] ss:$16 sps:$4 sm:$0xff]   ;;  %v3156_v22 = vld [vmem:[%s4724_s1 + $0x440] ss:$16 sps:$4 sm:$0xff]   ;;  %v3185_v37 = vld [vmem:[%s4724_s1 + $0xcc] ss:$16 sps:$4 sm:$0xff]  }
  0x26   :  { %v3164_v24 = vld [vmem:[%s4724_s1 + $0x464] ss:$16 sps:$4 sm:$0xff]   ;;  %v3162_v26 = vld [vmem:[%s4724_s1 + $0x460] ss:$16 sps:$4 sm:$0xff]   ;;  %v3233_v9 = vld [vmem:[%s4724_s1 + $0x1cc] ss:$16 sps:$4 sm:$0xff]  }
  0x27   :  { %1628 = vmatpush1.bf16.msra.mxu1 %v3106_v38  ;;  %v3170_v28 = vld [vmem:[%s4724_s1 + $0x484] ss:$16 sps:$4 sm:$0xff]   ;;  %v3168_v30 = vld [vmem:[%s4724_s1 + $0x480] ss:$16 sps:$4 sm:$0xff]  }
  0x28   :  { %1671 = vmatpush1.bf16.msra.mxu0 %v3107_v39  ;;  %1629 = vmatprep.subr.bf16.mxu1 %v3108_v40  ;;  %v3176_v32 = vld [vmem:[%s4724_s1 + $0x4a4] ss:$16 sps:$4 sm:$0xff]   ;;  %v3174_v34 = vld [vmem:[%s4724_s1 + $0x4a0] ss:$16 sps:$4 sm:$0xff]   ;;  %v3183_v39 = vld [vmem:[%s4724_s1 + $0xc8] ss:$16 sps:$4 sm:$0xff]  }
  0x29   :  { %1672 = vmatprep.subr.bf16.mxu0 %v3110_v41  ;;  %v3182_v36 = vld [vmem:[%s4724_s1 + $0x4c4] ss:$16 sps:$4 sm:$0xff]   ;;  %v3180_v38 = vld [vmem:[%s4724_s1 + $0x4c0] ss:$16 sps:$4 sm:$0xff]   ;;  %v32_v40 = vld [vmem:[%s4725_s0 + $0x28] sm:$0xff] }
  0x2a   :  { %v40_v41 = vld [vmem:[%s4725_s0 + $0x68] sm:$0xff]  ;;  %v3192_v49 = vld [vmem:[%s4724_s1 + $0x500] ss:$16 sps:$4 sm:$0xff]   ;;  %v3200_v51 = vld [vmem:[%s4724_s1 + $0x524] ss:$16 sps:$4 sm:$0xff]  }
  0x2b   :  { %1630 = vmatpush1.bf16.msra.mxu1 %v3112_v42  ;;  %v3188_v42 = vld [vmem:[%s4724_s1 + $0x4e4] ss:$16 sps:$4 sm:$0xff]   ;;  %v3222_v6 = vld [vmem:[%s4724_s1 + $0x5a0] ss:$16 sps:$4 sm:$0xff]  }
  0x2c   :  { %1673 = vmatpush1.bf16.msra.mxu0 %v3113_v43  ;;  %1631 = vmatprep.subr.bf16.mxu1 %v3114_v44  ;;  %v3191_v43 = vld [vmem:[%s4724_s1 + $0xec] ss:$16 sps:$4 sm:$0xff]   ;;  %v3917_v44 = vpack.c.bf16 %v40_v41, %v32_v40  ;;  %v3228_v10 = vld [vmem:[%s4724_s1 + $0x5c0] ss:$16 sps:$4 sm:$0xff]   ;;  %v3267_v41 = vld [vmem:[%s4724_s1 + $0x288] ss:$16 sps:$4 sm:$0xff]  }
  0x2d   :  { %1674 = vmatprep.subr.bf16.mxu0 %v3116_v45  ;;  %v3186_v45 = vld [vmem:[%s4724_s1 + $0x4e0] ss:$16 sps:$4 sm:$0xff]  }
  0x2e   :  { %v3264_v40 = vld [vmem:[%s4724_s1 + $0x680] ss:$16 sps:$4 sm:$0xff]  }
  0x2f   :  { %1632 = vmatpush1.bf16.msra.mxu1 %v3118_v47  ;;  %v3194_v47 = vld [vmem:[%s4724_s1 + $0x504] ss:$16 sps:$4 sm:$0xff]  }
  0x30   :  { %1675 = vmatpush1.bf16.msra.mxu0 %v3119_v48  ;;  %1633 = vmatprep.subr.bf16.mxu1 %v3120_v53  ;;  %v3197_v48 = vld [vmem:[%s4724_s1 + $0x10c] ss:$16 sps:$4 sm:$0xff]   ;;  %v3198_v53 = vld [vmem:[%s4724_s1 + $0x520] ss:$16 sps:$4 sm:$0xff]  }
  0x31   :  { %1676 = vmatprep.subr.bf16.mxu0 %v3122_v54  ;;  %v3201_v54 = vld [vmem:[%s4724_s1 + $0x128] ss:$16 sps:$4 sm:$0xff]  }
  0x33   :  { %1634 = vmatpush1.bf16.msra.mxu1 %v3124_v56  ;;  %v3206_v56 = vld [vmem:[%s4724_s1 + $0x544] ss:$16 sps:$4 sm:$0xff]  }
  0x34   :  { %1677 = vmatpush1.bf16.msra.mxu0 %v3125_v57  ;;  %1635 = vmatprep.subr.bf16.mxu1 %v3126_v58  ;;  %v3209_v57 = vld [vmem:[%s4724_s1 + $0x14c] ss:$16 sps:$4 sm:$0xff]   ;;  %v3204_v58 = vld [vmem:[%s4724_s1 + $0x540] ss:$16 sps:$4 sm:$0xff]  }
  0x35   :  { %1678 = vmatprep.subr.bf16.mxu0 %v3128_v59  ;;  %v3207_v59 = vld [vmem:[%s4724_s1 + $0x148] ss:$16 sps:$4 sm:$0xff]  }
  0x37   :  { %1636 = vmatpush1.bf16.msra.mxu1 %v3130_v60  ;;  %v3212_v60 = vld [vmem:[%s4724_s1 + $0x564] ss:$16 sps:$4 sm:$0xff]  }
  0x38   :  { %1679 = vmatpush1.bf16.msra.mxu0 %v3131_v61  ;;  %1637 = vmatprep.subr.bf16.mxu1 %v3132_v62  ;;  %v3215_v61 = vld [vmem:[%s4724_s1 + $0x16c] ss:$16 sps:$4 sm:$0xff]   ;;  %v3210_v62 = vld [vmem:[%s4724_s1 + $0x560] ss:$16 sps:$4 sm:$0xff]  }
  0x39   :  { %1680 = vmatprep.subr.bf16.mxu0 %v3134_v63  ;;  %v3213_v63 = vld [vmem:[%s4724_s1 + $0x168] ss:$16 sps:$4 sm:$0xff]  }
  0x3b   :  { %1638 = vmatpush1.bf16.msra.mxu1 %v3136_v0  ;;  %v3218_v0 = vld [vmem:[%s4724_s1 + $0x584] ss:$16 sps:$4 sm:$0xff]  }
  0x3c   :  { %1681 = vmatpush1.bf16.msra.mxu0 %v3137_v1  ;;  %1639 = vmatprep.subr.bf16.mxu1 %v3138_v2  ;;  %v3221_v1 = vld [vmem:[%s4724_s1 + $0x18c] ss:$16 sps:$4 sm:$0xff]   ;;  %v3216_v2 = vld [vmem:[%s4724_s1 + $0x580] ss:$16 sps:$4 sm:$0xff]  }
  0x3d   :  { %1682 = vmatprep.subr.bf16.mxu0 %v3140_v3  ;;  %v3219_v3 = vld [vmem:[%s4724_s1 + $0x188] ss:$16 sps:$4 sm:$0xff]  }
  0x3f   :  { %1640 = vmatpush1.bf16.msra.mxu1 %v3142_v4  ;;  %v3224_v4 = vld [vmem:[%s4724_s1 + $0x5a4] ss:$16 sps:$4 sm:$0xff]  }
  0x40   :  { %1683 = vmatpush1.bf16.msra.mxu0 %v3143_v5  ;;  %1781 = vmatprep.subr.bf16.mxu1 %v3149_v11  ;;  %v3227_v5 = vld [vmem:[%s4724_s1 + $0x1ac] ss:$16 sps:$4 sm:$0xff]   ;;  %v3231_v11 = vld [vmem:[%s4724_s1 + $0x1c8] ss:$16 sps:$4 sm:$0xff]  }
  0x41   :  { %1695 = vmatprep.subr.bf16.mxu0 %v3146_v8  ;;  %v3230_v8 = vld [vmem:[%s4724_s1 + $0x5c4] ss:$16 sps:$4 sm:$0xff]  }
  0x42   :  { %1642 = vmatmul.mubr.bf16.vlgmr.msra.gmra.mrb[0].mxu1 %v3820_v12 }
  0x43   :  { %1685 = vmatmul.mubr.bf16.vlgmr.msra.gmra.mrb[0].mxu0 %v3828_v15  ;;  %1782 = vmatpush1.bf16.msra.mxu1 %v3147_v14  ;;  %v3239_v14 = vld [vmem:[%s4724_s1 + $0x1ec] ss:$16 sps:$4 sm:$0xff]  }
  0x44   :  { %1696 = vmatpush1.bf16.msra.mxu0 %v3144_v13  ;;  %1783 = vmatprep.subr.bf16.mxu1 %v3155_v17  ;;  %v3236_v13 = vld [vmem:[%s4724_s1 + $0x5e4] ss:$16 sps:$4 sm:$0xff]   ;;  %v3237_v17 = vld [vmem:[%s4724_s1 + $0x1e8] ss:$16 sps:$4 sm:$0xff]  }
  0x45   :  { %1697 = vmatprep.subr.bf16.mxu0 %v3152_v16  ;;  %1813 = vmatprep.mubr.bf16.mxu1 %v3742_v50  ;;  %v3195_v50 = vld [vmem:[%s4724_s1 + $0x108] ss:$16 sps:$4 sm:$0xff]   ;;  %v3234_v16 = vld [vmem:[%s4724_s1 + $0x5e0] ss:$16 sps:$4 sm:$0xff]  }
  0x46   :  { %1727 = vmatprep.mubr.bf16.mxu0 %v3917_v44 }
  0x47   :  { %1784 = vmatpush1.bf16.msra.mxu1 %v3153_v19  ;;  %v31_v19 = vld [vmem:[%s4725_s0 + $0x20] sm:$0xff] }
  0x48   :  { %1698 = vmatpush1.bf16.msra.mxu0 %v3150_v18  ;;  %1785 = vmatprep.subr.bf16.mxu1 %v3161_v21  ;;  %v3242_v18 = vld [vmem:[%s4724_s1 + $0x604] ss:$16 sps:$4 sm:$0xff]   ;;  %v3245_v21 = vld [vmem:[%s4724_s1 + $0x20c] ss:$16 sps:$4 sm:$0xff]  }
  0x49   :  { %1699 = vmatprep.subr.bf16.mxu0 %v3158_v20  ;;  %v39_v20 = vld [vmem:[%s4725_s0 + $0x60] sm:$0xff] }
  0x4b   :  { %1786 = vmatpush1.bf16.msra.mxu1 %v3159_v23  ;;  %v3243_v23 = vld [vmem:[%s4724_s1 + $0x208] ss:$16 sps:$4 sm:$0xff]  }
  0x4c   :  { %1700 = vmatpush1.bf16.msra.mxu0 %v3156_v22  ;;  %1787 = vmatprep.subr.bf16.mxu1 %v3167_v25  ;;  %v3240_v22 = vld [vmem:[%s4724_s1 + $0x600] ss:$16 sps:$4 sm:$0xff]   ;;  %v3248_v25 = vld [vmem:[%s4724_s1 + $0x624] ss:$16 sps:$4 sm:$0xff]  }
  0x4d   :  { %1701 = vmatprep.subr.bf16.mxu0 %v3164_v24  ;;  %v4040_v24 = vpack.c.bf16 %v39_v20, %v31_v19  ;;  %v3329_v19 = vld [vmem:[%s4724_s1 + $0x3cc] ss:$16 sps:$4 sm:$0xff]   ;;  %v3324_v20 = vld [vmem:[%s4724_s1 + $0x7c0] ss:$16 sps:$4 sm:$0xff]  }
  0x4f   :  { %1788 = vmatpush1.bf16.msra.mxu1 %v3165_v27  ;;  %v3246_v27 = vld [vmem:[%s4724_s1 + $0x620] ss:$16 sps:$4 sm:$0xff]  }
  0x50   :  { %1702 = vmatpush1.bf16.msra.mxu0 %v3162_v26  ;;  %1789 = vmatprep.subr.bf16.mxu1 %v3173_v29  ;;  %v3251_v26 = vld [vmem:[%s4724_s1 + $0x22c] ss:$16 sps:$4 sm:$0xff]   ;;  %v3254_v29 = vld [vmem:[%s4724_s1 + $0x644] ss:$16 sps:$4 sm:$0xff]  }
  0x51   :  { %1703 = vmatprep.subr.bf16.mxu0 %v3170_v28  ;;  %v3249_v28 = vld [vmem:[%s4724_s1 + $0x228] ss:$16 sps:$4 sm:$0xff]  }
  0x53   :  { %1790 = vmatpush1.bf16.msra.mxu1 %v3171_v31  ;;  %v3257_v31 = vld [vmem:[%s4724_s1 + $0x24c] ss:$16 sps:$4 sm:$0xff]  }
  0x54   :  { %1704 = vmatpush1.bf16.msra.mxu0 %v3168_v30  ;;  %1791 = vmatprep.subr.bf16.mxu1 %v3179_v33  ;;  %v34_v30 = vld [vmem:[%s4725_s0 + $0x38] sm:$0xff]  ;;  %v3252_v33 = vld [vmem:[%s4724_s1 + $0x640] ss:$16 sps:$4 sm:$0xff]  }
  0x55   :  { %1705 = vmatprep.subr.bf16.mxu0 %v3176_v32 }
  0x57   :  { %1792 = vmatpush1.bf16.msra.mxu1 %v3177_v35  ;;  %v3260_v35 = vld [vmem:[%s4724_s1 + $0x664] ss:$16 sps:$4 sm:$0xff]  }
  0x58   :  { %1706 = vmatpush1.bf16.msra.mxu0 %v3174_v34  ;;  %1793 = vmatprep.subr.bf16.mxu1 %v3185_v37  ;;  %v3255_v34 = vld [vmem:[%s4724_s1 + $0x248] ss:$16 sps:$4 sm:$0xff]  }
  0x59   :  { %1707 = vmatprep.subr.bf16.mxu0 %v3182_v36  ;;  %v3258_v36 = vld [vmem:[%s4724_s1 + $0x660] ss:$16 sps:$4 sm:$0xff]   ;;  %v3261_v37 = vld [vmem:[%s4724_s1 + $0x268] ss:$16 sps:$4 sm:$0xff]  }
  0x5b   :  { %1794 = vmatpush1.bf16.msra.mxu1 %v3183_v39  ;;  %v3269_v39 = vld [vmem:[%s4724_s1 + $0x28c] ss:$16 sps:$4 sm:$0xff]  }
  0x5c   :  { %1708 = vmatpush1.bf16.msra.mxu0 %v3180_v38  ;;  %1795 = vmatprep.subr.bf16.mxu1 %v3191_v43  ;;  %v3266_v38 = vld [vmem:[%s4724_s1 + $0x684] ss:$16 sps:$4 sm:$0xff]   ;;  %v3275_v43 = vld [vmem:[%s4724_s1 + $0x2ac] ss:$16 sps:$4 sm:$0xff]  }
  0x5d   :  { %1709 = vmatprep.subr.bf16.mxu0 %v3188_v42  ;;  %v3272_v42 = vld [vmem:[%s4724_s1 + $0x6a4] ss:$16 sps:$4 sm:$0xff]  }
  0x5f   :  { %1796 = vmatpush1.bf16.msra.mxu1 %v3189_v46  ;;  %v3273_v46 = vld [vmem:[%s4724_s1 + $0x2a8] ss:$16 sps:$4 sm:$0xff]  }
  0x60   :  { %1710 = vmatpush1.bf16.msra.mxu0 %v3186_v45  ;;  %1797 = vmatprep.subr.bf16.mxu1 %v3197_v48  ;;  %v3270_v45 = vld [vmem:[%s4724_s1 + $0x6a0] ss:$16 sps:$4 sm:$0xff]   ;;  %v3281_v48 = vld [vmem:[%s4724_s1 + $0x2cc] ss:$16 sps:$4 sm:$0xff]  }
  0x61   :  { %1711 = vmatprep.subr.bf16.mxu0 %v3194_v47  ;;  %v3278_v47 = vld [vmem:[%s4724_s1 + $0x6c4] ss:$16 sps:$4 sm:$0xff]  }
  0x63   :  { %1798 = vmatpush1.bf16.msra.mxu1 %v3195_v50  ;;  %v3279_v50 = vld [vmem:[%s4724_s1 + $0x2c8] ss:$16 sps:$4 sm:$0xff]  }
  0x64   :  { %1712 = vmatpush1.bf16.msra.mxu0 %v3192_v49  ;;  %1799 = vmatprep.subr.bf16.mxu1 %v3203_v52  ;;  %v3276_v49 = vld [vmem:[%s4724_s1 + $0x6c0] ss:$16 sps:$4 sm:$0xff]   ;;  %v3287_v52 = vld [vmem:[%s4724_s1 + $0x2ec] ss:$16 sps:$4 sm:$0xff]  }
  0x65   :  { %1713 = vmatprep.subr.bf16.mxu0 %v3200_v51  ;;  %v3284_v51 = vld [vmem:[%s4724_s1 + $0x6e4] ss:$16 sps:$4 sm:$0xff]  }
  0x67   :  { %1800 = vmatpush1.bf16.msra.mxu1 %v3201_v54  ;;  %v3285_v54 = vld [vmem:[%s4724_s1 + $0x2e8] ss:$16 sps:$4 sm:$0xff]  }
  0x68   :  { %1714 = vmatpush1.bf16.msra.mxu0 %v3198_v53  ;;  %1801 = vmatprep.subr.bf16.mxu1 %v3209_v57  ;;  %v3282_v53 = vld [vmem:[%s4724_s1 + $0x6e0] ss:$16 sps:$4 sm:$0xff]   ;;  %v3293_v57 = vld [vmem:[%s4724_s1 + $0x30c] ss:$16 sps:$4 sm:$0xff]  }
  0x69   :  { %1715 = vmatprep.subr.bf16.mxu0 %v3206_v56  ;;  %v3290_v56 = vld [vmem:[%s4724_s1 + $0x704] ss:$16 sps:$4 sm:$0xff]  }
  0x6b   :  { %1802 = vmatpush1.bf16.msra.mxu1 %v3207_v59  ;;  %v3291_v59 = vld [vmem:[%s4724_s1 + $0x308] ss:$16 sps:$4 sm:$0xff]  }
  0x6c   :  { %1716 = vmatpush1.bf16.msra.mxu0 %v3204_v58  ;;  %1803 = vmatprep.subr.bf16.mxu1 %v3215_v61  ;;  %v3288_v58 = vld [vmem:[%s4724_s1 + $0x700] ss:$16 sps:$4 sm:$0xff]   ;;  %v3299_v61 = vld [vmem:[%s4724_s1 + $0x32c] ss:$16 sps:$4 sm:$0xff]  }
  0x6d   :  { %1717 = vmatprep.subr.bf16.mxu0 %v3212_v60  ;;  %v3296_v60 = vld [vmem:[%s4724_s1 + $0x724] ss:$16 sps:$4 sm:$0xff]  }
  0x6f   :  { %1804 = vmatpush1.bf16.msra.mxu1 %v3213_v63  ;;  %v3297_v63 = vld [vmem:[%s4724_s1 + $0x328] ss:$16 sps:$4 sm:$0xff]  }
  0x70   :  { %1718 = vmatpush1.bf16.msra.mxu0 %v3210_v62  ;;  %1805 = vmatprep.subr.bf16.mxu1 %v3221_v1  ;;  %v3294_v62 = vld [vmem:[%s4724_s1 + $0x720] ss:$16 sps:$4 sm:$0xff]   ;;  %v3305_v1 = vld [vmem:[%s4724_s1 + $0x34c] ss:$16 sps:$4 sm:$0xff]  }
  0x71   :  { %1719 = vmatprep.subr.bf16.mxu0 %v3218_v0  ;;  %v3302_v0 = vld [vmem:[%s4724_s1 + $0x744] ss:$16 sps:$4 sm:$0xff]  }
  0x73   :  { %1806 = vmatpush1.bf16.msra.mxu1 %v3219_v3  ;;  %v3303_v3 = vld [vmem:[%s4724_s1 + $0x348] ss:$16 sps:$4 sm:$0xff]  }
  0x74   :  { %1720 = vmatpush1.bf16.msra.mxu0 %v3216_v2  ;;  %1807 = vmatprep.subr.bf16.mxu1 %v3227_v5  ;;  %v3300_v2 = vld [vmem:[%s4724_s1 + $0x740] ss:$16 sps:$4 sm:$0xff]   ;;  %v3311_v5 = vld [vmem:[%s4724_s1 + $0x36c] ss:$16 sps:$4 sm:$0xff]  }
  0x75   :  { %1721 = vmatprep.subr.bf16.mxu0 %v3224_v4  ;;  %v3308_v4 = vld [vmem:[%s4724_s1 + $0x764] ss:$16 sps:$4 sm:$0xff]  }
  0x77   :  { %1808 = vmatpush1.bf16.msra.mxu1 %v3225_v7  ;;  %v3309_v7 = vld [vmem:[%s4724_s1 + $0x368] ss:$16 sps:$4 sm:$0xff]  }
  0x78   :  { %1722 = vmatpush1.bf16.msra.mxu0 %v3222_v6  ;;  %1809 = vmatprep.subr.bf16.mxu1 %v3233_v9  ;;  %v3306_v6 = vld [vmem:[%s4724_s1 + $0x760] ss:$16 sps:$4 sm:$0xff]   ;;  %v3317_v9 = vld [vmem:[%s4724_s1 + $0x38c] ss:$16 sps:$4 sm:$0xff]  }
  0x79   :  { %1723 = vmatprep.subr.bf16.mxu0 %v3230_v8  ;;  %v3314_v8 = vld [vmem:[%s4724_s1 + $0x784] ss:$16 sps:$4 sm:$0xff]  }
  0x7b   :  { %1810 = vmatpush1.bf16.msra.mxu1 %v3231_v11  ;;  %v3315_v11 = vld [vmem:[%s4724_s1 + $0x388] ss:$16 sps:$4 sm:$0xff]  }
  0x7c   :  { %1724 = vmatpush1.bf16.msra.mxu0 %v3228_v10  ;;  %1811 = vmatprep.subr.bf16.mxu1 %v3239_v14  ;;  %v3312_v10 = vld [vmem:[%s4724_s1 + $0x780] ss:$16 sps:$4 sm:$0xff]   ;;  %v3323_v14 = vld [vmem:[%s4724_s1 + $0x3ac] ss:$16 sps:$4 sm:$0xff]  }
  0x7d   :  { %1725 = vmatprep.subr.bf16.mxu0 %v3236_v13  ;;  %v3320_v13 = vld [vmem:[%s4724_s1 + $0x7a4] ss:$16 sps:$4 sm:$0xff]  }
  0x7f   :  { %1812 = vmatpush1.bf16.msra.mxu1 %v3237_v17  ;;  %v3321_v17 = vld [vmem:[%s4724_s1 + $0x3a8] ss:$16 sps:$4 sm:$0xff]  }
  0x80   :  { %1726 = vmatpush1.bf16.msra.mxu0 %v3234_v16  ;;  %1824 = vmatprep.subr.bf16.mxu1 %v3245_v21  ;;  %v3318_v16 = vld [vmem:[%s4724_s1 + $0x7a0] ss:$16 sps:$4 sm:$0xff]   ;;  %v3327_v21 = vld [vmem:[%s4724_s1 + $0x3c8] ss:$16 sps:$4 sm:$0xff]  }
  0x81   :  { %1738 = vmatprep.subr.bf16.mxu0 %v3242_v18  ;;  %v3326_v18 = vld [vmem:[%s4724_s1 + $0x7c4] ss:$16 sps:$4 sm:$0xff]  }
  0x82   :  { %1814 = vmatmul.mubr.bf16.vlgmr.msra.gmra.mrb[4].mxu1 %v3820_v12  ;;  %v42_v12 = vld [vmem:[%s4725_s0 + $0x78] sm:$0xff] }
  0x83   :  { %1728 = vmatmul.mubr.bf16.vlgmr.msra.gmra.mrb[0].mxu0 %v4040_v24  ;;  %1825 = vmatpush1.bf16.msra.mxu1 %v3243_v23  ;;  %v4068_v32 = vpack.c.bf16 %v42_v12, %v34_v30  ;;  %v3335_v23 = vld [vmem:[%s4724_s1 + $0x3ec] ss:$16 sps:$4 sm:$0xff]   ;;  %v3336_v12 = vld [vmem:[%s4724_s1 + $0x408] ss:$16 sps:$4 sm:$0xff]  }
  0x84   :  { %1739 = vmatpush1.bf16.msra.mxu0 %v3240_v22  ;;  %1826 = vmatprep.subr.bf16.mxu1 %v3251_v26  ;;  %v3332_v22 = vld [vmem:[%s4724_s1 + $0x7e4] ss:$16 sps:$4 sm:$0xff]   ;;  %v3333_v26 = vld [vmem:[%s4724_s1 + $0x3e8] ss:$16 sps:$4 sm:$0xff]  }
  0x85   :  { %1740 = vmatprep.subr.bf16.mxu0 %v3248_v25  ;;  %1856 = vmatprep.mubr.bf16.mxu1 %v3756_v55  ;;  %v3263_v55 = vld [vmem:[%s4724_s1 + $0x26c] ss:$16 sps:$4 sm:$0xff]   ;;  %v3330_v25 = vld [vmem:[%s4724_s1 + $0x7e0] ss:$16 sps:$4 sm:$0xff]  }
  0x86   :  { %1770 = vmatprep.mubr.bf16.mxu0 %v4068_v32 }
  0x87   :  { %1827 = vmatpush1.bf16.msra.mxu1 %v3249_v28  ;;  %v41_v28 = vld [vmem:[%s4725_s0 + $0x70] sm:$0xff] }
  0x88   :  { %1741 = vmatpush1.bf16.msra.mxu0 %v3246_v27  ;;  %1828 = vmatprep.subr.bf16.mxu1 %v3257_v31  ;;  %v33_v27 = vld [vmem:[%s4725_s0 + $0x30] sm:$0xff]  ;;  %v3341_v31 = vld [vmem:[%s4724_s1 + $0x42c] ss:$16 sps:$4 sm:$0xff]  }
  0x89   :  { %1742 = vmatprep.subr.bf16.mxu0 %v3254_v29  ;;  %v3338_v29 = vld [vmem:[%s4724_s1 + $0x40c] ss:$16 sps:$4 sm:$0xff]   ;;  %v4243_v30 = vpack.c.bf16 %v41_v28, %v33_v27  ;;  %v3381_v27 = vld [vmem:[%s4724_s1 + $0x5e8] ss:$16 sps:$4 sm:$0xff]  }
  0x8a   :  { %v3386_v28 = vld [vmem:[%s4724_s1 + $0x60c] ss:$16 sps:$4 sm:$0xff]  }
  0x8b   :  { %1829 = vmatpush1.bf16.msra.mxu1 %v3255_v34  ;;  %v3344_v34 = vld [vmem:[%s4724_s1 + $0x44c] ss:$16 sps:$4 sm:$0xff]  }
  0x8c   :  { %1743 = vmatpush1.bf16.msra.mxu0 %v3252_v33  ;;  %1830 = vmatprep.subr.bf16.mxu1 %v3263_v55  ;;  %v3339_v33 = vld [vmem:[%s4724_s1 + $0x428] ss:$16 sps:$4 sm:$0xff]   ;;  %v3437_v55 = vld [vmem:[%s4726_s3 + $0x14] ss:$8 sps:$4 sm:$0xff]  }
  0x8d   :  { %1744 = vmatprep.subr.bf16.mxu0 %v3260_v35  ;;  %v3432_v35 = vld [vmem:[%s4726_s3] ss:$8 sps:$4 sm:$0xff]  }
  0x8f   :  { %1831 = vmatpush1.bf16.msra.mxu1 %v3261_v37  ;;  %v3435_v37 = vld [vmem:[%s4726_s3 + $0x10] ss:$8 sps:$4 sm:$0xff]  }
  0x90   :  { %1745 = vmatpush1.bf16.msra.mxu0 %v3258_v36  ;;  %1832 = vmatprep.subr.bf16.mxu1 %v3269_v39  ;;  %v3342_v36 = vld [vmem:[%s4724_s1 + $0x448] ss:$16 sps:$4 sm:$0xff]  }
  0x91   :  { %1746 = vmatprep.subr.bf16.mxu0 %v3266_v38  ;;  %v3440_v38 = vld [vmem:[%s4726_s3 + $0x24] ss:$8 sps:$4 sm:$0xff]   ;;  %v3345_v39 = vld [vmem:[%s4724_s1 + $0x468] ss:$16 sps:$4 sm:$0xff]  }
  0x93   :  { %1833 = vmatpush1.bf16.msra.mxu1 %v3267_v41  ;;  %v3438_v41 = vld [vmem:[%s4726_s3 + $0x20] ss:$8 sps:$4 sm:$0xff]  }
  0x94   :  { %1747 = vmatpush1.bf16.msra.mxu0 %v3264_v40  ;;  %1834 = vmatprep.subr.bf16.mxu1 %v3275_v43  ;;  %v3350_v40 = vld [vmem:[%s4724_s1 + $0x48c] ss:$16 sps:$4 sm:$0xff]   ;;  %v3348_v43 = vld [vmem:[%s4724_s1 + $0x488] ss:$16 sps:$4 sm:$0xff]  }
  0x95   :  { %1748 = vmatprep.subr.bf16.mxu0 %v3272_v42  ;;  %v3443_v42 = vld [vmem:[%s4726_s3 + $0x34] ss:$8 sps:$4 sm:$0xff]  }
  0x97   :  { %1835 = vmatpush1.bf16.msra.mxu1 %v3273_v46  ;;  %v3441_v46 = vld [vmem:[%s4726_s3 + $0x30] ss:$8 sps:$4 sm:$0xff]  }
  0x98   :  { %1749 = vmatpush1.bf16.msra.mxu0 %v3270_v45  ;;  %1836 = vmatprep.subr.bf16.mxu1 %v3281_v48  ;;  %v3353_v45 = vld [vmem:[%s4724_s1 + $0x4ac] ss:$16 sps:$4 sm:$0xff]   ;;  %v3351_v48 = vld [vmem:[%s4724_s1 + $0x4a8] ss:$16 sps:$4 sm:$0xff]  }
  0x99   :  { %1750 = vmatprep.subr.bf16.mxu0 %v3278_v47  ;;  %v3446_v47 = vld [vmem:[%s4726_s3 + $0x44] ss:$8 sps:$4 sm:$0xff]  }
  0x9b   :  { %1837 = vmatpush1.bf16.msra.mxu1 %v3279_v50  ;;  %v3444_v50 = vld [vmem:[%s4726_s3 + $0x40] ss:$8 sps:$4 sm:$0xff]  }
  0x9c   :  { %1751 = vmatpush1.bf16.msra.mxu0 %v3276_v49  ;;  %1838 = vmatprep.subr.bf16.mxu1 %v3287_v52  ;;  %v3356_v49 = vld [vmem:[%s4724_s1 + $0x4cc] ss:$16 sps:$4 sm:$0xff]   ;;  %v3354_v52 = vld [vmem:[%s4724_s1 + $0x4c8] ss:$16 sps:$4 sm:$0xff]  }
  0x9d   :  { %1752 = vmatprep.subr.bf16.mxu0 %v3284_v51  ;;  %v3449_v51 = vld [vmem:[%s4726_s3 + $0x54] ss:$8 sps:$4 sm:$0xff]  }
  0x9f   :  { %1839 = vmatpush1.bf16.msra.mxu1 %v3285_v54  ;;  %v3359_v54 = vld [vmem:[%s4724_s1 + $0x4ec] ss:$16 sps:$4 sm:$0xff]  }
  0xa0   :  { %1753 = vmatpush1.bf16.msra.mxu0 %v3282_v53  ;;  %1840 = vmatprep.subr.bf16.mxu1 %v3293_v57  ;;  %v3447_v53 = vld [vmem:[%s4726_s3 + $0x50] ss:$8 sps:$4 sm:$0xff]  }
  0xa1   :  { %1754 = vmatprep.subr.bf16.mxu0 %v3290_v56  ;;  %v3452_v56 = vld [vmem:[%s4726_s3 + $0x64] ss:$8 sps:$4 sm:$0xff]   ;;  %v3357_v57 = vld [vmem:[%s4724_s1 + $0x4e8] ss:$16 sps:$4 sm:$0xff]  }
  0xa3   :  { %1841 = vmatpush1.bf16.msra.mxu1 %v3291_v59  ;;  %v3362_v59 = vld [vmem:[%s4724_s1 + $0x50c] ss:$16 sps:$4 sm:$0xff]  }
  0xa4   :  { %1755 = vmatpush1.bf16.msra.mxu0 %v3288_v58  ;;  %1842 = vmatprep.subr.bf16.mxu1 %v3299_v61  ;;  %v3450_v58 = vld [vmem:[%s4726_s3 + $0x60] ss:$8 sps:$4 sm:$0xff]  }
  0xa5   :  { %1756 = vmatprep.subr.bf16.mxu0 %v3296_v60  ;;  %v3455_v60 = vld [vmem:[%s4726_s3 + $0x74] ss:$8 sps:$4 sm:$0xff]   ;;  %v3360_v61 = vld [vmem:[%s4724_s1 + $0x508] ss:$16 sps:$4 sm:$0xff]  }
  0xa7   :  { %1843 = vmatpush1.bf16.msra.mxu1 %v3297_v63  ;;  %v3365_v63 = vld [vmem:[%s4724_s1 + $0x52c] ss:$16 sps:$4 sm:$0xff]  }
  0xa8   :  { %1757 = vmatpush1.bf16.msra.mxu0 %v3294_v62  ;;  %1844 = vmatprep.subr.bf16.mxu1 %v3305_v1  ;;  %v3453_v62 = vld [vmem:[%s4726_s3 + $0x70] ss:$8 sps:$4 sm:$0xff]  }
  0xa9   :  { %1758 = vmatprep.subr.bf16.mxu0 %v3302_v0  ;;  %v3458_v0 = vld [vmem:[%s4726_s3 + $0x84] ss:$8 sps:$4 sm:$0xff]   ;;  %v3363_v1 = vld [vmem:[%s4724_s1 + $0x528] ss:$16 sps:$4 sm:$0xff]  }
  0xab   :  { %1845 = vmatpush1.bf16.msra.mxu1 %v3303_v3  ;;  %v3368_v3 = vld [vmem:[%s4724_s1 + $0x54c] ss:$16 sps:$4 sm:$0xff]  }
  0xac   :  { %1759 = vmatpush1.bf16.msra.mxu0 %v3300_v2  ;;  %1846 = vmatprep.subr.bf16.mxu1 %v3311_v5  ;;  %v3456_v2 = vld [vmem:[%s4726_s3 + $0x80] ss:$8 sps:$4 sm:$0xff]  }
  0xad   :  { %1760 = vmatprep.subr.bf16.mxu0 %v3308_v4  ;;  %v3461_v4 = vld [vmem:[%s4726_s3 + $0x94] ss:$8 sps:$4 sm:$0xff]   ;;  %v3366_v5 = vld [vmem:[%s4724_s1 + $0x548] ss:$16 sps:$4 sm:$0xff]  }
  0xaf   :  { %1847 = vmatpush1.bf16.msra.mxu1 %v3309_v7  ;;  %v3371_v7 = vld [vmem:[%s4724_s1 + $0x56c] ss:$16 sps:$4 sm:$0xff]  }
  0xb0   :  { %1761 = vmatpush1.bf16.msra.mxu0 %v3306_v6  ;;  %1848 = vmatprep.subr.bf16.mxu1 %v3317_v9  ;;  %v3459_v6 = vld [vmem:[%s4726_s3 + $0x90] ss:$8 sps:$4 sm:$0xff]  }
  0xb1   :  { %1762 = vmatprep.subr.bf16.mxu0 %v3314_v8  ;;  %v3464_v8 = vld [vmem:[%s4726_s3 + $0xa4] ss:$8 sps:$4 sm:$0xff]   ;;  %v3369_v9 = vld [vmem:[%s4724_s1 + $0x568] ss:$16 sps:$4 sm:$0xff]  }
  0xb3   :  { %1849 = vmatpush1.bf16.msra.mxu1 %v3315_v11  ;;  %v3374_v11 = vld [vmem:[%s4724_s1 + $0x58c] ss:$16 sps:$4 sm:$0xff]  }
  0xb4   :  { %1763 = vmatpush1.bf16.msra.mxu0 %v3312_v10  ;;  %1850 = vmatprep.subr.bf16.mxu1 %v3323_v14  ;;  %v3462_v10 = vld [vmem:[%s4726_s3 + $0xa0] ss:$8 sps:$4 sm:$0xff]  }
  0xb5   :  { %1764 = vmatprep.subr.bf16.mxu0 %v3320_v13  ;;  %v3467_v13 = vld [vmem:[%s4726_s3 + $0xb4] ss:$8 sps:$4 sm:$0xff]   ;;  %v3372_v14 = vld [vmem:[%s4724_s1 + $0x588] ss:$16 sps:$4 sm:$0xff]  }
  0xb7   :  { %1851 = vmatpush1.bf16.msra.mxu1 %v3321_v17  ;;  %v3377_v17 = vld [vmem:[%s4724_s1 + $0x5ac] ss:$16 sps:$4 sm:$0xff]  }
  0xb8   :  { %1765 = vmatpush1.bf16.msra.mxu0 %v3318_v16  ;;  %1852 = vmatprep.subr.bf16.mxu1 %v3329_v19  ;;  %v3465_v16 = vld [vmem:[%s4726_s3 + $0xb0] ss:$8 sps:$4 sm:$0xff]  }
  0xb9   :  { %1766 = vmatprep.subr.bf16.mxu0 %v3326_v18  ;;  %v3470_v18 = vld [vmem:[%s4726_s3 + $0xc4] ss:$8 sps:$4 sm:$0xff]   ;;  %v3375_v19 = vld [vmem:[%s4724_s1 + $0x5a8] ss:$16 sps:$4 sm:$0xff]  }
  0xbb   :  { %1853 = vmatpush1.bf16.msra.mxu1 %v3327_v21  ;;  %v3380_v21 = vld [vmem:[%s4724_s1 + $0x5cc] ss:$16 sps:$4 sm:$0xff]  }
  0xbc   :  { %1767 = vmatpush1.bf16.msra.mxu0 %v3324_v20  ;;  %1854 = vmatprep.subr.bf16.mxu1 %v3335_v23  ;;  %v3468_v20 = vld [vmem:[%s4726_s3 + $0xc0] ss:$8 sps:$4 sm:$0xff]  }
  0xbd   :  { %1768 = vmatprep.subr.bf16.mxu0 %v3332_v22  ;;  %v3473_v22 = vld [vmem:[%s4726_s3 + $0xd4] ss:$8 sps:$4 sm:$0xff]   ;;  %v3378_v23 = vld [vmem:[%s4724_s1 + $0x5c8] ss:$16 sps:$4 sm:$0xff]  }
  0xbf   :  { %1855 = vmatpush1.bf16.msra.mxu1 %v3333_v26  ;;  %v3383_v26 = vld [vmem:[%s4724_s1 + $0x5ec] ss:$16 sps:$4 sm:$0xff]  }
  0xc0   :  { %1769 = vmatpush1.bf16.msra.mxu0 %v3330_v25  ;;  %1867 = vmatprep.subr.bf16.mxu1 %v3338_v29  ;;  %v3471_v25 = vld [vmem:[%s4726_s3 + $0xd0] ss:$8 sps:$4 sm:$0xff]  }
  0xc1   :  { %v3384_v29 = vld [vmem:[%s4724_s1 + $0x608] ss:$16 sps:$4 sm:$0xff]  }
  0xc2   :  { %1857 = vmatmul.mubr.bf16.vlgmr.msra.gmra.mrb[4].mxu1 %v3828_v15  ;;  %v3434_v15 = vld [vmem:[%s4726_s3 + $0x4] ss:$8 sps:$4 sm:$0xff]  }
  0xc3   :  { %1771 = vmatmul.mubr.bf16.vlgmr.msra.gmra.mrb[0].mxu0 %v4243_v30  ;;  %1868 = vmatpush1.bf16.msra.mxu1 %v3336_v12  ;;  %v3389_v12 = vld [vmem:[%s4724_s1 + $0x62c] ss:$16 sps:$4 sm:$0xff]  }
  0xc4   :  { %1899 = vmatprep.mubr.bf16.mxu1 %v3917_v44  ;;  %1869 = vmatprep.subr.bf16.mxu1 %v3341_v31  ;;  %v3347_v44 = vld [vmem:[%s4724_s1 + $0x46c] ss:$16 sps:$4 sm:$0xff]   ;;  %v3387_v31 = vld [vmem:[%s4724_s1 + $0x628] ss:$16 sps:$4 sm:$0xff]  }
  0xc5   :  { %2361 = vmatprep.subr.bf16.mxu0 %v3434_v15  ;;  %v3396_v15 = vld [vmem:[%s4724_s1 + $0x688] ss:$16 sps:$4 sm:$0xff]  }
  0xc6   :  { %2362 = vmatpush1.bf16.msra.mxu0 %v3432_v35  ;;  %v3398_v35 = vld [vmem:[%s4724_s1 + $0x68c] ss:$16 sps:$4 sm:$0xff]  }
  0xc7   :  { %1870 = vmatpush1.bf16.msra.mxu1 %v3339_v33  ;;  %2363 = vmatprep.subr.bf16.mxu0 %v3437_v55  ;;  %v3392_v33 = vld [vmem:[%s4724_s1 + $0x64c] ss:$16 sps:$4 sm:$0xff]  }
  0xc8   :  { %1871 = vmatprep.subr.bf16.mxu1 %v3344_v34  ;;  %v3390_v34 = vld [vmem:[%s4724_s1 + $0x648] ss:$16 sps:$4 sm:$0xff]   ;;  %v3401_v55 = vld [vmem:[%s4724_s1 + $0x6ac] ss:$16 sps:$4 sm:$0xff]  }
  0xca   :  { %2364 = vmatpush1.bf16.msra.mxu0 %v3435_v37 }
  0xcb   :  { %1872 = vmatpush1.bf16.msra.mxu1 %v3342_v36  ;;  %2365 = vmatprep.subr.bf16.mxu0 %v3440_v38  ;;  %v3399_v36 = vld [vmem:[%s4724_s1 + $0x6a8] ss:$16 sps:$4 sm:$0xff]  }
  0xcc   :  { %1873 = vmatprep.subr.bf16.mxu1 %v3347_v44  ;;  %v3404_v44 = vld [vmem:[%s4724_s1 + $0x6cc] ss:$16 sps:$4 sm:$0xff]  }
  0xce   :  { %2366 = vmatpush1.bf16.msra.mxu0 %v3438_v41  ;;  %v3402_v41 = vld [vmem:[%s4724_s1 + $0x6c8] ss:$16 sps:$4 sm:$0xff]  }
  0xcf   :  { %1874 = vmatpush1.bf16.msra.mxu1 %v3345_v39  ;;  %2367 = vmatprep.subr.bf16.mxu0 %v3443_v42  ;;  %v3476_v39 = vld [vmem:[%s4726_s3 + $0xe4] ss:$8 sps:$4 sm:$0xff]   ;;  %v3474_v42 = vld [vmem:[%s4726_s3 + $0xe0] ss:$8 sps:$4 sm:$0xff]  }
  0xd0   :  { %1875 = vmatprep.subr.bf16.mxu1 %v3350_v40 }
  0xd2   :  { %2368 = vmatpush1.bf16.msra.mxu0 %v3441_v46  ;;  %v3479_v46 = vld [vmem:[%s4726_s3 + $0xf4] ss:$8 sps:$4 sm:$0xff]  }
  0xd3   :  { %1876 = vmatpush1.bf16.msra.mxu1 %v3348_v43  ;;  %2369 = vmatprep.subr.bf16.mxu0 %v3446_v47  ;;  %v3405_v47 = vld [vmem:[%s4724_s1 + $0x6e8] ss:$16 sps:$4 sm:$0xff]  }
  0xd4   :  { %1877 = vmatprep.subr.bf16.mxu1 %v3353_v45  ;;  %v3407_v45 = vld [vmem:[%s4724_s1 + $0x6ec] ss:$16 sps:$4 sm:$0xff]  }
  0xd6   :  { %2370 = vmatpush1.bf16.msra.mxu0 %v3444_v50  ;;  %v3408_v50 = vld [vmem:[%s4724_s1 + $0x708] ss:$16 sps:$4 sm:$0xff]  }
  0xd7   :  { %1878 = vmatpush1.bf16.msra.mxu1 %v3351_v48  ;;  %2371 = vmatprep.subr.bf16.mxu0 %v3449_v51  ;;  %v3477_v48 = vld [vmem:[%s4726_s3 + $0xf0] ss:$8 sps:$4 sm:$0xff]   ;;  %v3413_v51 = vld [vmem:[%s4724_s1 + $0x72c] ss:$16 sps:$4 sm:$0xff]  }
  0xd8   :  { %1879 = vmatprep.subr.bf16.mxu1 %v3356_v49  ;;  %v3410_v49 = vld [vmem:[%s4724_s1 + $0x70c] ss:$16 sps:$4 sm:$0xff]  }
  0xda   :  { %2372 = vmatpush1.bf16.msra.mxu0 %v3447_v53  ;;  %v3411_v53 = vld [vmem:[%s4724_s1 + $0x728] ss:$16 sps:$4 sm:$0xff]  }
  0xdb   :  { %1880 = vmatpush1.bf16.msra.mxu1 %v3354_v52  ;;  %2373 = vmatprep.subr.bf16.mxu0 %v3452_v56  ;;  %v3482_v52 = vld [vmem:[%s4726_s3 + $0x104] ss:$8 sps:$4 sm:$0xff]   ;;  %v3414_v56 = vld [vmem:[%s4724_s1 + $0x748] ss:$16 sps:$4 sm:$0xff]  }
  0xdc   :  { %1881 = vmatprep.subr.bf16.mxu1 %v3359_v54  ;;  %v3416_v54 = vld [vmem:[%s4724_s1 + $0x74c] ss:$16 sps:$4 sm:$0xff]  }
  0xde   :  { %2374 = vmatpush1.bf16.msra.mxu0 %v3450_v58  ;;  %v3417_v58 = vld [vmem:[%s4724_s1 + $0x768] ss:$16 sps:$4 sm:$0xff]  }
  0xdf   :  { %1882 = vmatpush1.bf16.msra.mxu1 %v3357_v57  ;;  %2375 = vmatprep.subr.bf16.mxu0 %v3455_v60  ;;  %v3419_v57 = vld [vmem:[%s4724_s1 + $0x76c] ss:$16 sps:$4 sm:$0xff]   ;;  %v3420_v60 = vld [vmem:[%s4724_s1 + $0x788] ss:$16 sps:$4 sm:$0xff]  }
  0xe0   :  { %1883 = vmatprep.subr.bf16.mxu1 %v3362_v59  ;;  %v3422_v59 = vld [vmem:[%s4724_s1 + $0x78c] ss:$16 sps:$4 sm:$0xff]  }
  0xe2   :  { %2376 = vmatpush1.bf16.msra.mxu0 %v3453_v62  ;;  %v3423_v62 = vld [vmem:[%s4724_s1 + $0x7a8] ss:$16 sps:$4 sm:$0xff]  }
  0xe3   :  { %1884 = vmatpush1.bf16.msra.mxu1 %v3360_v61  ;;  %2377 = vmatprep.subr.bf16.mxu0 %v3458_v0  ;;  %v3425_v61 = vld [vmem:[%s4724_s1 + $0x7ac] ss:$16 sps:$4 sm:$0xff]   ;;  %v3426_v0 = vld [vmem:[%s4724_s1 + $0x7c8] ss:$16 sps:$4 sm:$0xff]  }
  0xe4   :  { %1885 = vmatprep.subr.bf16.mxu1 %v3365_v63  ;;  %v3428_v63 = vld [vmem:[%s4724_s1 + $0x7cc] ss:$16 sps:$4 sm:$0xff]  }
  0xe6   :  { %2378 = vmatpush1.bf16.msra.mxu0 %v3456_v2  ;;  %v3429_v2 = vld [vmem:[%s4724_s1 + $0x7e8] ss:$16 sps:$4 sm:$0xff]  }
  0xe7   :  { %1886 = vmatpush1.bf16.msra.mxu1 %v3363_v1  ;;  %2379 = vmatprep.subr.bf16.mxu0 %v3461_v4  ;;  %v3431_v1 = vld [vmem:[%s4724_s1 + $0x7ec] ss:$16 sps:$4 sm:$0xff]  }
  0xe8   :  { %1887 = vmatprep.subr.bf16.mxu1 %v3368_v3  ;;  %v309_v3 = vlaneseq }
  0xea   :  { %2380 = vmatpush1.bf16.msra.mxu0 %v3459_v6  ;;  %v4545_v4 = vshrl.u32 %v309_v3, 7  ;;  %v4551_v6 = vld [vmem:[%s4727_s2] sm:$0xf] }
  0xeb   :  { %1888 = vmatpush1.bf16.msra.mxu1 %v3366_v5  ;;  %2381 = vmatprep.subr.bf16.mxu0 %v3464_v8  ;;  %v3522_v3 = vld [vmem:[%s4726_s3 + $0x1e0] ss:$8 sps:$4 sm:$0xff]  }
  0xec   :  { %1889 = vmatprep.subr.bf16.mxu1 %v3371_v7  ;;  %v311_v5 = vsub.s32 0, %v4545_v4  ;;  %v315_v7 = vsub.s32 1, %v4545_v4 }
  0xee   :  { %2382 = vmatpush1.bf16.msra.mxu0 %v3462_v10  ;;  %v312_v8 = vrot.slane %v4551_v6, %v311_v5 }
  0xef   :  { %1890 = vmatpush1.bf16.msra.mxu1 %v3369_v9  ;;  %2383 = vmatprep.subr.bf16.mxu0 %v3467_v13 }
  0xf0   :  { %1891 = vmatprep.subr.bf16.mxu1 %v3374_v11 }
  0xf2   :  { %2384 = vmatpush1.bf16.msra.mxu0 %v3465_v16 }
  0xf3   :  { %1892 = vmatpush1.bf16.msra.mxu1 %v3372_v14  ;;  %2385 = vmatprep.subr.bf16.mxu0 %v3470_v18 }
  0xf4   :  { %1893 = vmatprep.subr.bf16.mxu1 %v3377_v17 }
  0xf6   :  { %2386 = vmatpush1.bf16.msra.mxu0 %v3468_v20 }
  0xf7   :  { %1894 = vmatpush1.bf16.msra.mxu1 %v3375_v19  ;;  %2387 = vmatprep.subr.bf16.mxu0 %v3473_v22 }
  0xf8   :  { %1895 = vmatprep.subr.bf16.mxu1 %v3380_v21 }
  0xfa   :  { %2388 = vmatpush1.bf16.msra.mxu0 %v3471_v25 }
  0xfb   :  { %1896 = vmatpush1.bf16.msra.mxu1 %v3378_v23  ;;  %2389 = vmatprep.subr.bf16.mxu0 %v3476_v39  ;;  %v3534_v39 = vld [vmem:[%s4728_s5 + $0x58] sm:$0xff]  }
  0xfc   :  { %1897 = vmatprep.subr.bf16.mxu1 %v3383_v26 }
  0xfe   :  { %2390 = vmatpush1.bf16.msra.mxu0 %v3474_v42  ;;  %v3535_v42 = vld [vmem:[%s4728_s5 + $0x18] sm:$0xff]  }
  0xff   :  { %1898 = vmatpush1.bf16.msra.mxu1 %v3381_v27  ;;  %2391 = vmatprep.subr.bf16.mxu0 %v3479_v46  ;;  %v3537_v46 = vld [vmem:[%s4728_s5 + $0x20] sm:$0xff]  }
 0x100   :  { %1910 = vmatprep.subr.bf16.mxu1 %v3386_v28 }
 0x102   :  { %1900 = vmatmul.mubr.bf16.vlgmr.msra.gmra.mrb[4].mxu1 %v4040_v24  ;;  %v3395_v24 = vld [vmem:[%s4724_s1 + $0x66c] ss:$16 sps:$4 sm:$0xff]   ;;  %2392 = vmatpush1.bf16.msra.mxu0 %v3477_v48 }
 0x103   :  { %1911 = vmatpush1.bf16.msra.mxu1 %v3384_v29  ;;  %1942 = vmatprep.mubr.bf16.mxu1 %v4068_v32  ;;  %v3393_v32 = vld [vmem:[%s4724_s1 + $0x668] ss:$16 sps:$4 sm:$0xff]  }
 0x104   :  { %1912 = vmatprep.subr.bf16.mxu1 %v3389_v12  ;;  %2404 = vmatprep.subr.bf16.mxu0 %v3482_v52  ;;  %v3480_v12 = vld [vmem:[%s4726_s3 + $0x100] ss:$8 sps:$4 sm:$0xff]   ;;  %v3501_v52 = vld [vmem:[%s4726_s3 + $0x170] ss:$8 sps:$4 sm:$0xff]  }
 0x105   :  { %v3538_v48 = vld [vmem:[%s4728_s5 + $0x68] sm:$0xff]  }
 0x107   :  { %1913 = vmatpush1.bf16.msra.mxu1 %v3387_v31  ;;  %v3485_v31 = vld [vmem:[%s4726_s3 + $0x114] ss:$8 sps:$4 sm:$0xff]  }
 0x108   :  { %1914 = vmatprep.subr.bf16.mxu1 %v3392_v33  ;;  %v3483_v33 = vld [vmem:[%s4726_s3 + $0x110] ss:$8 sps:$4 sm:$0xff]  }
 0x10b   :  { %1915 = vmatpush1.bf16.msra.mxu1 %v3390_v34  ;;  %v3488_v34 = vld [vmem:[%s4726_s3 + $0x124] ss:$8 sps:$4 sm:$0xff]  }
 0x10c   :  { %1916 = vmatprep.subr.bf16.mxu1 %v3395_v24  ;;  %v3528_v24 = vld [vmem:[%s4728_s5 + $0x40] sm:$0xff]  }
 0x10f   :  { %1917 = vmatpush1.bf16.msra.mxu1 %v3393_v32  ;;  %v3529_v32 = vld [vmem:[%s4728_s5] sm:$0xff]  }
 0x110   :  { %1918 = vmatprep.subr.bf16.mxu1 %v3398_v35  ;;  %v3486_v35 = vld [vmem:[%s4726_s3 + $0x120] ss:$8 sps:$4 sm:$0xff]  }
 0x113   :  { %1919 = vmatpush1.bf16.msra.mxu1 %v3396_v15  ;;  %v3530_v15 = vld [vmem:[%s4728_s5 + $0x48] sm:$0xff]  }
 0x114   :  { %1920 = vmatprep.subr.bf16.mxu1 %v3401_v55  ;;  %v3531_v55 = vld [vmem:[%s4728_s5 + $0x8] sm:$0xff]  }
 0x115   :  { %v4466_v37 = vpop.f32.mrb[0].mxu1 }
 0x116   :  { %v4468_v38 = vpop.f32.mrb[1].mxu1  ;;  %v1644_v9 = vadd.f32 %v4466_v37, %v312_v8  ;;  %v3489_v37 = vld [vmem:[%s4726_s3 + $0x130] ss:$8 sps:$4 sm:$0xff]  }
 0x117   :  { %v4473_v40 = vpop.f32.mrb[2].mxu1  ;;  %1921 = vmatpush1.bf16.msra.mxu1 %v3399_v36  ;;  %v3532_v36 = vld [vmem:[%s4728_s5 + $0x50] sm:$0xff]  }
 0x118   :  { %v1649_v43 = vpop.f32.mrb[3].mxu1  ;;  %1922 = vmatprep.subr.bf16.mxu1 %v3404_v44  ;;  %v1648_v13 = vadd.f32 %v4473_v40, %v312_v8  ;;  %v3491_v44 = vld [vmem:[%s4726_s3 + $0x134] ss:$8 sps:$4 sm:$0xff]   ;;  %v3494_v40 = vld [vmem:[%s4726_s3 + $0x144] ss:$8 sps:$4 sm:$0xff]  }
 0x119   :  { %v3527_v8 = vld [vmem:[%s4726_s3 + $0x1f4] ss:$8 sps:$4 sm:$0xff]  }
 0x11b   :  { %1923 = vmatpush1.bf16.msra.mxu1 %v3402_v41  ;;  %v3492_v41 = vld [vmem:[%s4726_s3 + $0x140] ss:$8 sps:$4 sm:$0xff]  }
 0x11c   :  { %1924 = vmatprep.subr.bf16.mxu1 %v3407_v45  ;;  %v3536_v45 = vld [vmem:[%s4728_s5 + $0x60] sm:$0xff]  }
 0x11f   :  { %1925 = vmatpush1.bf16.msra.mxu1 %v3405_v47  ;;  %v3495_v47 = vld [vmem:[%s4726_s3 + $0x150] ss:$8 sps:$4 sm:$0xff]  }
 0x120   :  { %1926 = vmatprep.subr.bf16.mxu1 %v3410_v49  ;;  %v3500_v49 = vld [vmem:[%s4726_s3 + $0x164] ss:$8 sps:$4 sm:$0xff]  }
 0x123   :  { %1927 = vmatpush1.bf16.msra.mxu1 %v3408_v50  ;;  %v3498_v50 = vld [vmem:[%s4726_s3 + $0x160] ss:$8 sps:$4 sm:$0xff]  }
 0x124   :  { %1928 = vmatprep.subr.bf16.mxu1 %v3413_v51  ;;  %v3503_v51 = vld [vmem:[%s4726_s3 + $0x174] ss:$8 sps:$4 sm:$0xff]  }
 0x127   :  { %1929 = vmatpush1.bf16.msra.mxu1 %v3411_v53  ;;  %v3506_v53 = vld [vmem:[%s4726_s3 + $0x184] ss:$8 sps:$4 sm:$0xff]  }
 0x128   :  { %1930 = vmatprep.subr.bf16.mxu1 %v3416_v54  ;;  %v3504_v54 = vld [vmem:[%s4726_s3 + $0x180] ss:$8 sps:$4 sm:$0xff]  }
 0x12b   :  { %1931 = vmatpush1.bf16.msra.mxu1 %v3414_v56  ;;  %v3509_v56 = vld [vmem:[%s4726_s3 + $0x194] ss:$8 sps:$4 sm:$0xff]  }
 0x12c   :  { %1932 = vmatprep.subr.bf16.mxu1 %v3419_v57  ;;  %v3507_v57 = vld [vmem:[%s4726_s3 + $0x190] ss:$8 sps:$4 sm:$0xff]  }
 0x12f   :  { %1933 = vmatpush1.bf16.msra.mxu1 %v3417_v58  ;;  %v3512_v58 = vld [vmem:[%s4726_s3 + $0x1a4] ss:$8 sps:$4 sm:$0xff]  }
 0x130   :  { %1934 = vmatprep.subr.bf16.mxu1 %v3422_v59  ;;  %v3510_v59 = vld [vmem:[%s4726_s3 + $0x1a0] ss:$8 sps:$4 sm:$0xff]  }
 0x133   :  { %1935 = vmatpush1.bf16.msra.mxu1 %v3420_v60  ;;  %v3515_v60 = vld [vmem:[%s4726_s3 + $0x1b4] ss:$8 sps:$4 sm:$0xff]  }
 0x134   :  { %1936 = vmatprep.subr.bf16.mxu1 %v3425_v61  ;;  %v3513_v61 = vld [vmem:[%s4726_s3 + $0x1b0] ss:$8 sps:$4 sm:$0xff]  }
 0x137   :  { %1937 = vmatpush1.bf16.msra.mxu1 %v3423_v62  ;;  %v3518_v62 = vld [vmem:[%s4726_s3 + $0x1c4] ss:$8 sps:$4 sm:$0xff]  }
 0x138   :  { %1938 = vmatprep.subr.bf16.mxu1 %v3428_v63  ;;  %v3516_v63 = vld [vmem:[%s4726_s3 + $0x1c0] ss:$8 sps:$4 sm:$0xff]  }
 0x13b   :  { %1939 = vmatpush1.bf16.msra.mxu1 %v3426_v0  ;;  %v3521_v0 = vld [vmem:[%s4726_s3 + $0x1d4] ss:$8 sps:$4 sm:$0xff]  }
 0x13c   :  { %1940 = vmatprep.subr.bf16.mxu1 %v3431_v1  ;;  %v3519_v1 = vld [vmem:[%s4726_s3 + $0x1d0] ss:$8 sps:$4 sm:$0xff]  }
 0x13f   :  { %1941 = vmatpush1.bf16.msra.mxu1 %v3429_v2  ;;  %v3524_v2 = vld [vmem:[%s4726_s3 + $0x1e4] ss:$8 sps:$4 sm:$0xff]  }
 0x140   :  { %2986 = vmatprep.subr.bf16.mxu1 %v3528_v24  ;;  %v2029_v24 = vld [vmem:[%s4729_s4] sm:$0x3] }
 0x142   :  { %1943 = vmatmul.mubr.bf16.vlgmr.msra.gmra.mrb[4].mxu1 %v4243_v30  ;;  %v316_v30 = vrot.slane %v4551_v6, %v315_v7 }
 0x143   :  { %2987 = vmatpush3.bf16.msra.mxu1 %v3529_v32  ;;  %v2034_v32 = vrot.slane %v2029_v24, %v311_v5 }
 0x144   :  { %v1646_v10 = vadd.f32 %v4468_v38, %v316_v30  ;;  %v1650_v17 = vadd.f32 %v1649_v43, %v316_v30  ;;  %2988 = vmatprep.subr.bf16.mxu1 %v3530_v15  ;;  %v3533_v38 = vld [vmem:[%s4728_s5 + $0x10] sm:$0xff]  }
 0x145   :  { %v3497_v43 = vld [vmem:[%s4726_s3 + $0x154] ss:$8 sps:$4 sm:$0xff]   ;;  %v3525_v30 = vld [vmem:[%s4726_s3 + $0x1f0] ss:$8 sps:$4 sm:$0xff]  }
 0x147   :  { %2989 = vmatpush3.bf16.msra.mxu1 %v3531_v55 }
 0x148   :  { %2990 = vmatprep.subr.bf16.mxu1 %v3532_v36 }
 0x14b   :  { %2991 = vmatpush3.bf16.msra.mxu1 %v3533_v38 }
 0x14c   :  { %2992 = vmatprep.subr.bf16.mxu1 %v3534_v39 }
 0x14f   :  { %2993 = vmatpush3.bf16.msra.mxu1 %v3535_v42 }
 0x150   :  { %2994 = vmatprep.subr.bf16.mxu1 %v3536_v45 }
 0x153   :  { %2995 = vmatpush3.bf16.msra.mxu1 %v3537_v46 }
 0x154   :  { %2996 = vmatprep.subr.bf16.mxu1 %v3538_v48 }
 0x196   :  { %v1772_v11 = vpop.f32.mrb[0].mxu0 }
 0x197   :  { %v3009_v14 = vadd.f32 %v1772_v11, %v1644_v9  ;;  %v1774_v16 = vpop.f32.mrb[1].mxu0  ;;  %v319_v9 = vsub.s32 2, %v4545_v4 }
 0x198   :  { %v3011_v18 = vadd.f32 %v1774_v16, %v1646_v10  ;;  %v1776_v19 = vpop.f32.mrb[2].mxu0  ;;  %v323_v10 = vsub.s32 3, %v4545_v4  ;;  %v2967_v4 = vld [vmem:[%s4730_s6] ss:$0 sm:$0xff] }
 0x199   :  { %v3013_v20 = vadd.f32 %v1776_v19, %v1648_v13  ;;  %v1778_v21 = vpop.f32.mrb[3].mxu0  ;;  %v1953_v23 = vmax.f32 %v3009_v14, 0.0  ;;  %v320_v11 = vrot.slane %v4551_v6, %v319_v9 }
 0x19a   :  { %v3015_v22 = vadd.f32 %v1778_v21, %v1650_v17  ;;  %v1954_v26 = vmax.f32 %v3011_v18, 0.0  ;;  %v324_v13 = vrot.slane %v4551_v6, %v323_v10  ;;  %v3539_v6 = vld [vmem:[%s4728_s5 + $0x28] sm:$0xff]  }
 0x19b   :  { %v1957_v25 = vmax.f32 %v3013_v20, 0.0  ;;  %2997 = vmatpush3.bf16.msra.mxu1 %v3539_v6 }
 0x19c   :  { %v1958_v27 = vmax.f32 %v3015_v22, 0.0 }
 0x19d   :  { %v1961_v28 = vpack.c.bf16 %v1957_v25, %v1953_v23 }
 0x19e   :  { %v1962_v29 = vpack.c.bf16 %v1958_v27, %v1954_v26 }
 0x1a0   :  { %2393 = vmatprep.mubr.bf16.mxu0 %v1962_v29 }
 0x1a1   :  { %2394 = vmatmul.mubr.bf16.vlgmr.msra.gmra.mrb[4].mxu0 %v1961_v28 }
 0x1a2   :  { %2405 = vmatpush1.bf16.msra.mxu0 %v3480_v12  ;;  %v3540_v12 = vld [vmem:[%s4728_s5 + $0x70] sm:$0xff]  }
 0x1a3   :  { %2406 = vmatprep.subr.bf16.mxu0 %v3485_v31  ;;  %v3541_v31 = vld [vmem:[%s4728_s5 + $0x30] sm:$0xff]   ;;  %2998 = vmatprep.subr.bf16.mxu1 %v3540_v12 }
 0x1a4   :  { %2999 = vmatpush3.bf16.msra.mxu1 %v3541_v31 }
 0x1a6   :  { %2407 = vmatpush1.bf16.msra.mxu0 %v3483_v33  ;;  %v3542_v33 = vld [vmem:[%s4728_s5 + $0x78] sm:$0xff]  }
 0x1a7   :  { %2408 = vmatprep.subr.bf16.mxu0 %v3488_v34  ;;  %v3543_v34 = vld [vmem:[%s4728_s5 + $0x38] sm:$0xff]   ;;  %3000 = vmatprep.subr.bf16.mxu1 %v3542_v33 }
 0x1a8   :  { %3001 = vmatpush3.bf16.msra.mxu1 %v3543_v34 }
 0x1aa   :  { %2409 = vmatpush1.bf16.msra.mxu0 %v3486_v35  ;;  %v2038_v35 = vrot.slane %v2029_v24, %v315_v7 }
 0x1ab   :  { %2410 = vmatprep.subr.bf16.mxu0 %v3491_v44 }
 0x1ae   :  { %2411 = vmatpush1.bf16.msra.mxu0 %v3489_v37 }
 0x1af   :  { %2412 = vmatprep.subr.bf16.mxu0 %v3494_v40 }
 0x1b2   :  { %2413 = vmatpush1.bf16.msra.mxu0 %v3492_v41 }
 0x1b3   :  { %2414 = vmatprep.subr.bf16.mxu0 %v3497_v43 }
 0x1b6   :  { %2415 = vmatpush1.bf16.msra.mxu0 %v3495_v47 }
 0x1b7   :  { %2416 = vmatprep.subr.bf16.mxu0 %v3500_v49 }
 0x1ba   :  { %2417 = vmatpush1.bf16.msra.mxu0 %v3498_v50 }
 0x1bb   :  { %2418 = vmatprep.subr.bf16.mxu0 %v3503_v51 }
 0x1be   :  { %2419 = vmatpush1.bf16.msra.mxu0 %v3501_v52 }
 0x1bf   :  { %2420 = vmatprep.subr.bf16.mxu0 %v3506_v53 }
 0x1c2   :  { %2421 = vmatpush1.bf16.msra.mxu0 %v3504_v54 }
 0x1c3   :  { %2422 = vmatprep.subr.bf16.mxu0 %v3509_v56 }
 0x1c6   :  { %2423 = vmatpush1.bf16.msra.mxu0 %v3507_v57 }
 0x1c7   :  { %2424 = vmatprep.subr.bf16.mxu0 %v3512_v58 }
 0x1ca   :  { %2425 = vmatpush1.bf16.msra.mxu0 %v3510_v59 }
 0x1cb   :  { %2426 = vmatprep.subr.bf16.mxu0 %v3515_v60 }
 0x1ce   :  { %2427 = vmatpush1.bf16.msra.mxu0 %v3513_v61 }
 0x1cf   :  { %2428 = vmatprep.subr.bf16.mxu0 %v3518_v62 }
 0x1d2   :  { %2429 = vmatpush1.bf16.msra.mxu0 %v3516_v63 }
 0x1d3   :  { %2430 = vmatprep.subr.bf16.mxu0 %v3521_v0 }
 0x1d6   :  { %2431 = vmatpush1.bf16.msra.mxu0 %v3519_v1 }
 0x1d7   :  { %2432 = vmatprep.subr.bf16.mxu0 %v3524_v2 }
 0x1da   :  { %2433 = vmatpush1.bf16.msra.mxu0 %v3522_v3 }
 0x1db   :  { %2434 = vmatprep.subr.bf16.mxu0 %v3527_v8 }
 0x1de   :  { %2435 = vmatpush1.bf16.msra.mxu0 %v3525_v30 }
 0x215   :  { %v1944_v14 = vpop.f32.mrb[4].mxu1 }
 0x216   :  { %v3016_v16 = vadd.f32 %v1944_v14, %v320_v11  ;;  %v1946_v17 = vpop.f32.mrb[5].mxu1 }
 0x217   :  { %v3017_v18 = vadd.f32 %v1946_v17, %v324_v13  ;;  %v1948_v19 = vpop.f32.mrb[6].mxu1 }
 0x218   :  { %v3018_v20 = vadd.f32 %v1948_v19, %v320_v11  ;;  %v1950_v21 = vpop.f32.mrb[7].mxu1  ;;  %v1955_v23 = vmax.f32 %v3016_v16, 0.0 }
 0x219   :  { %v3019_v22 = vadd.f32 %v1950_v21, %v324_v13  ;;  %v1956_v26 = vmax.f32 %v3017_v18, 0.0 }
 0x21a   :  { %v1959_v25 = vmax.f32 %v3018_v20, 0.0 }
 0x21b   :  { %v1960_v27 = vmax.f32 %v3019_v22, 0.0 }
 0x21c   :  { %v1963_v28 = vpack.c.bf16 %v1959_v25, %v1955_v23 }
 0x21d   :  { %v1964_v29 = vpack.c.bf16 %v1960_v27, %v1956_v26 }
 0x21f   :  { %2436 = vmatprep.mubr.bf16.mxu0 %v1964_v29 }
 0x220   :  { %2437 = vmatmul.mubr.bf16.vlgmr.msra.gmra.mrb[4].mxu0 %v1963_v28 }
 0x2f3   :  { %v2438_v15 = vpop.f32.mrb[4].mxu0 }
 0x2f4   :  { %v3020_v55 = vadd.f32 %v2438_v15, %v2034_v32  ;;  %v2440_v36 = vpop.f32.mrb[5].mxu0 }
 0x2f5   :  { %v3021_v44 = vadd.f32 %v2440_v36, %v2038_v35  ;;  %v2442_v37 = vpop.f32.mrb[6].mxu0 }
 0x2f6   :  { %v3022_v38 = vadd.f32 %v2442_v37, %v2034_v32  ;;  %v2444_v39 = vpop.f32.mrb[7].mxu0  ;;  %v2447_v41 = vmax.f32 %v3020_v55, 0.0 }
 0x2f7   :  { %v3023_v40 = vadd.f32 %v2444_v39, %v2038_v35  ;;  %v2448_v43 = vmax.f32 %v3021_v44, 0.0 }
 0x2f8   :  { %v2449_v42 = vmax.f32 %v3022_v38, 0.0 }
 0x2f9   :  { %v2450_v45 = vmax.f32 %v3023_v40, 0.0 }
 0x2fa   :  { %v2451_v46 = vpack.c.bf16 %v2449_v42, %v2447_v41 }
 0x2fb   :  { %v2452_v47 = vpack.c.bf16 %v2450_v45, %v2448_v43 }
 0x2fd   :  { %2620 = vmatprep.mubr.bf16.mxu1 %v2452_v47 }
 0x2fe   :  { %2621 = vmatmul.mubr.bf16.vlgmr.msra.gmra.mrb[8].mxu1 %v2451_v46 }
 0x3d1   :  { %v3002_v5 = vpop.f32.mrb[8].mxu1 }
 0x3d2   :  { %v3003_v7 = vpop.f32.mrb[9].mxu1 }
 0x3d3   :  { %v3004_v48 = vadd.f32 %v3003_v7, %v3002_v5  ;;  %v3005_v49 = vpop.f32.mrb[10].mxu1 }
 0x3d4   :  { %v3006_v50 = vpop.f32.mrb[11].mxu1 }
 0x3d5   :  { %v2623_v51 = vadd.f32 %v3004_v48, %v2967_v4  ;;  %v3007_v52 = vadd.f32 %v3006_v50, %v3005_v49 }
 0x3d7   :  { %v2984_v53 = vmul.f32 -1.442695, %v2623_v51  ;;  %v2626_v54 = vadd.f32 %v3007_v52, %v2967_v4 }
 0x3d9   :  { %3544 = vpow2.f32 %v2984_v53  ;;  %v2985_v56 = vmul.f32 -1.442695, %v2626_v54 }
 0x3db   :  { %3546 = vpow2.f32 %v2985_v56 }
 0x3e3   :  { %v3545_v57 = vpop.eup %3544 }
 0x3e4   :  { %v2635_v58 = vadd.f32 1.0, %v3545_v57 }
 0x3e5   :  { %v3547_v59 = vpop.eup %3546 }
 0x3e6   :  { %3548 = vrcp.f32 %v2635_v58  ;;  %v2636_v60 = vadd.f32 1.0, %v3547_v59 }
 0x3e8   :  { %3550 = vrcp.f32 %v2636_v60 }
 0x3f0   :  { %v3549_v61 = vpop.eup %3548 }
 0x3f1   :  { %2641 = vst [vmem:[%s4731_s7] sm:$0xff] %v3549_v61 }
 0x3f2   :  { %v3551_v62 = vpop.eup %3550 }
 0x3f3   :  { %2642 = vst [vmem:[%s4731_s7 + $0x8] sm:$0xff] %v3551_v62 }

</bundles_post_ra>
